<compile_context>
chip_gen: v7x
topology: tpu7x:2x2x1
jax: 0.10.0
libtpu: 0.0.40
codegen_flags: <defaults>
</compile_context>

<pallas_src>
import functools

import jax
import jax.numpy as jnp
from jax.experimental import pallas as pl
from jax.experimental.pallas import tpu as pltpu


_VMEM_LIMIT = 32 * 1024 * 1024  # conservative; fits v5e/v6e/v7x scoped VMEM


def _round_up(x, m):
    return ((x + m - 1) // m) * m


# ----------------------------------------------------------------------------
# Pallas kernels: fused matmul (+bias, +GELU)
# ----------------------------------------------------------------------------
def _matmul_single_k_kernel(a_ref, b_ref, bias_ref, o_ref, *, activation):
    """Single K step: dot + bias (+ activation) straight to output block."""
    y = jnp.dot(a_ref[...], b_ref[...], preferred_element_type=jnp.float32)
    y = y + bias_ref[...]
    if activation == "gelu":
        y = jax.nn.gelu(y, approximate=True)
    o_ref[...] = y.astype(o_ref.dtype)


def _matmul_multi_k_kernel(a_ref, b_ref, bias_ref, o_ref, acc_ref, *,
                           activation):
    """General path (K > 512 only): f32 VMEM accumulator, fused epilogue."""
    k = pl.program_id(2)

    @pl.when(k == 0)
    def _():
        acc_ref[...] = jnp.zeros_like(acc_ref)

    acc_ref[...] += jnp.dot(a_ref[...], b_ref[...],
                            preferred_element_type=jnp.float32)

    @pl.when(k == pl.num_programs(2) - 1)
    def _():
        y = acc_ref[...] + bias_ref[...]
        if activation == "gelu":
            y = jax.nn.gelu(y, approximate=True)
        o_ref[...] = y.astype(o_ref.dtype)


def pallas_matmul(a, b, bias=None, *, activation=None, out_dtype=jnp.float32):
    """(M,K) @ (K,N) [+ bias][+ gelu] -> (M,N).  bf16 MXU, f32 accumulate."""
    M, K = a.shape
    K2, N = b.shape
    assert K == K2
    a = a.astype(jnp.bfloat16)
    b = b.astype(jnp.bfloat16)

    tm = min(512, _round_up(M, 8))
    tn = min(768, _round_up(N, 128))
    tk = K if K <= 512 else 512          # full-K block => single K step
    Mp, Kp, Np = _round_up(M, tm), _round_up(K, tk), _round_up(N, tn)

    bias_vec = (jnp.zeros((N,), jnp.float32) if bias is None
                else bias.astype(jnp.float32))
    bias_p = bias_vec if Np == N else jnp.pad(bias_vec, (0, Np - N))
    bias_p = bias_p.reshape(1, Np)
    a_p = a if (Mp == M and Kp == K) else jnp.pad(a, ((0, Mp - M), (0, Kp - K)))
    b_p = b if (Kp == K and Np == N) else jnp.pad(b, ((0, Kp - K), (0, Np - N)))

    if Kp == tk:
        # Single K step: no accumulator scratch, 2-D parallel grid.
        out = pl.pallas_call(
            functools.partial(_matmul_single_k_kernel, activation=activation),
            out_shape=jax.ShapeDtypeStruct((Mp, Np), out_dtype),
            grid=(Mp // tm, Np // tn),
            in_specs=[pl.BlockSpec((tm, tk), lambda i, j: (i, 0)),
                      pl.BlockSpec((tk, tn), lambda i, j: (0, j)),
                      pl.BlockSpec((1, tn), lambda i, j: (0, j))],
            out_specs=pl.BlockSpec((tm, tn), lambda i, j: (i, j)),
            compiler_params=pltpu.CompilerParams(
                dimension_semantics=("parallel", "parallel"),
                vmem_limit_bytes=_VMEM_LIMIT),
        )(a_p, b_p, bias_p)
    else:
        out = pl.pallas_call(
            functools.partial(_matmul_multi_k_kernel, activation=activation),
            out_shape=jax.ShapeDtypeStruct((Mp, Np), out_dtype),
            grid=(Mp // tm, Np // tn, Kp // tk),
            in_specs=[pl.BlockSpec((tm, tk), lambda i, j, k: (i, k)),
                      pl.BlockSpec((tk, tn), lambda i, j, k: (k, j)),
                      pl.BlockSpec((1, tn), lambda i, j, k: (0, j))],
            out_specs=pl.BlockSpec((tm, tn), lambda i, j, k: (i, j)),
            scratch_shapes=[pltpu.VMEM((tm, tn), jnp.float32)],
            compiler_params=pltpu.CompilerParams(
                dimension_semantics=("parallel", "parallel", "arbitrary"),
                vmem_limit_bytes=_VMEM_LIMIT),
        )(a_p, b_p, bias_p)

    if Mp != M or Np != N:
        out = out[:M, :N]
    return out


# ----------------------------------------------------------------------------
# Pallas kernel: one-pass attention over the fused qkv tensor
# ----------------------------------------------------------------------------
def _attn_onepass_kernel(q_ref, k_ref, v_ref, o_ref, *, scale):
    """Full-key tile, single-pass softmax (no online rescale needed)."""
    q = q_ref[...]                       # (tq, dh)  bf16
    k = k_ref[...]                       # (n_k, dh) bf16
    v = v_ref[...]                       # (n_k, dh) bf16
    # Contract last dims directly (no explicit K transpose -> no XLU copy).
    s = jax.lax.dot_general(q, k, (((1,), (1,)), ((), ())),
                            preferred_element_type=jnp.float32) * scale
    m = s.max(axis=-1, keepdims=True)
    p = jnp.exp(s - m)
    l = p.sum(axis=-1, keepdims=True)
    o = jnp.dot(p.astype(v.dtype), v, preferred_element_type=jnp.float32)
    o_ref[...] = (o * pl.reciprocal(l, approx=True)).astype(o_ref.dtype)


def pallas_attention_fused_qkv(qkv, heads, dim_head, scale, *, tq=256):
    """qkv: (B, n, 3*heads*dim_head) bf16 -> (B, n, heads*dim_head) bf16.

    Consumes the fused Q|K|V projection directly; each grid step selects one
    (batch, head, q-tile) via last-dim block indexing (block width = dim_head),
    so no head split / transpose relayouts are ever materialized.
    """
    B, n, _ = qkv.shape
    tq_ = n
    for t in (tq, 128, 64, 32, 16, 8):
        if n % t == 0:
            tq_ = t
            break
    # TODO(synk): for sequence lengths that are not a multiple of 8 (or too
    # long for a full-key VMEM tile) this needs q/k padding + key masking.

    return pl.pallas_call(
        functools.partial(_attn_onepass_kernel, scale=scale),
        out_shape=jax.ShapeDtypeStruct((B, n, heads * dim_head), jnp.bfloat16),
        grid=(B, heads, n // tq_),
        in_specs=[
            # q: head h lives in columns [h*dh, (h+1)*dh)
            pl.BlockSpec((None, tq_, dim_head), lambda b, h, qi: (b, qi, h)),
            # k: columns [(heads+h)*dh, ...), full key length
            pl.BlockSpec((None, n, dim_head),
                         lambda b, h, qi: (b, 0, heads + h)),
            # v: columns [(2*heads+h)*dh, ...), full key length
            pl.BlockSpec((None, n, dim_head),
                         lambda b, h, qi: (b, 0, 2 * heads + h)),
        ],
        out_specs=pl.BlockSpec((None, tq_, dim_head),
                               lambda b, h, qi: (b, qi, h)),
        compiler_params=pltpu.CompilerParams(
            dimension_semantics=("parallel", "parallel", "parallel"),
            vmem_limit_bytes=_VMEM_LIMIT),
    )(qkv, qkv, qkv)


# ----------------------------------------------------------------------------
# Glue ops (plain JAX)
# ----------------------------------------------------------------------------
def linear(x, lp, *, activation=None, out_dtype=jnp.float32):
    """y = x @ W + b.  W stored pre-transposed as (in, out), bf16."""
    shp = x.shape
    y = pallas_matmul(x.reshape(-1, shp[-1]), lp['w'], bias=lp['b'],
                      activation=activation, out_dtype=out_dtype)
    return y.reshape(*shp[:-1], lp['w'].shape[1])


def layernorm(x, lnp, eps=1e-5):
    x = x.astype(jnp.float32)
    mean = x.mean(-1, keepdims=True)
    var = x.var(-1, keepdims=True)
    return (x - mean) / jnp.sqrt(var + eps) * lnp['g'] + lnp['b']


def posemb_sincos_3d(d, w, h, dim, temperature=10000.0):
    z, y, x = jnp.meshgrid(jnp.arange(d), jnp.arange(w), jnp.arange(h),
                           indexing='ij')
    fourier_dim = dim // 6
    omega = jnp.arange(fourier_dim) / (fourier_dim - 1)
    omega = 1.0 / (temperature ** omega)
    z = z.flatten()[:, None] * omega[None, :]
    y = y.flatten()[:, None] * omega[None, :]
    x = x.flatten()[:, None] * omega[None, :]
    pe = jnp.concatenate([jnp.sin(x), jnp.cos(x),
                          jnp.sin(y), jnp.cos(y),
                          jnp.sin(z), jnp.cos(z)], axis=1)
    pe = jnp.pad(pe, ((0, 0), (0, dim - fourier_dim * 6)))
    return pe.astype(jnp.float32)


# ----------------------------------------------------------------------------
# Model blocks
# ----------------------------------------------------------------------------
def attention_forward(ap, x, heads, dim_head):
    # Note: the PyTorch Attention defines self.norm but never applies it.
    b, n, _ = x.shape
    inner = heads * dim_head
    scale = dim_head ** (-0.5)
    # Fused Q|K|V projection, emitted in bf16 (consumed in bf16 by the MXU).
    qkv = linear(x, ap['qkv'], out_dtype=jnp.bfloat16)      # (b, n, 3*inner)

    if dim_head % 128 == 0 and n % 8 == 0:
        out = pallas_attention_fused_qkv(qkv, heads, dim_head, scale)
    else:
        # TODO(synk): lane-dense fused-qkv kernel requires dim_head % 128 == 0;
        # plain XLA attention fallback for other head sizes.
        qkv4 = qkv.astype(jnp.float32).reshape(b, n, 3, heads, dim_head)
        q, k, v = (qkv4[:, :, i].transpose(0, 2, 1, 3) for i in range(3))
        s = jnp.einsum('bhqd,bhkd->bhqk', q, k) * scale
        a = jax.nn.softmax(s, axis=-1)
        out = jnp.einsum('bhqk,bhkd->bhqd', a, v).transpose(0, 2, 1, 3)
        out = out.reshape(b, n, inner)

    return linear(out, ap['o'], out_dtype=jnp.float32)


def feedforward_forward(fp, x):
    h = layernorm(x, fp['ln'])
    # GELU fused into the l1 epilogue (tanh approx); bf16 out for the l2 GEMM.
    h = linear(h, fp['l1'], activation="gelu", out_dtype=jnp.bfloat16)
    return linear(h, fp['l2'], out_dtype=jnp.float32)


def encoder_forward(p, img, cfg):
    ps = cfg['patch_size']
    dim = cfg['dim']
    b, c, D, W, H = img.shape
    d, w, h = D // ps, W // ps, H // ps
    # Rearrange('b c (d p1) (w p2) (h p3) -> b d w h (p1 p2 p3 c)')
    x = img.reshape(b, c, d, ps, w, ps, h, ps)
    x = x.transpose(0, 2, 4, 6, 3, 5, 7, 1).reshape(b, d, w, h, ps * ps * ps * c)
    x = layernorm(x, p['ln1'])
    x = linear(x, p['patch'], out_dtype=jnp.float32)
    x = layernorm(x, p['ln2'])
    pe = posemb_sincos_3d(d, w, h, dim)
    x = x.reshape(b, d * w * h, dim) + pe[None]
    for layer in p['layers']:
        x = attention_forward(layer['attn'], x, cfg['heads'], cfg['dim_head']) + x
        x = feedforward_forward(layer['ff'], x) + x
    x = layernorm(x, p['norm'])
    return x.mean(axis=1)


# ----------------------------------------------------------------------------
# Deterministic parameter init (weights pre-transposed to (in, out), bf16)
# ----------------------------------------------------------------------------
def init_params(key, cfg):
    ps, c = cfg['patch_size'], cfg['channels']
    dim, heads, dh, mlp = cfg['dim'], cfg['heads'], cfg['dim_head'], cfg['mlp_dim']
    inner = heads * dh
    patch_dim = c * ps ** 3
    keys = iter(jax.random.split(key, 64))

    def lin(din, dout, bias=True):
        w = (0.1 * jax.random.normal(next(keys), (din, dout), jnp.float32)
             ).astype(jnp.bfloat16)
        b = (0.05 * jax.random.normal(next(keys), (dout,), jnp.float32)
             if bias else None)
        return {'w': w, 'b': b}

    def ln(d):
        return {'g': jnp.ones((d,), jnp.float32),
                'b': jnp.zeros((d,), jnp.float32)}

    layers = []
    for _ in range(cfg['depth']):
        layers.append({
            # to_q / to_k / to_v concatenated along the output dim (equivalent).
            'attn': {'qkv': lin(dim, 3 * inner),
                     'o': lin(inner, dim, bias=False)},
            'ff': {'ln': ln(dim), 'l1': lin(dim, mlp), 'l2': lin(mlp, dim)},
        })
    return {'ln1': ln(patch_dim), 'patch': lin(patch_dim, dim), 'ln2': ln(dim),
            'layers': layers, 'norm': ln(dim)}


# ----------------------------------------------------------------------------
if __name__ == "__main__":
    CFG = dict(
        image_size=16, patch_size=2, channels=4,
        dim=128, depth=2, heads=2, dim_head=128, mlp_dim=256,
        batch=2,
    )

    key = jax.random.PRNGKey(0)
    k_params, k_img = jax.random.split(key)
    params = init_params(k_params, CFG)

    img = jax.random.normal(
        k_img,
        (CFG['batch'], CFG['channels'],
         CFG['image_size'], CFG['image_size'], CFG['image_size']),
        jnp.float32)

    fwd = jax.jit(lambda p, i: encoder_forward(p, i, CFG))
    out = fwd(params, img)
    out = jax.block_until_ready(out)

    assert out.shape == (CFG['batch'], CFG['dim']), out.shape
    assert bool(jnp.all(jnp.isfinite(out)))
    print("KERNEL_OK")
</pallas_src>

<mosaic_0001>
module attributes {stable_mosaic.version = 11 : i64} {
  func.func @_matmul_single_k_kernel(%arg0: i32, %arg1: i32, %arg2: memref<512x32xbf16, #tpu.memory_space<vmem>>, %arg3: memref<32x128xbf16, #tpu.memory_space<vmem>>, %arg4: memref<1x128xf32, #tpu.memory_space<vmem>>, %arg5: memref<512x128xf32, #tpu.memory_space<vmem>>) attributes {dimension_semantics = [#tpu.dimension_semantics<parallel>, #tpu.dimension_semantics<parallel>], iteration_bounds = array<i64: 2, 1>, scalar_prefetch = 0 : i64, scratch_operands = 0 : i64, tpu.core_type = #tpu.core_type<tc>, window_params = [{transform_indices = @transform_0, window_bounds = array<i64: 512, 32>}, {transform_indices = @transform_1, window_bounds = array<i64: 32, 128>}, {transform_indices = @transform_2, window_bounds = array<i64: 1, 128>}, {transform_indices = @transform_3, window_bounds = array<i64: 512, 128>}]} {
    %c0 = arith.constant 0 : index
    %c0_0 = arith.constant 0 : index
    %0 = vector.load %arg2[%c0, %c0_0] : memref<512x32xbf16, #tpu.memory_space<vmem>>, vector<512x32xbf16>
    %c0_1 = arith.constant 0 : index
    %c0_2 = arith.constant 0 : index
    %1 = vector.load %arg3[%c0_1, %c0_2] : memref<32x128xbf16, #tpu.memory_space<vmem>>, vector<32x128xbf16>
    %cst = arith.constant dense<0.000000e+00> : vector<512x128xf32>
    %2 = tpu.matmul %0, %1, %cst {dimension_numbers = #tpu.dot_dimension_numbers<[1], [0], [0], [1], [0, 0, 1, 1], [], []>} : vector<512x32xbf16>, vector<32x128xbf16>, vector<512x128xf32> -> vector<512x128xf32>
    %c0_3 = arith.constant 0 : index
    %c0_4 = arith.constant 0 : index
    %3 = vector.load %arg4[%c0_3, %c0_4] : memref<1x128xf32, #tpu.memory_space<vmem>>, vector<1x128xf32>
    %4 = vector.broadcast %3 : vector<1x128xf32> to vector<512x128xf32>
    %5 = arith.addf %2, %4 : vector<512x128xf32>
    %c0_5 = arith.constant 0 : index
    %c0_6 = arith.constant 0 : index
    %6 = vector.load %arg5[%c0_5, %c0_6] : memref<512x128xf32, #tpu.memory_space<vmem>>, vector<512x128xf32>
    tpu.vector_store %arg5[%c0_5, %c0_6], %5 {strides = array<i32>} : memref<512x128xf32, #tpu.memory_space<vmem>>, vector<512x128xf32>,
    return
  }
  func.func @transform_0(%arg0: i32, %arg1: i32) -> (i32, i32) {
    %c0_i32 = arith.constant 0 : i32
    %c0_i32_0 = arith.constant 0 : i32
    return %arg0, %c0_i32 : i32, i32
  }
  func.func @transform_1(%arg0: i32, %arg1: i32) -> (i32, i32) {
    %c0_i32 = arith.constant 0 : i32
    %c0_i32_0 = arith.constant 0 : i32
    return %c0_i32, %arg1 : i32, i32
  }
  func.func @transform_2(%arg0: i32, %arg1: i32) -> (i32, i32) {
    %c0_i32 = arith.constant 0 : i32
    %c0_i32_0 = arith.constant 0 : i32
    return %c0_i32, %arg1 : i32, i32
  }
  func.func @transform_3(%arg0: i32, %arg1: i32) -> (i32, i32) {
    %c0_i32 = arith.constant 0 : i32
    return %arg0, %arg1 : i32, i32
  }
}

module attributes {stable_mosaic.version = 11 : i64} {
  func.func @_matmul_single_k_kernel(%arg0: i32, %arg1: i32, %arg2: memref<512x128xbf16, #tpu.memory_space<vmem>>, %arg3: memref<128x768xbf16, #tpu.memory_space<vmem>>, %arg4: memref<1x768xf32, #tpu.memory_space<vmem>>, %arg5: memref<512x768xbf16, #tpu.memory_space<vmem>>) attributes {dimension_semantics = [#tpu.dimension_semantics<parallel>, #tpu.dimension_semantics<parallel>], iteration_bounds = array<i64: 2, 1>, scalar_prefetch = 0 : i64, scratch_operands = 0 : i64, tpu.core_type = #tpu.core_type<tc>, window_params = [{transform_indices = @transform_0, window_bounds = array<i64: 512, 128>}, {transform_indices = @transform_1, window_bounds = array<i64: 128, 768>}, {transform_indices = @transform_2, window_bounds = array<i64: 1, 768>}, {transform_indices = @transform_3, window_bounds = array<i64: 512, 768>}]} {
    %c0 = arith.constant 0 : index
    %c0_0 = arith.constant 0 : index
    %0 = vector.load %arg2[%c0, %c0_0] : memref<512x128xbf16, #tpu.memory_space<vmem>>, vector<512x128xbf16>
    %c0_1 = arith.constant 0 : index
    %c0_2 = arith.constant 0 : index
    %1 = vector.load %arg3[%c0_1, %c0_2] : memref<128x768xbf16, #tpu.memory_space<vmem>>, vector<128x768xbf16>
    %cst = arith.constant dense<0.000000e+00> : vector<512x768xf32>
    %2 = tpu.matmul %0, %1, %cst {dimension_numbers = #tpu.dot_dimension_numbers<[1], [0], [0], [1], [0, 0, 1, 1], [], []>} : vector<512x128xbf16>, vector<128x768xbf16>, vector<512x768xf32> -> vector<512x768xf32>
    %c0_3 = arith.constant 0 : index
    %c0_4 = arith.constant 0 : index
    %3 = vector.load %arg4[%c0_3, %c0_4] : memref<1x768xf32, #tpu.memory_space<vmem>>, vector<1x768xf32>
    %4 = vector.broadcast %3 : vector<1x768xf32> to vector<512x768xf32>
    %5 = arith.addf %2, %4 : vector<512x768xf32>
    %6 = arith.truncf %5 : vector<512x768xf32> to vector<512x768xbf16>
    %c0_5 = arith.constant 0 : index
    %c0_6 = arith.constant 0 : index
    %7 = vector.load %arg5[%c0_5, %c0_6] : memref<512x768xbf16, #tpu.memory_space<vmem>>, vector<512x768xbf16>
    tpu.vector_store %arg5[%c0_5, %c0_6], %6 {strides = array<i32>} : memref<512x768xbf16, #tpu.memory_space<vmem>>, vector<512x768xbf16>,
    return
  }
  func.func @transform_0(%arg0: i32, %arg1: i32) -> (i32, i32) {
    %c0_i32 = arith.constant 0 : i32
    %c0_i32_0 = arith.constant 0 : i32
    return %arg0, %c0_i32 : i32, i32
  }
  func.func @transform_1(%arg0: i32, %arg1: i32) -> (i32, i32) {
    %c0_i32 = arith.constant 0 : i32
    %c0_i32_0 = arith.constant 0 : i32
    return %c0_i32, %arg1 : i32, i32
  }
  func.func @transform_2(%arg0: i32, %arg1: i32) -> (i32, i32) {
    %c0_i32 = arith.constant 0 : i32
    %c0_i32_0 = arith.constant 0 : i32
    return %c0_i32, %arg1 : i32, i32
  }
  func.func @transform_3(%arg0: i32, %arg1: i32) -> (i32, i32) {
    %c0_i32 = arith.constant 0 : i32
    return %arg0, %arg1 : i32, i32
  }
}

module attributes {stable_mosaic.version = 11 : i64} {
  func.func @_attn_onepass_kernel(%arg0: i32, %arg1: i32, %arg2: i32, %arg3: memref<1x256x128xbf16, #tpu.memory_space<vmem>>, %arg4: memref<1x512x128xbf16, #tpu.memory_space<vmem>>, %arg5: memref<1x512x128xbf16, #tpu.memory_space<vmem>>, %arg6: memref<1x256x128xbf16, #tpu.memory_space<vmem>>) attributes {dimension_semantics = [#tpu.dimension_semantics<parallel>, #tpu.dimension_semantics<parallel>, #tpu.dimension_semantics<parallel>], iteration_bounds = array<i64: 2, 2, 2>, scalar_prefetch = 0 : i64, scratch_operands = 0 : i64, tpu.core_type = #tpu.core_type<tc>, window_params = [{transform_indices = @transform_0, window_bounds = array<i64: 1, 256, 128>}, {transform_indices = @transform_1, window_bounds = array<i64: 1, 512, 128>}, {transform_indices = @transform_2, window_bounds = array<i64: 1, 512, 128>}, {transform_indices = @transform_3, window_bounds = array<i64: 1, 256, 128>}]} {
    %c0 = arith.constant 0 : index
    %c0_0 = arith.constant 0 : index
    %c0_1 = arith.constant 0 : index
    %0 = vector.load %arg3[%c0, %c0_0, %c0_1] : memref<1x256x128xbf16, #tpu.memory_space<vmem>>, vector<1x256x128xbf16>
    %1 = vector.shape_cast %0 : vector<1x256x128xbf16> to vector<256x128xbf16>
    %c0_2 = arith.constant 0 : index
    %c0_3 = arith.constant 0 : index
    %c0_4 = arith.constant 0 : index
    %2 = vector.load %arg4[%c0_2, %c0_3, %c0_4] : memref<1x512x128xbf16, #tpu.memory_space<vmem>>, vector<1x512x128xbf16>
    %3 = vector.shape_cast %2 : vector<1x512x128xbf16> to vector<512x128xbf16>
    %c0_5 = arith.constant 0 : index
    %c0_6 = arith.constant 0 : index
    %c0_7 = arith.constant 0 : index
    %4 = vector.load %arg5[%c0_5, %c0_6, %c0_7] : memref<1x512x128xbf16, #tpu.memory_space<vmem>>, vector<1x512x128xbf16>
    %5 = vector.shape_cast %4 : vector<1x512x128xbf16> to vector<512x128xbf16>
    %cst = arith.constant dense<0.000000e+00> : vector<256x512xf32>
    %6 = tpu.matmul %1, %3, %cst {dimension_numbers = #tpu.dot_dimension_numbers<[1], [1], [0], [0], [0, 0, 1, 0], [], []>} : vector<256x128xbf16>, vector<512x128xbf16>, vector<256x512xf32> -> vector<256x512xf32>
    %cst_8 = arith.constant 0.0883883461 : f32
    %7 = vector.broadcast %cst_8 : f32 to vector<256x512xf32>
    %8 = arith.mulf %6, %7 : vector<256x512xf32>
    %cst_9 = arith.constant dense<0xFF800000> : vector<256xf32>
    %9 = vector.multi_reduction <maximumf>, %8, %cst_9 [1] : vector<256x512xf32> to vector<256xf32>
    %10 = vector.shape_cast %9 : vector<256xf32> to vector<256x1xf32>
    %11 = vector.broadcast %10 : vector<256x1xf32> to vector<256x512xf32>
    %12 = arith.subf %8, %11 : vector<256x512xf32>
    %13 = math.exp %12 : vector<256x512xf32>
    %cst_10 = arith.constant dense<0.000000e+00> : vector<256xf32>
    %14 = vector.multi_reduction <add>, %13, %cst_10 [1] : vector<256x512xf32> to vector<256xf32>
    %15 = vector.shape_cast %14 : vector<256xf32> to vector<256x1xf32>
    %16 = arith.truncf %13 : vector<256x512xf32> to vector<256x512xbf16>
    %cst_11 = arith.constant dense<0.000000e+00> : vector<256x128xf32>
    %17 = tpu.matmul %16, %5, %cst_11 {dimension_numbers = #tpu.dot_dimension_numbers<[1], [0], [0], [1], [0, 0, 1, 1], [], []>} : vector<256x512xbf16>, vector<512x128xbf16>, vector<256x128xf32> -> vector<256x128xf32>
    %18 = tpu.reciprocal %15 {approx = true} : vector<256x1xf32> -> vector<256x1xf32>
    %19 = vector.broadcast %18 : vector<256x1xf32> to vector<256x128xf32>
    %20 = arith.mulf %17, %19 : vector<256x128xf32>
    %21 = arith.truncf %20 : vector<256x128xf32> to vector<256x128xbf16>
    %c0_12 = arith.constant 0 : index
    %c0_13 = arith.constant 0 : index
    %c0_14 = arith.constant 0 : index
    %22 = vector.load %arg6[%c0_12, %c0_13, %c0_14] : memref<1x256x128xbf16, #tpu.memory_space<vmem>>, vector<1x256x128xbf16>
    %23 = vector.shape_cast %22 : vector<1x256x128xbf16> to vector<256x128xbf16>
    %24 = vector.shape_cast %21 : vector<256x128xbf16> to vector<1x256x128xbf16>
    tpu.vector_store %arg6[%c0_12, %c0_13, %c0_14], %24 {strides = array<i32>} : memref<1x256x128xbf16, #tpu.memory_space<vmem>>, vector<1x256x128xbf16>,
    return
  }
  func.func @transform_0(%arg0: i32, %arg1: i32, %arg2: i32) -> (i32, i32, i32) {
    %c0_i32 = arith.constant 0 : i32
    return %arg0, %arg2, %arg1 : i32, i32, i32
  }
  func.func @transform_1(%arg0: i32, %arg1: i32, %arg2: i32) -> (i32, i32, i32) {
    %c2_i32 = arith.constant 2 : i32
    %0 = arith.addi %c2_i32, %arg1 : i32
    %c0_i32 = arith.constant 0 : i32
    %c0_i32_0 = arith.constant 0 : i32
    return %arg0, %c0_i32, %0 : i32, i32, i32
  }
  func.func @transform_2(%arg0: i32, %arg1: i32, %arg2: i32) -> (i32, i32, i32) {
    %c4_i32 = arith.constant 4 : i32
    %0 = arith.addi %c4_i32, %arg1 : i32
    %c0_i32 = arith.constant 0 : i32
    %c0_i32_0 = arith.constant 0 : i32
    return %arg0, %c0_i32, %0 : i32, i32, i32
  }
  func.func @transform_3(%arg0: i32, %arg1: i32, %arg2: i32) -> (i32, i32, i32) {
    %c0_i32 = arith.constant 0 : i32
    return %arg0, %arg2, %arg1 : i32, i32, i32
  }
}

module attributes {stable_mosaic.version = 11 : i64} {
  func.func @_matmul_single_k_kernel(%arg0: i32, %arg1: i32, %arg2: memref<512x256xbf16, #tpu.memory_space<vmem>>, %arg3: memref<256x128xbf16, #tpu.memory_space<vmem>>, %arg4: memref<1x128xf32, #tpu.memory_space<vmem>>, %arg5: memref<512x128xf32, #tpu.memory_space<vmem>>) attributes {dimension_semantics = [#tpu.dimension_semantics<parallel>, #tpu.dimension_semantics<parallel>], iteration_bounds = array<i64: 2, 1>, scalar_prefetch = 0 : i64, scratch_operands = 0 : i64, tpu.core_type = #tpu.core_type<tc>, window_params = [{transform_indices = @transform_0, window_bounds = array<i64: 512, 256>}, {transform_indices = @transform_1, window_bounds = array<i64: 256, 128>}, {transform_indices = @transform_2, window_bounds = array<i64: 1, 128>}, {transform_indices = @transform_3, window_bounds = array<i64: 512, 128>}]} {
    %c0 = arith.constant 0 : index
    %c0_0 = arith.constant 0 : index
    %0 = vector.load %arg2[%c0, %c0_0] : memref<512x256xbf16, #tpu.memory_space<vmem>>, vector<512x256xbf16>
    %c0_1 = arith.constant 0 : index
    %c0_2 = arith.constant 0 : index
    %1 = vector.load %arg3[%c0_1, %c0_2] : memref<256x128xbf16, #tpu.memory_space<vmem>>, vector<256x128xbf16>
    %cst = arith.constant dense<0.000000e+00> : vector<512x128xf32>
    %2 = tpu.matmul %0, %1, %cst {dimension_numbers = #tpu.dot_dimension_numbers<[1], [0], [0], [1], [0, 0, 1, 1], [], []>} : vector<512x256xbf16>, vector<256x128xbf16>, vector<512x128xf32> -> vector<512x128xf32>
    %c0_3 = arith.constant 0 : index
    %c0_4 = arith.constant 0 : index
    %3 = vector.load %arg4[%c0_3, %c0_4] : memref<1x128xf32, #tpu.memory_space<vmem>>, vector<1x128xf32>
    %4 = vector.broadcast %3 : vector<1x128xf32> to vector<512x128xf32>
    %5 = arith.addf %2, %4 : vector<512x128xf32>
    %c0_5 = arith.constant 0 : index
    %c0_6 = arith.constant 0 : index
    %6 = vector.load %arg5[%c0_5, %c0_6] : memref<512x128xf32, #tpu.memory_space<vmem>>, vector<512x128xf32>
    tpu.vector_store %arg5[%c0_5, %c0_6], %5 {strides = array<i32>} : memref<512x128xf32, #tpu.memory_space<vmem>>, vector<512x128xf32>,
    return
  }
  func.func @transform_0(%arg0: i32, %arg1: i32) -> (i32, i32) {
    %c0_i32 = arith.constant 0 : i32
    %c0_i32_0 = arith.constant 0 : i32
    return %arg0, %c0_i32 : i32, i32
  }
  func.func @transform_1(%arg0: i32, %arg1: i32) -> (i32, i32) {
    %c0_i32 = arith.constant 0 : i32
    %c0_i32_0 = arith.constant 0 : i32
    return %c0_i32, %arg1 : i32, i32
  }
  func.func @transform_2(%arg0: i32, %arg1: i32) -> (i32, i32) {
    %c0_i32 = arith.constant 0 : i32
    %c0_i32_0 = arith.constant 0 : i32
    return %c0_i32, %arg1 : i32, i32
  }
  func.func @transform_3(%arg0: i32, %arg1: i32) -> (i32, i32) {
    %c0_i32 = arith.constant 0 : i32
    return %arg0, %arg1 : i32, i32
  }
}

module attributes {stable_mosaic.version = 11 : i64} {
  func.func @_matmul_single_k_kernel(%arg0: i32, %arg1: i32, %arg2: memref<512x128xbf16, #tpu.memory_space<vmem>>, %arg3: memref<128x256xbf16, #tpu.memory_space<vmem>>, %arg4: memref<1x256xf32, #tpu.memory_space<vmem>>, %arg5: memref<512x256xbf16, #tpu.memory_space<vmem>>) attributes {dimension_semantics = [#tpu.dimension_semantics<parallel>, #tpu.dimension_semantics<parallel>], iteration_bounds = array<i64: 2, 1>, scalar_prefetch = 0 : i64, scratch_operands = 0 : i64, tpu.core_type = #tpu.core_type<tc>, window_params = [{transform_indices = @transform_0, window_bounds = array<i64: 512, 128>}, {transform_indices = @transform_1, window_bounds = array<i64: 128, 256>}, {transform_indices = @transform_2, window_bounds = array<i64: 1, 256>}, {transform_indices = @transform_3, window_bounds = array<i64: 512, 256>}]} {
    %c0 = arith.constant 0 : index
    %c0_0 = arith.constant 0 : index
    %0 = vector.load %arg2[%c0, %c0_0] : memref<512x128xbf16, #tpu.memory_space<vmem>>, vector<512x128xbf16>
    %c0_1 = arith.constant 0 : index
    %c0_2 = arith.constant 0 : index
    %1 = vector.load %arg3[%c0_1, %c0_2] : memref<128x256xbf16, #tpu.memory_space<vmem>>, vector<128x256xbf16>
    %cst = arith.constant dense<0.000000e+00> : vector<512x256xf32>
    %2 = tpu.matmul %0, %1, %cst {dimension_numbers = #tpu.dot_dimension_numbers<[1], [0], [0], [1], [0, 0, 1, 1], [], []>} : vector<512x128xbf16>, vector<128x256xbf16>, vector<512x256xf32> -> vector<512x256xf32>
    %c0_3 = arith.constant 0 : index
    %c0_4 = arith.constant 0 : index
    %3 = vector.load %arg4[%c0_3, %c0_4] : memref<1x256xf32, #tpu.memory_space<vmem>>, vector<1x256xf32>
    %4 = vector.broadcast %3 : vector<1x256xf32> to vector<512x256xf32>
    %5 = arith.addf %2, %4 : vector<512x256xf32>
    %6 = arith.mulf %5, %5 : vector<512x256xf32>
    %7 = arith.mulf %5, %6 : vector<512x256xf32>
    %cst_5 = arith.constant 4.471500e-02 : f32
    %8 = vector.broadcast %cst_5 : f32 to vector<512x256xf32>
    %9 = arith.mulf %8, %7 : vector<512x256xf32>
    %10 = arith.addf %5, %9 : vector<512x256xf32>
    %cst_6 = arith.constant 0.797884583 : f32
    %11 = vector.broadcast %cst_6 : f32 to vector<512x256xf32>
    %12 = arith.mulf %11, %10 : vector<512x256xf32>
    %13 = math.tanh %12 : vector<512x256xf32>
    %cst_7 = arith.constant 1.000000e+00 : f32
    %14 = vector.broadcast %cst_7 : f32 to vector<512x256xf32>
    %15 = arith.addf %14, %13 : vector<512x256xf32>
    %cst_8 = arith.constant 5.000000e-01 : f32
    %16 = vector.broadcast %cst_8 : f32 to vector<512x256xf32>
    %17 = arith.mulf %16, %15 : vector<512x256xf32>
    %18 = arith.mulf %5, %17 : vector<512x256xf32>
    %19 = arith.truncf %18 : vector<512x256xf32> to vector<512x256xbf16>
    %c0_9 = arith.constant 0 : index
    %c0_10 = arith.constant 0 : index
    %20 = vector.load %arg5[%c0_9, %c0_10] : memref<512x256xbf16, #tpu.memory_space<vmem>>, vector<512x256xbf16>
    tpu.vector_store %arg5[%c0_9, %c0_10], %19 {strides = array<i32>} : memref<512x256xbf16, #tpu.memory_space<vmem>>, vector<512x256xbf16>,
    return
  }
  func.func @transform_0(%arg0: i32, %arg1: i32) -> (i32, i32) {
    %c0_i32 = arith.constant 0 : i32
    %c0_i32_0 = arith.constant 0 : i32
    return %arg0, %c0_i32 : i32, i32
  }
  func.func @transform_1(%arg0: i32, %arg1: i32) -> (i32, i32) {
    %c0_i32 = arith.constant 0 : i32
    %c0_i32_0 = arith.constant 0 : i32
    return %c0_i32, %arg1 : i32, i32
  }
  func.func @transform_2(%arg0: i32, %arg1: i32) -> (i32, i32) {
    %c0_i32 = arith.constant 0 : i32
    %c0_i32_0 = arith.constant 0 : i32
    return %c0_i32, %arg1 : i32, i32
  }
  func.func @transform_3(%arg0: i32, %arg1: i32) -> (i32, i32) {
    %c0_i32 = arith.constant 0 : i32
    return %arg0, %arg1 : i32, i32
  }
}

</mosaic_0001>

<bundles_post_ra>
// kernel: _lambda_.11
= control target key start
LH: loop header
LB: loop body
LE: loop exit
PB: predicated region body
PF: predicated region fallthrough
CT: control target
= control target key end

     0   :  { %s1313_s12 = smov 0   ;;  %s1315_s13 = smov 0   ;;  %s1557_s0 = inlined_call_operand.vmem [shape: bf16[1024,32], index: 0, kind: input, shape index: {}]   ;;  %s1558_s1 = inlined_call_operand.vmem [shape: bf16[32,128], index: 1, kind: input, shape index: {}]   ;;  %s1559_s2 = inlined_call_operand.vmem [shape: f32[1,128], index: 2, kind: input, shape index: {}]   ;;  %s1560_s3 = inlined_call_operand.vmem [shape: f32[1024,128], index: 3, kind: output, shape index: {}]  }
   0x1   :  { %s1317_s14 = smov 0  }
   0x2 LB: > { %s25_s15 = sadd.s32 1, %s1287_s13  ;;  %p1031_p0 = scmp.ge.s32.totalorder %s1291_s14, 1  ;;  %s1291_s14 = sphi %s1317_s14, %s13_s14   ;;  %s1287_s13 = sphi %s1315_s13, %s1562_s13   ;;  %s1283_s12 = sphi %s1313_s12, %s1561_s12  }
   0x3   : > { %p27_p1 = scmp.ge.s32.totalorder %s25_s15, 2  ;;  %p169_p2 = scmp.lt.s32.totalorder %s1291_s14, 3 }
   0x5   : > { %s1564_s15 = smov (%p27_p1, %s25_s15), 0  ;;  %p170_p3 = pnand %p1031_p0, %p169_p2 }
   0x6   : > { %v1235_v0 = vld [vmem:[%s1558_s1] sm:$0xff] (!%p170_p3)   ;;  %s1032_s18 = sshll.u32 (!%p170_p3), %s1283_s12, 6  ;;  %v1236_v1 = vld [vmem:[%s1558_s1 + $0x8] sm:$0xff] (!%p170_p3)   ;;  %vm473_vm0 = vcmask (!%p170_p3), 261120  }
   0x7   : > { %173 = sbr.rel (%p170_p3) target bundleno = 294 (0x126), region = 32  ;;  %p204_p4 = scmp.lt.s32.totalorder (!%p170_p3), %s1032_s18, 127  ;;  %1139 = vmatprep.subr.bf16.mxu0 (!%p170_p3), %v1235_v0  ;;  %1207 = vmatprep.subr.bf16.mxu1 (!%p170_p3), %v1235_v0  ;;  %v1413_v34 = vld [vmem:[%s1559_s2] ss:$0 sm:$0xff] (!%p170_p3) }
   0x8   : > { %1140 = vmatpush3.bf16.msra.mxu0 (!%p170_p3), %v1235_v0  ;;  %1209 = vmatpush3.bf16.msra.mxu1 (!%p170_p3), %v1235_v0 }
   0x9   : > { %1141 = vmatprep.subr.bf16.mxu0 (!%p170_p3), %v1236_v1  ;;  %1208 = vmatprep.subr.bf16.mxu1 (!%p170_p3), %v1236_v1 }
   0xc   : > { %1142 = vmatpush3.bf16.msra.mxu0 (!%p170_p3), %v1236_v1  ;;  %1210 = vmatpush3.bf16.msra.mxu1 (!%p170_p3), %v1236_v1 }
   0xe   : > { %s1566_s18 = smov (!%p204_p4, %s1032_s18), 127 }
   0xf   : > { %s1033_s21 = sshll.u32 %s1566_s18, 2  ;;  %s1035_s25 = sshll.u32 %s1566_s18, 3 }
  0x10   : > { %s1343_s24 = scalar_lea.vmem %s1557_s0, %s1033_s21  ;;  %s1418_s30 = scalar_lea.vmem %s1560_s3, %s1035_s25 }
  0x11   : > { %v1237_v2 = vld [vmem:[%s1343_s24] sm:$0xff]   ;;  %v1239_v4 = vld [vmem:[%s1343_s24 + $0x8] sm:$0xff]   ;;  %v1241_v6 = vld [vmem:[%s1343_s24 + $0x10] sm:$0xff]  }
  0x12   : > { %v1238_v3 = vld [vmem:[%s1343_s24 + $0x80] sm:$0xff]   ;;  %1143 = vmatprep.mubr.msk.bf16.mxu0 %vm473_vm0, %v1237_v2  ;;  %v1240_v5 = vld [vmem:[%s1343_s24 + $0x88] sm:$0xff]   ;;  %v1242_v7 = vld [vmem:[%s1343_s24 + $0x90] sm:$0xff]  }
  0x13   : > { %1175 = vmatprep.mubr.msk.bf16.mxu1 %vm473_vm0, %v1238_v3  ;;  %1144 = vmatmul.mubr.msk.bf16.vlgmr.msra.gmra.mrb[0].mxu0 %vm473_vm0, %v1239_v4  ;;  %v1243_v8 = vld [vmem:[%s1343_s24 + $0x18] sm:$0xff]   ;;  %v1245_v10 = vld [vmem:[%s1343_s24 + $0x20] sm:$0xff]   ;;  %v1247_v12 = vld [vmem:[%s1343_s24 + $0x28] sm:$0xff]  }
  0x14   : > { %1176 = vmatmul.mubr.msk.bf16.vlgmr.msra.gmra.mrb[0].mxu1 %vm473_vm0, %v1240_v5  ;;  %1147 = vmatprep.mubr.msk.bf16.mxu0 %vm473_vm0, %v1241_v6  ;;  %v1244_v9 = vld [vmem:[%s1343_s24 + $0x98] sm:$0xff]   ;;  %v1246_v11 = vld [vmem:[%s1343_s24 + $0xa0] sm:$0xff]   ;;  %v1248_v13 = vld [vmem:[%s1343_s24 + $0xa8] sm:$0xff]  }
  0x15   : > { %1179 = vmatprep.mubr.msk.bf16.mxu1 %vm473_vm0, %v1242_v7  ;;  %v1249_v14 = vld [vmem:[%s1343_s24 + $0x30] sm:$0xff]   ;;  %v1251_v16 = vld [vmem:[%s1343_s24 + $0x38] sm:$0xff]   ;;  %v1253_v18 = vld [vmem:[%s1343_s24 + $0x40] sm:$0xff]  }
  0x16   : > { %v1250_v15 = vld [vmem:[%s1343_s24 + $0xb0] sm:$0xff]   ;;  %v1252_v17 = vld [vmem:[%s1343_s24 + $0xb8] sm:$0xff]   ;;  %v1254_v19 = vld [vmem:[%s1343_s24 + $0xc0] sm:$0xff]  }
  0x17   : > { %v1255_v20 = vld [vmem:[%s1343_s24 + $0x48] sm:$0xff]   ;;  %v1257_v22 = vld [vmem:[%s1343_s24 + $0x50] sm:$0xff]   ;;  %v1259_v24 = vld [vmem:[%s1343_s24 + $0x58] sm:$0xff]  }
  0x18   : > { %v1256_v21 = vld [vmem:[%s1343_s24 + $0xc8] sm:$0xff]   ;;  %v1258_v23 = vld [vmem:[%s1343_s24 + $0xd0] sm:$0xff]   ;;  %v1260_v25 = vld [vmem:[%s1343_s24 + $0xd8] sm:$0xff]  }
  0x19   : > { %v1261_v26 = vld [vmem:[%s1343_s24 + $0x60] sm:$0xff]   ;;  %v1263_v28 = vld [vmem:[%s1343_s24 + $0x68] sm:$0xff]   ;;  %v1265_v30 = vld [vmem:[%s1343_s24 + $0x70] sm:$0xff]  }
  0x1a   : > { %v1262_v27 = vld [vmem:[%s1343_s24 + $0xe0] sm:$0xff]   ;;  %v1264_v29 = vld [vmem:[%s1343_s24 + $0xe8] sm:$0xff]   ;;  %v1266_v31 = vld [vmem:[%s1343_s24 + $0xf0] sm:$0xff]  }
  0x1b   : > { %1148 = vmatmul.mubr.msk.bf16.gmra.mrb[4].mxu0 %vm473_vm0, %v1243_v8  ;;  %v1267_v32 = vld [vmem:[%s1343_s24 + $0x78] sm:$0xff]  }
  0x1c   : > { %1180 = vmatmul.mubr.msk.bf16.gmra.mrb[4].mxu1 %vm473_vm0, %v1244_v9  ;;  %1151 = vmatprep.mubr.msk.bf16.mxu0 %vm473_vm0, %v1245_v10  ;;  %v1268_v33 = vld [vmem:[%s1343_s24 + $0xf8] sm:$0xff]  }
  0x1d   : > { %1183 = vmatprep.mubr.msk.bf16.mxu1 %vm473_vm0, %v1246_v11 }
  0x23   : > { %1152 = vmatmul.mubr.msk.bf16.gmra.mrb[8].mxu0 %vm473_vm0, %v1247_v12 }
  0x24   : > { %1184 = vmatmul.mubr.msk.bf16.gmra.mrb[8].mxu1 %vm473_vm0, %v1248_v13  ;;  %1155 = vmatprep.mubr.msk.bf16.mxu0 %vm473_vm0, %v1249_v14 }
  0x25   : > { %1187 = vmatprep.mubr.msk.bf16.mxu1 %vm473_vm0, %v1250_v15 }
  0x2b   : > { %1156 = vmatmul.mubr.msk.bf16.gmra.mrb[12].mxu0 %vm473_vm0, %v1251_v16 }
  0x2c   : > { %1188 = vmatmul.mubr.msk.bf16.gmra.mrb[12].mxu1 %vm473_vm0, %v1252_v17  ;;  %1159 = vmatprep.mubr.msk.bf16.mxu0 %vm473_vm0, %v1253_v18 }
  0x2d   : > { %1191 = vmatprep.mubr.msk.bf16.mxu1 %vm473_vm0, %v1254_v19 }
  0x33   : > { %1160 = vmatmul.mubr.msk.bf16.gmra.mrb[16].mxu0 %vm473_vm0, %v1255_v20 }
  0x34   : > { %1192 = vmatmul.mubr.msk.bf16.gmra.mrb[16].mxu1 %vm473_vm0, %v1256_v21  ;;  %1163 = vmatprep.mubr.msk.bf16.mxu0 %vm473_vm0, %v1257_v22 }
  0x35   : > { %1195 = vmatprep.mubr.msk.bf16.mxu1 %vm473_vm0, %v1258_v23 }
  0x3b   : > { %1164 = vmatmul.mubr.msk.bf16.gmra.mrb[20].mxu0 %vm473_vm0, %v1259_v24 }
  0x3c   : > { %1196 = vmatmul.mubr.msk.bf16.gmra.mrb[20].mxu1 %vm473_vm0, %v1260_v25  ;;  %1167 = vmatprep.mubr.msk.bf16.mxu0 %vm473_vm0, %v1261_v26 }
  0x3d   : > { %1199 = vmatprep.mubr.msk.bf16.mxu1 %vm473_vm0, %v1262_v27 }
  0x43   : > { %1168 = vmatmul.mubr.msk.bf16.gmra.mrb[24].mxu0 %vm473_vm0, %v1263_v28 }
  0x44   : > { %1200 = vmatmul.mubr.msk.bf16.gmra.mrb[24].mxu1 %vm473_vm0, %v1264_v29  ;;  %1171 = vmatprep.mubr.msk.bf16.mxu0 %vm473_vm0, %v1265_v30 }
  0x45   : > { %1203 = vmatprep.mubr.msk.bf16.mxu1 %vm473_vm0, %v1266_v31 }
  0x4b   : > { %1172 = vmatmul.mubr.msk.bf16.gmra.mrb[28].mxu0 %vm473_vm0, %v1267_v32 }
  0x4c   : > { %1204 = vmatmul.mubr.msk.bf16.gmra.mrb[28].mxu1 %vm473_vm0, %v1268_v33 }
  0xe6   : > { %v1145_v35 = vpop.f32.mrb[0].mxu0 }
  0xe7   : > { %v613_v36 = vadd.f32 %v1145_v35, %v1413_v34  ;;  %v1177_v37 = vpop.f32.mrb[0].mxu1  ;;  %v604_v38 = vpop.f32.mrb[1].mxu0 }
  0xe8   : > { %v741_v39 = vadd.f32 %v1177_v37, %v1413_v34  ;;  %v605_v40 = vadd.f32 %v1413_v34, %v604_v38  ;;  %v732_v41 = vpop.f32.mrb[1].mxu1  ;;  %v1146_v42 = vpop.f32.mrb[2].mxu0 }
  0xe9   : > { %861 = vst [vmem:[%s1418_s30 + $0x10] sm:$0xff] %v613_v36  ;;  %v733_v43 = vadd.f32 %v1413_v34, %v732_v41  ;;  %v616_v44 = vadd.f32 %v1146_v42, %v1413_v34  ;;  %v1178_v45 = vpop.f32.mrb[2].mxu1  ;;  %v607_v46 = vpop.f32.mrb[3].mxu0 }
  0xea   : > { %893 = vst [vmem:[%s1418_s30 + $0x110] sm:$0xff] %v741_v39  ;;  %859 = vst [vmem:[%s1418_s30] sm:$0xff] %v605_v40  ;;  %v744_v47 = vadd.f32 %v1178_v45, %v1413_v34  ;;  %v608_v48 = vadd.f32 %v1413_v34, %v607_v46  ;;  %v735_v49 = vpop.f32.mrb[3].mxu1 }
  0xeb   : > { %891 = vst [vmem:[%s1418_s30 + $0x100] sm:$0xff] %v733_v43  ;;  %862 = vst [vmem:[%s1418_s30 + $0x18] sm:$0xff] %v616_v44  ;;  %v736_v50 = vadd.f32 %v1413_v34, %v735_v49 }
  0xec   : > { %894 = vst [vmem:[%s1418_s30 + $0x118] sm:$0xff] %v744_v47  ;;  %860 = vst [vmem:[%s1418_s30 + $0x8] sm:$0xff] %v608_v48 }
  0xed   : > { %892 = vst [vmem:[%s1418_s30 + $0x108] sm:$0xff] %v736_v50 }
  0xee   : > { %v1149_v51 = vpop.f32.mrb[4].mxu0 }
  0xef   : > { %v629_v52 = vadd.f32 %v1149_v51, %v1413_v34  ;;  %v1181_v53 = vpop.f32.mrb[4].mxu1  ;;  %v620_v54 = vpop.f32.mrb[5].mxu0 }
  0xf0   : > { %v757_v55 = vadd.f32 %v1181_v53, %v1413_v34  ;;  %v621_v56 = vadd.f32 %v1413_v34, %v620_v54  ;;  %v748_v57 = vpop.f32.mrb[5].mxu1  ;;  %v1150_v58 = vpop.f32.mrb[6].mxu0 }
  0xf1   : > { %865 = vst [vmem:[%s1418_s30 + $0x30] sm:$0xff] %v629_v52  ;;  %v749_v59 = vadd.f32 %v1413_v34, %v748_v57  ;;  %v632_v60 = vadd.f32 %v1150_v58, %v1413_v34  ;;  %v1182_v61 = vpop.f32.mrb[6].mxu1  ;;  %v623_v62 = vpop.f32.mrb[7].mxu0 }
  0xf2   : > { %897 = vst [vmem:[%s1418_s30 + $0x130] sm:$0xff] %v757_v55  ;;  %863 = vst [vmem:[%s1418_s30 + $0x20] sm:$0xff] %v621_v56  ;;  %v760_v63 = vadd.f32 %v1182_v61, %v1413_v34  ;;  %v624_v0 = vadd.f32 %v1413_v34, %v623_v62  ;;  %v751_v1 = vpop.f32.mrb[7].mxu1 }
  0xf3   : > { %895 = vst [vmem:[%s1418_s30 + $0x120] sm:$0xff] %v749_v59  ;;  %866 = vst [vmem:[%s1418_s30 + $0x38] sm:$0xff] %v632_v60  ;;  %v752_v2 = vadd.f32 %v1413_v34, %v751_v1 }
  0xf4   : > { %898 = vst [vmem:[%s1418_s30 + $0x138] sm:$0xff] %v760_v63  ;;  %864 = vst [vmem:[%s1418_s30 + $0x28] sm:$0xff] %v624_v0 }
  0xf5   : > { %896 = vst [vmem:[%s1418_s30 + $0x128] sm:$0xff] %v752_v2 }
  0xf6   : > { %v1153_v3 = vpop.f32.mrb[8].mxu0 }
  0xf7   : > { %v645_v4 = vadd.f32 %v1153_v3, %v1413_v34  ;;  %v1185_v5 = vpop.f32.mrb[8].mxu1  ;;  %v636_v6 = vpop.f32.mrb[9].mxu0 }
  0xf8   : > { %v773_v7 = vadd.f32 %v1185_v5, %v1413_v34  ;;  %v637_v8 = vadd.f32 %v1413_v34, %v636_v6  ;;  %v764_v9 = vpop.f32.mrb[9].mxu1  ;;  %v1154_v10 = vpop.f32.mrb[10].mxu0 }
  0xf9   : > { %869 = vst [vmem:[%s1418_s30 + $0x50] sm:$0xff] %v645_v4  ;;  %v765_v11 = vadd.f32 %v1413_v34, %v764_v9  ;;  %v648_v12 = vadd.f32 %v1154_v10, %v1413_v34  ;;  %v1186_v13 = vpop.f32.mrb[10].mxu1  ;;  %v639_v14 = vpop.f32.mrb[11].mxu0 }
  0xfa   : > { %901 = vst [vmem:[%s1418_s30 + $0x150] sm:$0xff] %v773_v7  ;;  %867 = vst [vmem:[%s1418_s30 + $0x40] sm:$0xff] %v637_v8  ;;  %v776_v15 = vadd.f32 %v1186_v13, %v1413_v34  ;;  %v640_v16 = vadd.f32 %v1413_v34, %v639_v14  ;;  %v767_v17 = vpop.f32.mrb[11].mxu1 }
  0xfb   : > { %899 = vst [vmem:[%s1418_s30 + $0x140] sm:$0xff] %v765_v11  ;;  %870 = vst [vmem:[%s1418_s30 + $0x58] sm:$0xff] %v648_v12  ;;  %v768_v18 = vadd.f32 %v1413_v34, %v767_v17 }
  0xfc   : > { %902 = vst [vmem:[%s1418_s30 + $0x158] sm:$0xff] %v776_v15  ;;  %868 = vst [vmem:[%s1418_s30 + $0x48] sm:$0xff] %v640_v16 }
  0xfd   : > { %900 = vst [vmem:[%s1418_s30 + $0x148] sm:$0xff] %v768_v18 }
  0xfe   : > { %v1157_v19 = vpop.f32.mrb[12].mxu0 }
  0xff   : > { %v661_v20 = vadd.f32 %v1157_v19, %v1413_v34  ;;  %v1189_v21 = vpop.f32.mrb[12].mxu1  ;;  %v652_v22 = vpop.f32.mrb[13].mxu0 }
 0x100   : > { %v789_v23 = vadd.f32 %v1189_v21, %v1413_v34  ;;  %v653_v24 = vadd.f32 %v1413_v34, %v652_v22  ;;  %v780_v25 = vpop.f32.mrb[13].mxu1  ;;  %v1158_v26 = vpop.f32.mrb[14].mxu0 }
 0x101   : > { %873 = vst [vmem:[%s1418_s30 + $0x70] sm:$0xff] %v661_v20  ;;  %v781_v27 = vadd.f32 %v1413_v34, %v780_v25  ;;  %v664_v28 = vadd.f32 %v1158_v26, %v1413_v34  ;;  %v1190_v29 = vpop.f32.mrb[14].mxu1  ;;  %v655_v30 = vpop.f32.mrb[15].mxu0 }
 0x102   : > { %905 = vst [vmem:[%s1418_s30 + $0x170] sm:$0xff] %v789_v23  ;;  %871 = vst [vmem:[%s1418_s30 + $0x60] sm:$0xff] %v653_v24  ;;  %v792_v31 = vadd.f32 %v1190_v29, %v1413_v34  ;;  %v656_v32 = vadd.f32 %v1413_v34, %v655_v30  ;;  %v783_v33 = vpop.f32.mrb[15].mxu1 }
 0x103   : > { %903 = vst [vmem:[%s1418_s30 + $0x160] sm:$0xff] %v781_v27  ;;  %874 = vst [vmem:[%s1418_s30 + $0x78] sm:$0xff] %v664_v28  ;;  %v784_v35 = vadd.f32 %v1413_v34, %v783_v33 }
 0x104   : > { %906 = vst [vmem:[%s1418_s30 + $0x178] sm:$0xff] %v792_v31  ;;  %872 = vst [vmem:[%s1418_s30 + $0x68] sm:$0xff] %v656_v32 }
 0x105   : > { %904 = vst [vmem:[%s1418_s30 + $0x168] sm:$0xff] %v784_v35 }
 0x106   : > { %v1161_v36 = vpop.f32.mrb[16].mxu0 }
 0x107   : > { %v677_v37 = vadd.f32 %v1161_v36, %v1413_v34  ;;  %v1193_v38 = vpop.f32.mrb[16].mxu1  ;;  %v668_v39 = vpop.f32.mrb[17].mxu0 }
 0x108   : > { %v805_v40 = vadd.f32 %v1193_v38, %v1413_v34  ;;  %v669_v41 = vadd.f32 %v1413_v34, %v668_v39  ;;  %v796_v42 = vpop.f32.mrb[17].mxu1  ;;  %v1162_v43 = vpop.f32.mrb[18].mxu0 }
 0x109   : > { %877 = vst [vmem:[%s1418_s30 + $0x90] sm:$0xff] %v677_v37  ;;  %v797_v44 = vadd.f32 %v1413_v34, %v796_v42  ;;  %v680_v45 = vadd.f32 %v1162_v43, %v1413_v34  ;;  %v1194_v46 = vpop.f32.mrb[18].mxu1  ;;  %v671_v47 = vpop.f32.mrb[19].mxu0 }
 0x10a   : > { %909 = vst [vmem:[%s1418_s30 + $0x190] sm:$0xff] %v805_v40  ;;  %875 = vst [vmem:[%s1418_s30 + $0x80] sm:$0xff] %v669_v41  ;;  %v808_v48 = vadd.f32 %v1194_v46, %v1413_v34  ;;  %v672_v49 = vadd.f32 %v1413_v34, %v671_v47  ;;  %v799_v50 = vpop.f32.mrb[19].mxu1 }
 0x10b   : > { %907 = vst [vmem:[%s1418_s30 + $0x180] sm:$0xff] %v797_v44  ;;  %878 = vst [vmem:[%s1418_s30 + $0x98] sm:$0xff] %v680_v45  ;;  %v800_v51 = vadd.f32 %v1413_v34, %v799_v50 }
 0x10c   : > { %910 = vst [vmem:[%s1418_s30 + $0x198] sm:$0xff] %v808_v48  ;;  %876 = vst [vmem:[%s1418_s30 + $0x88] sm:$0xff] %v672_v49 }
 0x10d   : > { %908 = vst [vmem:[%s1418_s30 + $0x188] sm:$0xff] %v800_v51 }
 0x10e   : > { %v1165_v52 = vpop.f32.mrb[20].mxu0 }
 0x10f   : > { %v693_v53 = vadd.f32 %v1165_v52, %v1413_v34  ;;  %v1197_v54 = vpop.f32.mrb[20].mxu1  ;;  %v684_v55 = vpop.f32.mrb[21].mxu0 }
 0x110   : > { %v821_v56 = vadd.f32 %v1197_v54, %v1413_v34  ;;  %v685_v57 = vadd.f32 %v1413_v34, %v684_v55  ;;  %v812_v58 = vpop.f32.mrb[21].mxu1  ;;  %v1166_v59 = vpop.f32.mrb[22].mxu0 }
 0x111   : > { %881 = vst [vmem:[%s1418_s30 + $0xb0] sm:$0xff] %v693_v53  ;;  %v813_v60 = vadd.f32 %v1413_v34, %v812_v58  ;;  %v696_v61 = vadd.f32 %v1166_v59, %v1413_v34  ;;  %v1198_v62 = vpop.f32.mrb[22].mxu1  ;;  %v687_v63 = vpop.f32.mrb[23].mxu0 }
 0x112   : > { %913 = vst [vmem:[%s1418_s30 + $0x1b0] sm:$0xff] %v821_v56  ;;  %879 = vst [vmem:[%s1418_s30 + $0xa0] sm:$0xff] %v685_v57  ;;  %v824_v0 = vadd.f32 %v1198_v62, %v1413_v34  ;;  %v688_v1 = vadd.f32 %v1413_v34, %v687_v63  ;;  %v815_v2 = vpop.f32.mrb[23].mxu1 }
 0x113   : > { %911 = vst [vmem:[%s1418_s30 + $0x1a0] sm:$0xff] %v813_v60  ;;  %882 = vst [vmem:[%s1418_s30 + $0xb8] sm:$0xff] %v696_v61  ;;  %v816_v3 = vadd.f32 %v1413_v34, %v815_v2 }
 0x114   : > { %914 = vst [vmem:[%s1418_s30 + $0x1b8] sm:$0xff] %v824_v0  ;;  %880 = vst [vmem:[%s1418_s30 + $0xa8] sm:$0xff] %v688_v1 }
 0x115   : > { %912 = vst [vmem:[%s1418_s30 + $0x1a8] sm:$0xff] %v816_v3 }
 0x116   : > { %v1169_v4 = vpop.f32.mrb[24].mxu0 }
 0x117   : > { %v709_v5 = vadd.f32 %v1169_v4, %v1413_v34  ;;  %v1201_v6 = vpop.f32.mrb[24].mxu1  ;;  %v700_v7 = vpop.f32.mrb[25].mxu0 }
 0x118   : > { %v837_v8 = vadd.f32 %v1201_v6, %v1413_v34  ;;  %v701_v9 = vadd.f32 %v1413_v34, %v700_v7  ;;  %v828_v10 = vpop.f32.mrb[25].mxu1  ;;  %v1170_v11 = vpop.f32.mrb[26].mxu0 }
 0x119   : > { %885 = vst [vmem:[%s1418_s30 + $0xd0] sm:$0xff] %v709_v5  ;;  %v829_v12 = vadd.f32 %v1413_v34, %v828_v10  ;;  %v712_v13 = vadd.f32 %v1170_v11, %v1413_v34  ;;  %v1202_v14 = vpop.f32.mrb[26].mxu1  ;;  %v703_v15 = vpop.f32.mrb[27].mxu0 }
 0x11a   : > { %917 = vst [vmem:[%s1418_s30 + $0x1d0] sm:$0xff] %v837_v8  ;;  %883 = vst [vmem:[%s1418_s30 + $0xc0] sm:$0xff] %v701_v9  ;;  %v840_v16 = vadd.f32 %v1202_v14, %v1413_v34  ;;  %v704_v17 = vadd.f32 %v1413_v34, %v703_v15  ;;  %v831_v18 = vpop.f32.mrb[27].mxu1 }
 0x11b   : > { %915 = vst [vmem:[%s1418_s30 + $0x1c0] sm:$0xff] %v829_v12  ;;  %886 = vst [vmem:[%s1418_s30 + $0xd8] sm:$0xff] %v712_v13  ;;  %v832_v19 = vadd.f32 %v1413_v34, %v831_v18 }
 0x11c   : > { %918 = vst [vmem:[%s1418_s30 + $0x1d8] sm:$0xff] %v840_v16  ;;  %884 = vst [vmem:[%s1418_s30 + $0xc8] sm:$0xff] %v704_v17 }
 0x11d   : > { %916 = vst [vmem:[%s1418_s30 + $0x1c8] sm:$0xff] %v832_v19 }
 0x11e   : > { %v1173_v20 = vpop.f32.mrb[28].mxu0 }
 0x11f   : > { %v725_v21 = vadd.f32 %v1173_v20, %v1413_v34  ;;  %v1205_v22 = vpop.f32.mrb[28].mxu1  ;;  %v716_v23 = vpop.f32.mrb[29].mxu0 }
 0x120   : > { %v853_v24 = vadd.f32 %v1205_v22, %v1413_v34  ;;  %v717_v25 = vadd.f32 %v1413_v34, %v716_v23  ;;  %v844_v26 = vpop.f32.mrb[29].mxu1  ;;  %v1174_v27 = vpop.f32.mrb[30].mxu0 }
 0x121   : > { %889 = vst [vmem:[%s1418_s30 + $0xf0] sm:$0xff] %v725_v21  ;;  %v845_v28 = vadd.f32 %v1413_v34, %v844_v26  ;;  %v728_v29 = vadd.f32 %v1174_v27, %v1413_v34  ;;  %v1206_v30 = vpop.f32.mrb[30].mxu1  ;;  %v719_v31 = vpop.f32.mrb[31].mxu0 }
 0x122   : > { %921 = vst [vmem:[%s1418_s30 + $0x1f0] sm:$0xff] %v853_v24  ;;  %887 = vst [vmem:[%s1418_s30 + $0xe0] sm:$0xff] %v717_v25  ;;  %v856_v32 = vadd.f32 %v1206_v30, %v1413_v34  ;;  %v720_v33 = vadd.f32 %v1413_v34, %v719_v31  ;;  %v847_v35 = vpop.f32.mrb[31].mxu1 }
 0x123   : > { %919 = vst [vmem:[%s1418_s30 + $0x1e0] sm:$0xff] %v845_v28  ;;  %890 = vst [vmem:[%s1418_s30 + $0xf8] sm:$0xff] %v728_v29  ;;  %v848_v36 = vadd.f32 %v1413_v34, %v847_v35 }
 0x124   : > { %922 = vst [vmem:[%s1418_s30 + $0x1f8] sm:$0xff] %v856_v32  ;;  %888 = vst [vmem:[%s1418_s30 + $0xe8] sm:$0xff] %v720_v33 }
 0x125   : > { %920 = vst [vmem:[%s1418_s30 + $0x1e8] sm:$0xff] %v848_v36 }
 0x126 PF: > { %s13_s14 = sadd.s32 1, %s1291_s14   ;;  %s1561_s12 = smov %s1287_s13 }
 0x127   : > { %p10_p5 = scmp.ge.s32.totalorder %s13_s14, 4   ;;  %s1562_s13 = smov %s1564_s15 }
 0x129   :  { %12 = sbr.rel (!%p10_p5) target bundleno = 2 (0x2), region = 68 }

// kernel: _lambda_.12
= control target key start
LH: loop header
LB: loop body
LE: loop exit
PB: predicated region body
PF: predicated region fallthrough
CT: control target
= control target key end

     0   :  { %s4005_s12 = smov 0   ;;  %s4007_s13 = smov 0   ;;  %s5061_s0 = inlined_call_operand.vmem [shape: bf16[1024,128], index: 0, kind: input, shape index: {}]   ;;  %s5062_s1 = inlined_call_operand.vmem [shape: bf16[128,768], index: 1, kind: input, shape index: {}]   ;;  %s5063_s2 = inlined_call_operand.vmem [shape: f32[1,768], index: 2, kind: input, shape index: {}]   ;;  %s5064_s3 = inlined_call_operand.vmem [shape: bf16[1024,768], index: 3, kind: output, shape index: {}]  }
   0x1   :  { %s4009_s14 = smov 0  }
   0x2 LB: > { %s25_s15 = sadd.s32 1, %s3978_s13  ;;  %p3337_p0 = scmp.ge.s32.totalorder %s3982_s14, 1  ;;  %s3982_s14 = sphi %s4009_s14, %s13_s14   ;;  %s3978_s13 = sphi %s4007_s13, %s5066_s13   ;;  %s3974_s12 = sphi %s4005_s12, %s5065_s12  }
   0x3   : > { %p27_p1 = scmp.ge.s32.totalorder %s25_s15, 2  ;;  %p173_p2 = scmp.lt.s32.totalorder %s3982_s14, 3 }
   0x5   : > { %s5068_s15 = smov (%p27_p1, %s25_s15), 0  ;;  %p174_p3 = pnand %p3337_p0, %p173_p2 }
   0x6   : > { %v3850_v0 = vld [vmem:[%s5062_s1 + $0x4] ss:$24 sps:$4 sm:$0xff] (!%p174_p3)   ;;  %s3338_s18 = sshll.u32 (!%p174_p3), %s3974_s12, 6  ;;  %v3852_v1 = vld [vmem:[%s5062_s1] ss:$24 sps:$4 sm:$0xff] (!%p174_p3)   ;;  %v3984_v2 = vmov (!%p174_p3), 0  }
   0x7   : > { %177 = sbr.rel (%p174_p3) target bundleno = 636 (0x27c), region = 32  ;;  %849 = vmatprep.mubr.bf16.mxu0 (!%p174_p3), %v3984_v2  ;;  %1009 = vmatprep.mubr.bf16.mxu1 (!%p174_p3), %v3984_v2  ;;  %p212_p4 = scmp.lt.s32.totalorder (!%p174_p3), %s3338_s18, 127  ;;  %v3853_v3 = vld [vmem:[%s5062_s1 + $0x34] ss:$24 sps:$4 sm:$0xff] (!%p174_p3)   ;;  %v3855_v4 = vld [vmem:[%s5062_s1 + $0x30] ss:$24 sps:$4 sm:$0xff] (!%p174_p3)  }
   0x8   : > { %817 = vmatprep.subr.bf16.mxu0 (!%p174_p3), %v3850_v0  ;;  %3808 = vmatprep.subr.bf16.mxu1 (!%p174_p3), %v3850_v0  ;;  %v3856_v5 = vld [vmem:[%s5062_s1 + $0x64] ss:$24 sps:$4 sm:$0xff] (!%p174_p3)   ;;  %v3858_v6 = vld [vmem:[%s5062_s1 + $0x60] ss:$24 sps:$4 sm:$0xff] (!%p174_p3)   ;;  %v3859_v7 = vld [vmem:[%s5062_s1 + $0x94] ss:$24 sps:$4 sm:$0xff] (!%p174_p3)  }
   0x9   : > { %818 = vmatpush1.bf16.msra.mxu0 (!%p174_p3), %v3852_v1  ;;  %3816 = vmatpush1.bf16.msra.mxu1 (!%p174_p3), %v3852_v1  ;;  %v3861_v8 = vld [vmem:[%s5062_s1 + $0x90] ss:$24 sps:$4 sm:$0xff] (!%p174_p3)   ;;  %v3862_v9 = vld [vmem:[%s5062_s1 + $0xc4] ss:$24 sps:$4 sm:$0xff] (!%p174_p3)   ;;  %v3864_v10 = vld [vmem:[%s5062_s1 + $0xc0] ss:$24 sps:$4 sm:$0xff] (!%p174_p3)  }
   0xa   : > { %819 = vmatprep.subr.bf16.mxu0 (!%p174_p3), %v3853_v3  ;;  %3809 = vmatprep.subr.bf16.mxu1 (!%p174_p3), %v3853_v3  ;;  %v3865_v11 = vld [vmem:[%s5062_s1 + $0xf4] ss:$24 sps:$4 sm:$0xff] (!%p174_p3)   ;;  %v3867_v12 = vld [vmem:[%s5062_s1 + $0xf0] ss:$24 sps:$4 sm:$0xff] (!%p174_p3)   ;;  %v3868_v13 = vld [vmem:[%s5062_s1 + $0x124] ss:$24 sps:$4 sm:$0xff] (!%p174_p3)  }
   0xb   : > { %v3870_v14 = vld [vmem:[%s5062_s1 + $0x120] ss:$24 sps:$4 sm:$0xff] (!%p174_p3)   ;;  %v3871_v15 = vld [vmem:[%s5062_s1 + $0x154] ss:$24 sps:$4 sm:$0xff] (!%p174_p3)   ;;  %v3873_v16 = vld [vmem:[%s5062_s1 + $0x150] ss:$24 sps:$4 sm:$0xff] (!%p174_p3)  }
   0xc   : > { %v3878_v18 = vld [vmem:[%s5062_s1 + $0xc] ss:$24 sps:$4 sm:$0xff] (!%p174_p3)   ;;  %v3876_v21 = vld [vmem:[%s5062_s1 + $0x8] ss:$24 sps:$4 sm:$0xff] (!%p174_p3)   ;;  %v3886_v23 = vld [vmem:[%s5062_s1 + $0x38] ss:$24 sps:$4 sm:$0xff] (!%p174_p3)  }
   0xd   : > { %820 = vmatpush1.bf16.msra.mxu0 (!%p174_p3), %v3855_v4  ;;  %3817 = vmatpush1.bf16.msra.mxu1 (!%p174_p3), %v3855_v4  ;;  %v3881_v19 = vld [vmem:[%s5062_s1 + $0x14] ss:$24 sps:$4 sm:$0xff] (!%p174_p3)   ;;  %v3879_v22 = vld [vmem:[%s5062_s1 + $0x10] ss:$24 sps:$4 sm:$0xff] (!%p174_p3)   ;;  %v3891_v25 = vld [vmem:[%s5062_s1 + $0x44] ss:$24 sps:$4 sm:$0xff] (!%p174_p3)  }
   0xe   : > { %s5070_s18 = smov (!%p212_p4, %s3338_s18), 127  ;;  %821 = vmatprep.subr.bf16.mxu0 %v3856_v5  ;;  %3810 = vmatprep.subr.bf16.mxu1 %v3856_v5  ;;  %v3888_v24 = vld [vmem:[%s5062_s1 + $0x3c] ss:$24 sps:$4 sm:$0xff]   ;;  %v3889_v26 = vld [vmem:[%s5062_s1 + $0x40] ss:$24 sps:$4 sm:$0xff]  }
   0xf   : > { %s3339_s27 = sshll.u32 %s5070_s18, 2  ;;  %v3898_v27 = vld [vmem:[%s5062_s1 + $0x6c] ss:$24 sps:$4 sm:$0xff]   ;;  %v3896_v31 = vld [vmem:[%s5062_s1 + $0x68] ss:$24 sps:$4 sm:$0xff]   ;;  %s3824_s30 = smul.u32 24, %s5070_s18 }
  0x10   : > { %s4052_s7 = scalar_lea.vmem %s5061_s0, %s3339_s27  ;;  %v3901_v28 = vld [vmem:[%s5062_s1 + $0x74] ss:$24 sps:$4 sm:$0xff]   ;;  %v3899_v32 = vld [vmem:[%s5062_s1 + $0x70] ss:$24 sps:$4 sm:$0xff]   ;;  %v3911_v34 = vld [vmem:[%s5062_s1 + $0xa4] ss:$24 sps:$4 sm:$0xff]  }
  0x11   : > { %822 = vmatpush1.bf16.msra.mxu0 %v3858_v6  ;;  %3818 = vmatpush1.bf16.msra.mxu1 %v3858_v6  ;;  %v4082_v17 = vld [vmem:[%s4052_s7] sm:$0xff]   ;;  %v4122_v29 = vld [vmem:[%s4052_s7 + $0x8] sm:$0xff]   ;;  %v3908_v33 = vld [vmem:[%s5062_s1 + $0x9c] ss:$24 sps:$4 sm:$0xff]   ;;  %s4386_s6 = scalar_lea.vmem %s5064_s3, %s3824_s30 }
  0x12   : > { %823 = vmatprep.subr.bf16.mxu0 %v3859_v7  ;;  %3811 = vmatprep.subr.bf16.mxu1 %v3859_v7  ;;  %v4091_v20 = vld [vmem:[%s4052_s7 + $0x80] sm:$0xff]   ;;  %v4125_v30 = vld [vmem:[%s4052_s7 + $0x88] sm:$0xff]   ;;  %v3906_v35 = vld [vmem:[%s5062_s1 + $0x98] ss:$24 sps:$4 sm:$0xff]  }
  0x13   : > { %v3909_v36 = vld [vmem:[%s5062_s1 + $0xa0] ss:$24 sps:$4 sm:$0xff]   ;;  %v4150_v37 = vld [vmem:[%s4052_s7 + $0x10] sm:$0xff]   ;;  %v3918_v38 = vld [vmem:[%s5062_s1 + $0xcc] ss:$24 sps:$4 sm:$0xff]  }
  0x14   : > { %v3921_v39 = vld [vmem:[%s5062_s1 + $0xd4] ss:$24 sps:$4 sm:$0xff]   ;;  %v3916_v41 = vld [vmem:[%s5062_s1 + $0xc8] ss:$24 sps:$4 sm:$0xff]   ;;  %v3931_v44 = vld [vmem:[%s5062_s1 + $0x104] ss:$24 sps:$4 sm:$0xff]  }
  0x15   : > { %824 = vmatpush1.bf16.msra.mxu0 %v3861_v8  ;;  %3819 = vmatpush1.bf16.msra.mxu1 %v3861_v8  ;;  %v4159_v40 = vld [vmem:[%s4052_s7 + $0x90] sm:$0xff]   ;;  %v4181_v46 = vld [vmem:[%s4052_s7 + $0x18] sm:$0xff]   ;;  %v3938_v49 = vld [vmem:[%s5062_s1 + $0x12c] ss:$24 sps:$4 sm:$0xff]  }
  0x16   : > { %825 = vmatprep.subr.bf16.mxu0 %v3862_v9  ;;  %3812 = vmatprep.subr.bf16.mxu1 %v3862_v9  ;;  %v3919_v42 = vld [vmem:[%s5062_s1 + $0xd0] ss:$24 sps:$4 sm:$0xff]   ;;  %v3928_v43 = vld [vmem:[%s5062_s1 + $0xfc] ss:$24 sps:$4 sm:$0xff]   ;;  %v3929_v47 = vld [vmem:[%s5062_s1 + $0x100] ss:$24 sps:$4 sm:$0xff]  }
  0x17   : > { %v3926_v45 = vld [vmem:[%s5062_s1 + $0xf8] ss:$24 sps:$4 sm:$0xff]   ;;  %v3936_v50 = vld [vmem:[%s5062_s1 + $0x128] ss:$24 sps:$4 sm:$0xff]   ;;  %v3941_v51 = vld [vmem:[%s5062_s1 + $0x134] ss:$24 sps:$4 sm:$0xff]  }
  0x18   : > { %v4187_v48 = vld [vmem:[%s4052_s7 + $0x98] sm:$0xff]   ;;  %v3939_v52 = vld [vmem:[%s5062_s1 + $0x130] ss:$24 sps:$4 sm:$0xff]   ;;  %v4206_v53 = vld [vmem:[%s4052_s7 + $0x20] sm:$0xff]  }
  0x19   : > { %826 = vmatpush1.bf16.msra.mxu0 %v3864_v10  ;;  %3820 = vmatpush1.bf16.msra.mxu1 %v3864_v10  ;;  %v3946_v54 = vld [vmem:[%s5062_s1 + $0x158] ss:$24 sps:$4 sm:$0xff]   ;;  %v3948_v55 = vld [vmem:[%s5062_s1 + $0x15c] ss:$24 sps:$4 sm:$0xff]   ;;  %v4221_v58 = vld [vmem:[%s4052_s7 + $0xa0] sm:$0xff]  }
  0x1a   : > { %827 = vmatprep.subr.bf16.mxu0 %v3865_v11  ;;  %3813 = vmatprep.subr.bf16.mxu1 %v3865_v11  ;;  %v3949_v56 = vld [vmem:[%s5062_s1 + $0x160] ss:$24 sps:$4 sm:$0xff]   ;;  %v3951_v57 = vld [vmem:[%s5062_s1 + $0x164] ss:$24 sps:$4 sm:$0xff]   ;;  %v4228_v59 = vld [vmem:[%s4052_s7 + $0x28] sm:$0xff]  }
  0x1b   : > { %v4231_v60 = vld [vmem:[%s4052_s7 + $0xa8] sm:$0xff]   ;;  %v4238_v61 = vld [vmem:[%s4052_s7 + $0x30] sm:$0xff]   ;;  %v4248_v63 = vld [vmem:[%s4052_s7 + $0x38] sm:$0xff]  }
  0x1c   : > { %v4241_v62 = vld [vmem:[%s4052_s7 + $0xb0] sm:$0xff]   ;;  %v4251_v0 = vld [vmem:[%s4052_s7 + $0xb8] sm:$0xff]   ;;  %v4258_v1 = vld [vmem:[%s4052_s7 + $0x40] sm:$0xff]  }
  0x1d   : > { %828 = vmatpush1.bf16.msra.mxu0 %v3867_v12  ;;  %3821 = vmatpush1.bf16.msra.mxu1 %v3867_v12  ;;  %v4261_v3 = vld [vmem:[%s4052_s7 + $0xc0] sm:$0xff]   ;;  %v4268_v4 = vld [vmem:[%s4052_s7 + $0x48] sm:$0xff]   ;;  %v4278_v6 = vld [vmem:[%s4052_s7 + $0x50] sm:$0xff]  }
  0x1e   : > { %829 = vmatprep.subr.bf16.mxu0 %v3868_v13  ;;  %3814 = vmatprep.subr.bf16.mxu1 %v3868_v13  ;;  %v4271_v5 = vld [vmem:[%s4052_s7 + $0xc8] sm:$0xff]   ;;  %v3925_v7 = vld [vmem:[%s4052_s7 + $0xd0] sm:$0xff]   ;;  %v4285_v8 = vld [vmem:[%s4052_s7 + $0x58] sm:$0xff]  }
  0x1f   : > { %v3933_v9 = vld [vmem:[%s4052_s7 + $0xd8] sm:$0xff]   ;;  %v4292_v10 = vld [vmem:[%s4052_s7 + $0x60] sm:$0xff]   ;;  %v4299_v12 = vld [vmem:[%s4052_s7 + $0x68] sm:$0xff]  }
  0x20   : > { %v3935_v11 = vld [vmem:[%s4052_s7 + $0xe0] sm:$0xff]   ;;  %v3943_v13 = vld [vmem:[%s4052_s7 + $0xe8] sm:$0xff]  }
  0x21   : > { %830 = vmatpush1.bf16.msra.mxu0 %v3870_v14  ;;  %3822 = vmatpush1.bf16.msra.mxu1 %v3870_v14  ;;  %v4306_v14 = vld [vmem:[%s4052_s7 + $0x70] sm:$0xff]  }
  0x22   : > { %831 = vmatprep.subr.bf16.mxu0 %v3871_v15  ;;  %3815 = vmatprep.subr.bf16.mxu1 %v3871_v15  ;;  %v3945_v15 = vld [vmem:[%s4052_s7 + $0xf0] sm:$0xff]  }
  0x25   : > { %832 = vmatpush1.bf16.msra.mxu0 %v3873_v16  ;;  %3823 = vmatpush1.bf16.msra.mxu1 %v3873_v16  ;;  %v4313_v16 = vld [vmem:[%s4052_s7 + $0x78] sm:$0xff]  }
  0x26   : > { %1170 = vmatprep.subr.bf16.mxu1 %v3878_v18  ;;  %1523 = vmatprep.subr.bf16.mxu0 %v3881_v19  ;;  %v3953_v18 = vld [vmem:[%s4052_s7 + $0xf8] sm:$0xff]  }
  0x28   : > { %850 = vmatmul.mubr.bf16.vlgmr.msra.gmra.mrb[0].mxu0 %v4082_v17  ;;  %1010 = vmatmul.mubr.bf16.vlgmr.msra.gmra.mrb[0].mxu1 %v4091_v20 }
  0x29   : > { %1171 = vmatpush1.bf16.msra.mxu1 %v3876_v21  ;;  %1524 = vmatpush1.bf16.msra.mxu0 %v3879_v22  ;;  %v4365_v22 = vld [vmem:[%s5063_s2] sm:$0x3f] }
  0x2a   : > { %859 = vmatprep.mubr.bf16.mxu0 %v3984_v2  ;;  %1019 = vmatprep.mubr.bf16.mxu1 %v3984_v2 }
  0x2b   : > { %1172 = vmatprep.subr.bf16.mxu1 %v3888_v24  ;;  %1525 = vmatprep.subr.bf16.mxu0 %v3891_v25 }
  0x2d   : > { %1173 = vmatpush1.bf16.msra.mxu1 %v3886_v23  ;;  %1526 = vmatpush1.bf16.msra.mxu0 %v3889_v26 }
  0x2e   : > { %1174 = vmatprep.subr.bf16.mxu1 %v3898_v27  ;;  %1527 = vmatprep.subr.bf16.mxu0 %v3901_v28 }
  0x30   : > { %860 = vmatmul.mubr.bf16.gmra.mrb[4].mxu0 %v4122_v29  ;;  %1020 = vmatmul.mubr.bf16.gmra.mrb[4].mxu1 %v4125_v30 }
  0x31   : > { %869 = vmatprep.mubr.bf16.mxu0 %v3984_v2  ;;  %1029 = vmatprep.mubr.bf16.mxu1 %v3984_v2 }
  0x32   : > { %1175 = vmatpush1.bf16.msra.mxu1 %v3896_v31  ;;  %1528 = vmatpush1.bf16.msra.mxu0 %v3899_v32 }
  0x33   : > { %1176 = vmatprep.subr.bf16.mxu1 %v3908_v33  ;;  %1529 = vmatprep.subr.bf16.mxu0 %v3911_v34 }
  0x36   : > { %1177 = vmatpush1.bf16.msra.mxu1 %v3906_v35  ;;  %1530 = vmatpush1.bf16.msra.mxu0 %v3909_v36 }
  0x37   : > { %1178 = vmatprep.subr.bf16.mxu1 %v3918_v38  ;;  %1531 = vmatprep.subr.bf16.mxu0 %v3921_v39 }
  0x38   : > { %870 = vmatmul.mubr.bf16.gmra.mrb[8].mxu0 %v4150_v37  ;;  %1030 = vmatmul.mubr.bf16.gmra.mrb[8].mxu1 %v4159_v40 }
  0x39   : > { %879 = vmatprep.mubr.bf16.mxu0 %v3984_v2  ;;  %1039 = vmatprep.mubr.bf16.mxu1 %v3984_v2 }
  0x3a   : > { %1179 = vmatpush1.bf16.msra.mxu1 %v3916_v41  ;;  %1532 = vmatpush1.bf16.msra.mxu0 %v3919_v42 }
  0x3b   : > { %1180 = vmatprep.subr.bf16.mxu1 %v3928_v43  ;;  %1533 = vmatprep.subr.bf16.mxu0 %v3931_v44 }
  0x3e   : > { %1181 = vmatpush1.bf16.msra.mxu1 %v3926_v45  ;;  %1534 = vmatpush1.bf16.msra.mxu0 %v3929_v47 }
  0x3f   : > { %1182 = vmatprep.subr.bf16.mxu1 %v3938_v49  ;;  %1535 = vmatprep.subr.bf16.mxu0 %v3941_v51 }
  0x40   : > { %880 = vmatmul.mubr.bf16.gmra.mrb[12].mxu0 %v4181_v46  ;;  %1040 = vmatmul.mubr.bf16.gmra.mrb[12].mxu1 %v4187_v48 }
  0x41   : > { %889 = vmatprep.mubr.bf16.mxu0 %v3984_v2  ;;  %1049 = vmatprep.mubr.bf16.mxu1 %v3984_v2 }
  0x42   : > { %1183 = vmatpush1.bf16.msra.mxu1 %v3936_v50  ;;  %1536 = vmatpush1.bf16.msra.mxu0 %v3939_v52 }
  0x43   : > { %1184 = vmatprep.subr.bf16.mxu1 %v3948_v55  ;;  %1537 = vmatprep.subr.bf16.mxu0 %v3951_v57 }
  0x46   : > { %1185 = vmatpush1.bf16.msra.mxu1 %v3946_v54  ;;  %1538 = vmatpush1.bf16.msra.mxu0 %v3949_v56 }
  0x48   : > { %890 = vmatmul.mubr.bf16.gmra.mrb[16].mxu0 %v4206_v53  ;;  %1050 = vmatmul.mubr.bf16.gmra.mrb[16].mxu1 %v4221_v58 }
  0x49   : > { %899 = vmatprep.mubr.bf16.mxu0 %v3984_v2  ;;  %1059 = vmatprep.mubr.bf16.mxu1 %v3984_v2 }
  0x50   : > { %900 = vmatmul.mubr.bf16.gmra.mrb[20].mxu0 %v4228_v59  ;;  %1060 = vmatmul.mubr.bf16.gmra.mrb[20].mxu1 %v4231_v60 }
  0x51   : > { %909 = vmatprep.mubr.bf16.mxu0 %v3984_v2  ;;  %1069 = vmatprep.mubr.bf16.mxu1 %v3984_v2 }
  0x58   : > { %910 = vmatmul.mubr.bf16.gmra.mrb[24].mxu0 %v4238_v61  ;;  %1070 = vmatmul.mubr.bf16.gmra.mrb[24].mxu1 %v4241_v62 }
  0x59   : > { %919 = vmatprep.mubr.bf16.mxu0 %v3984_v2  ;;  %1079 = vmatprep.mubr.bf16.mxu1 %v3984_v2 }
  0x60   : > { %920 = vmatmul.mubr.bf16.gmra.mrb[28].mxu0 %v4248_v63  ;;  %1080 = vmatmul.mubr.bf16.gmra.mrb[28].mxu1 %v4251_v0 }
  0x61   : > { %929 = vmatprep.mubr.bf16.mxu0 %v3984_v2  ;;  %1089 = vmatprep.mubr.bf16.mxu1 %v3984_v2 }
  0x68   : > { %930 = vmatmul.mubr.bf16.gmra.mrb[32].mxu0 %v4258_v1  ;;  %1090 = vmatmul.mubr.bf16.gmra.mrb[32].mxu1 %v4261_v3 }
  0x69   : > { %939 = vmatprep.mubr.bf16.mxu0 %v3984_v2  ;;  %1099 = vmatprep.mubr.bf16.mxu1 %v3984_v2 }
  0x70   : > { %940 = vmatmul.mubr.bf16.gmra.mrb[36].mxu0 %v4268_v4  ;;  %1100 = vmatmul.mubr.bf16.gmra.mrb[36].mxu1 %v4271_v5 }
  0x71   : > { %949 = vmatprep.mubr.bf16.mxu0 %v3984_v2  ;;  %1109 = vmatprep.mubr.bf16.mxu1 %v3984_v2 }
  0x78   : > { %950 = vmatmul.mubr.bf16.gmra.mrb[40].mxu0 %v4278_v6  ;;  %1110 = vmatmul.mubr.bf16.gmra.mrb[40].mxu1 %v3925_v7 }
  0x79   : > { %959 = vmatprep.mubr.bf16.mxu0 %v3984_v2  ;;  %1119 = vmatprep.mubr.bf16.mxu1 %v3984_v2 }
  0x80   : > { %960 = vmatmul.mubr.bf16.gmra.mrb[44].mxu0 %v4285_v8  ;;  %1120 = vmatmul.mubr.bf16.gmra.mrb[44].mxu1 %v3933_v9 }
  0x81   : > { %969 = vmatprep.mubr.bf16.mxu0 %v3984_v2  ;;  %1129 = vmatprep.mubr.bf16.mxu1 %v3984_v2 }
  0x88   : > { %970 = vmatmul.mubr.bf16.gmra.mrb[48].mxu0 %v4292_v10  ;;  %1130 = vmatmul.mubr.bf16.gmra.mrb[48].mxu1 %v3935_v11 }
  0x89   : > { %979 = vmatprep.mubr.bf16.mxu0 %v3984_v2  ;;  %1139 = vmatprep.mubr.bf16.mxu1 %v3984_v2 }
  0x90   : > { %980 = vmatmul.mubr.bf16.gmra.mrb[52].mxu0 %v4299_v12  ;;  %1140 = vmatmul.mubr.bf16.gmra.mrb[52].mxu1 %v3943_v13 }
  0x91   : > { %989 = vmatprep.mubr.bf16.mxu0 %v3984_v2  ;;  %1149 = vmatprep.mubr.bf16.mxu1 %v3984_v2 }
  0x98   : > { %990 = vmatmul.mubr.bf16.gmra.mrb[56].mxu0 %v4306_v14  ;;  %1150 = vmatmul.mubr.bf16.gmra.mrb[56].mxu1 %v3945_v15 }
  0x99   : > { %999 = vmatprep.mubr.bf16.mxu0 %v3984_v2  ;;  %1159 = vmatprep.mubr.bf16.mxu1 %v3984_v2 }
  0xa0   : > { %1000 = vmatmul.mubr.bf16.gmra.mrb[60].mxu0 %v4313_v16  ;;  %1160 = vmatmul.mubr.bf16.gmra.mrb[60].mxu1 %v3953_v18 }
  0xa1   : > { %1202 = vmatprep.mubr.bf16.mxu1 %v3984_v2  ;;  %1555 = vmatprep.mubr.bf16.mxu0 %v3984_v2 }
  0xa8   : > { %1203 = vmatmul.mubr.bf16.vlgmr.msra.gmra.mrb[64].mxu1 %v4082_v17  ;;  %1556 = vmatmul.mubr.bf16.vlgmr.msra.gmra.mrb[64].mxu0 %v4082_v17  ;;  %v355_v17 = vlaneseq }
  0xa9   : > { %1212 = vmatprep.mubr.bf16.mxu1 %v3984_v2  ;;  %1565 = vmatprep.mubr.bf16.mxu0 %v3984_v2 }
  0xaa   : > { %v4357_v19 = vshrl.u32 %v355_v17, 7 }
  0xac   : > { %v357_v21 = vsub.s32 0, %v4357_v19  ;;  %v361_v23 = vsub.s32 1, %v4357_v19 }
  0xae   : > { %v4371_v24 = vrot.slane %v4365_v22, %v357_v21  ;;  %v4374_v25 = vrot.slane %v4365_v22, %v361_v23 }
  0xb0   : > { %1213 = vmatmul.mubr.bf16.gmra.mrb[68].mxu1 %v4122_v29  ;;  %1566 = vmatmul.mubr.bf16.gmra.mrb[68].mxu0 %v4122_v29 }
  0xb1   : > { %1222 = vmatprep.mubr.bf16.mxu1 %v3984_v2  ;;  %1575 = vmatprep.mubr.bf16.mxu0 %v3984_v2 }
  0xb8   : > { %1223 = vmatmul.mubr.bf16.gmra.mrb[72].mxu1 %v4150_v37  ;;  %1576 = vmatmul.mubr.bf16.gmra.mrb[72].mxu0 %v4150_v37 }
  0xb9   : > { %1232 = vmatprep.mubr.bf16.mxu1 %v3984_v2  ;;  %1585 = vmatprep.mubr.bf16.mxu0 %v3984_v2 }
  0xc0   : > { %1233 = vmatmul.mubr.bf16.gmra.mrb[76].mxu1 %v4181_v46  ;;  %1586 = vmatmul.mubr.bf16.gmra.mrb[76].mxu0 %v4181_v46 }
  0xc1   : > { %1242 = vmatprep.mubr.bf16.mxu1 %v3984_v2  ;;  %1595 = vmatprep.mubr.bf16.mxu0 %v3984_v2 }
  0xc8   : > { %1243 = vmatmul.mubr.bf16.gmra.mrb[80].mxu1 %v4206_v53  ;;  %1596 = vmatmul.mubr.bf16.gmra.mrb[80].mxu0 %v4206_v53 }
  0xc9   : > { %1252 = vmatprep.mubr.bf16.mxu1 %v3984_v2  ;;  %1605 = vmatprep.mubr.bf16.mxu0 %v3984_v2 }
  0xd0   : > { %1253 = vmatmul.mubr.bf16.gmra.mrb[84].mxu1 %v4228_v59  ;;  %1606 = vmatmul.mubr.bf16.gmra.mrb[84].mxu0 %v4228_v59 }
  0xd1   : > { %1262 = vmatprep.mubr.bf16.mxu1 %v3984_v2  ;;  %1615 = vmatprep.mubr.bf16.mxu0 %v3984_v2 }
  0xd8   : > { %1263 = vmatmul.mubr.bf16.gmra.mrb[88].mxu1 %v4238_v61  ;;  %1616 = vmatmul.mubr.bf16.gmra.mrb[88].mxu0 %v4238_v61 }
  0xd9   : > { %1272 = vmatprep.mubr.bf16.mxu1 %v3984_v2  ;;  %1625 = vmatprep.mubr.bf16.mxu0 %v3984_v2 }
  0xe0   : > { %1273 = vmatmul.mubr.bf16.gmra.mrb[92].mxu1 %v4248_v63  ;;  %1626 = vmatmul.mubr.bf16.gmra.mrb[92].mxu0 %v4248_v63 }
  0xe1   : > { %1282 = vmatprep.mubr.bf16.mxu1 %v3984_v2  ;;  %1635 = vmatprep.mubr.bf16.mxu0 %v3984_v2 }
  0xe8   : > { %1283 = vmatmul.mubr.bf16.gmra.mrb[96].mxu1 %v4258_v1  ;;  %1636 = vmatmul.mubr.bf16.gmra.mrb[96].mxu0 %v4258_v1 }
  0xe9   : > { %1292 = vmatprep.mubr.bf16.mxu1 %v3984_v2  ;;  %1645 = vmatprep.mubr.bf16.mxu0 %v3984_v2 }
  0xf0   : > { %1293 = vmatmul.mubr.bf16.gmra.mrb[100].mxu1 %v4268_v4  ;;  %1646 = vmatmul.mubr.bf16.gmra.mrb[100].mxu0 %v4268_v4 }
  0xf1   : > { %1302 = vmatprep.mubr.bf16.mxu1 %v3984_v2  ;;  %1655 = vmatprep.mubr.bf16.mxu0 %v3984_v2 }
  0xf8   : > { %1303 = vmatmul.mubr.bf16.gmra.mrb[104].mxu1 %v4278_v6  ;;  %1656 = vmatmul.mubr.bf16.gmra.mrb[104].mxu0 %v4278_v6 }
  0xf9   : > { %1312 = vmatprep.mubr.bf16.mxu1 %v3984_v2  ;;  %1665 = vmatprep.mubr.bf16.mxu0 %v3984_v2 }
  0xfb   : > { %v851_v26 = vpop.f32.mrb[0].mxu0  ;;  %v1011_v27 = vpop.f32.mrb[0].mxu1 }
  0xfc   : > { %v852_v28 = vadd.f32 %v851_v26, %v4371_v24  ;;  %v1012_v29 = vadd.f32 %v1011_v27, %v4371_v24  ;;  %v853_v31 = vpop.f32.mrb[1].mxu0  ;;  %v1013_v32 = vpop.f32.mrb[1].mxu1 }
  0xfd   : > { %v854_v33 = vadd.f32 %v853_v31, %v4374_v25  ;;  %v1014_v34 = vadd.f32 %v1013_v32, %v4374_v25  ;;  %v855_v35 = vpop.f32.mrb[2].mxu0  ;;  %v1015_v36 = vpop.f32.mrb[2].mxu1 }
  0xfe   : > { %v856_v37 = vadd.f32 %v855_v35, %v4371_v24  ;;  %v1016_v38 = vadd.f32 %v1015_v36, %v4371_v24  ;;  %v857_v39 = vpop.f32.mrb[3].mxu0  ;;  %v1017_v41 = vpop.f32.mrb[3].mxu1 }
  0xff   : > { %v3616_v42 = vpack.c.bf16 %v854_v33, %v852_v28  ;;  %v3712_v43 = vpack.c.bf16 %v1014_v34, %v1012_v29  ;;  %v858_v44 = vadd.f32 %v857_v39, %v4374_v25  ;;  %v1018_v45 = vadd.f32 %v1017_v41, %v4374_v25 }
 0x100   : > { %1313 = vmatmul.mubr.bf16.gmra.mrb[108].mxu1 %v4285_v8  ;;  %1666 = vmatmul.mubr.bf16.gmra.mrb[108].mxu0 %v4285_v8 }
 0x101   : > { %3028 = vst [vmem:[%s4386_s6] sm:$0xff] %v3616_v42  ;;  %3124 = vst [vmem:[%s4386_s6 + $0x300] sm:$0xff] %v3712_v43  ;;  %v3619_v46 = vpack.c.bf16 %v858_v44, %v856_v37  ;;  %v3715_v47 = vpack.c.bf16 %v1018_v45, %v1016_v38  ;;  %1322 = vmatprep.mubr.bf16.mxu1 %v3984_v2  ;;  %1675 = vmatprep.mubr.bf16.mxu0 %v3984_v2 }
 0x103   : > { %3031 = vst [vmem:[%s4386_s6 + $0x18] sm:$0xff] %v3619_v46  ;;  %3127 = vst [vmem:[%s4386_s6 + $0x318] sm:$0xff] %v3715_v47  ;;  %v861_v49 = vpop.f32.mrb[4].mxu0  ;;  %v1021_v50 = vpop.f32.mrb[4].mxu1 }
 0x104   : > { %v862_v51 = vadd.f32 %v861_v49, %v4371_v24  ;;  %v1022_v52 = vadd.f32 %v1021_v50, %v4371_v24  ;;  %v863_v53 = vpop.f32.mrb[5].mxu0  ;;  %v1023_v54 = vpop.f32.mrb[5].mxu1 }
 0x105   : > { %v864_v55 = vadd.f32 %v863_v53, %v4374_v25  ;;  %v1024_v56 = vadd.f32 %v1023_v54, %v4374_v25  ;;  %v865_v57 = vpop.f32.mrb[6].mxu0  ;;  %v1025_v59 = vpop.f32.mrb[6].mxu1 }
 0x106   : > { %v866_v61 = vadd.f32 %v865_v57, %v4371_v24  ;;  %v1026_v63 = vadd.f32 %v1025_v59, %v4371_v24  ;;  %v867_v1 = vpop.f32.mrb[7].mxu0  ;;  %v1027_v4 = vpop.f32.mrb[7].mxu1 }
 0x107   : > { %v3622_v6 = vpack.c.bf16 %v864_v55, %v862_v51  ;;  %v3718_v7 = vpack.c.bf16 %v1024_v56, %v1022_v52  ;;  %v868_v8 = vadd.f32 %v867_v1, %v4374_v25  ;;  %v1028_v9 = vadd.f32 %v1027_v4, %v4374_v25 }
 0x108   : > { %1323 = vmatmul.mubr.bf16.gmra.mrb[112].mxu1 %v4292_v10  ;;  %1676 = vmatmul.mubr.bf16.gmra.mrb[112].mxu0 %v4292_v10 }
 0x109   : > { %3034 = vst [vmem:[%s4386_s6 + $0x30] sm:$0xff] %v3622_v6  ;;  %3130 = vst [vmem:[%s4386_s6 + $0x330] sm:$0xff] %v3718_v7  ;;  %v3625_v11 = vpack.c.bf16 %v868_v8, %v866_v61  ;;  %v3721_v13 = vpack.c.bf16 %v1028_v9, %v1026_v63  ;;  %1332 = vmatprep.mubr.bf16.mxu1 %v3984_v2  ;;  %1685 = vmatprep.mubr.bf16.mxu0 %v3984_v2 }
 0x10b   : > { %3037 = vst [vmem:[%s4386_s6 + $0x48] sm:$0xff] %v3625_v11  ;;  %3133 = vst [vmem:[%s4386_s6 + $0x348] sm:$0xff] %v3721_v13  ;;  %v871_v15 = vpop.f32.mrb[8].mxu0  ;;  %v1031_v18 = vpop.f32.mrb[8].mxu1 }
 0x10c   : > { %v872_v17 = vadd.f32 %v871_v15, %v4371_v24  ;;  %v1032_v21 = vadd.f32 %v1031_v18, %v4371_v24  ;;  %v873_v23 = vpop.f32.mrb[9].mxu0  ;;  %v1033_v26 = vpop.f32.mrb[9].mxu1 }
 0x10d   : > { %v874_v10 = vadd.f32 %v873_v23, %v4374_v25  ;;  %v1034_v27 = vadd.f32 %v1033_v26, %v4374_v25  ;;  %v875_v28 = vpop.f32.mrb[10].mxu0  ;;  %v1035_v29 = vpop.f32.mrb[10].mxu1 }
 0x10e   : > { %v876_v31 = vadd.f32 %v875_v28, %v4371_v24  ;;  %v1036_v32 = vadd.f32 %v1035_v29, %v4371_v24  ;;  %v877_v33 = vpop.f32.mrb[11].mxu0  ;;  %v1037_v34 = vpop.f32.mrb[11].mxu1 }
 0x10f   : > { %v3628_v35 = vpack.c.bf16 %v874_v10, %v872_v17  ;;  %v3724_v36 = vpack.c.bf16 %v1034_v27, %v1032_v21  ;;  %v878_v37 = vadd.f32 %v877_v33, %v4374_v25  ;;  %v1038_v38 = vadd.f32 %v1037_v34, %v4374_v25 }
 0x110   : > { %1333 = vmatmul.mubr.bf16.gmra.mrb[116].mxu1 %v4299_v12  ;;  %1686 = vmatmul.mubr.bf16.gmra.mrb[116].mxu0 %v4299_v12 }
 0x111   : > { %3040 = vst [vmem:[%s4386_s6 + $0x60] sm:$0xff] %v3628_v35  ;;  %3136 = vst [vmem:[%s4386_s6 + $0x360] sm:$0xff] %v3724_v36  ;;  %v3631_v39 = vpack.c.bf16 %v878_v37, %v876_v31  ;;  %v3727_v41 = vpack.c.bf16 %v1038_v38, %v1036_v32  ;;  %1342 = vmatprep.mubr.bf16.mxu1 %v3984_v2  ;;  %1695 = vmatprep.mubr.bf16.mxu0 %v3984_v2 }
 0x113   : > { %3043 = vst [vmem:[%s4386_s6 + $0x78] sm:$0xff] %v3631_v39  ;;  %3139 = vst [vmem:[%s4386_s6 + $0x378] sm:$0xff] %v3727_v41  ;;  %v881_v42 = vpop.f32.mrb[12].mxu0  ;;  %v1041_v43 = vpop.f32.mrb[12].mxu1 }
 0x114   : > { %v882_v44 = vadd.f32 %v881_v42, %v4371_v24  ;;  %v1042_v45 = vadd.f32 %v1041_v43, %v4371_v24  ;;  %v883_v46 = vpop.f32.mrb[13].mxu0  ;;  %v1043_v47 = vpop.f32.mrb[13].mxu1 }
 0x115   : > { %v884_v12 = vadd.f32 %v883_v46, %v4374_v25  ;;  %v1044_v49 = vadd.f32 %v1043_v47, %v4374_v25  ;;  %v885_v50 = vpop.f32.mrb[14].mxu0  ;;  %v1045_v51 = vpop.f32.mrb[14].mxu1 }
 0x116   : > { %v886_v52 = vadd.f32 %v885_v50, %v4371_v24  ;;  %v1046_v53 = vadd.f32 %v1045_v51, %v4371_v24  ;;  %v887_v54 = vpop.f32.mrb[15].mxu0  ;;  %v1047_v55 = vpop.f32.mrb[15].mxu1 }
 0x117   : > { %v3634_v56 = vpack.c.bf16 %v884_v12, %v882_v44  ;;  %v3730_v57 = vpack.c.bf16 %v1044_v49, %v1042_v45  ;;  %v888_v59 = vadd.f32 %v887_v54, %v4374_v25  ;;  %v1048_v61 = vadd.f32 %v1047_v55, %v4374_v25 }
 0x118   : > { %1343 = vmatmul.mubr.bf16.gmra.mrb[120].mxu1 %v4306_v14  ;;  %1696 = vmatmul.mubr.bf16.gmra.mrb[120].mxu0 %v4306_v14 }
 0x119   : > { %3046 = vst [vmem:[%s4386_s6 + $0x90] sm:$0xff] %v3634_v56  ;;  %3142 = vst [vmem:[%s4386_s6 + $0x390] sm:$0xff] %v3730_v57  ;;  %v3637_v63 = vpack.c.bf16 %v888_v59, %v886_v52  ;;  %v3733_v1 = vpack.c.bf16 %v1048_v61, %v1046_v53  ;;  %1352 = vmatprep.mubr.bf16.mxu1 %v3984_v2  ;;  %1705 = vmatprep.mubr.bf16.mxu0 %v3984_v2 }
 0x11b   : > { %3049 = vst [vmem:[%s4386_s6 + $0xa8] sm:$0xff] %v3637_v63  ;;  %3145 = vst [vmem:[%s4386_s6 + $0x3a8] sm:$0xff] %v3733_v1  ;;  %v891_v4 = vpop.f32.mrb[16].mxu0  ;;  %v1051_v6 = vpop.f32.mrb[16].mxu1 }
 0x11c   : > { %v892_v7 = vadd.f32 %v891_v4, %v4371_v24  ;;  %v1052_v8 = vadd.f32 %v1051_v6, %v4371_v24  ;;  %v893_v9 = vpop.f32.mrb[17].mxu0  ;;  %v1053_v11 = vpop.f32.mrb[17].mxu1 }
 0x11d   : > { %v894_v14 = vadd.f32 %v893_v9, %v4374_v25  ;;  %v1054_v13 = vadd.f32 %v1053_v11, %v4374_v25  ;;  %v895_v15 = vpop.f32.mrb[18].mxu0  ;;  %v1055_v18 = vpop.f32.mrb[18].mxu1 }
 0x11e   : > { %v896_v17 = vadd.f32 %v895_v15, %v4371_v24  ;;  %v1056_v21 = vadd.f32 %v1055_v18, %v4371_v24  ;;  %v897_v23 = vpop.f32.mrb[19].mxu0  ;;  %v1057_v26 = vpop.f32.mrb[19].mxu1 }
 0x11f   : > { %v3640_v10 = vpack.c.bf16 %v894_v14, %v892_v7  ;;  %v3736_v27 = vpack.c.bf16 %v1054_v13, %v1052_v8  ;;  %v898_v28 = vadd.f32 %v897_v23, %v4374_v25  ;;  %v1058_v29 = vadd.f32 %v1057_v26, %v4374_v25 }
 0x120   : > { %1353 = vmatmul.mubr.bf16.gmra.mrb[124].mxu1 %v4313_v16  ;;  %1706 = vmatmul.mubr.bf16.gmra.mrb[124].mxu0 %v4313_v16 }
 0x121   : > { %3052 = vst [vmem:[%s4386_s6 + $0xc0] sm:$0xff] %v3640_v10  ;;  %3148 = vst [vmem:[%s4386_s6 + $0x3c0] sm:$0xff] %v3736_v27  ;;  %v3643_v31 = vpack.c.bf16 %v898_v28, %v896_v17  ;;  %v3739_v32 = vpack.c.bf16 %v1058_v29, %v1056_v21  ;;  %1362 = vmatprep.mubr.bf16.mxu1 %v3984_v2  ;;  %1715 = vmatprep.mubr.bf16.mxu0 %v3984_v2 }
 0x123   : > { %3055 = vst [vmem:[%s4386_s6 + $0xd8] sm:$0xff] %v3643_v31  ;;  %3151 = vst [vmem:[%s4386_s6 + $0x3d8] sm:$0xff] %v3739_v32  ;;  %v901_v33 = vpop.f32.mrb[20].mxu0  ;;  %v1061_v34 = vpop.f32.mrb[20].mxu1 }
 0x124   : > { %v902_v35 = vadd.f32 %v901_v33, %v4371_v24  ;;  %v1062_v36 = vadd.f32 %v1061_v34, %v4371_v24  ;;  %v903_v37 = vpop.f32.mrb[21].mxu0  ;;  %v1063_v38 = vpop.f32.mrb[21].mxu1 }
 0x125   : > { %v904_v16 = vadd.f32 %v903_v37, %v4374_v25  ;;  %v1064_v39 = vadd.f32 %v1063_v38, %v4374_v25  ;;  %v905_v41 = vpop.f32.mrb[22].mxu0  ;;  %v1065_v42 = vpop.f32.mrb[22].mxu1 }
 0x126   : > { %v906_v43 = vadd.f32 %v905_v41, %v4371_v24  ;;  %v1066_v44 = vadd.f32 %v1065_v42, %v4371_v24  ;;  %v907_v45 = vpop.f32.mrb[23].mxu0  ;;  %v1067_v46 = vpop.f32.mrb[23].mxu1 }
 0x127   : > { %v3646_v47 = vpack.c.bf16 %v904_v16, %v902_v35  ;;  %v3742_v12 = vpack.c.bf16 %v1064_v39, %v1062_v36  ;;  %v908_v49 = vadd.f32 %v907_v45, %v4374_v25  ;;  %v1068_v50 = vadd.f32 %v1067_v46, %v4374_v25 }
 0x128   : > { %1363 = vmatmul.mubr.bf16.gmra.mrb[128].mxu1 %v4091_v20  ;;  %1716 = vmatmul.mubr.bf16.gmra.mrb[128].mxu0 %v4091_v20 }
 0x129   : > { %3058 = vst [vmem:[%s4386_s6 + $0xf0] sm:$0xff] %v3646_v47  ;;  %3154 = vst [vmem:[%s4386_s6 + $0x3f0] sm:$0xff] %v3742_v12  ;;  %v3649_v51 = vpack.c.bf16 %v908_v49, %v906_v43  ;;  %v3745_v52 = vpack.c.bf16 %v1068_v50, %v1066_v44  ;;  %1372 = vmatprep.mubr.bf16.mxu1 %v3984_v2  ;;  %1725 = vmatprep.mubr.bf16.mxu0 %v3984_v2 }
 0x12b   : > { %3061 = vst [vmem:[%s4386_s6 + $0x108] sm:$0xff] %v3649_v51  ;;  %3157 = vst [vmem:[%s4386_s6 + $0x408] sm:$0xff] %v3745_v52  ;;  %v911_v53 = vpop.f32.mrb[24].mxu0  ;;  %v1071_v54 = vpop.f32.mrb[24].mxu1 }
 0x12c   : > { %v912_v55 = vadd.f32 %v911_v53, %v4371_v24  ;;  %v1072_v56 = vadd.f32 %v1071_v54, %v4371_v24  ;;  %v913_v57 = vpop.f32.mrb[25].mxu0  ;;  %v1073_v59 = vpop.f32.mrb[25].mxu1 }
 0x12d   : > { %v914_v20 = vadd.f32 %v913_v57, %v4374_v25  ;;  %v1074_v61 = vadd.f32 %v1073_v59, %v4374_v25  ;;  %v915_v63 = vpop.f32.mrb[26].mxu0  ;;  %v1075_v1 = vpop.f32.mrb[26].mxu1 }
 0x12e   : > { %v916_v4 = vadd.f32 %v915_v63, %v4371_v24  ;;  %v1076_v6 = vadd.f32 %v1075_v1, %v4371_v24  ;;  %v917_v7 = vpop.f32.mrb[27].mxu0  ;;  %v1077_v8 = vpop.f32.mrb[27].mxu1 }
 0x12f   : > { %v3652_v9 = vpack.c.bf16 %v914_v20, %v912_v55  ;;  %v3748_v11 = vpack.c.bf16 %v1074_v61, %v1072_v56  ;;  %v918_v14 = vadd.f32 %v917_v7, %v4374_v25  ;;  %v1078_v13 = vadd.f32 %v1077_v8, %v4374_v25 }
 0x130   : > { %1373 = vmatmul.mubr.bf16.gmra.mrb[132].mxu1 %v4125_v30  ;;  %1726 = vmatmul.mubr.bf16.gmra.mrb[132].mxu0 %v4125_v30 }
 0x131   : > { %3064 = vst [vmem:[%s4386_s6 + $0x120] sm:$0xff] %v3652_v9  ;;  %3160 = vst [vmem:[%s4386_s6 + $0x420] sm:$0xff] %v3748_v11  ;;  %v3655_v15 = vpack.c.bf16 %v918_v14, %v916_v4  ;;  %v3751_v18 = vpack.c.bf16 %v1078_v13, %v1076_v6  ;;  %1382 = vmatprep.mubr.bf16.mxu1 %v3984_v2  ;;  %1735 = vmatprep.mubr.bf16.mxu0 %v3984_v2 }
 0x133   : > { %3067 = vst [vmem:[%s4386_s6 + $0x138] sm:$0xff] %v3655_v15  ;;  %3163 = vst [vmem:[%s4386_s6 + $0x438] sm:$0xff] %v3751_v18  ;;  %v921_v17 = vpop.f32.mrb[28].mxu0  ;;  %v1081_v21 = vpop.f32.mrb[28].mxu1 }
 0x134   : > { %v922_v23 = vadd.f32 %v921_v17, %v4371_v24  ;;  %v1082_v26 = vadd.f32 %v1081_v21, %v4371_v24  ;;  %v923_v10 = vpop.f32.mrb[29].mxu0  ;;  %v1083_v27 = vpop.f32.mrb[29].mxu1 }
 0x135   : > { %v924_v30 = vadd.f32 %v923_v10, %v4374_v25  ;;  %v1084_v28 = vadd.f32 %v1083_v27, %v4374_v25  ;;  %v925_v29 = vpop.f32.mrb[30].mxu0  ;;  %v1085_v31 = vpop.f32.mrb[30].mxu1 }
 0x136   : > { %v926_v32 = vadd.f32 %v925_v29, %v4371_v24  ;;  %v1086_v33 = vadd.f32 %v1085_v31, %v4371_v24  ;;  %v927_v34 = vpop.f32.mrb[31].mxu0  ;;  %v1087_v35 = vpop.f32.mrb[31].mxu1 }
 0x137   : > { %v3658_v36 = vpack.c.bf16 %v924_v30, %v922_v23  ;;  %v3754_v37 = vpack.c.bf16 %v1084_v28, %v1082_v26  ;;  %v928_v38 = vadd.f32 %v927_v34, %v4374_v25  ;;  %v1088_v16 = vadd.f32 %v1087_v35, %v4374_v25 }
 0x138   : > { %1383 = vmatmul.mubr.bf16.gmra.mrb[136].mxu1 %v4159_v40  ;;  %1736 = vmatmul.mubr.bf16.gmra.mrb[136].mxu0 %v4159_v40 }
 0x139   : > { %3070 = vst [vmem:[%s4386_s6 + $0x150] sm:$0xff] %v3658_v36  ;;  %3166 = vst [vmem:[%s4386_s6 + $0x450] sm:$0xff] %v3754_v37  ;;  %v3661_v39 = vpack.c.bf16 %v928_v38, %v926_v32  ;;  %v3757_v41 = vpack.c.bf16 %v1088_v16, %v1086_v33  ;;  %1392 = vmatprep.mubr.bf16.mxu1 %v3984_v2  ;;  %1745 = vmatprep.mubr.bf16.mxu0 %v3984_v2 }
 0x13b   : > { %3073 = vst [vmem:[%s4386_s6 + $0x168] sm:$0xff] %v3661_v39  ;;  %3169 = vst [vmem:[%s4386_s6 + $0x468] sm:$0xff] %v3757_v41  ;;  %v931_v42 = vpop.f32.mrb[32].mxu0  ;;  %v1091_v43 = vpop.f32.mrb[32].mxu1 }
 0x13c   : > { %v932_v44 = vadd.f32 %v931_v42, %v4371_v24  ;;  %v1092_v45 = vadd.f32 %v1091_v43, %v4371_v24  ;;  %v933_v46 = vpop.f32.mrb[33].mxu0  ;;  %v1093_v47 = vpop.f32.mrb[33].mxu1 }
 0x13d   : > { %v934_v40 = vadd.f32 %v933_v46, %v4374_v25  ;;  %v1094_v12 = vadd.f32 %v1093_v47, %v4374_v25  ;;  %v935_v49 = vpop.f32.mrb[34].mxu0  ;;  %v1095_v50 = vpop.f32.mrb[34].mxu1 }
 0x13e   : > { %v936_v51 = vadd.f32 %v935_v49, %v4371_v24  ;;  %v1096_v52 = vadd.f32 %v1095_v50, %v4371_v24  ;;  %v937_v53 = vpop.f32.mrb[35].mxu0  ;;  %v1097_v54 = vpop.f32.mrb[35].mxu1 }
 0x13f   : > { %v3664_v55 = vpack.c.bf16 %v934_v40, %v932_v44  ;;  %v3760_v56 = vpack.c.bf16 %v1094_v12, %v1092_v45  ;;  %v938_v57 = vadd.f32 %v937_v53, %v4374_v25  ;;  %v1098_v59 = vadd.f32 %v1097_v54, %v4374_v25 }
 0x140   : > { %1393 = vmatmul.mubr.bf16.gmra.mrb[140].mxu1 %v4187_v48  ;;  %1746 = vmatmul.mubr.bf16.gmra.mrb[140].mxu0 %v4187_v48 }
 0x141   : > { %3076 = vst [vmem:[%s4386_s6 + $0x180] sm:$0xff] %v3664_v55  ;;  %3172 = vst [vmem:[%s4386_s6 + $0x480] sm:$0xff] %v3760_v56  ;;  %v3667_v20 = vpack.c.bf16 %v938_v57, %v936_v51  ;;  %v3763_v61 = vpack.c.bf16 %v1098_v59, %v1096_v52  ;;  %1402 = vmatprep.mubr.bf16.mxu1 %v3984_v2  ;;  %1755 = vmatprep.mubr.bf16.mxu0 %v3984_v2 }
 0x143   : > { %3079 = vst [vmem:[%s4386_s6 + $0x198] sm:$0xff] %v3667_v20  ;;  %3175 = vst [vmem:[%s4386_s6 + $0x498] sm:$0xff] %v3763_v61  ;;  %v941_v63 = vpop.f32.mrb[36].mxu0  ;;  %v1101_v1 = vpop.f32.mrb[36].mxu1 }
 0x144   : > { %v942_v4 = vadd.f32 %v941_v63, %v4371_v24  ;;  %v1102_v6 = vadd.f32 %v1101_v1, %v4371_v24  ;;  %v943_v7 = vpop.f32.mrb[37].mxu0  ;;  %v1103_v8 = vpop.f32.mrb[37].mxu1 }
 0x145   : > { %v944_v48 = vadd.f32 %v943_v7, %v4374_v25  ;;  %v1104_v9 = vadd.f32 %v1103_v8, %v4374_v25  ;;  %v945_v11 = vpop.f32.mrb[38].mxu0  ;;  %v1105_v14 = vpop.f32.mrb[38].mxu1 }
 0x146   : > { %v946_v13 = vadd.f32 %v945_v11, %v4371_v24  ;;  %v1106_v15 = vadd.f32 %v1105_v14, %v4371_v24  ;;  %v947_v18 = vpop.f32.mrb[39].mxu0  ;;  %v1107_v17 = vpop.f32.mrb[39].mxu1 }
 0x147   : > { %v3670_v21 = vpack.c.bf16 %v944_v48, %v942_v4  ;;  %v3766_v23 = vpack.c.bf16 %v1104_v9, %v1102_v6  ;;  %v948_v26 = vadd.f32 %v947_v18, %v4374_v25  ;;  %v1108_v10 = vadd.f32 %v1107_v17, %v4374_v25 }
 0x148   : > { %1403 = vmatmul.mubr.bf16.gmra.mrb[144].mxu1 %v4221_v58  ;;  %1756 = vmatmul.mubr.bf16.gmra.mrb[144].mxu0 %v4221_v58 }
 0x149   : > { %3082 = vst [vmem:[%s4386_s6 + $0x1b0] sm:$0xff] %v3670_v21  ;;  %3178 = vst [vmem:[%s4386_s6 + $0x4b0] sm:$0xff] %v3766_v23  ;;  %v3673_v27 = vpack.c.bf16 %v948_v26, %v946_v13  ;;  %v3769_v30 = vpack.c.bf16 %v1108_v10, %v1106_v15  ;;  %1412 = vmatprep.mubr.bf16.mxu1 %v3984_v2  ;;  %1765 = vmatprep.mubr.bf16.mxu0 %v3984_v2 }
 0x14b   : > { %3085 = vst [vmem:[%s4386_s6 + $0x1c8] sm:$0xff] %v3673_v27  ;;  %3181 = vst [vmem:[%s4386_s6 + $0x4c8] sm:$0xff] %v3769_v30  ;;  %v951_v28 = vpop.f32.mrb[40].mxu0  ;;  %v1111_v29 = vpop.f32.mrb[40].mxu1 }
 0x14c   : > { %v952_v31 = vadd.f32 %v951_v28, %v4371_v24  ;;  %v1112_v32 = vadd.f32 %v1111_v29, %v4371_v24  ;;  %v953_v33 = vpop.f32.mrb[41].mxu0  ;;  %v1113_v34 = vpop.f32.mrb[41].mxu1 }
 0x14d   : > { %v954_v58 = vadd.f32 %v953_v33, %v4374_v25  ;;  %v1114_v35 = vadd.f32 %v1113_v34, %v4374_v25  ;;  %v955_v36 = vpop.f32.mrb[42].mxu0  ;;  %v1115_v37 = vpop.f32.mrb[42].mxu1 }
 0x14e   : > { %v956_v38 = vadd.f32 %v955_v36, %v4371_v24  ;;  %v1116_v16 = vadd.f32 %v1115_v37, %v4371_v24  ;;  %v957_v39 = vpop.f32.mrb[43].mxu0  ;;  %v1117_v41 = vpop.f32.mrb[43].mxu1 }
 0x14f   : > { %v3676_v42 = vpack.c.bf16 %v954_v58, %v952_v31  ;;  %v3772_v43 = vpack.c.bf16 %v1114_v35, %v1112_v32  ;;  %v958_v44 = vadd.f32 %v957_v39, %v4374_v25  ;;  %v1118_v45 = vadd.f32 %v1117_v41, %v4374_v25 }
 0x150   : > { %1413 = vmatmul.mubr.bf16.gmra.mrb[148].mxu1 %v4231_v60  ;;  %1766 = vmatmul.mubr.bf16.gmra.mrb[148].mxu0 %v4231_v60 }
 0x151   : > { %3088 = vst [vmem:[%s4386_s6 + $0x1e0] sm:$0xff] %v3676_v42  ;;  %3184 = vst [vmem:[%s4386_s6 + $0x4e0] sm:$0xff] %v3772_v43  ;;  %v3679_v46 = vpack.c.bf16 %v958_v44, %v956_v38  ;;  %v3775_v47 = vpack.c.bf16 %v1118_v45, %v1116_v16  ;;  %1422 = vmatprep.mubr.bf16.mxu1 %v3984_v2  ;;  %1775 = vmatprep.mubr.bf16.mxu0 %v3984_v2 }
 0x153   : > { %3091 = vst [vmem:[%s4386_s6 + $0x1f8] sm:$0xff] %v3679_v46  ;;  %3187 = vst [vmem:[%s4386_s6 + $0x4f8] sm:$0xff] %v3775_v47  ;;  %v961_v40 = vpop.f32.mrb[44].mxu0  ;;  %v1121_v12 = vpop.f32.mrb[44].mxu1 }
 0x154   : > { %v962_v49 = vadd.f32 %v961_v40, %v4371_v24  ;;  %v1122_v50 = vadd.f32 %v1121_v12, %v4371_v24  ;;  %v963_v51 = vpop.f32.mrb[45].mxu0  ;;  %v1123_v52 = vpop.f32.mrb[45].mxu1 }
 0x155   : > { %v964_v60 = vadd.f32 %v963_v51, %v4374_v25  ;;  %v1124_v53 = vadd.f32 %v1123_v52, %v4374_v25  ;;  %v965_v54 = vpop.f32.mrb[46].mxu0  ;;  %v1125_v55 = vpop.f32.mrb[46].mxu1 }
 0x156   : > { %v966_v56 = vadd.f32 %v965_v54, %v4371_v24  ;;  %v1126_v57 = vadd.f32 %v1125_v55, %v4371_v24  ;;  %v967_v59 = vpop.f32.mrb[47].mxu0  ;;  %v1127_v20 = vpop.f32.mrb[47].mxu1 }
 0x157   : > { %v3682_v61 = vpack.c.bf16 %v964_v60, %v962_v49  ;;  %v3778_v63 = vpack.c.bf16 %v1124_v53, %v1122_v50  ;;  %v968_v1 = vadd.f32 %v967_v59, %v4374_v25  ;;  %v1128_v4 = vadd.f32 %v1127_v20, %v4374_v25 }
 0x158   : > { %1423 = vmatmul.mubr.bf16.gmra.mrb[152].mxu1 %v4241_v62  ;;  %1776 = vmatmul.mubr.bf16.gmra.mrb[152].mxu0 %v4241_v62 }
 0x159   : > { %3094 = vst [vmem:[%s4386_s6 + $0x210] sm:$0xff] %v3682_v61  ;;  %3190 = vst [vmem:[%s4386_s6 + $0x510] sm:$0xff] %v3778_v63  ;;  %v3685_v6 = vpack.c.bf16 %v968_v1, %v966_v56  ;;  %v3781_v7 = vpack.c.bf16 %v1128_v4, %v1126_v57  ;;  %1432 = vmatprep.mubr.bf16.mxu1 %v3984_v2  ;;  %1785 = vmatprep.mubr.bf16.mxu0 %v3984_v2 }
 0x15b   : > { %3097 = vst [vmem:[%s4386_s6 + $0x228] sm:$0xff] %v3685_v6  ;;  %3193 = vst [vmem:[%s4386_s6 + $0x528] sm:$0xff] %v3781_v7  ;;  %v971_v8 = vpop.f32.mrb[48].mxu0  ;;  %v1131_v48 = vpop.f32.mrb[48].mxu1 }
 0x15c   : > { %v972_v9 = vadd.f32 %v971_v8, %v4371_v24  ;;  %v1132_v11 = vadd.f32 %v1131_v48, %v4371_v24  ;;  %v973_v14 = vpop.f32.mrb[49].mxu0  ;;  %v1133_v13 = vpop.f32.mrb[49].mxu1 }
 0x15d   : > { %v974_v62 = vadd.f32 %v973_v14, %v4374_v25  ;;  %v1134_v15 = vadd.f32 %v1133_v13, %v4374_v25  ;;  %v975_v18 = vpop.f32.mrb[50].mxu0  ;;  %v1135_v17 = vpop.f32.mrb[50].mxu1  ;;  %v365_v14 = vsub.s32 2, %v4357_v19 }
 0x15e   : > { %v976_v21 = vadd.f32 %v975_v18, %v4371_v24  ;;  %v1136_v23 = vadd.f32 %v1135_v17, %v4371_v24  ;;  %v977_v26 = vpop.f32.mrb[51].mxu0  ;;  %v1137_v10 = vpop.f32.mrb[51].mxu1  ;;  %v373_v18 = vsub.s32 4, %v4357_v19  ;;  %v369_v17 = vsub.s32 3, %v4357_v19 }
 0x15f   : > { %v3688_v27 = vpack.c.bf16 %v974_v62, %v972_v9  ;;  %v3784_v30 = vpack.c.bf16 %v1134_v15, %v1132_v11  ;;  %v978_v28 = vadd.f32 %v977_v26, %v4374_v25  ;;  %v1138_v29 = vadd.f32 %v1137_v10, %v4374_v25 }
 0x160   : > { %1433 = vmatmul.mubr.bf16.gmra.mrb[156].mxu1 %v4251_v0  ;;  %1786 = vmatmul.mubr.bf16.gmra.mrb[156].mxu0 %v4251_v0 }
 0x161   : > { %3100 = vst [vmem:[%s4386_s6 + $0x240] sm:$0xff] %v3688_v27  ;;  %3196 = vst [vmem:[%s4386_s6 + $0x540] sm:$0xff] %v3784_v30  ;;  %v3691_v31 = vpack.c.bf16 %v978_v28, %v976_v21  ;;  %v3787_v32 = vpack.c.bf16 %v1138_v29, %v1136_v23  ;;  %1442 = vmatprep.mubr.bf16.mxu1 %v3984_v2  ;;  %1795 = vmatprep.mubr.bf16.mxu0 %v3984_v2  ;;  %v377_v27 = vsub.s32 5, %v4357_v19 }
 0x162   : > { %v4638_v19 = vrot.slane %v4365_v22, %v365_v14 }
 0x163   : > { %3103 = vst [vmem:[%s4386_s6 + $0x258] sm:$0xff] %v3691_v31  ;;  %3199 = vst [vmem:[%s4386_s6 + $0x558] sm:$0xff] %v3787_v32  ;;  %v981_v33 = vpop.f32.mrb[52].mxu0  ;;  %v1141_v34 = vpop.f32.mrb[52].mxu1 }
 0x164   : > { %v982_v58 = vadd.f32 %v981_v33, %v4371_v24  ;;  %v1142_v35 = vadd.f32 %v1141_v34, %v4371_v24  ;;  %v983_v36 = vpop.f32.mrb[53].mxu0  ;;  %v1143_v37 = vpop.f32.mrb[53].mxu1 }
 0x165   : > { %v984_v0 = vadd.f32 %v983_v36, %v4374_v25  ;;  %v1144_v38 = vadd.f32 %v1143_v37, %v4374_v25  ;;  %v985_v16 = vpop.f32.mrb[54].mxu0  ;;  %v1145_v39 = vpop.f32.mrb[54].mxu1  ;;  %v4641_v36 = vrot.slane %v4365_v22, %v373_v18 }
 0x166   : > { %v986_v41 = vadd.f32 %v985_v16, %v4371_v24  ;;  %v1146_v42 = vadd.f32 %v1145_v39, %v4371_v24  ;;  %v987_v43 = vpop.f32.mrb[55].mxu0  ;;  %v1147_v44 = vpop.f32.mrb[55].mxu1 }
 0x167   : > { %v3694_v45 = vpack.c.bf16 %v984_v0, %v982_v58  ;;  %v3790_v46 = vpack.c.bf16 %v1144_v38, %v1142_v35  ;;  %v988_v47 = vadd.f32 %v987_v43, %v4374_v25  ;;  %v1148_v40 = vadd.f32 %v1147_v44, %v4374_v25  ;;  %v3954_v35 = vld [vmem:[%s4052_s7 + $0xd0] sm:$0xff]  }
 0x168   : > { %1443 = vmatmul.mubr.bf16.gmra.mrb[160].mxu1 %v4261_v3  ;;  %1796 = vmatmul.mubr.bf16.gmra.mrb[160].mxu0 %v4261_v3  ;;  %v4649_v38 = vrot.slane %v4365_v22, %v377_v27 }
 0x169   : > { %3106 = vst [vmem:[%s4386_s6 + $0x270] sm:$0xff] %v3694_v45  ;;  %3202 = vst [vmem:[%s4386_s6 + $0x570] sm:$0xff] %v3790_v46  ;;  %v3697_v12 = vpack.c.bf16 %v988_v47, %v986_v41  ;;  %v3793_v49 = vpack.c.bf16 %v1148_v40, %v1146_v42  ;;  %1452 = vmatprep.mubr.bf16.mxu1 %v3984_v2  ;;  %1805 = vmatprep.mubr.bf16.mxu0 %v3984_v2 }
 0x16b   : > { %3109 = vst [vmem:[%s4386_s6 + $0x288] sm:$0xff] %v3697_v12  ;;  %3205 = vst [vmem:[%s4386_s6 + $0x588] sm:$0xff] %v3793_v49  ;;  %v991_v50 = vpop.f32.mrb[56].mxu0  ;;  %v1151_v51 = vpop.f32.mrb[56].mxu1 }
 0x16c   : > { %v992_v52 = vadd.f32 %v991_v50, %v4371_v24  ;;  %v1152_v60 = vadd.f32 %v1151_v51, %v4371_v24  ;;  %v993_v53 = vpop.f32.mrb[57].mxu0  ;;  %v1153_v54 = vpop.f32.mrb[57].mxu1 }
 0x16d   : > { %v994_v3 = vadd.f32 %v993_v53, %v4374_v25  ;;  %v1154_v55 = vadd.f32 %v1153_v54, %v4374_v25  ;;  %v995_v56 = vpop.f32.mrb[58].mxu0  ;;  %v1155_v57 = vpop.f32.mrb[58].mxu1  ;;  %v3955_v53 = vld [vmem:[%s4052_s7 + $0xd8] sm:$0xff]  }
 0x16e   : > { %v996_v59 = vadd.f32 %v995_v56, %v4371_v24  ;;  %v1156_v20 = vadd.f32 %v1155_v57, %v4371_v24  ;;  %v997_v61 = vpop.f32.mrb[59].mxu0  ;;  %v1157_v63 = vpop.f32.mrb[59].mxu1 }
 0x16f   : > { %v3700_v1 = vpack.c.bf16 %v994_v3, %v992_v52  ;;  %v3796_v4 = vpack.c.bf16 %v1154_v55, %v1152_v60  ;;  %v998_v6 = vadd.f32 %v997_v61, %v4374_v25  ;;  %v1158_v7 = vadd.f32 %v1157_v63, %v4374_v25 }
 0x170   : > { %1453 = vmatmul.mubr.bf16.gmra.mrb[164].mxu1 %v4271_v5  ;;  %1806 = vmatmul.mubr.bf16.gmra.mrb[164].mxu0 %v4271_v5 }
 0x171   : > { %3112 = vst [vmem:[%s4386_s6 + $0x2a0] sm:$0xff] %v3700_v1  ;;  %3208 = vst [vmem:[%s4386_s6 + $0x5a0] sm:$0xff] %v3796_v4  ;;  %v3703_v8 = vpack.c.bf16 %v998_v6, %v996_v59  ;;  %v3799_v48 = vpack.c.bf16 %v1158_v7, %v1156_v20  ;;  %1462 = vmatprep.mubr.bf16.mxu1 %v3984_v2  ;;  %1815 = vmatprep.mubr.bf16.mxu0 %v3984_v2 }
 0x173   : > { %3115 = vst [vmem:[%s4386_s6 + $0x2b8] sm:$0xff] %v3703_v8  ;;  %3211 = vst [vmem:[%s4386_s6 + $0x5b8] sm:$0xff] %v3799_v48  ;;  %v1001_v9 = vpop.f32.mrb[60].mxu0  ;;  %v1161_v11 = vpop.f32.mrb[60].mxu1 }
 0x174   : > { %v1002_v13 = vadd.f32 %v1001_v9, %v4371_v24  ;;  %v1162_v62 = vadd.f32 %v1161_v11, %v4371_v24  ;;  %v1003_v15 = vpop.f32.mrb[61].mxu0  ;;  %v1163_v5 = vpop.f32.mrb[61].mxu1 }
 0x175   : > { %v1004_v21 = vadd.f32 %v1003_v15, %v4374_v25  ;;  %v1164_v23 = vadd.f32 %v1163_v5, %v4374_v25  ;;  %v1005_v26 = vpop.f32.mrb[62].mxu0  ;;  %v1165_v10 = vpop.f32.mrb[62].mxu1  ;;  %v3956_v15 = vld [vmem:[%s4052_s7 + $0xe0] sm:$0xff]  }
 0x176   : > { %v1006_v30 = vadd.f32 %v1005_v26, %v4371_v24  ;;  %v1166_v28 = vadd.f32 %v1165_v10, %v4371_v24  ;;  %v1007_v29 = vpop.f32.mrb[63].mxu0  ;;  %v1167_v31 = vpop.f32.mrb[63].mxu1  ;;  %v4644_v24 = vrot.slane %v4365_v22, %v369_v17 }
 0x177   : > { %v3706_v32 = vpack.c.bf16 %v1004_v21, %v1002_v13  ;;  %v3802_v33 = vpack.c.bf16 %v1164_v23, %v1162_v62  ;;  %v1008_v34 = vadd.f32 %v1007_v29, %v4374_v25  ;;  %v1168_v58 = vadd.f32 %v1167_v31, %v4374_v25 }
 0x178   : > { %1463 = vmatmul.mubr.bf16.gmra.mrb[168].mxu1 %v3954_v35  ;;  %1816 = vmatmul.mubr.bf16.gmra.mrb[168].mxu0 %v3954_v35 }
 0x179   : > { %3118 = vst [vmem:[%s4386_s6 + $0x2d0] sm:$0xff] %v3706_v32  ;;  %3214 = vst [vmem:[%s4386_s6 + $0x5d0] sm:$0xff] %v3802_v33  ;;  %v3709_v37 = vpack.c.bf16 %v1008_v34, %v1006_v30  ;;  %v3805_v0 = vpack.c.bf16 %v1168_v58, %v1166_v28  ;;  %1472 = vmatprep.mubr.bf16.mxu1 %v3984_v2  ;;  %1825 = vmatprep.mubr.bf16.mxu0 %v3984_v2 }
 0x17b   : > { %3121 = vst [vmem:[%s4386_s6 + $0x2e8] sm:$0xff] %v3709_v37  ;;  %3217 = vst [vmem:[%s4386_s6 + $0x5e8] sm:$0xff] %v3805_v0  ;;  %v1204_v25 = vpop.f32.mrb[64].mxu1  ;;  %v1557_v16 = vpop.f32.mrb[64].mxu0 }
 0x17c   : > { %v1205_v39 = vadd.f32 %v1204_v25, %v4638_v19  ;;  %v1558_v41 = vadd.f32 %v1557_v16, %v4641_v36  ;;  %v1206_v42 = vpop.f32.mrb[65].mxu1  ;;  %v1559_v43 = vpop.f32.mrb[65].mxu0  ;;  %v3957_v16 = vld [vmem:[%s4052_s7 + $0xe8] sm:$0xff]  }
 0x17d   : > { %v1207_v44 = vadd.f32 %v1206_v42, %v4644_v24  ;;  %v1560_v22 = vadd.f32 %v1559_v43, %v4649_v38  ;;  %v1208_v45 = vpop.f32.mrb[66].mxu1  ;;  %v1561_v46 = vpop.f32.mrb[66].mxu0 }
 0x17e   : > { %v1209_v47 = vadd.f32 %v1208_v45, %v4638_v19  ;;  %v1562_v40 = vadd.f32 %v1561_v46, %v4641_v36  ;;  %v1210_v12 = vpop.f32.mrb[67].mxu1  ;;  %v1563_v49 = vpop.f32.mrb[67].mxu0 }
 0x17f   : > { %v3617_v50 = vpack.c.bf16 %v1207_v44, %v1205_v39  ;;  %v3618_v51 = vpack.c.bf16 %v1560_v22, %v1558_v41  ;;  %v1211_v52 = vadd.f32 %v1210_v12, %v4644_v24  ;;  %v1564_v60 = vadd.f32 %v1563_v49, %v4649_v38 }
 0x180   : > { %1473 = vmatmul.mubr.bf16.gmra.mrb[172].mxu1 %v3955_v53  ;;  %1826 = vmatmul.mubr.bf16.gmra.mrb[172].mxu0 %v3955_v53 }
 0x181   : > { %3029 = vst [vmem:[%s4386_s6 + $0x8] sm:$0xff] %v3617_v50  ;;  %3030 = vst [vmem:[%s4386_s6 + $0x10] sm:$0xff] %v3618_v51  ;;  %v3620_v54 = vpack.c.bf16 %v1211_v52, %v1209_v47  ;;  %v3621_v3 = vpack.c.bf16 %v1564_v60, %v1562_v40  ;;  %1482 = vmatprep.mubr.bf16.mxu1 %v3984_v2  ;;  %1835 = vmatprep.mubr.bf16.mxu0 %v3984_v2 }
 0x183   : > { %3032 = vst [vmem:[%s4386_s6 + $0x20] sm:$0xff] %v3620_v54  ;;  %3033 = vst [vmem:[%s4386_s6 + $0x28] sm:$0xff] %v3621_v3  ;;  %v1214_v55 = vpop.f32.mrb[68].mxu1  ;;  %v1567_v56 = vpop.f32.mrb[68].mxu0 }
 0x184   : > { %v1215_v57 = vadd.f32 %v1214_v55, %v4638_v19  ;;  %v1568_v59 = vadd.f32 %v1567_v56, %v4641_v36  ;;  %v1216_v20 = vpop.f32.mrb[69].mxu1  ;;  %v1569_v61 = vpop.f32.mrb[69].mxu0  ;;  %v3958_v56 = vld [vmem:[%s4052_s7 + $0xf0] sm:$0xff]  }
 0x185   : > { %v1217_v63 = vadd.f32 %v1216_v20, %v4644_v24  ;;  %v1570_v1 = vadd.f32 %v1569_v61, %v4649_v38  ;;  %v1218_v4 = vpop.f32.mrb[70].mxu1  ;;  %v1571_v6 = vpop.f32.mrb[70].mxu0 }
 0x186   : > { %v1219_v7 = vadd.f32 %v1218_v4, %v4638_v19  ;;  %v1572_v8 = vadd.f32 %v1571_v6, %v4641_v36  ;;  %v1220_v48 = vpop.f32.mrb[71].mxu1  ;;  %v1573_v9 = vpop.f32.mrb[71].mxu0 }
 0x187   : > { %v3623_v11 = vpack.c.bf16 %v1217_v63, %v1215_v57  ;;  %v3624_v14 = vpack.c.bf16 %v1570_v1, %v1568_v59  ;;  %v1221_v13 = vadd.f32 %v1220_v48, %v4644_v24  ;;  %v1574_v62 = vadd.f32 %v1573_v9, %v4649_v38 }
 0x188   : > { %1483 = vmatmul.mubr.bf16.gmra.mrb[176].mxu1 %v3956_v15  ;;  %1836 = vmatmul.mubr.bf16.gmra.mrb[176].mxu0 %v3956_v15 }
 0x189   : > { %3035 = vst [vmem:[%s4386_s6 + $0x38] sm:$0xff] %v3623_v11  ;;  %3036 = vst [vmem:[%s4386_s6 + $0x40] sm:$0xff] %v3624_v14  ;;  %v3626_v5 = vpack.c.bf16 %v1221_v13, %v1219_v7  ;;  %v3627_v18 = vpack.c.bf16 %v1574_v62, %v1572_v8  ;;  %1492 = vmatprep.mubr.bf16.mxu1 %v3984_v2  ;;  %1845 = vmatprep.mubr.bf16.mxu0 %v3984_v2 }
 0x18b   : > { %3038 = vst [vmem:[%s4386_s6 + $0x50] sm:$0xff] %v3626_v5  ;;  %3039 = vst [vmem:[%s4386_s6 + $0x58] sm:$0xff] %v3627_v18  ;;  %v1224_v17 = vpop.f32.mrb[72].mxu1  ;;  %v1577_v21 = vpop.f32.mrb[72].mxu0 }
 0x18c   : > { %v1225_v23 = vadd.f32 %v1224_v17, %v4638_v19  ;;  %v1578_v26 = vadd.f32 %v1577_v21, %v4641_v36  ;;  %v1226_v10 = vpop.f32.mrb[73].mxu1  ;;  %v1579_v27 = vpop.f32.mrb[73].mxu0  ;;  %v3959_v17 = vld [vmem:[%s4052_s7 + $0xf8] sm:$0xff]  }
 0x18d   : > { %v1227_v30 = vadd.f32 %v1226_v10, %v4644_v24  ;;  %v1580_v28 = vadd.f32 %v1579_v27, %v4649_v38  ;;  %v1228_v29 = vpop.f32.mrb[74].mxu1  ;;  %v1581_v31 = vpop.f32.mrb[74].mxu0 }
 0x18e   : > { %v1229_v32 = vadd.f32 %v1228_v29, %v4638_v19  ;;  %v1582_v33 = vadd.f32 %v1581_v31, %v4641_v36  ;;  %v1230_v34 = vpop.f32.mrb[75].mxu1  ;;  %v1583_v58 = vpop.f32.mrb[75].mxu0 }
 0x18f   : > { %v3629_v35 = vpack.c.bf16 %v1227_v30, %v1225_v23  ;;  %v3630_v37 = vpack.c.bf16 %v1580_v28, %v1578_v26  ;;  %v1231_v0 = vadd.f32 %v1230_v34, %v4644_v24  ;;  %v1584_v25 = vadd.f32 %v1583_v58, %v4649_v38 }
 0x190   : > { %1493 = vmatmul.mubr.bf16.gmra.mrb[180].mxu1 %v3957_v16  ;;  %1846 = vmatmul.mubr.bf16.gmra.mrb[180].mxu0 %v3957_v16 }
 0x191   : > { %3041 = vst [vmem:[%s4386_s6 + $0x68] sm:$0xff] %v3629_v35  ;;  %3042 = vst [vmem:[%s4386_s6 + $0x70] sm:$0xff] %v3630_v37  ;;  %v3632_v39 = vpack.c.bf16 %v1231_v0, %v1229_v32  ;;  %v3633_v41 = vpack.c.bf16 %v1584_v25, %v1582_v33  ;;  %1502 = vmatprep.mubr.bf16.mxu1 %v3984_v2  ;;  %1855 = vmatprep.mubr.bf16.mxu0 %v3984_v2 }
 0x193   : > { %3044 = vst [vmem:[%s4386_s6 + $0x80] sm:$0xff] %v3632_v39  ;;  %3045 = vst [vmem:[%s4386_s6 + $0x88] sm:$0xff] %v3633_v41  ;;  %v1234_v42 = vpop.f32.mrb[76].mxu1  ;;  %v1587_v43 = vpop.f32.mrb[76].mxu0 }
 0x194   : > { %v1235_v44 = vadd.f32 %v1234_v42, %v4638_v19  ;;  %v1588_v22 = vadd.f32 %v1587_v43, %v4641_v36  ;;  %v1236_v45 = vpop.f32.mrb[77].mxu1  ;;  %v1589_v46 = vpop.f32.mrb[77].mxu0 }
 0x195   : > { %v1237_v47 = vadd.f32 %v1236_v45, %v4644_v24  ;;  %v1590_v40 = vadd.f32 %v1589_v46, %v4649_v38  ;;  %v1238_v12 = vpop.f32.mrb[78].mxu1  ;;  %v1591_v49 = vpop.f32.mrb[78].mxu0 }
 0x196   : > { %v1239_v50 = vadd.f32 %v1238_v12, %v4638_v19  ;;  %v1592_v51 = vadd.f32 %v1591_v49, %v4641_v36  ;;  %v1240_v52 = vpop.f32.mrb[79].mxu1  ;;  %v1593_v60 = vpop.f32.mrb[79].mxu0 }
 0x197   : > { %v3635_v53 = vpack.c.bf16 %v1237_v47, %v1235_v44  ;;  %v3636_v54 = vpack.c.bf16 %v1590_v40, %v1588_v22  ;;  %v1241_v3 = vadd.f32 %v1240_v52, %v4644_v24  ;;  %v1594_v55 = vadd.f32 %v1593_v60, %v4649_v38 }
 0x198   : > { %1503 = vmatmul.mubr.bf16.gmra.mrb[184].mxu1 %v3958_v56  ;;  %1856 = vmatmul.mubr.bf16.gmra.mrb[184].mxu0 %v3958_v56 }
 0x199   : > { %3047 = vst [vmem:[%s4386_s6 + $0x98] sm:$0xff] %v3635_v53  ;;  %3048 = vst [vmem:[%s4386_s6 + $0xa0] sm:$0xff] %v3636_v54  ;;  %v3638_v57 = vpack.c.bf16 %v1241_v3, %v1239_v50  ;;  %v3639_v59 = vpack.c.bf16 %v1594_v55, %v1592_v51  ;;  %1512 = vmatprep.mubr.bf16.mxu1 %v3984_v2  ;;  %1865 = vmatprep.mubr.bf16.mxu0 %v3984_v2 }
 0x19b   : > { %3050 = vst [vmem:[%s4386_s6 + $0xb0] sm:$0xff] %v3638_v57  ;;  %3051 = vst [vmem:[%s4386_s6 + $0xb8] sm:$0xff] %v3639_v59  ;;  %v1244_v20 = vpop.f32.mrb[80].mxu1  ;;  %v1597_v61 = vpop.f32.mrb[80].mxu0 }
 0x19c   : > { %v1245_v63 = vadd.f32 %v1244_v20, %v4638_v19  ;;  %v1598_v1 = vadd.f32 %v1597_v61, %v4641_v36  ;;  %v1246_v4 = vpop.f32.mrb[81].mxu1  ;;  %v1599_v6 = vpop.f32.mrb[81].mxu0 }
 0x19d   : > { %v1247_v7 = vadd.f32 %v1246_v4, %v4644_v24  ;;  %v1600_v8 = vadd.f32 %v1599_v6, %v4649_v38  ;;  %v1248_v48 = vpop.f32.mrb[82].mxu1  ;;  %v1601_v9 = vpop.f32.mrb[82].mxu0 }
 0x19e   : > { %v1249_v2 = vadd.f32 %v1248_v48, %v4638_v19  ;;  %v1602_v11 = vadd.f32 %v1601_v9, %v4641_v36  ;;  %v1250_v14 = vpop.f32.mrb[83].mxu1  ;;  %v1603_v13 = vpop.f32.mrb[83].mxu0 }
 0x19f   : > { %v3641_v62 = vpack.c.bf16 %v1247_v7, %v1245_v63  ;;  %v3642_v15 = vpack.c.bf16 %v1600_v8, %v1598_v1  ;;  %v1251_v5 = vadd.f32 %v1250_v14, %v4644_v24  ;;  %v1604_v18 = vadd.f32 %v1603_v13, %v4649_v38 }
 0x1a0   : > { %1513 = vmatmul.mubr.bf16.gmra.mrb[188].mxu1 %v3959_v17  ;;  %1866 = vmatmul.mubr.bf16.gmra.mrb[188].mxu0 %v3959_v17 }
 0x1a1   : > { %3053 = vst [vmem:[%s4386_s6 + $0xc8] sm:$0xff] %v3641_v62  ;;  %3054 = vst [vmem:[%s4386_s6 + $0xd0] sm:$0xff] %v3642_v15  ;;  %v3644_v21 = vpack.c.bf16 %v1251_v5, %v1249_v2  ;;  %v3645_v23 = vpack.c.bf16 %v1604_v18, %v1602_v11 }
 0x1a3   : > { %3056 = vst [vmem:[%s4386_s6 + $0xe0] sm:$0xff] %v3644_v21  ;;  %3057 = vst [vmem:[%s4386_s6 + $0xe8] sm:$0xff] %v3645_v23  ;;  %v1254_v26 = vpop.f32.mrb[84].mxu1  ;;  %v1607_v10 = vpop.f32.mrb[84].mxu0 }
 0x1a4   : > { %v1255_v27 = vadd.f32 %v1254_v26, %v4638_v19  ;;  %v1608_v30 = vadd.f32 %v1607_v10, %v4641_v36  ;;  %v1256_v28 = vpop.f32.mrb[85].mxu1  ;;  %v1609_v29 = vpop.f32.mrb[85].mxu0 }
 0x1a5   : > { %v1257_v31 = vadd.f32 %v1256_v28, %v4644_v24  ;;  %v1610_v32 = vadd.f32 %v1609_v29, %v4649_v38  ;;  %v1258_v33 = vpop.f32.mrb[86].mxu1  ;;  %v1611_v34 = vpop.f32.mrb[86].mxu0 }
 0x1a6   : > { %v1259_v58 = vadd.f32 %v1258_v33, %v4638_v19  ;;  %v1612_v35 = vadd.f32 %v1611_v34, %v4641_v36  ;;  %v1260_v37 = vpop.f32.mrb[87].mxu1  ;;  %v1613_v0 = vpop.f32.mrb[87].mxu0 }
 0x1a7   : > { %v3647_v25 = vpack.c.bf16 %v1257_v31, %v1255_v27  ;;  %v3648_v16 = vpack.c.bf16 %v1610_v32, %v1608_v30  ;;  %v1261_v39 = vadd.f32 %v1260_v37, %v4644_v24  ;;  %v1614_v41 = vadd.f32 %v1613_v0, %v4649_v38 }
 0x1a9   : > { %3059 = vst [vmem:[%s4386_s6 + $0xf8] sm:$0xff] %v3647_v25  ;;  %3060 = vst [vmem:[%s4386_s6 + $0x100] sm:$0xff] %v3648_v16  ;;  %v3650_v42 = vpack.c.bf16 %v1261_v39, %v1259_v58  ;;  %v3651_v43 = vpack.c.bf16 %v1614_v41, %v1612_v35 }
 0x1ab   : > { %3062 = vst [vmem:[%s4386_s6 + $0x110] sm:$0xff] %v3650_v42  ;;  %3063 = vst [vmem:[%s4386_s6 + $0x118] sm:$0xff] %v3651_v43  ;;  %v1264_v44 = vpop.f32.mrb[88].mxu1  ;;  %v1617_v22 = vpop.f32.mrb[88].mxu0 }
 0x1ac   : > { %v1265_v45 = vadd.f32 %v1264_v44, %v4638_v19  ;;  %v1618_v46 = vadd.f32 %v1617_v22, %v4641_v36  ;;  %v1266_v47 = vpop.f32.mrb[89].mxu1  ;;  %v1619_v40 = vpop.f32.mrb[89].mxu0 }
 0x1ad   : > { %v1267_v12 = vadd.f32 %v1266_v47, %v4644_v24  ;;  %v1620_v49 = vadd.f32 %v1619_v40, %v4649_v38  ;;  %v1268_v50 = vpop.f32.mrb[90].mxu1  ;;  %v1621_v51 = vpop.f32.mrb[90].mxu0 }
 0x1ae   : > { %v1269_v52 = vadd.f32 %v1268_v50, %v4638_v19  ;;  %v1622_v60 = vadd.f32 %v1621_v51, %v4641_v36  ;;  %v1270_v53 = vpop.f32.mrb[91].mxu1  ;;  %v1623_v54 = vpop.f32.mrb[91].mxu0 }
 0x1af   : > { %v3653_v3 = vpack.c.bf16 %v1267_v12, %v1265_v45  ;;  %v3654_v55 = vpack.c.bf16 %v1620_v49, %v1618_v46  ;;  %v1271_v56 = vadd.f32 %v1270_v53, %v4644_v24  ;;  %v1624_v57 = vadd.f32 %v1623_v54, %v4649_v38 }
 0x1b1   : > { %3065 = vst [vmem:[%s4386_s6 + $0x128] sm:$0xff] %v3653_v3  ;;  %3066 = vst [vmem:[%s4386_s6 + $0x130] sm:$0xff] %v3654_v55  ;;  %v3656_v59 = vpack.c.bf16 %v1271_v56, %v1269_v52  ;;  %v3657_v20 = vpack.c.bf16 %v1624_v57, %v1622_v60 }
 0x1b3   : > { %3068 = vst [vmem:[%s4386_s6 + $0x140] sm:$0xff] %v3656_v59  ;;  %3069 = vst [vmem:[%s4386_s6 + $0x148] sm:$0xff] %v3657_v20  ;;  %v1274_v61 = vpop.f32.mrb[92].mxu1  ;;  %v1627_v63 = vpop.f32.mrb[92].mxu0 }
 0x1b4   : > { %v1275_v1 = vadd.f32 %v1274_v61, %v4638_v19  ;;  %v1628_v4 = vadd.f32 %v1627_v63, %v4641_v36  ;;  %v1276_v6 = vpop.f32.mrb[93].mxu1  ;;  %v1629_v7 = vpop.f32.mrb[93].mxu0 }
 0x1b5   : > { %v1277_v8 = vadd.f32 %v1276_v6, %v4644_v24  ;;  %v1630_v48 = vadd.f32 %v1629_v7, %v4649_v38  ;;  %v1278_v9 = vpop.f32.mrb[94].mxu1  ;;  %v1631_v2 = vpop.f32.mrb[94].mxu0 }
 0x1b6   : > { %v1279_v11 = vadd.f32 %v1278_v9, %v4638_v19  ;;  %v1632_v14 = vadd.f32 %v1631_v2, %v4641_v36  ;;  %v1280_v13 = vpop.f32.mrb[95].mxu1  ;;  %v1633_v62 = vpop.f32.mrb[95].mxu0 }
 0x1b7   : > { %v3659_v15 = vpack.c.bf16 %v1277_v8, %v1275_v1  ;;  %v3660_v5 = vpack.c.bf16 %v1630_v48, %v1628_v4  ;;  %v1281_v18 = vadd.f32 %v1280_v13, %v4644_v24  ;;  %v1634_v17 = vadd.f32 %v1633_v62, %v4649_v38 }
 0x1b9   : > { %3071 = vst [vmem:[%s4386_s6 + $0x158] sm:$0xff] %v3659_v15  ;;  %3072 = vst [vmem:[%s4386_s6 + $0x160] sm:$0xff] %v3660_v5  ;;  %v3662_v21 = vpack.c.bf16 %v1281_v18, %v1279_v11  ;;  %v3663_v23 = vpack.c.bf16 %v1634_v17, %v1632_v14 }
 0x1bb   : > { %3074 = vst [vmem:[%s4386_s6 + $0x170] sm:$0xff] %v3662_v21  ;;  %3075 = vst [vmem:[%s4386_s6 + $0x178] sm:$0xff] %v3663_v23  ;;  %v1284_v26 = vpop.f32.mrb[96].mxu1  ;;  %v1637_v10 = vpop.f32.mrb[96].mxu0 }
 0x1bc   : > { %v1285_v27 = vadd.f32 %v1284_v26, %v4638_v19  ;;  %v1638_v30 = vadd.f32 %v1637_v10, %v4641_v36  ;;  %v1286_v28 = vpop.f32.mrb[97].mxu1  ;;  %v1639_v29 = vpop.f32.mrb[97].mxu0 }
 0x1bd   : > { %v1287_v31 = vadd.f32 %v1286_v28, %v4644_v24  ;;  %v1640_v32 = vadd.f32 %v1639_v29, %v4649_v38  ;;  %v1288_v33 = vpop.f32.mrb[98].mxu1  ;;  %v1641_v34 = vpop.f32.mrb[98].mxu0 }
 0x1be   : > { %v1289_v58 = vadd.f32 %v1288_v33, %v4638_v19  ;;  %v1642_v35 = vadd.f32 %v1641_v34, %v4641_v36  ;;  %v1290_v37 = vpop.f32.mrb[99].mxu1  ;;  %v1643_v0 = vpop.f32.mrb[99].mxu0 }
 0x1bf   : > { %v3665_v25 = vpack.c.bf16 %v1287_v31, %v1285_v27  ;;  %v3666_v16 = vpack.c.bf16 %v1640_v32, %v1638_v30  ;;  %v1291_v39 = vadd.f32 %v1290_v37, %v4644_v24  ;;  %v1644_v41 = vadd.f32 %v1643_v0, %v4649_v38 }
 0x1c1   : > { %3077 = vst [vmem:[%s4386_s6 + $0x188] sm:$0xff] %v3665_v25  ;;  %3078 = vst [vmem:[%s4386_s6 + $0x190] sm:$0xff] %v3666_v16  ;;  %v3668_v42 = vpack.c.bf16 %v1291_v39, %v1289_v58  ;;  %v3669_v43 = vpack.c.bf16 %v1644_v41, %v1642_v35 }
 0x1c3   : > { %3080 = vst [vmem:[%s4386_s6 + $0x1a0] sm:$0xff] %v3668_v42  ;;  %3081 = vst [vmem:[%s4386_s6 + $0x1a8] sm:$0xff] %v3669_v43  ;;  %v1294_v44 = vpop.f32.mrb[100].mxu1  ;;  %v1647_v22 = vpop.f32.mrb[100].mxu0 }
 0x1c4   : > { %v1295_v45 = vadd.f32 %v1294_v44, %v4638_v19  ;;  %v1648_v46 = vadd.f32 %v1647_v22, %v4641_v36  ;;  %v1296_v47 = vpop.f32.mrb[101].mxu1  ;;  %v1649_v40 = vpop.f32.mrb[101].mxu0 }
 0x1c5   : > { %v1297_v12 = vadd.f32 %v1296_v47, %v4644_v24  ;;  %v1650_v49 = vadd.f32 %v1649_v40, %v4649_v38  ;;  %v1298_v50 = vpop.f32.mrb[102].mxu1  ;;  %v1651_v51 = vpop.f32.mrb[102].mxu0 }
 0x1c6   : > { %v1299_v52 = vadd.f32 %v1298_v50, %v4638_v19  ;;  %v1652_v60 = vadd.f32 %v1651_v51, %v4641_v36  ;;  %v1300_v53 = vpop.f32.mrb[103].mxu1  ;;  %v1653_v54 = vpop.f32.mrb[103].mxu0 }
 0x1c7   : > { %v3671_v3 = vpack.c.bf16 %v1297_v12, %v1295_v45  ;;  %v3672_v55 = vpack.c.bf16 %v1650_v49, %v1648_v46  ;;  %v1301_v56 = vadd.f32 %v1300_v53, %v4644_v24  ;;  %v1654_v57 = vadd.f32 %v1653_v54, %v4649_v38 }
 0x1c9   : > { %3083 = vst [vmem:[%s4386_s6 + $0x1b8] sm:$0xff] %v3671_v3  ;;  %3084 = vst [vmem:[%s4386_s6 + $0x1c0] sm:$0xff] %v3672_v55  ;;  %v3674_v59 = vpack.c.bf16 %v1301_v56, %v1299_v52  ;;  %v3675_v20 = vpack.c.bf16 %v1654_v57, %v1652_v60 }
 0x1cb   : > { %3086 = vst [vmem:[%s4386_s6 + $0x1d0] sm:$0xff] %v3674_v59  ;;  %3087 = vst [vmem:[%s4386_s6 + $0x1d8] sm:$0xff] %v3675_v20  ;;  %v1304_v61 = vpop.f32.mrb[104].mxu1  ;;  %v1657_v63 = vpop.f32.mrb[104].mxu0 }
 0x1cc   : > { %v1305_v1 = vadd.f32 %v1304_v61, %v4638_v19  ;;  %v1658_v4 = vadd.f32 %v1657_v63, %v4641_v36  ;;  %v1306_v6 = vpop.f32.mrb[105].mxu1  ;;  %v1659_v7 = vpop.f32.mrb[105].mxu0 }
 0x1cd   : > { %v1307_v8 = vadd.f32 %v1306_v6, %v4644_v24  ;;  %v1660_v48 = vadd.f32 %v1659_v7, %v4649_v38  ;;  %v1308_v9 = vpop.f32.mrb[106].mxu1  ;;  %v1661_v2 = vpop.f32.mrb[106].mxu0 }
 0x1ce   : > { %v1309_v11 = vadd.f32 %v1308_v9, %v4638_v19  ;;  %v1662_v14 = vadd.f32 %v1661_v2, %v4641_v36  ;;  %v1310_v13 = vpop.f32.mrb[107].mxu1  ;;  %v1663_v62 = vpop.f32.mrb[107].mxu0 }
 0x1cf   : > { %v3677_v15 = vpack.c.bf16 %v1307_v8, %v1305_v1  ;;  %v3678_v5 = vpack.c.bf16 %v1660_v48, %v1658_v4  ;;  %v1311_v18 = vadd.f32 %v1310_v13, %v4644_v24  ;;  %v1664_v17 = vadd.f32 %v1663_v62, %v4649_v38 }
 0x1d1   : > { %3089 = vst [vmem:[%s4386_s6 + $0x1e8] sm:$0xff] %v3677_v15  ;;  %3090 = vst [vmem:[%s4386_s6 + $0x1f0] sm:$0xff] %v3678_v5  ;;  %v3680_v21 = vpack.c.bf16 %v1311_v18, %v1309_v11  ;;  %v3681_v23 = vpack.c.bf16 %v1664_v17, %v1662_v14 }
 0x1d3   : > { %3092 = vst [vmem:[%s4386_s6 + $0x200] sm:$0xff] %v3680_v21  ;;  %3093 = vst [vmem:[%s4386_s6 + $0x208] sm:$0xff] %v3681_v23  ;;  %v1314_v26 = vpop.f32.mrb[108].mxu1  ;;  %v1667_v10 = vpop.f32.mrb[108].mxu0 }
 0x1d4   : > { %v1315_v27 = vadd.f32 %v1314_v26, %v4638_v19  ;;  %v1668_v30 = vadd.f32 %v1667_v10, %v4641_v36  ;;  %v1316_v28 = vpop.f32.mrb[109].mxu1  ;;  %v1669_v29 = vpop.f32.mrb[109].mxu0 }
 0x1d5   : > { %v1317_v31 = vadd.f32 %v1316_v28, %v4644_v24  ;;  %v1670_v32 = vadd.f32 %v1669_v29, %v4649_v38  ;;  %v1318_v33 = vpop.f32.mrb[110].mxu1  ;;  %v1671_v34 = vpop.f32.mrb[110].mxu0 }
 0x1d6   : > { %v1319_v58 = vadd.f32 %v1318_v33, %v4638_v19  ;;  %v1672_v35 = vadd.f32 %v1671_v34, %v4641_v36  ;;  %v1320_v37 = vpop.f32.mrb[111].mxu1  ;;  %v1673_v0 = vpop.f32.mrb[111].mxu0 }
 0x1d7   : > { %v3683_v25 = vpack.c.bf16 %v1317_v31, %v1315_v27  ;;  %v3684_v16 = vpack.c.bf16 %v1670_v32, %v1668_v30  ;;  %v1321_v39 = vadd.f32 %v1320_v37, %v4644_v24  ;;  %v1674_v41 = vadd.f32 %v1673_v0, %v4649_v38 }
 0x1d9   : > { %3095 = vst [vmem:[%s4386_s6 + $0x218] sm:$0xff] %v3683_v25  ;;  %3096 = vst [vmem:[%s4386_s6 + $0x220] sm:$0xff] %v3684_v16  ;;  %v3686_v42 = vpack.c.bf16 %v1321_v39, %v1319_v58  ;;  %v3687_v43 = vpack.c.bf16 %v1674_v41, %v1672_v35 }
 0x1db   : > { %3098 = vst [vmem:[%s4386_s6 + $0x230] sm:$0xff] %v3686_v42  ;;  %3099 = vst [vmem:[%s4386_s6 + $0x238] sm:$0xff] %v3687_v43  ;;  %v1324_v44 = vpop.f32.mrb[112].mxu1  ;;  %v1677_v22 = vpop.f32.mrb[112].mxu0 }
 0x1dc   : > { %v1325_v45 = vadd.f32 %v1324_v44, %v4638_v19  ;;  %v1678_v46 = vadd.f32 %v1677_v22, %v4641_v36  ;;  %v1326_v47 = vpop.f32.mrb[113].mxu1  ;;  %v1679_v40 = vpop.f32.mrb[113].mxu0 }
 0x1dd   : > { %v1327_v12 = vadd.f32 %v1326_v47, %v4644_v24  ;;  %v1680_v49 = vadd.f32 %v1679_v40, %v4649_v38  ;;  %v1328_v50 = vpop.f32.mrb[114].mxu1  ;;  %v1681_v51 = vpop.f32.mrb[114].mxu0 }
 0x1de   : > { %v1329_v52 = vadd.f32 %v1328_v50, %v4638_v19  ;;  %v1682_v60 = vadd.f32 %v1681_v51, %v4641_v36  ;;  %v1330_v53 = vpop.f32.mrb[115].mxu1  ;;  %v1683_v54 = vpop.f32.mrb[115].mxu0 }
 0x1df   : > { %v3689_v3 = vpack.c.bf16 %v1327_v12, %v1325_v45  ;;  %v3690_v55 = vpack.c.bf16 %v1680_v49, %v1678_v46  ;;  %v1331_v56 = vadd.f32 %v1330_v53, %v4644_v24  ;;  %v1684_v57 = vadd.f32 %v1683_v54, %v4649_v38 }
 0x1e1   : > { %3101 = vst [vmem:[%s4386_s6 + $0x248] sm:$0xff] %v3689_v3  ;;  %3102 = vst [vmem:[%s4386_s6 + $0x250] sm:$0xff] %v3690_v55  ;;  %v3692_v59 = vpack.c.bf16 %v1331_v56, %v1329_v52  ;;  %v3693_v20 = vpack.c.bf16 %v1684_v57, %v1682_v60 }
 0x1e3   : > { %3104 = vst [vmem:[%s4386_s6 + $0x260] sm:$0xff] %v3692_v59  ;;  %3105 = vst [vmem:[%s4386_s6 + $0x268] sm:$0xff] %v3693_v20  ;;  %v1334_v61 = vpop.f32.mrb[116].mxu1  ;;  %v1687_v63 = vpop.f32.mrb[116].mxu0 }
 0x1e4   : > { %v1335_v1 = vadd.f32 %v1334_v61, %v4638_v19  ;;  %v1688_v4 = vadd.f32 %v1687_v63, %v4641_v36  ;;  %v1336_v6 = vpop.f32.mrb[117].mxu1  ;;  %v1689_v7 = vpop.f32.mrb[117].mxu0 }
 0x1e5   : > { %v1337_v8 = vadd.f32 %v1336_v6, %v4644_v24  ;;  %v1690_v48 = vadd.f32 %v1689_v7, %v4649_v38  ;;  %v1338_v9 = vpop.f32.mrb[118].mxu1  ;;  %v1691_v2 = vpop.f32.mrb[118].mxu0 }
 0x1e6   : > { %v1339_v11 = vadd.f32 %v1338_v9, %v4638_v19  ;;  %v1692_v14 = vadd.f32 %v1691_v2, %v4641_v36  ;;  %v1340_v13 = vpop.f32.mrb[119].mxu1  ;;  %v1693_v62 = vpop.f32.mrb[119].mxu0 }
 0x1e7   : > { %v3695_v15 = vpack.c.bf16 %v1337_v8, %v1335_v1  ;;  %v3696_v5 = vpack.c.bf16 %v1690_v48, %v1688_v4  ;;  %v1341_v18 = vadd.f32 %v1340_v13, %v4644_v24  ;;  %v1694_v17 = vadd.f32 %v1693_v62, %v4649_v38 }
 0x1e9   : > { %3107 = vst [vmem:[%s4386_s6 + $0x278] sm:$0xff] %v3695_v15  ;;  %3108 = vst [vmem:[%s4386_s6 + $0x280] sm:$0xff] %v3696_v5  ;;  %v3698_v21 = vpack.c.bf16 %v1341_v18, %v1339_v11  ;;  %v3699_v23 = vpack.c.bf16 %v1694_v17, %v1692_v14 }
 0x1eb   : > { %3110 = vst [vmem:[%s4386_s6 + $0x290] sm:$0xff] %v3698_v21  ;;  %3111 = vst [vmem:[%s4386_s6 + $0x298] sm:$0xff] %v3699_v23  ;;  %v1344_v26 = vpop.f32.mrb[120].mxu1  ;;  %v1697_v10 = vpop.f32.mrb[120].mxu0 }
 0x1ec   : > { %v1345_v27 = vadd.f32 %v1344_v26, %v4638_v19  ;;  %v1698_v30 = vadd.f32 %v1697_v10, %v4641_v36  ;;  %v1346_v28 = vpop.f32.mrb[121].mxu1  ;;  %v1699_v29 = vpop.f32.mrb[121].mxu0 }
 0x1ed   : > { %v1347_v31 = vadd.f32 %v1346_v28, %v4644_v24  ;;  %v1700_v32 = vadd.f32 %v1699_v29, %v4649_v38  ;;  %v1348_v33 = vpop.f32.mrb[122].mxu1  ;;  %v1701_v34 = vpop.f32.mrb[122].mxu0 }
 0x1ee   : > { %v1349_v58 = vadd.f32 %v1348_v33, %v4638_v19  ;;  %v1702_v35 = vadd.f32 %v1701_v34, %v4641_v36  ;;  %v1350_v37 = vpop.f32.mrb[123].mxu1  ;;  %v1703_v0 = vpop.f32.mrb[123].mxu0 }
 0x1ef   : > { %v3701_v25 = vpack.c.bf16 %v1347_v31, %v1345_v27  ;;  %v3702_v16 = vpack.c.bf16 %v1700_v32, %v1698_v30  ;;  %v1351_v39 = vadd.f32 %v1350_v37, %v4644_v24  ;;  %v1704_v41 = vadd.f32 %v1703_v0, %v4649_v38 }
 0x1f1   : > { %3113 = vst [vmem:[%s4386_s6 + $0x2a8] sm:$0xff] %v3701_v25  ;;  %3114 = vst [vmem:[%s4386_s6 + $0x2b0] sm:$0xff] %v3702_v16  ;;  %v3704_v42 = vpack.c.bf16 %v1351_v39, %v1349_v58  ;;  %v3705_v43 = vpack.c.bf16 %v1704_v41, %v1702_v35 }
 0x1f3   : > { %3116 = vst [vmem:[%s4386_s6 + $0x2c0] sm:$0xff] %v3704_v42  ;;  %3117 = vst [vmem:[%s4386_s6 + $0x2c8] sm:$0xff] %v3705_v43  ;;  %v1354_v44 = vpop.f32.mrb[124].mxu1  ;;  %v1707_v22 = vpop.f32.mrb[124].mxu0 }
 0x1f4   : > { %v1355_v45 = vadd.f32 %v1354_v44, %v4638_v19  ;;  %v1708_v46 = vadd.f32 %v1707_v22, %v4641_v36  ;;  %v1356_v47 = vpop.f32.mrb[125].mxu1  ;;  %v1709_v40 = vpop.f32.mrb[125].mxu0 }
 0x1f5   : > { %v1357_v12 = vadd.f32 %v1356_v47, %v4644_v24  ;;  %v1710_v49 = vadd.f32 %v1709_v40, %v4649_v38  ;;  %v1358_v50 = vpop.f32.mrb[126].mxu1  ;;  %v1711_v51 = vpop.f32.mrb[126].mxu0 }
 0x1f6   : > { %v1359_v52 = vadd.f32 %v1358_v50, %v4638_v19  ;;  %v1712_v60 = vadd.f32 %v1711_v51, %v4641_v36  ;;  %v1360_v53 = vpop.f32.mrb[127].mxu1  ;;  %v1713_v54 = vpop.f32.mrb[127].mxu0 }
 0x1f7   : > { %v3707_v3 = vpack.c.bf16 %v1357_v12, %v1355_v45  ;;  %v3708_v55 = vpack.c.bf16 %v1710_v49, %v1708_v46  ;;  %v1361_v56 = vadd.f32 %v1360_v53, %v4644_v24  ;;  %v1714_v57 = vadd.f32 %v1713_v54, %v4649_v38 }
 0x1f9   : > { %3119 = vst [vmem:[%s4386_s6 + $0x2d8] sm:$0xff] %v3707_v3  ;;  %3120 = vst [vmem:[%s4386_s6 + $0x2e0] sm:$0xff] %v3708_v55  ;;  %v3710_v59 = vpack.c.bf16 %v1361_v56, %v1359_v52  ;;  %v3711_v20 = vpack.c.bf16 %v1714_v57, %v1712_v60 }
 0x1fb   : > { %3122 = vst [vmem:[%s4386_s6 + $0x2f0] sm:$0xff] %v3710_v59  ;;  %3123 = vst [vmem:[%s4386_s6 + $0x2f8] sm:$0xff] %v3711_v20  ;;  %v1364_v61 = vpop.f32.mrb[128].mxu1  ;;  %v1717_v63 = vpop.f32.mrb[128].mxu0 }
 0x1fc   : > { %v1365_v1 = vadd.f32 %v1364_v61, %v4638_v19  ;;  %v1718_v4 = vadd.f32 %v1717_v63, %v4641_v36  ;;  %v1366_v6 = vpop.f32.mrb[129].mxu1  ;;  %v1719_v7 = vpop.f32.mrb[129].mxu0 }
 0x1fd   : > { %v1367_v8 = vadd.f32 %v1366_v6, %v4644_v24  ;;  %v1720_v48 = vadd.f32 %v1719_v7, %v4649_v38  ;;  %v1368_v9 = vpop.f32.mrb[130].mxu1  ;;  %v1721_v2 = vpop.f32.mrb[130].mxu0 }
 0x1fe   : > { %v1369_v11 = vadd.f32 %v1368_v9, %v4638_v19  ;;  %v1722_v14 = vadd.f32 %v1721_v2, %v4641_v36  ;;  %v1370_v13 = vpop.f32.mrb[131].mxu1  ;;  %v1723_v62 = vpop.f32.mrb[131].mxu0 }
 0x1ff   : > { %v3713_v15 = vpack.c.bf16 %v1367_v8, %v1365_v1  ;;  %v3714_v5 = vpack.c.bf16 %v1720_v48, %v1718_v4  ;;  %v1371_v18 = vadd.f32 %v1370_v13, %v4644_v24  ;;  %v1724_v17 = vadd.f32 %v1723_v62, %v4649_v38 }
 0x201   : > { %3125 = vst [vmem:[%s4386_s6 + $0x308] sm:$0xff] %v3713_v15  ;;  %3126 = vst [vmem:[%s4386_s6 + $0x310] sm:$0xff] %v3714_v5  ;;  %v3716_v21 = vpack.c.bf16 %v1371_v18, %v1369_v11  ;;  %v3717_v23 = vpack.c.bf16 %v1724_v17, %v1722_v14 }
 0x203   : > { %3128 = vst [vmem:[%s4386_s6 + $0x320] sm:$0xff] %v3716_v21  ;;  %3129 = vst [vmem:[%s4386_s6 + $0x328] sm:$0xff] %v3717_v23  ;;  %v1374_v26 = vpop.f32.mrb[132].mxu1  ;;  %v1727_v10 = vpop.f32.mrb[132].mxu0 }
 0x204   : > { %v1375_v27 = vadd.f32 %v1374_v26, %v4638_v19  ;;  %v1728_v30 = vadd.f32 %v1727_v10, %v4641_v36  ;;  %v1376_v28 = vpop.f32.mrb[133].mxu1  ;;  %v1729_v29 = vpop.f32.mrb[133].mxu0 }
 0x205   : > { %v1377_v31 = vadd.f32 %v1376_v28, %v4644_v24  ;;  %v1730_v32 = vadd.f32 %v1729_v29, %v4649_v38  ;;  %v1378_v33 = vpop.f32.mrb[134].mxu1  ;;  %v1731_v34 = vpop.f32.mrb[134].mxu0 }
 0x206   : > { %v1379_v58 = vadd.f32 %v1378_v33, %v4638_v19  ;;  %v1732_v35 = vadd.f32 %v1731_v34, %v4641_v36  ;;  %v1380_v37 = vpop.f32.mrb[135].mxu1  ;;  %v1733_v0 = vpop.f32.mrb[135].mxu0 }
 0x207   : > { %v3719_v25 = vpack.c.bf16 %v1377_v31, %v1375_v27  ;;  %v3720_v16 = vpack.c.bf16 %v1730_v32, %v1728_v30  ;;  %v1381_v39 = vadd.f32 %v1380_v37, %v4644_v24  ;;  %v1734_v41 = vadd.f32 %v1733_v0, %v4649_v38 }
 0x209   : > { %3131 = vst [vmem:[%s4386_s6 + $0x338] sm:$0xff] %v3719_v25  ;;  %3132 = vst [vmem:[%s4386_s6 + $0x340] sm:$0xff] %v3720_v16  ;;  %v3722_v42 = vpack.c.bf16 %v1381_v39, %v1379_v58  ;;  %v3723_v43 = vpack.c.bf16 %v1734_v41, %v1732_v35 }
 0x20b   : > { %3134 = vst [vmem:[%s4386_s6 + $0x350] sm:$0xff] %v3722_v42  ;;  %3135 = vst [vmem:[%s4386_s6 + $0x358] sm:$0xff] %v3723_v43  ;;  %v1384_v44 = vpop.f32.mrb[136].mxu1  ;;  %v1737_v22 = vpop.f32.mrb[136].mxu0 }
 0x20c   : > { %v1385_v45 = vadd.f32 %v1384_v44, %v4638_v19  ;;  %v1738_v46 = vadd.f32 %v1737_v22, %v4641_v36  ;;  %v1386_v47 = vpop.f32.mrb[137].mxu1  ;;  %v1739_v40 = vpop.f32.mrb[137].mxu0 }
 0x20d   : > { %v1387_v12 = vadd.f32 %v1386_v47, %v4644_v24  ;;  %v1740_v49 = vadd.f32 %v1739_v40, %v4649_v38  ;;  %v1388_v50 = vpop.f32.mrb[138].mxu1  ;;  %v1741_v51 = vpop.f32.mrb[138].mxu0 }
 0x20e   : > { %v1389_v52 = vadd.f32 %v1388_v50, %v4638_v19  ;;  %v1742_v60 = vadd.f32 %v1741_v51, %v4641_v36  ;;  %v1390_v53 = vpop.f32.mrb[139].mxu1  ;;  %v1743_v54 = vpop.f32.mrb[139].mxu0 }
 0x20f   : > { %v3725_v3 = vpack.c.bf16 %v1387_v12, %v1385_v45  ;;  %v3726_v55 = vpack.c.bf16 %v1740_v49, %v1738_v46  ;;  %v1391_v56 = vadd.f32 %v1390_v53, %v4644_v24  ;;  %v1744_v57 = vadd.f32 %v1743_v54, %v4649_v38 }
 0x211   : > { %3137 = vst [vmem:[%s4386_s6 + $0x368] sm:$0xff] %v3725_v3  ;;  %3138 = vst [vmem:[%s4386_s6 + $0x370] sm:$0xff] %v3726_v55  ;;  %v3728_v59 = vpack.c.bf16 %v1391_v56, %v1389_v52  ;;  %v3729_v20 = vpack.c.bf16 %v1744_v57, %v1742_v60 }
 0x213   : > { %3140 = vst [vmem:[%s4386_s6 + $0x380] sm:$0xff] %v3728_v59  ;;  %3141 = vst [vmem:[%s4386_s6 + $0x388] sm:$0xff] %v3729_v20  ;;  %v1394_v61 = vpop.f32.mrb[140].mxu1  ;;  %v1747_v63 = vpop.f32.mrb[140].mxu0 }
 0x214   : > { %v1395_v1 = vadd.f32 %v1394_v61, %v4638_v19  ;;  %v1748_v4 = vadd.f32 %v1747_v63, %v4641_v36  ;;  %v1396_v6 = vpop.f32.mrb[141].mxu1  ;;  %v1749_v7 = vpop.f32.mrb[141].mxu0 }
 0x215   : > { %v1397_v8 = vadd.f32 %v1396_v6, %v4644_v24  ;;  %v1750_v48 = vadd.f32 %v1749_v7, %v4649_v38  ;;  %v1398_v9 = vpop.f32.mrb[142].mxu1  ;;  %v1751_v2 = vpop.f32.mrb[142].mxu0 }
 0x216   : > { %v1399_v11 = vadd.f32 %v1398_v9, %v4638_v19  ;;  %v1752_v14 = vadd.f32 %v1751_v2, %v4641_v36  ;;  %v1400_v13 = vpop.f32.mrb[143].mxu1  ;;  %v1753_v62 = vpop.f32.mrb[143].mxu0 }
 0x217   : > { %v3731_v15 = vpack.c.bf16 %v1397_v8, %v1395_v1  ;;  %v3732_v5 = vpack.c.bf16 %v1750_v48, %v1748_v4  ;;  %v1401_v18 = vadd.f32 %v1400_v13, %v4644_v24  ;;  %v1754_v17 = vadd.f32 %v1753_v62, %v4649_v38 }
 0x219   : > { %3143 = vst [vmem:[%s4386_s6 + $0x398] sm:$0xff] %v3731_v15  ;;  %3144 = vst [vmem:[%s4386_s6 + $0x3a0] sm:$0xff] %v3732_v5  ;;  %v3734_v21 = vpack.c.bf16 %v1401_v18, %v1399_v11  ;;  %v3735_v23 = vpack.c.bf16 %v1754_v17, %v1752_v14 }
 0x21b   : > { %3146 = vst [vmem:[%s4386_s6 + $0x3b0] sm:$0xff] %v3734_v21  ;;  %3147 = vst [vmem:[%s4386_s6 + $0x3b8] sm:$0xff] %v3735_v23  ;;  %v1404_v26 = vpop.f32.mrb[144].mxu1  ;;  %v1757_v10 = vpop.f32.mrb[144].mxu0 }
 0x21c   : > { %v1405_v27 = vadd.f32 %v1404_v26, %v4638_v19  ;;  %v1758_v30 = vadd.f32 %v1757_v10, %v4641_v36  ;;  %v1406_v28 = vpop.f32.mrb[145].mxu1  ;;  %v1759_v29 = vpop.f32.mrb[145].mxu0 }
 0x21d   : > { %v1407_v31 = vadd.f32 %v1406_v28, %v4644_v24  ;;  %v1760_v32 = vadd.f32 %v1759_v29, %v4649_v38  ;;  %v1408_v33 = vpop.f32.mrb[146].mxu1  ;;  %v1761_v34 = vpop.f32.mrb[146].mxu0 }
 0x21e   : > { %v1409_v58 = vadd.f32 %v1408_v33, %v4638_v19  ;;  %v1762_v35 = vadd.f32 %v1761_v34, %v4641_v36  ;;  %v1410_v37 = vpop.f32.mrb[147].mxu1  ;;  %v1763_v0 = vpop.f32.mrb[147].mxu0 }
 0x21f   : > { %v3737_v25 = vpack.c.bf16 %v1407_v31, %v1405_v27  ;;  %v3738_v16 = vpack.c.bf16 %v1760_v32, %v1758_v30  ;;  %v1411_v39 = vadd.f32 %v1410_v37, %v4644_v24  ;;  %v1764_v41 = vadd.f32 %v1763_v0, %v4649_v38 }
 0x221   : > { %3149 = vst [vmem:[%s4386_s6 + $0x3c8] sm:$0xff] %v3737_v25  ;;  %3150 = vst [vmem:[%s4386_s6 + $0x3d0] sm:$0xff] %v3738_v16  ;;  %v3740_v42 = vpack.c.bf16 %v1411_v39, %v1409_v58  ;;  %v3741_v43 = vpack.c.bf16 %v1764_v41, %v1762_v35 }
 0x223   : > { %3152 = vst [vmem:[%s4386_s6 + $0x3e0] sm:$0xff] %v3740_v42  ;;  %3153 = vst [vmem:[%s4386_s6 + $0x3e8] sm:$0xff] %v3741_v43  ;;  %v1414_v44 = vpop.f32.mrb[148].mxu1  ;;  %v1767_v22 = vpop.f32.mrb[148].mxu0 }
 0x224   : > { %v1415_v45 = vadd.f32 %v1414_v44, %v4638_v19  ;;  %v1768_v46 = vadd.f32 %v1767_v22, %v4641_v36  ;;  %v1416_v47 = vpop.f32.mrb[149].mxu1  ;;  %v1769_v40 = vpop.f32.mrb[149].mxu0 }
 0x225   : > { %v1417_v12 = vadd.f32 %v1416_v47, %v4644_v24  ;;  %v1770_v49 = vadd.f32 %v1769_v40, %v4649_v38  ;;  %v1418_v50 = vpop.f32.mrb[150].mxu1  ;;  %v1771_v51 = vpop.f32.mrb[150].mxu0 }
 0x226   : > { %v1419_v52 = vadd.f32 %v1418_v50, %v4638_v19  ;;  %v1772_v60 = vadd.f32 %v1771_v51, %v4641_v36  ;;  %v1420_v53 = vpop.f32.mrb[151].mxu1  ;;  %v1773_v54 = vpop.f32.mrb[151].mxu0 }
 0x227   : > { %v3743_v3 = vpack.c.bf16 %v1417_v12, %v1415_v45  ;;  %v3744_v55 = vpack.c.bf16 %v1770_v49, %v1768_v46  ;;  %v1421_v56 = vadd.f32 %v1420_v53, %v4644_v24  ;;  %v1774_v57 = vadd.f32 %v1773_v54, %v4649_v38 }
 0x229   : > { %3155 = vst [vmem:[%s4386_s6 + $0x3f8] sm:$0xff] %v3743_v3  ;;  %3156 = vst [vmem:[%s4386_s6 + $0x400] sm:$0xff] %v3744_v55  ;;  %v3746_v59 = vpack.c.bf16 %v1421_v56, %v1419_v52  ;;  %v3747_v20 = vpack.c.bf16 %v1774_v57, %v1772_v60 }
 0x22b   : > { %3158 = vst [vmem:[%s4386_s6 + $0x410] sm:$0xff] %v3746_v59  ;;  %3159 = vst [vmem:[%s4386_s6 + $0x418] sm:$0xff] %v3747_v20  ;;  %v1424_v61 = vpop.f32.mrb[152].mxu1  ;;  %v1777_v63 = vpop.f32.mrb[152].mxu0 }
 0x22c   : > { %v1425_v1 = vadd.f32 %v1424_v61, %v4638_v19  ;;  %v1778_v4 = vadd.f32 %v1777_v63, %v4641_v36  ;;  %v1426_v6 = vpop.f32.mrb[153].mxu1  ;;  %v1779_v7 = vpop.f32.mrb[153].mxu0 }
 0x22d   : > { %v1427_v8 = vadd.f32 %v1426_v6, %v4644_v24  ;;  %v1780_v48 = vadd.f32 %v1779_v7, %v4649_v38  ;;  %v1428_v9 = vpop.f32.mrb[154].mxu1  ;;  %v1781_v2 = vpop.f32.mrb[154].mxu0 }
 0x22e   : > { %v1429_v11 = vadd.f32 %v1428_v9, %v4638_v19  ;;  %v1782_v14 = vadd.f32 %v1781_v2, %v4641_v36  ;;  %v1430_v13 = vpop.f32.mrb[155].mxu1  ;;  %v1783_v62 = vpop.f32.mrb[155].mxu0 }
 0x22f   : > { %v3749_v15 = vpack.c.bf16 %v1427_v8, %v1425_v1  ;;  %v3750_v5 = vpack.c.bf16 %v1780_v48, %v1778_v4  ;;  %v1431_v18 = vadd.f32 %v1430_v13, %v4644_v24  ;;  %v1784_v17 = vadd.f32 %v1783_v62, %v4649_v38 }
 0x231   : > { %3161 = vst [vmem:[%s4386_s6 + $0x428] sm:$0xff] %v3749_v15  ;;  %3162 = vst [vmem:[%s4386_s6 + $0x430] sm:$0xff] %v3750_v5  ;;  %v3752_v21 = vpack.c.bf16 %v1431_v18, %v1429_v11  ;;  %v3753_v23 = vpack.c.bf16 %v1784_v17, %v1782_v14 }
 0x233   : > { %3164 = vst [vmem:[%s4386_s6 + $0x440] sm:$0xff] %v3752_v21  ;;  %3165 = vst [vmem:[%s4386_s6 + $0x448] sm:$0xff] %v3753_v23  ;;  %v1434_v26 = vpop.f32.mrb[156].mxu1  ;;  %v1787_v10 = vpop.f32.mrb[156].mxu0 }
 0x234   : > { %v1435_v27 = vadd.f32 %v1434_v26, %v4638_v19  ;;  %v1788_v30 = vadd.f32 %v1787_v10, %v4641_v36  ;;  %v1436_v28 = vpop.f32.mrb[157].mxu1  ;;  %v1789_v29 = vpop.f32.mrb[157].mxu0 }
 0x235   : > { %v1437_v31 = vadd.f32 %v1436_v28, %v4644_v24  ;;  %v1790_v32 = vadd.f32 %v1789_v29, %v4649_v38  ;;  %v1438_v33 = vpop.f32.mrb[158].mxu1  ;;  %v1791_v34 = vpop.f32.mrb[158].mxu0 }
 0x236   : > { %v1439_v58 = vadd.f32 %v1438_v33, %v4638_v19  ;;  %v1792_v35 = vadd.f32 %v1791_v34, %v4641_v36  ;;  %v1440_v37 = vpop.f32.mrb[159].mxu1  ;;  %v1793_v0 = vpop.f32.mrb[159].mxu0 }
 0x237   : > { %v3755_v25 = vpack.c.bf16 %v1437_v31, %v1435_v27  ;;  %v3756_v16 = vpack.c.bf16 %v1790_v32, %v1788_v30  ;;  %v1441_v39 = vadd.f32 %v1440_v37, %v4644_v24  ;;  %v1794_v41 = vadd.f32 %v1793_v0, %v4649_v38 }
 0x239   : > { %3167 = vst [vmem:[%s4386_s6 + $0x458] sm:$0xff] %v3755_v25  ;;  %3168 = vst [vmem:[%s4386_s6 + $0x460] sm:$0xff] %v3756_v16  ;;  %v3758_v42 = vpack.c.bf16 %v1441_v39, %v1439_v58  ;;  %v3759_v43 = vpack.c.bf16 %v1794_v41, %v1792_v35 }
 0x23b   : > { %3170 = vst [vmem:[%s4386_s6 + $0x470] sm:$0xff] %v3758_v42  ;;  %3171 = vst [vmem:[%s4386_s6 + $0x478] sm:$0xff] %v3759_v43  ;;  %v1444_v44 = vpop.f32.mrb[160].mxu1  ;;  %v1797_v22 = vpop.f32.mrb[160].mxu0 }
 0x23c   : > { %v1445_v45 = vadd.f32 %v1444_v44, %v4638_v19  ;;  %v1798_v46 = vadd.f32 %v1797_v22, %v4641_v36  ;;  %v1446_v47 = vpop.f32.mrb[161].mxu1  ;;  %v1799_v40 = vpop.f32.mrb[161].mxu0 }
 0x23d   : > { %v1447_v12 = vadd.f32 %v1446_v47, %v4644_v24  ;;  %v1800_v49 = vadd.f32 %v1799_v40, %v4649_v38  ;;  %v1448_v50 = vpop.f32.mrb[162].mxu1  ;;  %v1801_v51 = vpop.f32.mrb[162].mxu0 }
 0x23e   : > { %v1449_v52 = vadd.f32 %v1448_v50, %v4638_v19  ;;  %v1802_v60 = vadd.f32 %v1801_v51, %v4641_v36  ;;  %v1450_v53 = vpop.f32.mrb[163].mxu1  ;;  %v1803_v54 = vpop.f32.mrb[163].mxu0 }
 0x23f   : > { %v3761_v3 = vpack.c.bf16 %v1447_v12, %v1445_v45  ;;  %v3762_v55 = vpack.c.bf16 %v1800_v49, %v1798_v46  ;;  %v1451_v56 = vadd.f32 %v1450_v53, %v4644_v24  ;;  %v1804_v57 = vadd.f32 %v1803_v54, %v4649_v38 }
 0x241   : > { %3173 = vst [vmem:[%s4386_s6 + $0x488] sm:$0xff] %v3761_v3  ;;  %3174 = vst [vmem:[%s4386_s6 + $0x490] sm:$0xff] %v3762_v55  ;;  %v3764_v59 = vpack.c.bf16 %v1451_v56, %v1449_v52  ;;  %v3765_v20 = vpack.c.bf16 %v1804_v57, %v1802_v60 }
 0x243   : > { %3176 = vst [vmem:[%s4386_s6 + $0x4a0] sm:$0xff] %v3764_v59  ;;  %3177 = vst [vmem:[%s4386_s6 + $0x4a8] sm:$0xff] %v3765_v20  ;;  %v1454_v61 = vpop.f32.mrb[164].mxu1  ;;  %v1807_v63 = vpop.f32.mrb[164].mxu0 }
 0x244   : > { %v1455_v1 = vadd.f32 %v1454_v61, %v4638_v19  ;;  %v1808_v4 = vadd.f32 %v1807_v63, %v4641_v36  ;;  %v1456_v6 = vpop.f32.mrb[165].mxu1  ;;  %v1809_v7 = vpop.f32.mrb[165].mxu0 }
 0x245   : > { %v1457_v8 = vadd.f32 %v1456_v6, %v4644_v24  ;;  %v1810_v48 = vadd.f32 %v1809_v7, %v4649_v38  ;;  %v1458_v9 = vpop.f32.mrb[166].mxu1  ;;  %v1811_v2 = vpop.f32.mrb[166].mxu0 }
 0x246   : > { %v1459_v11 = vadd.f32 %v1458_v9, %v4638_v19  ;;  %v1812_v14 = vadd.f32 %v1811_v2, %v4641_v36  ;;  %v1460_v13 = vpop.f32.mrb[167].mxu1  ;;  %v1813_v62 = vpop.f32.mrb[167].mxu0 }
 0x247   : > { %v3767_v15 = vpack.c.bf16 %v1457_v8, %v1455_v1  ;;  %v3768_v5 = vpack.c.bf16 %v1810_v48, %v1808_v4  ;;  %v1461_v18 = vadd.f32 %v1460_v13, %v4644_v24  ;;  %v1814_v17 = vadd.f32 %v1813_v62, %v4649_v38 }
 0x249   : > { %3179 = vst [vmem:[%s4386_s6 + $0x4b8] sm:$0xff] %v3767_v15  ;;  %3180 = vst [vmem:[%s4386_s6 + $0x4c0] sm:$0xff] %v3768_v5  ;;  %v3770_v21 = vpack.c.bf16 %v1461_v18, %v1459_v11  ;;  %v3771_v23 = vpack.c.bf16 %v1814_v17, %v1812_v14 }
 0x24b   : > { %3182 = vst [vmem:[%s4386_s6 + $0x4d0] sm:$0xff] %v3770_v21  ;;  %3183 = vst [vmem:[%s4386_s6 + $0x4d8] sm:$0xff] %v3771_v23  ;;  %v1464_v26 = vpop.f32.mrb[168].mxu1  ;;  %v1817_v10 = vpop.f32.mrb[168].mxu0 }
 0x24c   : > { %v1465_v27 = vadd.f32 %v1464_v26, %v4638_v19  ;;  %v1818_v30 = vadd.f32 %v1817_v10, %v4641_v36  ;;  %v1466_v28 = vpop.f32.mrb[169].mxu1  ;;  %v1819_v29 = vpop.f32.mrb[169].mxu0 }
 0x24d   : > { %v1467_v31 = vadd.f32 %v1466_v28, %v4644_v24  ;;  %v1820_v32 = vadd.f32 %v1819_v29, %v4649_v38  ;;  %v1468_v33 = vpop.f32.mrb[170].mxu1  ;;  %v1821_v34 = vpop.f32.mrb[170].mxu0 }
 0x24e   : > { %v1469_v58 = vadd.f32 %v1468_v33, %v4638_v19  ;;  %v1822_v35 = vadd.f32 %v1821_v34, %v4641_v36  ;;  %v1470_v37 = vpop.f32.mrb[171].mxu1  ;;  %v1823_v0 = vpop.f32.mrb[171].mxu0 }
 0x24f   : > { %v3773_v25 = vpack.c.bf16 %v1467_v31, %v1465_v27  ;;  %v3774_v16 = vpack.c.bf16 %v1820_v32, %v1818_v30  ;;  %v1471_v39 = vadd.f32 %v1470_v37, %v4644_v24  ;;  %v1824_v41 = vadd.f32 %v1823_v0, %v4649_v38 }
 0x251   : > { %3185 = vst [vmem:[%s4386_s6 + $0x4e8] sm:$0xff] %v3773_v25  ;;  %3186 = vst [vmem:[%s4386_s6 + $0x4f0] sm:$0xff] %v3774_v16  ;;  %v3776_v42 = vpack.c.bf16 %v1471_v39, %v1469_v58  ;;  %v3777_v43 = vpack.c.bf16 %v1824_v41, %v1822_v35 }
 0x253   : > { %3188 = vst [vmem:[%s4386_s6 + $0x500] sm:$0xff] %v3776_v42  ;;  %3189 = vst [vmem:[%s4386_s6 + $0x508] sm:$0xff] %v3777_v43  ;;  %v1474_v44 = vpop.f32.mrb[172].mxu1  ;;  %v1827_v22 = vpop.f32.mrb[172].mxu0 }
 0x254   : > { %v1475_v45 = vadd.f32 %v1474_v44, %v4638_v19  ;;  %v1828_v46 = vadd.f32 %v1827_v22, %v4641_v36  ;;  %v1476_v47 = vpop.f32.mrb[173].mxu1  ;;  %v1829_v40 = vpop.f32.mrb[173].mxu0 }
 0x255   : > { %v1477_v12 = vadd.f32 %v1476_v47, %v4644_v24  ;;  %v1830_v49 = vadd.f32 %v1829_v40, %v4649_v38  ;;  %v1478_v50 = vpop.f32.mrb[174].mxu1  ;;  %v1831_v51 = vpop.f32.mrb[174].mxu0 }
 0x256   : > { %v1479_v52 = vadd.f32 %v1478_v50, %v4638_v19  ;;  %v1832_v60 = vadd.f32 %v1831_v51, %v4641_v36  ;;  %v1480_v53 = vpop.f32.mrb[175].mxu1  ;;  %v1833_v54 = vpop.f32.mrb[175].mxu0 }
 0x257   : > { %v3779_v3 = vpack.c.bf16 %v1477_v12, %v1475_v45  ;;  %v3780_v55 = vpack.c.bf16 %v1830_v49, %v1828_v46  ;;  %v1481_v56 = vadd.f32 %v1480_v53, %v4644_v24  ;;  %v1834_v57 = vadd.f32 %v1833_v54, %v4649_v38 }
 0x259   : > { %3191 = vst [vmem:[%s4386_s6 + $0x518] sm:$0xff] %v3779_v3  ;;  %3192 = vst [vmem:[%s4386_s6 + $0x520] sm:$0xff] %v3780_v55  ;;  %v3782_v59 = vpack.c.bf16 %v1481_v56, %v1479_v52  ;;  %v3783_v20 = vpack.c.bf16 %v1834_v57, %v1832_v60 }
 0x25b   : > { %3194 = vst [vmem:[%s4386_s6 + $0x530] sm:$0xff] %v3782_v59  ;;  %3195 = vst [vmem:[%s4386_s6 + $0x538] sm:$0xff] %v3783_v20  ;;  %v1484_v61 = vpop.f32.mrb[176].mxu1  ;;  %v1837_v63 = vpop.f32.mrb[176].mxu0 }
 0x25c   : > { %v1485_v1 = vadd.f32 %v1484_v61, %v4638_v19  ;;  %v1838_v4 = vadd.f32 %v1837_v63, %v4641_v36  ;;  %v1486_v6 = vpop.f32.mrb[177].mxu1  ;;  %v1839_v7 = vpop.f32.mrb[177].mxu0 }
 0x25d   : > { %v1487_v8 = vadd.f32 %v1486_v6, %v4644_v24  ;;  %v1840_v48 = vadd.f32 %v1839_v7, %v4649_v38  ;;  %v1488_v9 = vpop.f32.mrb[178].mxu1  ;;  %v1841_v2 = vpop.f32.mrb[178].mxu0 }
 0x25e   : > { %v1489_v11 = vadd.f32 %v1488_v9, %v4638_v19  ;;  %v1842_v14 = vadd.f32 %v1841_v2, %v4641_v36  ;;  %v1490_v13 = vpop.f32.mrb[179].mxu1  ;;  %v1843_v62 = vpop.f32.mrb[179].mxu0 }
 0x25f   : > { %v3785_v15 = vpack.c.bf16 %v1487_v8, %v1485_v1  ;;  %v3786_v5 = vpack.c.bf16 %v1840_v48, %v1838_v4  ;;  %v1491_v18 = vadd.f32 %v1490_v13, %v4644_v24  ;;  %v1844_v17 = vadd.f32 %v1843_v62, %v4649_v38 }
 0x261   : > { %3197 = vst [vmem:[%s4386_s6 + $0x548] sm:$0xff] %v3785_v15  ;;  %3198 = vst [vmem:[%s4386_s6 + $0x550] sm:$0xff] %v3786_v5  ;;  %v3788_v21 = vpack.c.bf16 %v1491_v18, %v1489_v11  ;;  %v3789_v23 = vpack.c.bf16 %v1844_v17, %v1842_v14 }
 0x263   : > { %3200 = vst [vmem:[%s4386_s6 + $0x560] sm:$0xff] %v3788_v21  ;;  %3201 = vst [vmem:[%s4386_s6 + $0x568] sm:$0xff] %v3789_v23  ;;  %v1494_v26 = vpop.f32.mrb[180].mxu1  ;;  %v1847_v10 = vpop.f32.mrb[180].mxu0 }
 0x264   : > { %v1495_v27 = vadd.f32 %v1494_v26, %v4638_v19  ;;  %v1848_v30 = vadd.f32 %v1847_v10, %v4641_v36  ;;  %v1496_v28 = vpop.f32.mrb[181].mxu1  ;;  %v1849_v29 = vpop.f32.mrb[181].mxu0 }
 0x265   : > { %v1497_v31 = vadd.f32 %v1496_v28, %v4644_v24  ;;  %v1850_v32 = vadd.f32 %v1849_v29, %v4649_v38  ;;  %v1498_v33 = vpop.f32.mrb[182].mxu1  ;;  %v1851_v34 = vpop.f32.mrb[182].mxu0 }
 0x266   : > { %v1499_v58 = vadd.f32 %v1498_v33, %v4638_v19  ;;  %v1852_v35 = vadd.f32 %v1851_v34, %v4641_v36  ;;  %v1500_v37 = vpop.f32.mrb[183].mxu1  ;;  %v1853_v0 = vpop.f32.mrb[183].mxu0 }
 0x267   : > { %v3791_v25 = vpack.c.bf16 %v1497_v31, %v1495_v27  ;;  %v3792_v16 = vpack.c.bf16 %v1850_v32, %v1848_v30  ;;  %v1501_v39 = vadd.f32 %v1500_v37, %v4644_v24  ;;  %v1854_v41 = vadd.f32 %v1853_v0, %v4649_v38 }
 0x269   : > { %3203 = vst [vmem:[%s4386_s6 + $0x578] sm:$0xff] %v3791_v25  ;;  %3204 = vst [vmem:[%s4386_s6 + $0x580] sm:$0xff] %v3792_v16  ;;  %v3794_v42 = vpack.c.bf16 %v1501_v39, %v1499_v58  ;;  %v3795_v43 = vpack.c.bf16 %v1854_v41, %v1852_v35 }
 0x26b   : > { %3206 = vst [vmem:[%s4386_s6 + $0x590] sm:$0xff] %v3794_v42  ;;  %3207 = vst [vmem:[%s4386_s6 + $0x598] sm:$0xff] %v3795_v43  ;;  %v1504_v44 = vpop.f32.mrb[184].mxu1  ;;  %v1857_v22 = vpop.f32.mrb[184].mxu0 }
 0x26c   : > { %v1505_v45 = vadd.f32 %v1504_v44, %v4638_v19  ;;  %v1858_v46 = vadd.f32 %v1857_v22, %v4641_v36  ;;  %v1506_v47 = vpop.f32.mrb[185].mxu1  ;;  %v1859_v40 = vpop.f32.mrb[185].mxu0 }
 0x26d   : > { %v1507_v12 = vadd.f32 %v1506_v47, %v4644_v24  ;;  %v1860_v49 = vadd.f32 %v1859_v40, %v4649_v38  ;;  %v1508_v50 = vpop.f32.mrb[186].mxu1  ;;  %v1861_v51 = vpop.f32.mrb[186].mxu0 }
 0x26e   : > { %v1509_v52 = vadd.f32 %v1508_v50, %v4638_v19  ;;  %v1862_v60 = vadd.f32 %v1861_v51, %v4641_v36  ;;  %v1510_v53 = vpop.f32.mrb[187].mxu1  ;;  %v1863_v54 = vpop.f32.mrb[187].mxu0 }
 0x26f   : > { %v3797_v3 = vpack.c.bf16 %v1507_v12, %v1505_v45  ;;  %v3798_v55 = vpack.c.bf16 %v1860_v49, %v1858_v46  ;;  %v1511_v56 = vadd.f32 %v1510_v53, %v4644_v24  ;;  %v1864_v57 = vadd.f32 %v1863_v54, %v4649_v38 }
 0x271   : > { %3209 = vst [vmem:[%s4386_s6 + $0x5a8] sm:$0xff] %v3797_v3  ;;  %3210 = vst [vmem:[%s4386_s6 + $0x5b0] sm:$0xff] %v3798_v55  ;;  %v3800_v59 = vpack.c.bf16 %v1511_v56, %v1509_v52  ;;  %v3801_v20 = vpack.c.bf16 %v1864_v57, %v1862_v60 }
 0x273   : > { %3212 = vst [vmem:[%s4386_s6 + $0x5c0] sm:$0xff] %v3800_v59  ;;  %3213 = vst [vmem:[%s4386_s6 + $0x5c8] sm:$0xff] %v3801_v20  ;;  %v1514_v61 = vpop.f32.mrb[188].mxu1  ;;  %v1867_v63 = vpop.f32.mrb[188].mxu0 }
 0x274   : > { %v1515_v1 = vadd.f32 %v1514_v61, %v4638_v19  ;;  %v1868_v4 = vadd.f32 %v1867_v63, %v4641_v36  ;;  %v1516_v6 = vpop.f32.mrb[189].mxu1  ;;  %v1869_v7 = vpop.f32.mrb[189].mxu0 }
 0x275   : > { %v1517_v8 = vadd.f32 %v1516_v6, %v4644_v24  ;;  %v1870_v48 = vadd.f32 %v1869_v7, %v4649_v38  ;;  %v1518_v9 = vpop.f32.mrb[190].mxu1  ;;  %v1871_v2 = vpop.f32.mrb[190].mxu0 }
 0x276   : > { %v1519_v11 = vadd.f32 %v1518_v9, %v4638_v19  ;;  %v1872_v14 = vadd.f32 %v1871_v2, %v4641_v36  ;;  %v1520_v13 = vpop.f32.mrb[191].mxu1  ;;  %v1873_v62 = vpop.f32.mrb[191].mxu0 }
 0x277   : > { %v3803_v15 = vpack.c.bf16 %v1517_v8, %v1515_v1  ;;  %v3804_v5 = vpack.c.bf16 %v1870_v48, %v1868_v4  ;;  %v1521_v18 = vadd.f32 %v1520_v13, %v4644_v24  ;;  %v1874_v17 = vadd.f32 %v1873_v62, %v4649_v38 }
 0x279   : > { %3215 = vst [vmem:[%s4386_s6 + $0x5d8] sm:$0xff] %v3803_v15  ;;  %3216 = vst [vmem:[%s4386_s6 + $0x5e0] sm:$0xff] %v3804_v5  ;;  %v3806_v21 = vpack.c.bf16 %v1521_v18, %v1519_v11  ;;  %v3807_v23 = vpack.c.bf16 %v1874_v17, %v1872_v14 }
 0x27b   : > { %3218 = vst [vmem:[%s4386_s6 + $0x5f0] sm:$0xff] %v3806_v21  ;;  %3219 = vst [vmem:[%s4386_s6 + $0x5f8] sm:$0xff] %v3807_v23 }
 0x27c PF: > { %s13_s14 = sadd.s32 1, %s3982_s14   ;;  %s5065_s12 = smov %s3978_s13 }
 0x27d   : > { %p10_p5 = scmp.ge.s32.totalorder %s13_s14, 4   ;;  %s5066_s13 = smov %s5068_s15 }
 0x27f   :  { %12 = sbr.rel (!%p10_p5) target bundleno = 2 (0x2), region = 68 }

// kernel: _lambda_.13
= control target key start
LH: loop header
LB: loop body
LE: loop exit
PB: predicated region body
PF: predicated region fallthrough
CT: control target
= control target key end

     0   :  { %s6558_s0 = inlined_call_operand.vmem [shape: bf16[2,512,768], index: 0, kind: input, shape index: {}, may-alias: {0,1,2}]   ;;  %s6559_s1 = inlined_call_operand.vmem [shape: bf16[2,512,768], index: 1, kind: input, shape index: {}, may-alias: {0,1,2}]   ;;  %s6560_s2 = inlined_call_operand.vmem [shape: bf16[2,512,768], index: 2, kind: input, shape index: {}, may-alias: {0,1,2}]   ;;  %s6561_s3 = inlined_call_operand.vmem [shape: bf16[2,512,256], index: 3, kind: output, shape index: {}]  }
   0x1   :  { %6644 = sst [smem:[#allocation91_spill]] %s6560_s2 }
   0x2   :  { %6645 = sst [smem:[#allocation92_spill]] %s6561_s3 }
   0x3   :  { %s5118_s12 = smov 0   ;;  %s5120_s13 = smov 0  }
   0x4   :  { %s5122_s14 = smov 0   ;;  %s5124_s15 = smov 0  }
   0x5   :  { %s5126_s16 = smov 0   ;;  %s5128_s17 = smov 0  }
   0x6   :  { %s5130_s18 = smov 0   ;;  %s5132_s19 = smov 0  }
   0x7   :  { %s5134_s20 = smov 0   ;;  %s5136_s21 = smov 0  }
   0x8   :  { %s5138_s22 = smov 0   ;;  %s5140_s23 = smov 0  }
   0x9   :  { %s5142_s24 = smov 0  }
   0xa LB: > { %6646 = sst [smem:[#allocation6_spill]] %s5056_s14  ;;  %s25_s26 = sadd.s32 1, %s5084_s21  ;;  %s5096_s24 = sphi %s5142_s24, %s13_s24   ;;  %s5092_s23 = sphi %s5140_s23, %s6836_s23   ;;  %s5088_s22 = sphi %s5138_s22, %s6835_s22   ;;  %s5084_s21 = sphi %s5136_s21, %s6834_s21   ;;  %s5080_s20 = sphi %s5134_s20, %s6833_s20   ;;  %s5076_s19 = sphi %s5132_s19, %s6832_s19   ;;  %s5072_s18 = sphi %s5130_s18, %s6831_s18   ;;  %s5068_s17 = sphi %s5128_s17, %s6830_s17   ;;  %s5064_s16 = sphi %s5126_s16, %s6829_s16   ;;  %s5060_s15 = sphi %s5124_s15, %s6828_s15   ;;  %s5056_s14 = sphi %s5122_s14, %s6827_s14   ;;  %s5052_s13 = sphi %s5120_s13, %s6826_s13   ;;  %s5048_s12 = sphi %s5118_s12, %s6825_s12  }
   0xb   : > { %6647 = sst [smem:[#allocation7_spill]] %s5072_s18  ;;  %p26_p0 = scmp.ge.s32.totalorder %s25_s26, 2 }
   0xc   : > { %6648 = sst [smem:[#allocation8_spill]] %s5076_s19  ;;  %s28_s27 = sadd.s32 1, %s5088_s22 }
   0xd   : > { %6649 = sst [smem:[#allocation9_spill]] %s5080_s20  ;;  %s32_s28 = sadd.s32 1, %s5092_s23 }
   0xe   : > { %s6838_s26 = smov (%p26_p0, %s25_s26), 0  ;;  %s6840_s27 = smov (!%p26_p0, %s28_s27), %s5088_s22 }
   0xf   : > { %6650 = sst [smem:[#allocation10_spill]] %s6838_s26  ;;  %s37_s30 = ssub.s32 %s5084_s21, %s6838_s26 }
  0x10   : > { %p50_p1 = scmp.ne.s32.totalorder %s5068_s17, %s5064_s16  ;;  %p30_p2 = scmp.ge.s32.totalorder %s6840_s27, 2 }
  0x11   : > { %p51_p3 = scmp.eq.s32.totalorder %s5096_s24, 0  ;;  %s66_s4 = sadd.s32 2, %s5088_s22 }
  0x12   : > { %s73_s5 = sadd.s32 1, %s5060_s15  ;;  %s6842_s27 = smov (%p30_p2, %s6840_s27), 0 }
  0x13   : > { %6651 = sst [smem:[#allocation11_spill]] %s6842_s27  ;;  %s6844_s28 = smov (!%p30_p2, %s32_s28), %s5092_s23 }
  0x14   : > { %s39_s6 = ssub.s32 %s5088_s22, %s6842_s27  ;;  %p5208_p4 = por %p51_p3, %p50_p1 }
  0x15   : > { %p34_p5 = scmp.ge.s32.totalorder %s6844_s28, 2  ;;  %s67_s8 = sadd.s32 2, %s6842_s27 }
  0x16   : > { %s69_s9 = ssub.s32 %s66_s4, %s67_s8  ;;  %p80_p6 = scmp.ne.s32.totalorder %s5060_s15, %s5056_s14 }
  0x17   : > { %s6846_s28 = smov (%p34_p5, %s6844_s28), 0  ;;  %s96_s11 = sadd.s32 4, %s5088_s22 }
  0x18   : > { %6653 = sst [smem:[#allocation12_spill]] %s6846_s28  ;;  %p5219_p7 = por %p80_p6, %p51_p3 }
  0x19   : > { %s36_s25 = ssub.s32 %s5092_s23, %s6846_s28  ;;  %s97_s29 = sadd.s32 4, %s6842_s27 }
  0x1a   : > { %s38_s4 = sor.u32 %s37_s30, %s36_s25  ;;  %s70_s8 = sor.u32 %s69_s9, %s36_s25 }
  0x1b   : > { %s40_s26 = sor.u32 %s39_s6, %s38_s4  ;;  %p71_p8 = scmp.eq.s32.totalorder %s70_s8, 0 }
  0x1c   : > { %p41_p9 = scmp.eq.s32.totalorder %s40_s26, 0  ;;  %s99_s3 = ssub.s32 %s96_s11, %s97_s29 }
  0x1d   : > { %s5228_s19 = scalar_select %p71_p8, %s5060_s15, %s73_s5  }
  0x1e   : > { %s6655_s20 = sadd.s32 1, %s5068_s17  ;;  %s100_s14 = sor.u32 %s99_s3, %s36_s25 }
  0x1f   : > { %s5233_s18 = scalar_select %p41_p9, %s5068_s17, %s6655_s20  }
  0x20   : > { %s103_s2 = sadd.s32 1, %s5052_s13  ;;  %p101_p10 = scmp.eq.s32.totalorder %s100_s14, 0 }
  0x21   : > { %p110_p11 = scmp.ne.s32.totalorder %s5052_s13, %s5048_s12  ;;  %s6656_s28 = sadd.s32 4294967295, %s5096_s24  }
  0x22   : > { %p144_p12 = scmp.eq.s32.totalorder %s6656_s28, 7  ;;  %p3779_p2 = scmp.ge.s32.totalorder %s5096_s24, 8 }
  0x23   : > { %s5241_s27 = scalar_select %p101_p10, %s5052_s13, %s103_s2  }
  0x24   : > { %p5245_p13 = por %p110_p11, %p51_p3  ;;  %p5252_p0 = por %p144_p12, %p50_p1 }
  0x25   : > { %166 = sbr.rel (%p3779_p2) target bundleno = 174 (0xae), region = 16 }
  0x2c   : > { %169 = sbr.rel (!%p5208_p4) target bundleno = 73 (0x49), region = 20  ;;  %s171_s2 = sand.u32 (%p5208_p4), 1, %s5068_s17  }
  0x2d   : > { %s4488_s3 = smul.u32 (%p5208_p4), 192, %s5084_s21  ;;  %s3780_s14 = sshll.u32 (%p5208_p4), %s171_s2, 7 }
  0x2e   : > { %s4489_s20 = smul.u32 (%p5208_p4), 384, %s5092_s23  ;;  %s5271_s7 = scalar_lea.vmem (%p5208_p4), [#allocation2], %s3780_s14 }
  0x2f   : > { %s176_s25 = sadd.s32 (%p5208_p4), %s5088_s22, %s4488_s3 }
  0x30   : > { %s178_s28 = sadd.s32 (%p5208_p4), %s4489_s20, %s176_s25 }
  0x31   : > { %s3783_s29 = sshll.u32 (%p5208_p4), %s178_s28, 2 }
  0x32   : > { %s5266_s9 = scalar_lea.vmem (%p5208_p4), %s6558_s0, %s3783_s29 }
  0x33   : > { %v196_v0 = vld [vmem:[%s5266_s9] sm:$0xf]  ;;  %v198_v1 = vld [vmem:[%s5266_s9 + $0x18] sm:$0xf]  ;;  %v200_v2 = vld [vmem:[%s5266_s9 + $0x30] sm:$0xf] }
  0x34   : > { %197 = vst [vmem:[%s5271_s7] sm:$0xf] %v196_v0  ;;  %199 = vst [vmem:[%s5271_s7 + $0x4] sm:$0xf] %v198_v1  ;;  %v202_v3 = vld [vmem:[%s5266_s9 + $0x48] sm:$0xf] }
  0x35   : > { %201 = vst [vmem:[%s5271_s7 + $0x8] sm:$0xf] %v200_v2  ;;  %v204_v4 = vld [vmem:[%s5266_s9 + $0x60] sm:$0xf]  ;;  %v206_v5 = vld [vmem:[%s5266_s9 + $0x78] sm:$0xf] }
  0x36   : > { %203 = vst [vmem:[%s5271_s7 + $0xc] sm:$0xf] %v202_v3  ;;  %205 = vst [vmem:[%s5271_s7 + $0x10] sm:$0xf] %v204_v4  ;;  %v208_v6 = vld [vmem:[%s5266_s9 + $0x90] sm:$0xf] }
  0x37   : > { %207 = vst [vmem:[%s5271_s7 + $0x14] sm:$0xf] %v206_v5  ;;  %v210_v7 = vld [vmem:[%s5266_s9 + $0xa8] sm:$0xf]  ;;  %v212_v8 = vld [vmem:[%s5266_s9 + $0xc0] sm:$0xf] }
  0x38   : > { %209 = vst [vmem:[%s5271_s7 + $0x18] sm:$0xf] %v208_v6  ;;  %211 = vst [vmem:[%s5271_s7 + $0x1c] sm:$0xf] %v210_v7  ;;  %v214_v9 = vld [vmem:[%s5266_s9 + $0xd8] sm:$0xf] }
  0x39   : > { %213 = vst [vmem:[%s5271_s7 + $0x20] sm:$0xf] %v212_v8  ;;  %v216_v10 = vld [vmem:[%s5266_s9 + $0xf0] sm:$0xf]  ;;  %v218_v11 = vld [vmem:[%s5266_s9 + $0x108] sm:$0xf] }
  0x3a   : > { %215 = vst [vmem:[%s5271_s7 + $0x24] sm:$0xf] %v214_v9  ;;  %217 = vst [vmem:[%s5271_s7 + $0x28] sm:$0xf] %v216_v10  ;;  %v220_v12 = vld [vmem:[%s5266_s9 + $0x120] sm:$0xf] }
  0x3b   : > { %219 = vst [vmem:[%s5271_s7 + $0x2c] sm:$0xf] %v218_v11  ;;  %v222_v13 = vld [vmem:[%s5266_s9 + $0x138] sm:$0xf]  ;;  %v224_v14 = vld [vmem:[%s5266_s9 + $0x150] sm:$0xf] }
  0x3c   : > { %221 = vst [vmem:[%s5271_s7 + $0x30] sm:$0xf] %v220_v12  ;;  %223 = vst [vmem:[%s5271_s7 + $0x34] sm:$0xf] %v222_v13  ;;  %v226_v15 = vld [vmem:[%s5266_s9 + $0x168] sm:$0xf] }
  0x3d   : > { %225 = vst [vmem:[%s5271_s7 + $0x38] sm:$0xf] %v224_v14  ;;  %v228_v16 = vld [vmem:[%s5266_s9 + $0x180] sm:$0xf]  ;;  %v230_v17 = vld [vmem:[%s5266_s9 + $0x198] sm:$0xf] }
  0x3e   : > { %227 = vst [vmem:[%s5271_s7 + $0x3c] sm:$0xf] %v226_v15  ;;  %229 = vst [vmem:[%s5271_s7 + $0x40] sm:$0xf] %v228_v16  ;;  %v232_v18 = vld [vmem:[%s5266_s9 + $0x1b0] sm:$0xf] }
  0x3f   : > { %231 = vst [vmem:[%s5271_s7 + $0x44] sm:$0xf] %v230_v17  ;;  %v234_v19 = vld [vmem:[%s5266_s9 + $0x1c8] sm:$0xf]  ;;  %v236_v20 = vld [vmem:[%s5266_s9 + $0x1e0] sm:$0xf] }
  0x40   : > { %233 = vst [vmem:[%s5271_s7 + $0x48] sm:$0xf] %v232_v18  ;;  %235 = vst [vmem:[%s5271_s7 + $0x4c] sm:$0xf] %v234_v19  ;;  %v238_v21 = vld [vmem:[%s5266_s9 + $0x1f8] sm:$0xf] }
  0x41   : > { %237 = vst [vmem:[%s5271_s7 + $0x50] sm:$0xf] %v236_v20  ;;  %v240_v22 = vld [vmem:[%s5266_s9 + $0x210] sm:$0xf]  ;;  %v242_v23 = vld [vmem:[%s5266_s9 + $0x228] sm:$0xf] }
  0x42   : > { %239 = vst [vmem:[%s5271_s7 + $0x54] sm:$0xf] %v238_v21  ;;  %241 = vst [vmem:[%s5271_s7 + $0x58] sm:$0xf] %v240_v22  ;;  %v244_v24 = vld [vmem:[%s5266_s9 + $0x240] sm:$0xf] }
  0x43   : > { %243 = vst [vmem:[%s5271_s7 + $0x5c] sm:$0xf] %v242_v23  ;;  %v246_v25 = vld [vmem:[%s5266_s9 + $0x258] sm:$0xf]  ;;  %v248_v26 = vld [vmem:[%s5266_s9 + $0x270] sm:$0xf] }
  0x44   : > { %245 = vst [vmem:[%s5271_s7 + $0x60] sm:$0xf] %v244_v24  ;;  %247 = vst [vmem:[%s5271_s7 + $0x64] sm:$0xf] %v246_v25  ;;  %v250_v27 = vld [vmem:[%s5266_s9 + $0x288] sm:$0xf] }
  0x45   : > { %249 = vst [vmem:[%s5271_s7 + $0x68] sm:$0xf] %v248_v26  ;;  %v252_v28 = vld [vmem:[%s5266_s9 + $0x2a0] sm:$0xf]  ;;  %v254_v29 = vld [vmem:[%s5266_s9 + $0x2b8] sm:$0xf] }
  0x46   : > { %251 = vst [vmem:[%s5271_s7 + $0x6c] sm:$0xf] %v250_v27  ;;  %253 = vst [vmem:[%s5271_s7 + $0x70] sm:$0xf] %v252_v28  ;;  %v256_v30 = vld [vmem:[%s5266_s9 + $0x2d0] sm:$0xf] }
  0x47   : > { %255 = vst [vmem:[%s5271_s7 + $0x74] sm:$0xf] %v254_v29  ;;  %v258_v31 = vld [vmem:[%s5266_s9 + $0x2e8] sm:$0xf]  ;;  %257 = vst [vmem:[%s5271_s7 + $0x78] sm:$0xf] %v256_v30 }
  0x48   : > { %259 = vst [vmem:[%s5271_s7 + $0x7c] sm:$0xf] %v258_v31 }
  0x49 PF: > { %346 = sbr.rel (!%p5219_p7) target bundleno = 122 (0x7a), region = 61  ;;  %s348_s11 = sand.u32 (%p5219_p7), 1, %s5060_s15  }
  0x4a   : > { %s3674_s4 = smul.u32 (%p5219_p7), 384, %s5092_s23  ;;  %s3784_s8 = sshll.u32 (%p5219_p7), %s348_s11, 8 }
  0x4b   : > { %s5347_s10 = scalar_lea.vmem (%p5219_p7), [#allocation3], %s3784_s8 }
  0x4c   : > { %s3675_s2 = sadd.s32 (%p5219_p7), %s5088_s22, %s3674_s4 }
  0x4d   : > { %s3785_s3 = sshll.u32 (%p5219_p7), %s3675_s2, 2 }
  0x4e   : > { %s5342_s25 = scalar_lea.vmem (%p5219_p7), %s6559_s1, %s3785_s3 }
  0x4f   : > { %v3786_v32 = vld [vmem:[%s5342_s25 + $0x8] sm:$0xf] (%p5219_p7)  ;;  %v3787_v33 = vld [vmem:[%s5342_s25 + $0x20] sm:$0xf] (%p5219_p7)  ;;  %v3788_v34 = vld [vmem:[%s5342_s25 + $0x38] sm:$0xf] (%p5219_p7) }
  0x50   : > { %372 = vst [vmem:[%s5347_s10] sm:$0xf] %v3786_v32  ;;  %374 = vst [vmem:[%s5347_s10 + $0x4] sm:$0xf] %v3787_v33  ;;  %v3789_v35 = vld [vmem:[%s5342_s25 + $0x50] sm:$0xf] }
  0x51   : > { %376 = vst [vmem:[%s5347_s10 + $0x8] sm:$0xf] %v3788_v34  ;;  %v3790_v36 = vld [vmem:[%s5342_s25 + $0x68] sm:$0xf]  ;;  %v3791_v37 = vld [vmem:[%s5342_s25 + $0x80] sm:$0xf] }
  0x52   : > { %378 = vst [vmem:[%s5347_s10 + $0xc] sm:$0xf] %v3789_v35  ;;  %380 = vst [vmem:[%s5347_s10 + $0x10] sm:$0xf] %v3790_v36  ;;  %v3792_v38 = vld [vmem:[%s5342_s25 + $0x98] sm:$0xf] }
  0x53   : > { %382 = vst [vmem:[%s5347_s10 + $0x14] sm:$0xf] %v3791_v37  ;;  %v3793_v39 = vld [vmem:[%s5342_s25 + $0xb0] sm:$0xf]  ;;  %v3794_v40 = vld [vmem:[%s5342_s25 + $0xc8] sm:$0xf] }
  0x54   : > { %384 = vst [vmem:[%s5347_s10 + $0x18] sm:$0xf] %v3792_v38  ;;  %386 = vst [vmem:[%s5347_s10 + $0x1c] sm:$0xf] %v3793_v39  ;;  %v3795_v41 = vld [vmem:[%s5342_s25 + $0xe0] sm:$0xf] }
  0x55   : > { %388 = vst [vmem:[%s5347_s10 + $0x20] sm:$0xf] %v3794_v40  ;;  %v3796_v42 = vld [vmem:[%s5342_s25 + $0xf8] sm:$0xf]  ;;  %v3797_v43 = vld [vmem:[%s5342_s25 + $0x110] sm:$0xf] }
  0x56   : > { %390 = vst [vmem:[%s5347_s10 + $0x24] sm:$0xf] %v3795_v41  ;;  %392 = vst [vmem:[%s5347_s10 + $0x28] sm:$0xf] %v3796_v42  ;;  %v3798_v44 = vld [vmem:[%s5342_s25 + $0x128] sm:$0xf] }
  0x57   : > { %394 = vst [vmem:[%s5347_s10 + $0x2c] sm:$0xf] %v3797_v43  ;;  %v3799_v45 = vld [vmem:[%s5342_s25 + $0x140] sm:$0xf]  ;;  %v3800_v46 = vld [vmem:[%s5342_s25 + $0x158] sm:$0xf] }
  0x58   : > { %396 = vst [vmem:[%s5347_s10 + $0x30] sm:$0xf] %v3798_v44  ;;  %398 = vst [vmem:[%s5347_s10 + $0x34] sm:$0xf] %v3799_v45  ;;  %v3801_v47 = vld [vmem:[%s5342_s25 + $0x170] sm:$0xf] }
  0x59   : > { %400 = vst [vmem:[%s5347_s10 + $0x38] sm:$0xf] %v3800_v46  ;;  %v3802_v48 = vld [vmem:[%s5342_s25 + $0x188] sm:$0xf]  ;;  %v3803_v49 = vld [vmem:[%s5342_s25 + $0x1a0] sm:$0xf] }
  0x5a   : > { %402 = vst [vmem:[%s5347_s10 + $0x3c] sm:$0xf] %v3801_v47  ;;  %404 = vst [vmem:[%s5347_s10 + $0x40] sm:$0xf] %v3802_v48  ;;  %v3804_v50 = vld [vmem:[%s5342_s25 + $0x1b8] sm:$0xf] }
  0x5b   : > { %406 = vst [vmem:[%s5347_s10 + $0x44] sm:$0xf] %v3803_v49  ;;  %v3805_v51 = vld [vmem:[%s5342_s25 + $0x1d0] sm:$0xf]  ;;  %v3806_v52 = vld [vmem:[%s5342_s25 + $0x1e8] sm:$0xf] }
  0x5c   : > { %408 = vst [vmem:[%s5347_s10 + $0x48] sm:$0xf] %v3804_v50  ;;  %410 = vst [vmem:[%s5347_s10 + $0x4c] sm:$0xf] %v3805_v51  ;;  %v3807_v53 = vld [vmem:[%s5342_s25 + $0x200] sm:$0xf] }
  0x5d   : > { %412 = vst [vmem:[%s5347_s10 + $0x50] sm:$0xf] %v3806_v52  ;;  %v3808_v54 = vld [vmem:[%s5342_s25 + $0x218] sm:$0xf]  ;;  %v3809_v55 = vld [vmem:[%s5342_s25 + $0x230] sm:$0xf] }
  0x5e   : > { %414 = vst [vmem:[%s5347_s10 + $0x54] sm:$0xf] %v3807_v53  ;;  %416 = vst [vmem:[%s5347_s10 + $0x58] sm:$0xf] %v3808_v54  ;;  %v3810_v56 = vld [vmem:[%s5342_s25 + $0x248] sm:$0xf] }
  0x5f   : > { %418 = vst [vmem:[%s5347_s10 + $0x5c] sm:$0xf] %v3809_v55  ;;  %v3811_v57 = vld [vmem:[%s5342_s25 + $0x260] sm:$0xf]  ;;  %v3812_v58 = vld [vmem:[%s5342_s25 + $0x278] sm:$0xf] }
  0x60   : > { %420 = vst [vmem:[%s5347_s10 + $0x60] sm:$0xf] %v3810_v56  ;;  %422 = vst [vmem:[%s5347_s10 + $0x64] sm:$0xf] %v3811_v57  ;;  %v3813_v59 = vld [vmem:[%s5342_s25 + $0x290] sm:$0xf] }
  0x61   : > { %424 = vst [vmem:[%s5347_s10 + $0x68] sm:$0xf] %v3812_v58  ;;  %v3814_v60 = vld [vmem:[%s5342_s25 + $0x2a8] sm:$0xf]  ;;  %v3815_v61 = vld [vmem:[%s5342_s25 + $0x2c0] sm:$0xf] }
  0x62   : > { %426 = vst [vmem:[%s5347_s10 + $0x6c] sm:$0xf] %v3813_v59  ;;  %428 = vst [vmem:[%s5347_s10 + $0x70] sm:$0xf] %v3814_v60  ;;  %v3816_v62 = vld [vmem:[%s5342_s25 + $0x2d8] sm:$0xf] }
  0x63   : > { %430 = vst [vmem:[%s5347_s10 + $0x74] sm:$0xf] %v3815_v61  ;;  %v3817_v63 = vld [vmem:[%s5342_s25 + $0x2f0] sm:$0xf]  ;;  %v3818_v0 = vld [vmem:[%s5342_s25 + $0x308] sm:$0xf] }
  0x64   : > { %432 = vst [vmem:[%s5347_s10 + $0x78] sm:$0xf] %v3816_v62  ;;  %434 = vst [vmem:[%s5347_s10 + $0x7c] sm:$0xf] %v3817_v63  ;;  %v3819_v1 = vld [vmem:[%s5342_s25 + $0x320] sm:$0xf] }
  0x65   : > { %436 = vst [vmem:[%s5347_s10 + $0x80] sm:$0xf] %v3818_v0  ;;  %v3820_v2 = vld [vmem:[%s5342_s25 + $0x338] sm:$0xf]  ;;  %v3821_v3 = vld [vmem:[%s5342_s25 + $0x350] sm:$0xf] }
  0x66   : > { %438 = vst [vmem:[%s5347_s10 + $0x84] sm:$0xf] %v3819_v1  ;;  %440 = vst [vmem:[%s5347_s10 + $0x88] sm:$0xf] %v3820_v2  ;;  %v3822_v4 = vld [vmem:[%s5342_s25 + $0x368] sm:$0xf] }
  0x67   : > { %442 = vst [vmem:[%s5347_s10 + $0x8c] sm:$0xf] %v3821_v3  ;;  %v3823_v5 = vld [vmem:[%s5342_s25 + $0x380] sm:$0xf]  ;;  %v3824_v6 = vld [vmem:[%s5342_s25 + $0x398] sm:$0xf] }
  0x68   : > { %444 = vst [vmem:[%s5347_s10 + $0x90] sm:$0xf] %v3822_v4  ;;  %446 = vst [vmem:[%s5347_s10 + $0x94] sm:$0xf] %v3823_v5  ;;  %v3825_v7 = vld [vmem:[%s5342_s25 + $0x3b0] sm:$0xf] }
  0x69   : > { %448 = vst [vmem:[%s5347_s10 + $0x98] sm:$0xf] %v3824_v6  ;;  %v3826_v8 = vld [vmem:[%s5342_s25 + $0x3c8] sm:$0xf]  ;;  %v3827_v9 = vld [vmem:[%s5342_s25 + $0x3e0] sm:$0xf] }
  0x6a   : > { %450 = vst [vmem:[%s5347_s10 + $0x9c] sm:$0xf] %v3825_v7  ;;  %452 = vst [vmem:[%s5347_s10 + $0xa0] sm:$0xf] %v3826_v8  ;;  %v3828_v10 = vld [vmem:[%s5342_s25 + $0x3f8] sm:$0xf] }
  0x6b   : > { %454 = vst [vmem:[%s5347_s10 + $0xa4] sm:$0xf] %v3827_v9  ;;  %v3829_v11 = vld [vmem:[%s5342_s25 + $0x410] sm:$0xf]  ;;  %v3830_v12 = vld [vmem:[%s5342_s25 + $0x428] sm:$0xf] }
  0x6c   : > { %456 = vst [vmem:[%s5347_s10 + $0xa8] sm:$0xf] %v3828_v10  ;;  %458 = vst [vmem:[%s5347_s10 + $0xac] sm:$0xf] %v3829_v11  ;;  %v3831_v13 = vld [vmem:[%s5342_s25 + $0x440] sm:$0xf] }
  0x6d   : > { %460 = vst [vmem:[%s5347_s10 + $0xb0] sm:$0xf] %v3830_v12  ;;  %v3832_v14 = vld [vmem:[%s5342_s25 + $0x458] sm:$0xf]  ;;  %v3833_v15 = vld [vmem:[%s5342_s25 + $0x470] sm:$0xf] }
  0x6e   : > { %462 = vst [vmem:[%s5347_s10 + $0xb4] sm:$0xf] %v3831_v13  ;;  %464 = vst [vmem:[%s5347_s10 + $0xb8] sm:$0xf] %v3832_v14  ;;  %v3834_v16 = vld [vmem:[%s5342_s25 + $0x488] sm:$0xf] }
  0x6f   : > { %466 = vst [vmem:[%s5347_s10 + $0xbc] sm:$0xf] %v3833_v15  ;;  %v3835_v17 = vld [vmem:[%s5342_s25 + $0x4a0] sm:$0xf]  ;;  %v3836_v18 = vld [vmem:[%s5342_s25 + $0x4b8] sm:$0xf] }
  0x70   : > { %468 = vst [vmem:[%s5347_s10 + $0xc0] sm:$0xf] %v3834_v16  ;;  %470 = vst [vmem:[%s5347_s10 + $0xc4] sm:$0xf] %v3835_v17  ;;  %v3837_v19 = vld [vmem:[%s5342_s25 + $0x4d0] sm:$0xf] }
  0x71   : > { %472 = vst [vmem:[%s5347_s10 + $0xc8] sm:$0xf] %v3836_v18  ;;  %v3838_v20 = vld [vmem:[%s5342_s25 + $0x4e8] sm:$0xf]  ;;  %v3839_v21 = vld [vmem:[%s5342_s25 + $0x500] sm:$0xf] }
  0x72   : > { %474 = vst [vmem:[%s5347_s10 + $0xcc] sm:$0xf] %v3837_v19  ;;  %476 = vst [vmem:[%s5347_s10 + $0xd0] sm:$0xf] %v3838_v20  ;;  %v3840_v22 = vld [vmem:[%s5342_s25 + $0x518] sm:$0xf] }
  0x73   : > { %478 = vst [vmem:[%s5347_s10 + $0xd4] sm:$0xf] %v3839_v21  ;;  %v3841_v23 = vld [vmem:[%s5342_s25 + $0x530] sm:$0xf]  ;;  %v3842_v24 = vld [vmem:[%s5342_s25 + $0x548] sm:$0xf] }
  0x74   : > { %480 = vst [vmem:[%s5347_s10 + $0xd8] sm:$0xf] %v3840_v22  ;;  %482 = vst [vmem:[%s5347_s10 + $0xdc] sm:$0xf] %v3841_v23  ;;  %v3843_v25 = vld [vmem:[%s5342_s25 + $0x560] sm:$0xf] }
  0x75   : > { %484 = vst [vmem:[%s5347_s10 + $0xe0] sm:$0xf] %v3842_v24  ;;  %v3844_v26 = vld [vmem:[%s5342_s25 + $0x578] sm:$0xf]  ;;  %v3845_v27 = vld [vmem:[%s5342_s25 + $0x590] sm:$0xf] }
  0x76   : > { %486 = vst [vmem:[%s5347_s10 + $0xe4] sm:$0xf] %v3843_v25  ;;  %488 = vst [vmem:[%s5347_s10 + $0xe8] sm:$0xf] %v3844_v26  ;;  %v3846_v28 = vld [vmem:[%s5342_s25 + $0x5a8] sm:$0xf] }
  0x77   : > { %490 = vst [vmem:[%s5347_s10 + $0xec] sm:$0xf] %v3845_v27  ;;  %v3847_v29 = vld [vmem:[%s5342_s25 + $0x5c0] sm:$0xf]  ;;  %v3848_v30 = vld [vmem:[%s5342_s25 + $0x5d8] sm:$0xf] }
  0x78   : > { %492 = vst [vmem:[%s5347_s10 + $0xf0] sm:$0xf] %v3846_v28  ;;  %494 = vst [vmem:[%s5347_s10 + $0xf4] sm:$0xf] %v3847_v29  ;;  %v3849_v31 = vld [vmem:[%s5342_s25 + $0x5f0] sm:$0xf] }
  0x79   : > { %496 = vst [vmem:[%s5347_s10 + $0xf8] sm:$0xf] %v3848_v30  ;;  %498 = vst [vmem:[%s5347_s10 + $0xfc] sm:$0xf] %v3849_v31 }
  0x7a PF: > { %649 = sbr.rel (!%p5245_p13) target bundleno = 174 (0xae), region = 102  ;;  %s651_s28 = sand.u32 (%p5245_p13), 1, %s5052_s13  }
  0x7b   : > { %s3681_s29 = smul.u32 (%p5245_p13), 384, %s5092_s23  ;;  %s3850_s5 = sshll.u32 (%p5245_p13), %s651_s28, 8 }
  0x7c   : > { %s6659_s4 = sld [smem:[#allocation91_spill]] (%p5245_p13)  ;;  %s5487_s30 = scalar_lea.vmem (%p5245_p13), [#allocation4], %s3850_s5 }
  0x7d   : > { %s3682_s6 = sadd.s32 (%p5245_p13), %s5088_s22, %s3681_s29 }
  0x7e   : > { %s3851_s9 = sshll.u32 (%p5245_p13), %s3682_s6, 2 }
  0x82   : > { %s5482_s8 = scalar_lea.vmem %s6659_s4, %s3851_s9 }
  0x83   : > { %v3852_v32 = vld [vmem:[%s5482_s8 + $0x10] sm:$0xf]  ;;  %v3853_v33 = vld [vmem:[%s5482_s8 + $0x28] sm:$0xf]  ;;  %v3854_v34 = vld [vmem:[%s5482_s8 + $0x40] sm:$0xf] }
  0x84   : > { %675 = vst [vmem:[%s5487_s30] sm:$0xf] %v3852_v32  ;;  %677 = vst [vmem:[%s5487_s30 + $0x4] sm:$0xf] %v3853_v33  ;;  %v3855_v35 = vld [vmem:[%s5482_s8 + $0x58] sm:$0xf] }
  0x85   : > { %679 = vst [vmem:[%s5487_s30 + $0x8] sm:$0xf] %v3854_v34  ;;  %v3856_v36 = vld [vmem:[%s5482_s8 + $0x70] sm:$0xf]  ;;  %v3857_v37 = vld [vmem:[%s5482_s8 + $0x88] sm:$0xf] }
  0x86   : > { %681 = vst [vmem:[%s5487_s30 + $0xc] sm:$0xf] %v3855_v35  ;;  %683 = vst [vmem:[%s5487_s30 + $0x10] sm:$0xf] %v3856_v36  ;;  %v3858_v38 = vld [vmem:[%s5482_s8 + $0xa0] sm:$0xf] }
  0x87   : > { %685 = vst [vmem:[%s5487_s30 + $0x14] sm:$0xf] %v3857_v37  ;;  %v3859_v39 = vld [vmem:[%s5482_s8 + $0xb8] sm:$0xf]  ;;  %v3860_v40 = vld [vmem:[%s5482_s8 + $0xd0] sm:$0xf] }
  0x88   : > { %687 = vst [vmem:[%s5487_s30 + $0x18] sm:$0xf] %v3858_v38  ;;  %689 = vst [vmem:[%s5487_s30 + $0x1c] sm:$0xf] %v3859_v39  ;;  %v3861_v41 = vld [vmem:[%s5482_s8 + $0xe8] sm:$0xf] }
  0x89   : > { %691 = vst [vmem:[%s5487_s30 + $0x20] sm:$0xf] %v3860_v40  ;;  %v3862_v42 = vld [vmem:[%s5482_s8 + $0x100] sm:$0xf]  ;;  %v3863_v43 = vld [vmem:[%s5482_s8 + $0x118] sm:$0xf] }
  0x8a   : > { %693 = vst [vmem:[%s5487_s30 + $0x24] sm:$0xf] %v3861_v41  ;;  %695 = vst [vmem:[%s5487_s30 + $0x28] sm:$0xf] %v3862_v42  ;;  %v3864_v44 = vld [vmem:[%s5482_s8 + $0x130] sm:$0xf] }
  0x8b   : > { %697 = vst [vmem:[%s5487_s30 + $0x2c] sm:$0xf] %v3863_v43  ;;  %v3865_v45 = vld [vmem:[%s5482_s8 + $0x148] sm:$0xf]  ;;  %v3866_v46 = vld [vmem:[%s5482_s8 + $0x160] sm:$0xf] }
  0x8c   : > { %699 = vst [vmem:[%s5487_s30 + $0x30] sm:$0xf] %v3864_v44  ;;  %701 = vst [vmem:[%s5487_s30 + $0x34] sm:$0xf] %v3865_v45  ;;  %v3867_v47 = vld [vmem:[%s5482_s8 + $0x178] sm:$0xf] }
  0x8d   : > { %703 = vst [vmem:[%s5487_s30 + $0x38] sm:$0xf] %v3866_v46  ;;  %v3868_v48 = vld [vmem:[%s5482_s8 + $0x190] sm:$0xf]  ;;  %v3869_v49 = vld [vmem:[%s5482_s8 + $0x1a8] sm:$0xf] }
  0x8e   : > { %705 = vst [vmem:[%s5487_s30 + $0x3c] sm:$0xf] %v3867_v47  ;;  %707 = vst [vmem:[%s5487_s30 + $0x40] sm:$0xf] %v3868_v48  ;;  %v3870_v50 = vld [vmem:[%s5482_s8 + $0x1c0] sm:$0xf] }
  0x8f   : > { %709 = vst [vmem:[%s5487_s30 + $0x44] sm:$0xf] %v3869_v49  ;;  %v3871_v51 = vld [vmem:[%s5482_s8 + $0x1d8] sm:$0xf]  ;;  %v3872_v52 = vld [vmem:[%s5482_s8 + $0x1f0] sm:$0xf] }
  0x90   : > { %711 = vst [vmem:[%s5487_s30 + $0x48] sm:$0xf] %v3870_v50  ;;  %713 = vst [vmem:[%s5487_s30 + $0x4c] sm:$0xf] %v3871_v51  ;;  %v3873_v53 = vld [vmem:[%s5482_s8 + $0x208] sm:$0xf] }
  0x91   : > { %715 = vst [vmem:[%s5487_s30 + $0x50] sm:$0xf] %v3872_v52  ;;  %v3874_v54 = vld [vmem:[%s5482_s8 + $0x220] sm:$0xf]  ;;  %v3875_v55 = vld [vmem:[%s5482_s8 + $0x238] sm:$0xf] }
  0x92   : > { %717 = vst [vmem:[%s5487_s30 + $0x54] sm:$0xf] %v3873_v53  ;;  %719 = vst [vmem:[%s5487_s30 + $0x58] sm:$0xf] %v3874_v54  ;;  %v3876_v56 = vld [vmem:[%s5482_s8 + $0x250] sm:$0xf] }
  0x93   : > { %721 = vst [vmem:[%s5487_s30 + $0x5c] sm:$0xf] %v3875_v55  ;;  %v3877_v57 = vld [vmem:[%s5482_s8 + $0x268] sm:$0xf]  ;;  %v3878_v58 = vld [vmem:[%s5482_s8 + $0x280] sm:$0xf] }
  0x94   : > { %723 = vst [vmem:[%s5487_s30 + $0x60] sm:$0xf] %v3876_v56  ;;  %725 = vst [vmem:[%s5487_s30 + $0x64] sm:$0xf] %v3877_v57  ;;  %v3879_v59 = vld [vmem:[%s5482_s8 + $0x298] sm:$0xf] }
  0x95   : > { %727 = vst [vmem:[%s5487_s30 + $0x68] sm:$0xf] %v3878_v58  ;;  %v3880_v60 = vld [vmem:[%s5482_s8 + $0x2b0] sm:$0xf]  ;;  %v3881_v61 = vld [vmem:[%s5482_s8 + $0x2c8] sm:$0xf] }
  0x96   : > { %729 = vst [vmem:[%s5487_s30 + $0x6c] sm:$0xf] %v3879_v59  ;;  %731 = vst [vmem:[%s5487_s30 + $0x70] sm:$0xf] %v3880_v60  ;;  %v3882_v62 = vld [vmem:[%s5482_s8 + $0x2e0] sm:$0xf] }
  0x97   : > { %733 = vst [vmem:[%s5487_s30 + $0x74] sm:$0xf] %v3881_v61  ;;  %v3883_v63 = vld [vmem:[%s5482_s8 + $0x2f8] sm:$0xf]  ;;  %v3884_v0 = vld [vmem:[%s5482_s8 + $0x310] sm:$0xf] }
  0x98   : > { %735 = vst [vmem:[%s5487_s30 + $0x78] sm:$0xf] %v3882_v62  ;;  %737 = vst [vmem:[%s5487_s30 + $0x7c] sm:$0xf] %v3883_v63  ;;  %v3885_v1 = vld [vmem:[%s5482_s8 + $0x328] sm:$0xf] }
  0x99   : > { %739 = vst [vmem:[%s5487_s30 + $0x80] sm:$0xf] %v3884_v0  ;;  %v3886_v2 = vld [vmem:[%s5482_s8 + $0x340] sm:$0xf]  ;;  %v3887_v3 = vld [vmem:[%s5482_s8 + $0x358] sm:$0xf] }
  0x9a   : > { %741 = vst [vmem:[%s5487_s30 + $0x84] sm:$0xf] %v3885_v1  ;;  %743 = vst [vmem:[%s5487_s30 + $0x88] sm:$0xf] %v3886_v2  ;;  %v3888_v4 = vld [vmem:[%s5482_s8 + $0x370] sm:$0xf] }
  0x9b   : > { %745 = vst [vmem:[%s5487_s30 + $0x8c] sm:$0xf] %v3887_v3  ;;  %v3889_v5 = vld [vmem:[%s5482_s8 + $0x388] sm:$0xf]  ;;  %v3890_v6 = vld [vmem:[%s5482_s8 + $0x3a0] sm:$0xf] }
  0x9c   : > { %747 = vst [vmem:[%s5487_s30 + $0x90] sm:$0xf] %v3888_v4  ;;  %749 = vst [vmem:[%s5487_s30 + $0x94] sm:$0xf] %v3889_v5  ;;  %v3891_v7 = vld [vmem:[%s5482_s8 + $0x3b8] sm:$0xf] }
  0x9d   : > { %751 = vst [vmem:[%s5487_s30 + $0x98] sm:$0xf] %v3890_v6  ;;  %v3892_v8 = vld [vmem:[%s5482_s8 + $0x3d0] sm:$0xf]  ;;  %v3893_v9 = vld [vmem:[%s5482_s8 + $0x3e8] sm:$0xf] }
  0x9e   : > { %753 = vst [vmem:[%s5487_s30 + $0x9c] sm:$0xf] %v3891_v7  ;;  %755 = vst [vmem:[%s5487_s30 + $0xa0] sm:$0xf] %v3892_v8  ;;  %v3894_v10 = vld [vmem:[%s5482_s8 + $0x400] sm:$0xf] }
  0x9f   : > { %757 = vst [vmem:[%s5487_s30 + $0xa4] sm:$0xf] %v3893_v9  ;;  %v3895_v11 = vld [vmem:[%s5482_s8 + $0x418] sm:$0xf]  ;;  %v3896_v12 = vld [vmem:[%s5482_s8 + $0x430] sm:$0xf] }
  0xa0   : > { %759 = vst [vmem:[%s5487_s30 + $0xa8] sm:$0xf] %v3894_v10  ;;  %761 = vst [vmem:[%s5487_s30 + $0xac] sm:$0xf] %v3895_v11  ;;  %v3897_v13 = vld [vmem:[%s5482_s8 + $0x448] sm:$0xf] }
  0xa1   : > { %763 = vst [vmem:[%s5487_s30 + $0xb0] sm:$0xf] %v3896_v12  ;;  %v3898_v14 = vld [vmem:[%s5482_s8 + $0x460] sm:$0xf]  ;;  %v3899_v15 = vld [vmem:[%s5482_s8 + $0x478] sm:$0xf] }
  0xa2   : > { %765 = vst [vmem:[%s5487_s30 + $0xb4] sm:$0xf] %v3897_v13  ;;  %767 = vst [vmem:[%s5487_s30 + $0xb8] sm:$0xf] %v3898_v14  ;;  %v3900_v16 = vld [vmem:[%s5482_s8 + $0x490] sm:$0xf] }
  0xa3   : > { %769 = vst [vmem:[%s5487_s30 + $0xbc] sm:$0xf] %v3899_v15  ;;  %v3901_v17 = vld [vmem:[%s5482_s8 + $0x4a8] sm:$0xf]  ;;  %v3902_v18 = vld [vmem:[%s5482_s8 + $0x4c0] sm:$0xf] }
  0xa4   : > { %771 = vst [vmem:[%s5487_s30 + $0xc0] sm:$0xf] %v3900_v16  ;;  %773 = vst [vmem:[%s5487_s30 + $0xc4] sm:$0xf] %v3901_v17  ;;  %v3903_v19 = vld [vmem:[%s5482_s8 + $0x4d8] sm:$0xf] }
  0xa5   : > { %775 = vst [vmem:[%s5487_s30 + $0xc8] sm:$0xf] %v3902_v18  ;;  %v3904_v20 = vld [vmem:[%s5482_s8 + $0x4f0] sm:$0xf]  ;;  %v3905_v21 = vld [vmem:[%s5482_s8 + $0x508] sm:$0xf] }
  0xa6   : > { %777 = vst [vmem:[%s5487_s30 + $0xcc] sm:$0xf] %v3903_v19  ;;  %779 = vst [vmem:[%s5487_s30 + $0xd0] sm:$0xf] %v3904_v20  ;;  %v3906_v22 = vld [vmem:[%s5482_s8 + $0x520] sm:$0xf] }
  0xa7   : > { %781 = vst [vmem:[%s5487_s30 + $0xd4] sm:$0xf] %v3905_v21  ;;  %v3907_v23 = vld [vmem:[%s5482_s8 + $0x538] sm:$0xf]  ;;  %v3908_v24 = vld [vmem:[%s5482_s8 + $0x550] sm:$0xf] }
  0xa8   : > { %783 = vst [vmem:[%s5487_s30 + $0xd8] sm:$0xf] %v3906_v22  ;;  %785 = vst [vmem:[%s5487_s30 + $0xdc] sm:$0xf] %v3907_v23  ;;  %v3909_v25 = vld [vmem:[%s5482_s8 + $0x568] sm:$0xf] }
  0xa9   : > { %787 = vst [vmem:[%s5487_s30 + $0xe0] sm:$0xf] %v3908_v24  ;;  %v3910_v26 = vld [vmem:[%s5482_s8 + $0x580] sm:$0xf]  ;;  %v3911_v27 = vld [vmem:[%s5482_s8 + $0x598] sm:$0xf] }
  0xaa   : > { %789 = vst [vmem:[%s5487_s30 + $0xe4] sm:$0xf] %v3909_v25  ;;  %791 = vst [vmem:[%s5487_s30 + $0xe8] sm:$0xf] %v3910_v26  ;;  %v3912_v28 = vld [vmem:[%s5482_s8 + $0x5b0] sm:$0xf] }
  0xab   : > { %793 = vst [vmem:[%s5487_s30 + $0xec] sm:$0xf] %v3911_v27  ;;  %v3913_v29 = vld [vmem:[%s5482_s8 + $0x5c8] sm:$0xf]  ;;  %v3914_v30 = vld [vmem:[%s5482_s8 + $0x5e0] sm:$0xf] }
  0xac   : > { %795 = vst [vmem:[%s5487_s30 + $0xf0] sm:$0xf] %v3912_v28  ;;  %797 = vst [vmem:[%s5487_s30 + $0xf4] sm:$0xf] %v3913_v29  ;;  %v3915_v31 = vld [vmem:[%s5482_s8 + $0x5f8] sm:$0xf] }
  0xad   : > { %799 = vst [vmem:[%s5487_s30 + $0xf8] sm:$0xf] %v3914_v30  ;;  %801 = vst [vmem:[%s5487_s30 + $0xfc] sm:$0xf] %v3915_v31 }
  0xae PF: > { %p3916_p1 = scmp.ge.s32.totalorder %s5096_s24, 1  ;;  %p951_p3 = scmp.lt.s32.totalorder %s5096_s24, 9 }
  0xb0   : > { %p952_p4 = pnand %p3916_p1, %p951_p3 }
  0xb2   : > { %955 = sbr.rel (%p952_p4) target bundleno = 1007 (0x3ef), region = 143 }
  0xb9   : > { %s6660_s2 = sld [smem:[#allocation6_spill]]  ;;  %s958_s25 = sand.u32 1, %s5064_s16  }
  0xba   : > { %s5638_s10 = sshll.u32 %s958_s25, 7  ;;  %s972_s16 = sand.u32 1, %s5048_s12  }
  0xbb   : > { %s5643_s28 = scalar_lea.vmem [#allocation2], %s5638_s10  ;;  %s3919_s29 = sshll.u32 %s972_s16, 8 }
  0xbc   : > { %v4626_v52 = vld [vmem:[%s5643_s28] sm:$0xff]   ;;  %v4627_v1 = vld [vmem:[%s5643_s28 + $0x8] sm:$0xff]   ;;  %v4628_v2 = vld [vmem:[%s5643_s28 + $0x10] sm:$0xff]   ;;  %s5674_s5 = scalar_lea.vmem [#allocation4], %s3919_s29  ;;  %s6421_s12 = scalar_lea.vmem [#allocation5], %s5638_s10 }
  0xbd   : > { %4184 = vmatprep.mubr.bf16.mxu0 %v4626_v52  ;;  %4232 = vmatprep.mubr.bf16.mxu1 %v4626_v52  ;;  %v4629_v3 = vld [vmem:[%s5643_s28 + $0x18] sm:$0xff]   ;;  %v4630_v4 = vld [vmem:[%s5643_s28 + $0x20] sm:$0xff]   ;;  %v4631_v5 = vld [vmem:[%s5643_s28 + $0x28] sm:$0xff]   ;;  %s6817_s6 = sld [smem:[#allocation7_spill]] (%p5252_p0)  ;;  %s6818_s9 = sld [smem:[#allocation9_spill]] (%p5252_p0) }
  0xbe   : > { %v4632_v6 = vld [vmem:[%s5643_s28 + $0x30] sm:$0xff]   ;;  %v4633_v7 = vld [vmem:[%s5643_s28 + $0x38] sm:$0xff]   ;;  %v4634_v8 = vld [vmem:[%s5643_s28 + $0x40] sm:$0xff]   ;;  %s6819_s7 = sld [smem:[#allocation8_spill]] (%p5252_p0) }
  0xbf   : > { %s965_s3 = sand.u32 1, %s6660_s2   ;;  %v4635_v9 = vld [vmem:[%s5643_s28 + $0x48] sm:$0xff]   ;;  %v4636_v10 = vld [vmem:[%s5643_s28 + $0x50] sm:$0xff]   ;;  %v4637_v11 = vld [vmem:[%s5643_s28 + $0x58] sm:$0xff]  }
  0xc0   : > { %s3918_s14 = sshll.u32 %s965_s3, 8  ;;  %v4638_v12 = vld [vmem:[%s5643_s28 + $0x60] sm:$0xff]   ;;  %v4639_v13 = vld [vmem:[%s5643_s28 + $0x68] sm:$0xff]   ;;  %v4640_v14 = vld [vmem:[%s5643_s28 + $0x70] sm:$0xff]  }
  0xc1   : > { %s5617_s20 = scalar_lea.vmem [#allocation3], %s3918_s14  ;;  %v4641_v15 = vld [vmem:[%s5643_s28 + $0x78] sm:$0xff]   ;;  %v4642_v16 = vld [vmem:[%s5674_s5 + $0x40] sm:$0xff]   ;;  %v4646_v20 = vld [vmem:[%s5674_s5 + $0x48] sm:$0xff]   ;;  %s6820_s14 = sld [smem:[#allocation92_spill]] (%p5252_p0) }
  0xc2   : > { %v4594_v32 = vld [vmem:[%s5617_s20 + $0x40] sm:$0xff]   ;;  %v4598_v36 = vld [vmem:[%s5617_s20 + $0x48] sm:$0xff]   ;;  %v4602_v40 = vld [vmem:[%s5617_s20 + $0x50] sm:$0xff]  }
  0xc3   : > { %v4595_v33 = vld [vmem:[%s5617_s20 + $0xc0] sm:$0xff]   ;;  %4168 = vmatprep.subr.bf16.mxu0 %v4594_v32  ;;  %v4599_v37 = vld [vmem:[%s5617_s20 + $0xc8] sm:$0xff]   ;;  %v4603_v41 = vld [vmem:[%s5617_s20 + $0xd0] sm:$0xff]   ;;  %s4072_s11 = sshll.u32 (%p5252_p0), %s6817_s6, 6  ;;  %s4036_s4 = sshll.u32 (%p5252_p0), %s6818_s9, 7 }
  0xc4   : > { %v4596_v34 = vld [vmem:[%s5617_s20] sm:$0xff]   ;;  %4216 = vmatprep.subr.bf16.mxu1 %v4595_v33  ;;  %v4600_v38 = vld [vmem:[%s5617_s20 + $0x8] sm:$0xff]   ;;  %v4604_v42 = vld [vmem:[%s5617_s20 + $0x10] sm:$0xff]   ;;  %s3484_s26 = sadd.s32 (%p5252_p0), %s6819_s7, %s4072_s11 }
  0xc5   : > { %v4597_v35 = vld [vmem:[%s5617_s20 + $0x80] sm:$0xff]   ;;  %4169 = vmatpush3.bf16.xpose.msra.mxu0 %v4596_v34  ;;  %v4601_v39 = vld [vmem:[%s5617_s20 + $0x88] sm:$0xff]   ;;  %v4605_v43 = vld [vmem:[%s5617_s20 + $0x90] sm:$0xff]   ;;  %s3486_s8 = sadd.s32 (%p5252_p0), %s4036_s4, %s3484_s26 }
  0xc6   : > { %4217 = vmatpush3.bf16.xpose.msra.mxu1 %v4597_v35  ;;  %4170 = vmatprep.subr.bf16.mxu0 %v4598_v36  ;;  %v4606_v44 = vld [vmem:[%s5617_s20 + $0x58] sm:$0xff]   ;;  %v4610_v48 = vld [vmem:[%s5617_s20 + $0x60] sm:$0xff]   ;;  %v4614_v53 = vld [vmem:[%s5617_s20 + $0x68] sm:$0xff]   ;;  %s4037_s30 = sshll.u32 (%p5252_p0), %s3486_s8, 2 }
  0xc7   : > { %4218 = vmatprep.subr.bf16.mxu1 %v4599_v37  ;;  %v4607_v45 = vld [vmem:[%s5617_s20 + $0xd8] sm:$0xff]   ;;  %v4611_v49 = vld [vmem:[%s5617_s20 + $0xe0] sm:$0xff]   ;;  %v4615_v54 = vld [vmem:[%s5617_s20 + $0xe8] sm:$0xff]  }
  0xc8   : > { %v4608_v46 = vld [vmem:[%s5617_s20 + $0x18] sm:$0xff]   ;;  %v4612_v50 = vld [vmem:[%s5617_s20 + $0x20] sm:$0xff]   ;;  %v4616_v55 = vld [vmem:[%s5617_s20 + $0x28] sm:$0xff]  }
  0xc9   : > { %v4609_v47 = vld [vmem:[%s5617_s20 + $0x98] sm:$0xff]   ;;  %v4613_v51 = vld [vmem:[%s5617_s20 + $0xa0] sm:$0xff]   ;;  %v4617_v56 = vld [vmem:[%s5617_s20 + $0xa8] sm:$0xff]  }
  0xca   : > { %v4618_v57 = vld [vmem:[%s5617_s20 + $0x70] sm:$0xff]   ;;  %v4622_v61 = vld [vmem:[%s5617_s20 + $0x78] sm:$0xff]   ;;  %v4643_v17 = vld [vmem:[%s5674_s5 + $0xc0] sm:$0xff]  }
  0xcb   : > { %v4619_v58 = vld [vmem:[%s5617_s20 + $0xf0] sm:$0xff]   ;;  %v4623_v62 = vld [vmem:[%s5617_s20 + $0xf8] sm:$0xff]   ;;  %v4644_v18 = vld [vmem:[%s5674_s5] sm:$0xff]  }
  0xcc   : > { %v4620_v59 = vld [vmem:[%s5617_s20 + $0x30] sm:$0xff]   ;;  %v4624_v63 = vld [vmem:[%s5617_s20 + $0x38] sm:$0xff]   ;;  %v4645_v19 = vld [vmem:[%s5674_s5 + $0x80] sm:$0xff]  }
  0xcd   : > { %4171 = vmatpush3.bf16.xpose.msra.mxu0 %v4600_v38  ;;  %v4621_v60 = vld [vmem:[%s5617_s20 + $0xb0] sm:$0xff]   ;;  %v4625_v0 = vld [vmem:[%s5617_s20 + $0xb8] sm:$0xff]   ;;  %v4647_v21 = vld [vmem:[%s5674_s5 + $0xc8] sm:$0xff]   ;;  %s6457_s20 = scalar_lea.vmem (%p5252_p0), %s6820_s14, %s4037_s30 }
  0xce   : > { %4219 = vmatpush3.bf16.xpose.msra.mxu1 %v4601_v39  ;;  %4172 = vmatprep.subr.bf16.mxu0 %v4602_v40  ;;  %v4648_v22 = vld [vmem:[%s5674_s5 + $0x8] sm:$0xff]   ;;  %v4650_v24 = vld [vmem:[%s5674_s5 + $0x50] sm:$0xff]   ;;  %v4654_v28 = vld [vmem:[%s5674_s5 + $0x58] sm:$0xff]  }
  0xcf   : > { %4220 = vmatprep.subr.bf16.mxu1 %v4603_v41  ;;  %v4649_v23 = vld [vmem:[%s5674_s5 + $0x88] sm:$0xff]   ;;  %v4651_v25 = vld [vmem:[%s5674_s5 + $0xd0] sm:$0xff]   ;;  %v4655_v29 = vld [vmem:[%s5674_s5 + $0xd8] sm:$0xff]  }
  0xd0   : > { %v4652_v26 = vld [vmem:[%s5674_s5 + $0x10] sm:$0xff]   ;;  %v4656_v30 = vld [vmem:[%s5674_s5 + $0x18] sm:$0xff]   ;;  %v4658_v32 = vld [vmem:[%s5674_s5 + $0x60] sm:$0xff]  }
  0xd1   : > { %v4653_v27 = vld [vmem:[%s5674_s5 + $0x90] sm:$0xff]   ;;  %v4657_v31 = vld [vmem:[%s5674_s5 + $0x98] sm:$0xff]   ;;  %v4659_v33 = vld [vmem:[%s5674_s5 + $0xe0] sm:$0xff]  }
  0xd2   : > { %v4660_v34 = vld [vmem:[%s5674_s5 + $0x20] sm:$0xff]   ;;  %v4662_v37 = vld [vmem:[%s5674_s5 + $0x68] sm:$0xff]  }
  0xd3   : > { %v4661_v35 = vld [vmem:[%s5674_s5 + $0xa0] sm:$0xff]   ;;  %v4663_v38 = vld [vmem:[%s5674_s5 + $0xe8] sm:$0xff]  }
  0xd4   : > { %v4664_v39 = vld [vmem:[%s5674_s5 + $0x28] sm:$0xff]  }
  0xd5   : > { %4173 = vmatpush3.bf16.xpose.msra.mxu0 %v4604_v42 }
  0xd6   : > { %4221 = vmatpush3.bf16.xpose.msra.mxu1 %v4605_v43  ;;  %4174 = vmatprep.subr.bf16.mxu0 %v4606_v44  ;;  %v4665_v43 = vld [vmem:[%s5674_s5 + $0xa8] sm:$0xff]  }
  0xd7   : > { %4222 = vmatprep.subr.bf16.mxu1 %v4607_v45 }
  0xdd   : > { %4175 = vmatpush3.bf16.xpose.msra.mxu0 %v4608_v46 }
  0xde   : > { %4223 = vmatpush3.bf16.xpose.msra.mxu1 %v4609_v47  ;;  %4176 = vmatprep.subr.bf16.mxu0 %v4610_v48 }
  0xdf   : > { %4224 = vmatprep.subr.bf16.mxu1 %v4611_v49 }
  0xe5   : > { %4177 = vmatpush3.bf16.xpose.msra.mxu0 %v4612_v50 }
  0xe6   : > { %4225 = vmatpush3.bf16.xpose.msra.mxu1 %v4613_v51  ;;  %4178 = vmatprep.subr.bf16.mxu0 %v4614_v53 }
  0xe7   : > { %4226 = vmatprep.subr.bf16.mxu1 %v4615_v54  ;;  %v4666_v54 = vld [vmem:[%s5674_s5 + $0x70] sm:$0xff]  }
  0xed   : > { %4179 = vmatpush3.bf16.xpose.msra.mxu0 %v4616_v55  ;;  %v4667_v55 = vld [vmem:[%s5674_s5 + $0xf0] sm:$0xff]  }
  0xee   : > { %4227 = vmatpush3.bf16.xpose.msra.mxu1 %v4617_v56  ;;  %4180 = vmatprep.subr.bf16.mxu0 %v4618_v57  ;;  %v4668_v56 = vld [vmem:[%s5674_s5 + $0x30] sm:$0xff]  }
  0xef   : > { %4228 = vmatprep.subr.bf16.mxu1 %v4619_v58  ;;  %v4669_v57 = vld [vmem:[%s5674_s5 + $0xb0] sm:$0xff]  }
  0xf5   : > { %4181 = vmatpush3.bf16.xpose.msra.mxu0 %v4620_v59 }
  0xf6   : > { %4229 = vmatpush3.bf16.xpose.msra.mxu1 %v4621_v60  ;;  %4182 = vmatprep.subr.bf16.mxu0 %v4622_v61 }
  0xf7   : > { %4230 = vmatprep.subr.bf16.mxu1 %v4623_v62 }
  0xfd   : > { %4183 = vmatpush3.bf16.xpose.msra.mxu0 %v4624_v63 }
  0xfe   : > { %4231 = vmatpush3.bf16.xpose.msra.mxu1 %v4625_v0  ;;  %4264 = vmatprep.subr.bf16.mxu0 %v4642_v16 }
  0xff   : > { %4376 = vmatprep.subr.bf16.mxu1 %v4643_v17 }
 0x104   : > { %4185 = vmatmul.mubr.bf16.vlgmr.msra.gmra.mrb[0].mxu0 %v4626_v52 }
 0x105   : > { %4233 = vmatmul.mubr.bf16.vlgmr.msra.gmra.mrb[0].mxu1 %v4626_v52  ;;  %4186 = vmatprep.mubr.bf16.mxu0 %v4627_v1 }
 0x106   : > { %4234 = vmatprep.mubr.bf16.mxu1 %v4627_v1  ;;  %4265 = vmatpush3.bf16.msra.mxu0 %v4644_v18 }
 0x107   : > { %4377 = vmatpush3.bf16.msra.mxu1 %v4645_v19  ;;  %4266 = vmatprep.subr.bf16.mxu0 %v4646_v20 }
 0x108   : > { %4378 = vmatprep.subr.bf16.mxu1 %v4647_v21 }
 0x10a   : > { %4267 = vmatpush3.bf16.msra.mxu0 %v4648_v22 }
 0x10b   : > { %4379 = vmatpush3.bf16.msra.mxu1 %v4649_v23  ;;  %4268 = vmatprep.subr.bf16.mxu0 %v4650_v24 }
 0x10c   : > { %4187 = vmatmul.mubr.bf16.gmra.mrb[4].mxu0 %v4627_v1  ;;  %4380 = vmatprep.subr.bf16.mxu1 %v4651_v25 }
 0x10d   : > { %4235 = vmatmul.mubr.bf16.gmra.mrb[4].mxu1 %v4627_v1  ;;  %4188 = vmatprep.mubr.bf16.mxu0 %v4628_v2 }
 0x10e   : > { %4236 = vmatprep.mubr.bf16.mxu1 %v4628_v2  ;;  %4269 = vmatpush3.bf16.msra.mxu0 %v4652_v26 }
 0x10f   : > { %4381 = vmatpush3.bf16.msra.mxu1 %v4653_v27  ;;  %4270 = vmatprep.subr.bf16.mxu0 %v4654_v28 }
 0x110   : > { %4382 = vmatprep.subr.bf16.mxu1 %v4655_v29 }
 0x112   : > { %4271 = vmatpush3.bf16.msra.mxu0 %v4656_v30 }
 0x113   : > { %4383 = vmatpush3.bf16.msra.mxu1 %v4657_v31  ;;  %4272 = vmatprep.subr.bf16.mxu0 %v4658_v32 }
 0x114   : > { %4189 = vmatmul.mubr.bf16.gmra.mrb[8].mxu0 %v4628_v2  ;;  %4384 = vmatprep.subr.bf16.mxu1 %v4659_v33 }
 0x115   : > { %4237 = vmatmul.mubr.bf16.gmra.mrb[8].mxu1 %v4628_v2  ;;  %4190 = vmatprep.mubr.bf16.mxu0 %v4629_v3 }
 0x116   : > { %4238 = vmatprep.mubr.bf16.mxu1 %v4629_v3  ;;  %4273 = vmatpush3.bf16.msra.mxu0 %v4660_v34 }
 0x117   : > { %4385 = vmatpush3.bf16.msra.mxu1 %v4661_v35  ;;  %4274 = vmatprep.subr.bf16.mxu0 %v4662_v37 }
 0x118   : > { %4386 = vmatprep.subr.bf16.mxu1 %v4663_v38 }
 0x11a   : > { %4275 = vmatpush3.bf16.msra.mxu0 %v4664_v39 }
 0x11b   : > { %4387 = vmatpush3.bf16.msra.mxu1 %v4665_v43  ;;  %4276 = vmatprep.subr.bf16.mxu0 %v4666_v54 }
 0x11c   : > { %4191 = vmatmul.mubr.bf16.gmra.mrb[12].mxu0 %v4629_v3  ;;  %4388 = vmatprep.subr.bf16.mxu1 %v4667_v55 }
 0x11d   : > { %4239 = vmatmul.mubr.bf16.gmra.mrb[12].mxu1 %v4629_v3  ;;  %4192 = vmatprep.mubr.bf16.mxu0 %v4630_v4 }
 0x11e   : > { %4240 = vmatprep.mubr.bf16.mxu1 %v4630_v4  ;;  %4277 = vmatpush3.bf16.msra.mxu0 %v4668_v56 }
 0x11f   : > { %4389 = vmatpush3.bf16.msra.mxu1 %v4669_v57 }
 0x124   : > { %4193 = vmatmul.mubr.bf16.gmra.mrb[16].mxu0 %v4630_v4 }
 0x125   : > { %4241 = vmatmul.mubr.bf16.gmra.mrb[16].mxu1 %v4630_v4  ;;  %4194 = vmatprep.mubr.bf16.mxu0 %v4631_v5 }
 0x126   : > { %4242 = vmatprep.mubr.bf16.mxu1 %v4631_v5 }
 0x12c   : > { %4195 = vmatmul.mubr.bf16.gmra.mrb[20].mxu0 %v4631_v5 }
 0x12d   : > { %4243 = vmatmul.mubr.bf16.gmra.mrb[20].mxu1 %v4631_v5  ;;  %4196 = vmatprep.mubr.bf16.mxu0 %v4632_v6 }
 0x12e   : > { %4244 = vmatprep.mubr.bf16.mxu1 %v4632_v6 }
 0x134   : > { %4197 = vmatmul.mubr.bf16.gmra.mrb[24].mxu0 %v4632_v6 }
 0x135   : > { %4245 = vmatmul.mubr.bf16.gmra.mrb[24].mxu1 %v4632_v6  ;;  %4198 = vmatprep.mubr.bf16.mxu0 %v4633_v7 }
 0x136   : > { %4246 = vmatprep.mubr.bf16.mxu1 %v4633_v7 }
 0x13c   : > { %4199 = vmatmul.mubr.bf16.gmra.mrb[28].mxu0 %v4633_v7 }
 0x13d   : > { %4247 = vmatmul.mubr.bf16.gmra.mrb[28].mxu1 %v4633_v7  ;;  %4200 = vmatprep.mubr.bf16.mxu0 %v4634_v8 }
 0x13e   : > { %4248 = vmatprep.mubr.bf16.mxu1 %v4634_v8 }
 0x144   : > { %4201 = vmatmul.mubr.bf16.gmra.mrb[32].mxu0 %v4634_v8 }
 0x145   : > { %4249 = vmatmul.mubr.bf16.gmra.mrb[32].mxu1 %v4634_v8  ;;  %4202 = vmatprep.mubr.bf16.mxu0 %v4635_v9 }
 0x146   : > { %4250 = vmatprep.mubr.bf16.mxu1 %v4635_v9 }
 0x14c   : > { %4203 = vmatmul.mubr.bf16.gmra.mrb[36].mxu0 %v4635_v9 }
 0x14d   : > { %4251 = vmatmul.mubr.bf16.gmra.mrb[36].mxu1 %v4635_v9  ;;  %4204 = vmatprep.mubr.bf16.mxu0 %v4636_v10 }
 0x14e   : > { %4252 = vmatprep.mubr.bf16.mxu1 %v4636_v10 }
 0x154   : > { %4205 = vmatmul.mubr.bf16.gmra.mrb[40].mxu0 %v4636_v10 }
 0x155   : > { %4253 = vmatmul.mubr.bf16.gmra.mrb[40].mxu1 %v4636_v10  ;;  %4206 = vmatprep.mubr.bf16.mxu0 %v4637_v11 }
 0x156   : > { %4254 = vmatprep.mubr.bf16.mxu1 %v4637_v11 }
 0x15c   : > { %4207 = vmatmul.mubr.bf16.gmra.mrb[44].mxu0 %v4637_v11 }
 0x15d   : > { %4255 = vmatmul.mubr.bf16.gmra.mrb[44].mxu1 %v4637_v11  ;;  %4208 = vmatprep.mubr.bf16.mxu0 %v4638_v12 }
 0x15e   : > { %4256 = vmatprep.mubr.bf16.mxu1 %v4638_v12 }
 0x164   : > { %4209 = vmatmul.mubr.bf16.gmra.mrb[48].mxu0 %v4638_v12 }
 0x165   : > { %4257 = vmatmul.mubr.bf16.gmra.mrb[48].mxu1 %v4638_v12  ;;  %4210 = vmatprep.mubr.bf16.mxu0 %v4639_v13 }
 0x166   : > { %4258 = vmatprep.mubr.bf16.mxu1 %v4639_v13 }
 0x16c   : > { %4211 = vmatmul.mubr.bf16.gmra.mrb[52].mxu0 %v4639_v13 }
 0x16d   : > { %4259 = vmatmul.mubr.bf16.gmra.mrb[52].mxu1 %v4639_v13  ;;  %4212 = vmatprep.mubr.bf16.mxu0 %v4640_v14 }
 0x16e   : > { %4260 = vmatprep.mubr.bf16.mxu1 %v4640_v14 }
 0x174   : > { %4213 = vmatmul.mubr.bf16.gmra.mrb[56].mxu0 %v4640_v14 }
 0x175   : > { %4261 = vmatmul.mubr.bf16.gmra.mrb[56].mxu1 %v4640_v14  ;;  %4214 = vmatprep.mubr.bf16.mxu0 %v4641_v15 }
 0x176   : > { %4262 = vmatprep.mubr.bf16.mxu1 %v4641_v15 }
 0x17c   : > { %4215 = vmatmul.mubr.bf16.gmra.mrb[60].mxu0 %v4641_v15 }
 0x17d   : > { %4263 = vmatmul.mubr.bf16.gmra.mrb[60].mxu1 %v4641_v15 }
 0x1d7   : > { %v1489_v36 = vpop.f32.mrb[0].mxu0 }
 0x1d8   : > { %v5699_v40 = vmul.f32 0.088388346, %v1489_v36  ;;  %v1682_v41 = vpop.f32.mrb[0].mxu1  ;;  %v1491_v42 = vpop.f32.mrb[1].mxu0 }
 0x1d9   : > { %v5702_v44 = vmul.f32 0.088388346, %v1682_v41  ;;  %v5704_v45 = vmul.f32 0.088388346, %v1491_v42  ;;  %v1684_v46 = vpop.f32.mrb[1].mxu1  ;;  %v1493_v47 = vpop.f32.mrb[2].mxu0 }
 0x1da   : > { %v5706_v48 = vmul.f32 0.088388346, %v1493_v47  ;;  %v1686_v49 = vpop.f32.mrb[2].mxu1  ;;  %v1495_v50 = vpop.f32.mrb[3].mxu0  ;;  %v5716_v58 = vmul.f32 0.088388346, %v1684_v46 }
 0x1db   : > { %v1969_v51 = vmax.f32 %v5699_v40, %v5704_v45  ;;  %v5710_v52 = vmul.f32 0.088388346, %v1495_v50  ;;  %v1688_v53 = vpop.f32.mrb[3].mxu1  ;;  %v5718_v59 = vmul.f32 0.088388346, %v1686_v49 }
 0x1dc   : > { %v5725_v1 = vmul.f32 0.088388346, %v1688_v53 }
 0x1dd   : > { %v1974_v60 = vmax.f32 %v5706_v48, %v5710_v52  ;;  %v1970_v61 = vmax.f32 %v1969_v51, %v5702_v44 }
 0x1df   : > { %v1499_v62 = vpop.f32.mrb[4].mxu0  ;;  %v1971_v63 = vmax.f32 %v1970_v61, %v5716_v58  ;;  %v1975_v0 = vmax.f32 %v1974_v60, %v5718_v59 }
 0x1e0   : > { %v5727_v2 = vmul.f32 0.088388346, %v1499_v62  ;;  %v1692_v3 = vpop.f32.mrb[4].mxu1  ;;  %v1501_v4 = vpop.f32.mrb[5].mxu0 }
 0x1e1   : > { %v5729_v5 = vmul.f32 0.088388346, %v1692_v3  ;;  %v5731_v6 = vmul.f32 0.088388346, %v1501_v4  ;;  %v1694_v7 = vpop.f32.mrb[5].mxu1  ;;  %1972 = vmax.xlane.f32.xlu0 %v1971_v63  ;;  %v1503_v8 = vpop.f32.mrb[6].mxu0  ;;  %v1976_v15 = vmax.f32 %v1975_v0, %v5725_v1 }
 0x1e2   : > { %v1696_v9 = vpop.f32.mrb[6].mxu1  ;;  %v5733_v10 = vmul.f32 0.088388346, %v1503_v8  ;;  %v1505_v11 = vpop.f32.mrb[7].mxu0  ;;  %v5740_v16 = vmul.f32 0.088388346, %v1694_v7 }
 0x1e3   : > { %v1979_v12 = vmax.f32 %v5727_v2, %v5731_v6  ;;  %v5737_v13 = vmul.f32 0.088388346, %v1505_v11  ;;  %v1698_v14 = vpop.f32.mrb[7].mxu1  ;;  %v5742_v17 = vmul.f32 0.088388346, %v1696_v9 }
 0x1e4   : > { %v5749_v23 = vmul.f32 0.088388346, %v1698_v14 }
 0x1e5   : > { %v1984_v18 = vmax.f32 %v5733_v10, %v5737_v13  ;;  %1977 = vmax.xlane.f32.xlu0 %v1976_v15  ;;  %v1980_v19 = vmax.f32 %v1979_v12, %v5729_v5 }
 0x1e7   : > { %v1509_v20 = vpop.f32.mrb[8].mxu0  ;;  %v1981_v21 = vmax.f32 %v1980_v19, %v5740_v16  ;;  %v1985_v22 = vmax.f32 %v1984_v18, %v5742_v17 }
 0x1e8   : > { %v5751_v24 = vmul.f32 0.088388346, %v1509_v20  ;;  %v1511_v25 = vpop.f32.mrb[9].mxu0  ;;  %v1702_v26 = vpop.f32.mrb[8].mxu1 }
 0x1e9   : > { %v5753_v27 = vmul.f32 0.088388346, %v1511_v25  ;;  %v5755_v28 = vmul.f32 0.088388346, %v1702_v26  ;;  %1982 = vmax.xlane.f32.xlu1 %v1981_v21  ;;  %v1513_v29 = vpop.f32.mrb[10].mxu0  ;;  %v1704_v30 = vpop.f32.mrb[9].mxu1  ;;  %v1986_v39 = vmax.f32 %v1985_v22, %v5749_v23 }
 0x1ea   : > { %v5757_v31 = vmul.f32 0.088388346, %v1513_v29  ;;  %v1515_v32 = vpop.f32.mrb[11].mxu0  ;;  %v5759_v33 = vmul.f32 0.088388346, %v1704_v30  ;;  %v1706_v34 = vpop.f32.mrb[10].mxu1 }
 0x1eb   : > { %v1989_v35 = vmax.f32 %v5751_v24, %v5753_v27  ;;  %v5763_v36 = vmul.f32 0.088388346, %v1515_v32  ;;  %v5765_v37 = vmul.f32 0.088388346, %v1706_v34  ;;  %v1708_v38 = vpop.f32.mrb[11].mxu1 }
 0x1ec   : > { %v5772_v46 = vmul.f32 0.088388346, %v1708_v38 }
 0x1ed   : > { %v1990_v41 = vmax.f32 %v1989_v35, %v5755_v28  ;;  %v1994_v42 = vmax.f32 %v5757_v31, %v5763_v36  ;;  %1987 = vmax.xlane.f32.xlu1 %v1986_v39 }
 0x1ef   : > { %v1995_v43 = vmax.f32 %v1994_v42, %v5765_v37  ;;  %v1519_v47 = vpop.f32.mrb[12].mxu0  ;;  %v1991_v49 = vmax.f32 %v1990_v41, %v5759_v33 }
 0x1f0   : > { %v5775_v50 = vmul.f32 0.088388346, %v1519_v47  ;;  %v1521_v51 = vpop.f32.mrb[13].mxu0  ;;  %v1712_v53 = vpop.f32.mrb[12].mxu1  ;;  %v4670_v47 = vld [vmem:[%s5674_s5 + $0x78] sm:$0xff]  }
 0x1f1   : > { %v5777_v54 = vmul.f32 0.088388346, %v1521_v51  ;;  %v5779_v55 = vmul.f32 0.088388346, %v1712_v53  ;;  %1992 = vmax.xlane.f32.xlu0 %v1991_v49  ;;  %v1523_v56 = vpop.f32.mrb[14].mxu0  ;;  %v1714_v57 = vpop.f32.mrb[13].mxu1  ;;  %v1996_v60 = vmax.f32 %v1995_v43, %v5772_v46  ;;  %4278 = vmatprep.subr.bf16.mxu0 %v4670_v47 }
 0x1f2   : > { %v5782_v61 = vmul.f32 0.088388346, %v1523_v56  ;;  %v1525_v62 = vpop.f32.mrb[15].mxu0  ;;  %v5784_v63 = vmul.f32 0.088388346, %v1714_v57  ;;  %v1716_v0 = vpop.f32.mrb[14].mxu1 }
 0x1f3   : > { %v1999_v3 = vmax.f32 %v5775_v50, %v5777_v54  ;;  %v5788_v4 = vmul.f32 0.088388346, %v1525_v62  ;;  %v5790_v7 = vmul.f32 0.088388346, %v1716_v0  ;;  %1997 = vmax.xlane.f32.xlu1 %v1996_v60  ;;  %v1718_v8 = vpop.f32.mrb[15].mxu1  ;;  %v4671_v49 = vld [vmem:[%s5674_s5 + $0xf8] sm:$0xff]  }
 0x1f4   : > { %v5796_v14 = vmul.f32 0.088388346, %v1718_v8  ;;  %v4672_v51 = vld [vmem:[%s5674_s5 + $0x38] sm:$0xff]   ;;  %4390 = vmatprep.subr.bf16.mxu1 %v4671_v49 }
 0x1f5   : > { %v2000_v9 = vmax.f32 %v1999_v3, %v5779_v55  ;;  %v2004_v11 = vmax.f32 %v5782_v61, %v5788_v4  ;;  %v4673_v53 = vld [vmem:[%s5674_s5 + $0xb8] sm:$0xff]   ;;  %4279 = vmatpush3.bf16.msra.mxu0 %v4672_v51 }
 0x1f6   : > { %4391 = vmatpush3.bf16.msra.mxu1 %v4673_v53 }
 0x1f7   : > { %v2005_v12 = vmax.f32 %v2004_v11, %v5790_v7  ;;  %v1529_v15 = vpop.f32.mrb[16].mxu0  ;;  %v2001_v18 = vmax.f32 %v2000_v9, %v5784_v63 }
 0x1f8   : > { %v5799_v19 = vmul.f32 0.088388346, %v1529_v15  ;;  %v1531_v20 = vpop.f32.mrb[17].mxu0  ;;  %v1722_v21 = vpop.f32.mrb[16].mxu1 }
 0x1f9   : > { %v5801_v22 = vmul.f32 0.088388346, %v1531_v20  ;;  %v5803_v25 = vmul.f32 0.088388346, %v1722_v21  ;;  %2002 = vmax.xlane.f32.xlu0 %v2001_v18  ;;  %v1533_v26 = vpop.f32.mrb[18].mxu0  ;;  %v1724_v29 = vpop.f32.mrb[17].mxu1  ;;  %v2006_v30 = vmax.f32 %v2005_v12, %v5796_v14 }
 0x1fa   : > { %v5806_v32 = vmul.f32 0.088388346, %v1533_v26  ;;  %v1535_v34 = vpop.f32.mrb[19].mxu0  ;;  %v5808_v35 = vmul.f32 0.088388346, %v1724_v29  ;;  %v1726_v38 = vpop.f32.mrb[18].mxu1 }
 0x1fb   : > { %v2009_v39 = vmax.f32 %v5799_v19, %v5801_v22  ;;  %v5812_v41 = vmul.f32 0.088388346, %v1535_v34  ;;  %v5814_v42 = vmul.f32 0.088388346, %v1726_v38  ;;  %2007 = vmax.xlane.f32.xlu1 %v2006_v30  ;;  %v1728_v43 = vpop.f32.mrb[19].mxu1 }
 0x1fc   : > { %v5824_v62 = vmul.f32 0.088388346, %v1728_v43 }
 0x1fd   : > { %v2010_v56 = vmax.f32 %v2009_v39, %v5803_v25  ;;  %v2014_v57 = vmax.f32 %v5806_v32, %v5812_v41 }
 0x1ff   : > { %v2015_v60 = vmax.f32 %v2014_v57, %v5814_v42  ;;  %v1539_v0 = vpop.f32.mrb[20].mxu0  ;;  %v2011_v3 = vmax.f32 %v2010_v56, %v5808_v35 }
 0x200   : > { %v5827_v8 = vmul.f32 0.088388346, %v1539_v0  ;;  %v1541_v9 = vpop.f32.mrb[21].mxu0  ;;  %v1732_v11 = vpop.f32.mrb[20].mxu1 }
 0x201   : > { %v5829_v12 = vmul.f32 0.088388346, %v1541_v9  ;;  %v5831_v15 = vmul.f32 0.088388346, %v1732_v11  ;;  %2012 = vmax.xlane.f32.xlu0 %v2011_v3  ;;  %v1543_v18 = vpop.f32.mrb[22].mxu0  ;;  %v1734_v20 = vpop.f32.mrb[21].mxu1  ;;  %v2016_v21 = vmax.f32 %v2015_v60, %v5824_v62 }
 0x202   : > { %v5834_v26 = vmul.f32 0.088388346, %v1543_v18  ;;  %v1545_v29 = vpop.f32.mrb[23].mxu0  ;;  %v5836_v30 = vmul.f32 0.088388346, %v1734_v20  ;;  %v1736_v34 = vpop.f32.mrb[22].mxu1 }
 0x203   : > { %v2019_v38 = vmax.f32 %v5827_v8, %v5829_v12  ;;  %v5840_v39 = vmul.f32 0.088388346, %v1545_v29  ;;  %v5842_v43 = vmul.f32 0.088388346, %v1736_v34  ;;  %2017 = vmax.xlane.f32.xlu1 %v2016_v21  ;;  %v1738_v47 = vpop.f32.mrb[23].mxu1 }
 0x204   : > { %v5848_v56 = vmul.f32 0.088388346, %v1738_v47 }
 0x205   : > { %6661 = vst [vmem:[#allocation13_spill] sm:$0xff] %v5840_v39  ;;  %6662 = vst [vmem:[#allocation14_spill] sm:$0xff] %v5842_v43  ;;  %v2020_v49 = vmax.f32 %v2019_v38, %v5831_v15  ;;  %v2024_v51 = vmax.f32 %v5834_v26, %v5840_v39 }
 0x206   : > { %6663 = vst [vmem:[#allocation15_spill] sm:$0xff] %v5848_v56 }
 0x207   : > { %v2025_v53 = vmax.f32 %v2024_v51, %v5842_v43  ;;  %v1549_v57 = vpop.f32.mrb[24].mxu0  ;;  %v2021_v60 = vmax.f32 %v2020_v49, %v5836_v30 }
 0x208   : > { %v5851_v0 = vmul.f32 0.088388346, %v1549_v57  ;;  %v1551_v3 = vpop.f32.mrb[25].mxu0  ;;  %v1742_v9 = vpop.f32.mrb[24].mxu1 }
 0x209   : > { %v5853_v11 = vmul.f32 0.088388346, %v1551_v3  ;;  %v5855_v18 = vmul.f32 0.088388346, %v1742_v9  ;;  %2022 = vmax.xlane.f32.xlu0 %v2021_v60  ;;  %v1553_v20 = vpop.f32.mrb[26].mxu0  ;;  %v1744_v21 = vpop.f32.mrb[25].mxu1  ;;  %v2026_v29 = vmax.f32 %v2025_v53, %v5848_v56 }
 0x20a   : > { %6664 = vst [vmem:[#allocation16_spill] sm:$0xff] %v5851_v0  ;;  %v5858_v34 = vmul.f32 0.088388346, %v1553_v20  ;;  %v1555_v38 = vpop.f32.mrb[27].mxu0  ;;  %v5860_v47 = vmul.f32 0.088388346, %v1744_v21 }
 0x20b   : > { %6665 = vst [vmem:[#allocation17_spill] sm:$0xff] %v5853_v11  ;;  %6666 = vst [vmem:[#allocation18_spill] sm:$0xff] %v5855_v18  ;;  %v1746_v51 = vpop.f32.mrb[26].mxu1  ;;  %v2029_v49 = vmax.f32 %v5851_v0, %v5853_v11  ;;  %v5864_v57 = vmul.f32 0.088388346, %v1555_v38  ;;  %2027 = vmax.xlane.f32.xlu1 %v2026_v29 }
 0x20c   : > { %6667 = vst [vmem:[#allocation19_spill] sm:$0xff] %v5858_v34  ;;  %6668 = vst [vmem:[#allocation20_spill] sm:$0xff] %v5860_v47  ;;  %v5866_v3 = vmul.f32 0.088388346, %v1746_v51  ;;  %v1748_v9 = vpop.f32.mrb[27].mxu1 }
 0x20d   : > { %6669 = vst [vmem:[#allocation21_spill] sm:$0xff] %v5864_v57  ;;  %v2030_v60 = vmax.f32 %v2029_v49, %v5855_v18  ;;  %v2034_v53 = vmax.f32 %v5858_v34, %v5864_v57  ;;  %v5872_v56 = vmul.f32 0.088388346, %v1748_v9 }
 0x20e   : > { %6670 = vst [vmem:[#allocation22_spill] sm:$0xff] %v5866_v3 }
 0x20f   : > { %v2035_v20 = vmax.f32 %v2034_v53, %v5866_v3  ;;  %6671 = vst [vmem:[#allocation23_spill] sm:$0xff] %v5872_v56  ;;  %v1559_v21 = vpop.f32.mrb[28].mxu0  ;;  %v2031_v43 = vmax.f32 %v2030_v60, %v5860_v47 }
 0x210   : > { %v5875_v39 = vmul.f32 0.088388346, %v1559_v21  ;;  %v1561_v38 = vpop.f32.mrb[29].mxu0  ;;  %v1752_v11 = vpop.f32.mrb[28].mxu1 }
 0x211   : > { %v5877_v51 = vmul.f32 0.088388346, %v1561_v38  ;;  %v5879_v29 = vmul.f32 0.088388346, %v1752_v11  ;;  %2032 = vmax.xlane.f32.xlu0 %v2031_v43  ;;  %v1563_v49 = vpop.f32.mrb[30].mxu0  ;;  %v1754_v18 = vpop.f32.mrb[29].mxu1  ;;  %v2036_v57 = vmax.f32 %v2035_v20, %v5872_v56 }
 0x212   : > { %6672 = vst [vmem:[#allocation24_spill] sm:$0xff] %v5875_v39  ;;  %v5882_v34 = vmul.f32 0.088388346, %v1563_v49  ;;  %v1565_v9 = vpop.f32.mrb[31].mxu0  ;;  %v5884_v53 = vmul.f32 0.088388346, %v1754_v18 }
 0x213   : > { %6673 = vst [vmem:[#allocation25_spill] sm:$0xff] %v5877_v51  ;;  %6674 = vst [vmem:[#allocation26_spill] sm:$0xff] %v5879_v29  ;;  %v1756_v3 = vpop.f32.mrb[30].mxu1  ;;  %v2039_v60 = vmax.f32 %v5875_v39, %v5877_v51  ;;  %v5888_v21 = vmul.f32 0.088388346, %v1565_v9  ;;  %2037 = vmax.xlane.f32.xlu1 %v2036_v57 }
 0x214   : > { %6675 = vst [vmem:[#allocation27_spill] sm:$0xff] %v5882_v34  ;;  %6676 = vst [vmem:[#allocation28_spill] sm:$0xff] %v5884_v53  ;;  %v5890_v38 = vmul.f32 0.088388346, %v1756_v3  ;;  %v1758_v11 = vpop.f32.mrb[31].mxu1 }
 0x215   : > { %6677 = vst [vmem:[#allocation29_spill] sm:$0xff] %v5888_v21  ;;  %v2040_v43 = vmax.f32 %v2039_v60, %v5879_v29  ;;  %v2044_v20 = vmax.f32 %v5882_v34, %v5888_v21  ;;  %v5896_v56 = vmul.f32 0.088388346, %v1758_v11 }
 0x216   : > { %6678 = vst [vmem:[#allocation30_spill] sm:$0xff] %v5890_v38 }
 0x217   : > { %v2045_v49 = vmax.f32 %v2044_v20, %v5890_v38  ;;  %6679 = vst [vmem:[#allocation31_spill] sm:$0xff] %v5896_v56  ;;  %v1569_v18 = vpop.f32.mrb[32].mxu0  ;;  %v2041_v47 = vmax.f32 %v2040_v43, %v5884_v53 }
 0x218   : > { %v5899_v0 = vmul.f32 0.088388346, %v1569_v18  ;;  %v1571_v9 = vpop.f32.mrb[33].mxu0  ;;  %v1762_v51 = vpop.f32.mrb[32].mxu1 }
 0x219   : > { %v5901_v3 = vmul.f32 0.088388346, %v1571_v9  ;;  %v5903_v57 = vmul.f32 0.088388346, %v1762_v51  ;;  %2042 = vmax.xlane.f32.xlu0 %v2041_v47  ;;  %v1573_v60 = vpop.f32.mrb[34].mxu0  ;;  %v1764_v29 = vpop.f32.mrb[33].mxu1  ;;  %v2046_v21 = vmax.f32 %v2045_v49, %v5896_v56 }
 0x21a   : > { %6680 = vst [vmem:[#allocation32_spill] sm:$0xff] %v5899_v0  ;;  %v5906_v34 = vmul.f32 0.088388346, %v1573_v60  ;;  %v1575_v11 = vpop.f32.mrb[35].mxu0  ;;  %v5908_v20 = vmul.f32 0.088388346, %v1764_v29 }
 0x21b   : > { %6681 = vst [vmem:[#allocation33_spill] sm:$0xff] %v5901_v3  ;;  %6682 = vst [vmem:[#allocation34_spill] sm:$0xff] %v5903_v57  ;;  %v1766_v38 = vpop.f32.mrb[34].mxu1  ;;  %v2049_v43 = vmax.f32 %v5899_v0, %v5901_v3  ;;  %v5912_v18 = vmul.f32 0.088388346, %v1575_v11  ;;  %2047 = vmax.xlane.f32.xlu1 %v2046_v21 }
 0x21c   : > { %6683 = vst [vmem:[#allocation35_spill] sm:$0xff] %v5906_v34  ;;  %6684 = vst [vmem:[#allocation36_spill] sm:$0xff] %v5908_v20  ;;  %v5914_v9 = vmul.f32 0.088388346, %v1766_v38  ;;  %v1768_v51 = vpop.f32.mrb[35].mxu1 }
 0x21d   : > { %6685 = vst [vmem:[#allocation37_spill] sm:$0xff] %v5912_v18  ;;  %v2050_v47 = vmax.f32 %v2049_v43, %v5903_v57  ;;  %v2054_v49 = vmax.f32 %v5906_v34, %v5912_v18  ;;  %v5920_v56 = vmul.f32 0.088388346, %v1768_v51 }
 0x21e   : > { %6686 = vst [vmem:[#allocation38_spill] sm:$0xff] %v5914_v9 }
 0x21f   : > { %v2055_v60 = vmax.f32 %v2054_v49, %v5914_v9  ;;  %6687 = vst [vmem:[#allocation39_spill] sm:$0xff] %v5920_v56  ;;  %v1579_v29 = vpop.f32.mrb[36].mxu0  ;;  %v2051_v53 = vmax.f32 %v2050_v47, %v5908_v20 }
 0x220   : > { %v5923_v39 = vmul.f32 0.088388346, %v1579_v29  ;;  %v1581_v11 = vpop.f32.mrb[37].mxu0  ;;  %v1772_v3 = vpop.f32.mrb[36].mxu1 }
 0x221   : > { %v5925_v38 = vmul.f32 0.088388346, %v1581_v11  ;;  %v5927_v21 = vmul.f32 0.088388346, %v1772_v3  ;;  %2052 = vmax.xlane.f32.xlu0 %v2051_v53  ;;  %v1583_v43 = vpop.f32.mrb[38].mxu0  ;;  %v1774_v57 = vpop.f32.mrb[37].mxu1  ;;  %v2056_v18 = vmax.f32 %v2055_v60, %v5920_v56 }
 0x222   : > { %6688 = vst [vmem:[#allocation40_spill] sm:$0xff] %v5923_v39  ;;  %v5930_v34 = vmul.f32 0.088388346, %v1583_v43  ;;  %v1585_v51 = vpop.f32.mrb[39].mxu0  ;;  %v5932_v49 = vmul.f32 0.088388346, %v1774_v57 }
 0x223   : > { %6689 = vst [vmem:[#allocation41_spill] sm:$0xff] %v5925_v38  ;;  %6690 = vst [vmem:[#allocation42_spill] sm:$0xff] %v5927_v21  ;;  %v1776_v9 = vpop.f32.mrb[38].mxu1  ;;  %v2059_v47 = vmax.f32 %v5923_v39, %v5925_v38  ;;  %v5936_v29 = vmul.f32 0.088388346, %v1585_v51  ;;  %2057 = vmax.xlane.f32.xlu1 %v2056_v18 }
 0x224   : > { %6691 = vst [vmem:[#allocation43_spill] sm:$0xff] %v5930_v34  ;;  %6692 = vst [vmem:[#allocation44_spill] sm:$0xff] %v5932_v49  ;;  %v5938_v11 = vmul.f32 0.088388346, %v1776_v9  ;;  %v1778_v3 = vpop.f32.mrb[39].mxu1 }
 0x225   : > { %6693 = vst [vmem:[#allocation45_spill] sm:$0xff] %v5936_v29  ;;  %v2060_v53 = vmax.f32 %v2059_v47, %v5927_v21  ;;  %v2064_v60 = vmax.f32 %v5930_v34, %v5936_v29  ;;  %v5944_v56 = vmul.f32 0.088388346, %v1778_v3 }
 0x226   : > { %6694 = vst [vmem:[#allocation46_spill] sm:$0xff] %v5938_v11 }
 0x227   : > { %v2065_v43 = vmax.f32 %v2064_v60, %v5938_v11  ;;  %6695 = vst [vmem:[#allocation47_spill] sm:$0xff] %v5944_v56  ;;  %v1589_v57 = vpop.f32.mrb[40].mxu0  ;;  %v2061_v20 = vmax.f32 %v2060_v53, %v5932_v49 }
 0x228   : > { %v5947_v0 = vmul.f32 0.088388346, %v1589_v57  ;;  %v1591_v51 = vpop.f32.mrb[41].mxu0  ;;  %v1782_v38 = vpop.f32.mrb[40].mxu1 }
 0x229   : > { %v5949_v9 = vmul.f32 0.088388346, %v1591_v51  ;;  %v5951_v18 = vmul.f32 0.088388346, %v1782_v38  ;;  %2062 = vmax.xlane.f32.xlu0 %v2061_v20  ;;  %v1593_v47 = vpop.f32.mrb[42].mxu0  ;;  %v1784_v21 = vpop.f32.mrb[41].mxu1  ;;  %v2066_v29 = vmax.f32 %v2065_v43, %v5944_v56 }
 0x22a   : > { %6696 = vst [vmem:[#allocation48_spill] sm:$0xff] %v5947_v0  ;;  %v5954_v34 = vmul.f32 0.088388346, %v1593_v47  ;;  %v1595_v3 = vpop.f32.mrb[43].mxu0  ;;  %v5956_v60 = vmul.f32 0.088388346, %v1784_v21 }
 0x22b   : > { %6697 = vst [vmem:[#allocation49_spill] sm:$0xff] %v5949_v9  ;;  %6698 = vst [vmem:[#allocation50_spill] sm:$0xff] %v5951_v18  ;;  %v1786_v11 = vpop.f32.mrb[42].mxu1  ;;  %v2069_v53 = vmax.f32 %v5947_v0, %v5949_v9  ;;  %v5960_v57 = vmul.f32 0.088388346, %v1595_v3  ;;  %2067 = vmax.xlane.f32.xlu1 %v2066_v29 }
 0x22c   : > { %6699 = vst [vmem:[#allocation51_spill] sm:$0xff] %v5954_v34  ;;  %6700 = vst [vmem:[#allocation52_spill] sm:$0xff] %v5956_v60  ;;  %v5962_v51 = vmul.f32 0.088388346, %v1786_v11  ;;  %v1788_v38 = vpop.f32.mrb[43].mxu1 }
 0x22d   : > { %6701 = vst [vmem:[#allocation53_spill] sm:$0xff] %v5960_v57  ;;  %v2070_v20 = vmax.f32 %v2069_v53, %v5951_v18  ;;  %v2074_v43 = vmax.f32 %v5954_v34, %v5960_v57  ;;  %v5968_v56 = vmul.f32 0.088388346, %v1788_v38 }
 0x22e   : > { %6702 = vst [vmem:[#allocation54_spill] sm:$0xff] %v5962_v51 }
 0x22f   : > { %v2075_v47 = vmax.f32 %v2074_v43, %v5962_v51  ;;  %6703 = vst [vmem:[#allocation55_spill] sm:$0xff] %v5968_v56  ;;  %v1599_v21 = vpop.f32.mrb[44].mxu0  ;;  %v2071_v49 = vmax.f32 %v2070_v20, %v5956_v60 }
 0x230   : > { %v5971_v39 = vmul.f32 0.088388346, %v1599_v21  ;;  %v1601_v3 = vpop.f32.mrb[45].mxu0  ;;  %v1792_v9 = vpop.f32.mrb[44].mxu1 }
 0x231   : > { %v5973_v11 = vmul.f32 0.088388346, %v1601_v3  ;;  %v5975_v29 = vmul.f32 0.088388346, %v1792_v9  ;;  %2072 = vmax.xlane.f32.xlu0 %v2071_v49  ;;  %v1603_v53 = vpop.f32.mrb[46].mxu0  ;;  %v1794_v18 = vpop.f32.mrb[45].mxu1  ;;  %v2076_v57 = vmax.f32 %v2075_v47, %v5968_v56 }
 0x232   : > { %6704 = vst [vmem:[#allocation56_spill] sm:$0xff] %v5971_v39  ;;  %v5978_v34 = vmul.f32 0.088388346, %v1603_v53  ;;  %v1605_v38 = vpop.f32.mrb[47].mxu0  ;;  %v5980_v43 = vmul.f32 0.088388346, %v1794_v18 }
 0x233   : > { %6705 = vst [vmem:[#allocation57_spill] sm:$0xff] %v5973_v11  ;;  %6706 = vst [vmem:[#allocation58_spill] sm:$0xff] %v5975_v29  ;;  %v1796_v51 = vpop.f32.mrb[46].mxu1  ;;  %v2079_v20 = vmax.f32 %v5971_v39, %v5973_v11  ;;  %v5984_v21 = vmul.f32 0.088388346, %v1605_v38  ;;  %2077 = vmax.xlane.f32.xlu1 %v2076_v57 }
 0x234   : > { %6707 = vst [vmem:[#allocation59_spill] sm:$0xff] %v5978_v34  ;;  %6708 = vst [vmem:[#allocation60_spill] sm:$0xff] %v5980_v43  ;;  %v5986_v3 = vmul.f32 0.088388346, %v1796_v51  ;;  %v1798_v9 = vpop.f32.mrb[47].mxu1 }
 0x235   : > { %6709 = vst [vmem:[#allocation61_spill] sm:$0xff] %v5984_v21  ;;  %v2080_v49 = vmax.f32 %v2079_v20, %v5975_v29  ;;  %v2084_v47 = vmax.f32 %v5978_v34, %v5984_v21  ;;  %v5992_v56 = vmul.f32 0.088388346, %v1798_v9 }
 0x236   : > { %6710 = vst [vmem:[#allocation62_spill] sm:$0xff] %v5986_v3 }
 0x237   : > { %v2085_v53 = vmax.f32 %v2084_v47, %v5986_v3  ;;  %6711 = vst [vmem:[#allocation63_spill] sm:$0xff] %v5992_v56  ;;  %v1609_v18 = vpop.f32.mrb[48].mxu0  ;;  %v2081_v60 = vmax.f32 %v2080_v49, %v5980_v43 }
 0x238   : > { %v5995_v0 = vmul.f32 0.088388346, %v1609_v18  ;;  %v1611_v38 = vpop.f32.mrb[49].mxu0  ;;  %v1802_v11 = vpop.f32.mrb[48].mxu1 }
 0x239   : > { %v5997_v51 = vmul.f32 0.088388346, %v1611_v38  ;;  %v5999_v57 = vmul.f32 0.088388346, %v1802_v11  ;;  %2082 = vmax.xlane.f32.xlu0 %v2081_v60  ;;  %v1613_v20 = vpop.f32.mrb[50].mxu0  ;;  %v1804_v29 = vpop.f32.mrb[49].mxu1  ;;  %v2086_v21 = vmax.f32 %v2085_v53, %v5992_v56 }
 0x23a   : > { %6712 = vst [vmem:[#allocation64_spill] sm:$0xff] %v5995_v0  ;;  %v6002_v34 = vmul.f32 0.088388346, %v1613_v20  ;;  %v1615_v9 = vpop.f32.mrb[51].mxu0  ;;  %v6004_v47 = vmul.f32 0.088388346, %v1804_v29 }
 0x23b   : > { %6713 = vst [vmem:[#allocation65_spill] sm:$0xff] %v5997_v51  ;;  %6714 = vst [vmem:[#allocation66_spill] sm:$0xff] %v5999_v57  ;;  %v1806_v3 = vpop.f32.mrb[50].mxu1  ;;  %v2089_v49 = vmax.f32 %v5995_v0, %v5997_v51  ;;  %v6008_v18 = vmul.f32 0.088388346, %v1615_v9  ;;  %2087 = vmax.xlane.f32.xlu1 %v2086_v21 }
 0x23c   : > { %6715 = vst [vmem:[#allocation67_spill] sm:$0xff] %v6002_v34  ;;  %6716 = vst [vmem:[#allocation68_spill] sm:$0xff] %v6004_v47  ;;  %v6010_v38 = vmul.f32 0.088388346, %v1806_v3  ;;  %v1808_v11 = vpop.f32.mrb[51].mxu1 }
 0x23d   : > { %6717 = vst [vmem:[#allocation69_spill] sm:$0xff] %v6008_v18  ;;  %v2090_v60 = vmax.f32 %v2089_v49, %v5999_v57  ;;  %v2094_v53 = vmax.f32 %v6002_v34, %v6008_v18  ;;  %v6016_v56 = vmul.f32 0.088388346, %v1808_v11 }
 0x23e   : > { %6718 = vst [vmem:[#allocation70_spill] sm:$0xff] %v6010_v38 }
 0x23f   : > { %v2095_v20 = vmax.f32 %v2094_v53, %v6010_v38  ;;  %6719 = vst [vmem:[#allocation71_spill] sm:$0xff] %v6016_v56  ;;  %v1619_v29 = vpop.f32.mrb[52].mxu0  ;;  %v2091_v43 = vmax.f32 %v2090_v60, %v6004_v47 }
 0x240   : > { %v6019_v39 = vmul.f32 0.088388346, %v1619_v29  ;;  %v1621_v9 = vpop.f32.mrb[53].mxu0  ;;  %v1812_v51 = vpop.f32.mrb[52].mxu1 }
 0x241   : > { %v6021_v3 = vmul.f32 0.088388346, %v1621_v9  ;;  %v6023_v21 = vmul.f32 0.088388346, %v1812_v51  ;;  %2092 = vmax.xlane.f32.xlu0 %v2091_v43  ;;  %v1623_v49 = vpop.f32.mrb[54].mxu0  ;;  %v1814_v57 = vpop.f32.mrb[53].mxu1  ;;  %v2096_v18 = vmax.f32 %v2095_v20, %v6016_v56 }
 0x242   : > { %6720 = vst [vmem:[#allocation72_spill] sm:$0xff] %v6019_v39  ;;  %v6026_v34 = vmul.f32 0.088388346, %v1623_v49  ;;  %v1625_v11 = vpop.f32.mrb[55].mxu0  ;;  %v6028_v53 = vmul.f32 0.088388346, %v1814_v57 }
 0x243   : > { %6721 = vst [vmem:[#allocation73_spill] sm:$0xff] %v6021_v3  ;;  %6722 = vst [vmem:[#allocation74_spill] sm:$0xff] %v6023_v21  ;;  %v1816_v38 = vpop.f32.mrb[54].mxu1  ;;  %v2099_v60 = vmax.f32 %v6019_v39, %v6021_v3  ;;  %v6032_v29 = vmul.f32 0.088388346, %v1625_v11  ;;  %2097 = vmax.xlane.f32.xlu1 %v2096_v18 }
 0x244   : > { %6723 = vst [vmem:[#allocation75_spill] sm:$0xff] %v6026_v34  ;;  %6724 = vst [vmem:[#allocation76_spill] sm:$0xff] %v6028_v53  ;;  %v6034_v9 = vmul.f32 0.088388346, %v1816_v38  ;;  %v1818_v51 = vpop.f32.mrb[55].mxu1 }
 0x245   : > { %6725 = vst [vmem:[#allocation77_spill] sm:$0xff] %v6032_v29  ;;  %v2100_v43 = vmax.f32 %v2099_v60, %v6023_v21  ;;  %v2104_v20 = vmax.f32 %v6026_v34, %v6032_v29  ;;  %v6040_v56 = vmul.f32 0.088388346, %v1818_v51 }
 0x246   : > { %6726 = vst [vmem:[#allocation78_spill] sm:$0xff] %v6034_v9 }
 0x247   : > { %v2105_v49 = vmax.f32 %v2104_v20, %v6034_v9  ;;  %6727 = vst [vmem:[#allocation79_spill] sm:$0xff] %v6040_v56  ;;  %v1629_v57 = vpop.f32.mrb[56].mxu0  ;;  %v2101_v47 = vmax.f32 %v2100_v43, %v6028_v53 }
 0x248   : > { %v6043_v0 = vmul.f32 0.088388346, %v1629_v57  ;;  %v1631_v11 = vpop.f32.mrb[57].mxu0  ;;  %v1822_v3 = vpop.f32.mrb[56].mxu1 }
 0x249   : > { %v6045_v38 = vmul.f32 0.088388346, %v1631_v11  ;;  %v6047_v18 = vmul.f32 0.088388346, %v1822_v3  ;;  %2102 = vmax.xlane.f32.xlu0 %v2101_v47  ;;  %v1633_v60 = vpop.f32.mrb[58].mxu0  ;;  %v1824_v21 = vpop.f32.mrb[57].mxu1  ;;  %v2106_v29 = vmax.f32 %v2105_v49, %v6040_v56 }
 0x24a   : > { %v6050_v34 = vmul.f32 0.088388346, %v1633_v60  ;;  %v1635_v51 = vpop.f32.mrb[59].mxu0  ;;  %v6052_v20 = vmul.f32 0.088388346, %v1824_v21  ;;  %v1826_v9 = vpop.f32.mrb[58].mxu1 }
 0x24b   : > { %6728 = vst [vmem:[#allocation80_spill] sm:$0xff] %v6045_v38  ;;  %6729 = vst [vmem:[#allocation81_spill] sm:$0xff] %v6047_v18  ;;  %v2109_v43 = vmax.f32 %v6043_v0, %v6045_v38  ;;  %v6056_v57 = vmul.f32 0.088388346, %v1635_v51  ;;  %v6058_v11 = vmul.f32 0.088388346, %v1826_v9  ;;  %2107 = vmax.xlane.f32.xlu1 %v2106_v29 }
 0x24c   : > { %6730 = vst [vmem:[#allocation82_spill] sm:$0xff] %v6050_v34  ;;  %v1828_v3 = vpop.f32.mrb[59].mxu1 }
 0x24d   : > { %6731 = vst [vmem:[#allocation83_spill] sm:$0xff] %v6056_v57  ;;  %6732 = vst [vmem:[#allocation84_spill] sm:$0xff] %v6058_v11  ;;  %v2110_v47 = vmax.f32 %v2109_v43, %v6047_v18  ;;  %v2114_v49 = vmax.f32 %v6050_v34, %v6056_v57  ;;  %v6064_v56 = vmul.f32 0.088388346, %v1828_v3 }
 0x24f   : > { %v2115_v60 = vmax.f32 %v2114_v49, %v6058_v11  ;;  %6733 = vst [vmem:[#allocation85_spill] sm:$0xff] %v6064_v56  ;;  %v1639_v21 = vpop.f32.mrb[60].mxu0  ;;  %v2111_v53 = vmax.f32 %v2110_v47, %v6052_v20 }
 0x250   : > { %v6067_v39 = vmul.f32 0.088388346, %v1639_v21  ;;  %v1641_v51 = vpop.f32.mrb[61].mxu0  ;;  %v1832_v38 = vpop.f32.mrb[60].mxu1 }
 0x251   : > { %v6069_v9 = vmul.f32 0.088388346, %v1641_v51  ;;  %v6071_v29 = vmul.f32 0.088388346, %v1832_v38  ;;  %2112 = vmax.xlane.f32.xlu0 %v2111_v53  ;;  %v1643_v43 = vpop.f32.mrb[62].mxu0  ;;  %v1834_v18 = vpop.f32.mrb[61].mxu1  ;;  %v2116_v57 = vmax.f32 %v2115_v60, %v6064_v56 }
 0x252   : > { %v6074_v34 = vmul.f32 0.088388346, %v1643_v43  ;;  %v1645_v3 = vpop.f32.mrb[63].mxu0  ;;  %v6076_v49 = vmul.f32 0.088388346, %v1834_v18  ;;  %v1836_v11 = vpop.f32.mrb[62].mxu1 }
 0x253   : > { %6734 = vst [vmem:[#allocation86_spill] sm:$0xff] %v6069_v9  ;;  %6735 = vst [vmem:[#allocation87_spill] sm:$0xff] %v6071_v29  ;;  %v2119_v47 = vmax.f32 %v6067_v39, %v6069_v9  ;;  %v6080_v21 = vmul.f32 0.088388346, %v1645_v3  ;;  %v6082_v51 = vmul.f32 0.088388346, %v1836_v11  ;;  %2117 = vmax.xlane.f32.xlu1 %v2116_v57 }
 0x254   : > { %6736 = vst [vmem:[#allocation88_spill] sm:$0xff] %v6074_v34  ;;  %v1838_v38 = vpop.f32.mrb[63].mxu1 }
 0x255   : > { %6737 = vst [vmem:[#allocation89_spill] sm:$0xff] %v6080_v21  ;;  %6738 = vst [vmem:[#allocation90_spill] sm:$0xff] %v6082_v51  ;;  %v2120_v53 = vmax.f32 %v2119_v47, %v6071_v29  ;;  %v2124_v60 = vmax.f32 %v6074_v34, %v6080_v21  ;;  %v6088_v56 = vmul.f32 0.088388346, %v1838_v38 }
 0x257   : > { %v2125_v43 = vmax.f32 %v2124_v60, %v6082_v51  ;;  %v2121_v18 = vmax.f32 %v2120_v53, %v6076_v49 }
 0x259   : > { %2122 = vmax.xlane.f32.xlu0 %v2121_v18  ;;  %v2126_v9 = vmax.f32 %v2125_v43, %v6088_v56 }
 0x25b   : > { %2127 = vmax.xlane.f32.xlu1 %v2126_v9 }
 0x26e   : > { %v1973_v3 = vpop.xlane.xlu0 %1972 }
 0x26f   : > { %v2129_v11 = vsub.f32 %v5699_v40, %v1973_v3  ;;  %v2130_v57 = vsub.f32 %v5704_v45, %v1973_v3  ;;  %v2131_v47 = vsub.f32 %v5702_v44, %v1973_v3  ;;  %v2132_v29 = vsub.f32 %v5716_v58, %v1973_v3 }
 0x271   : > { %v2257_v21 = vmul.f32 1.442695, %v2129_v11  ;;  %v2259_v34 = vmul.f32 1.442695, %v2130_v57  ;;  %v2261_v60 = vmul.f32 1.442695, %v2131_v47 }
 0x272   : > { %v2263_v38 = vmul.f32 1.442695, %v2132_v29  ;;  %v1978_v51 = vpop.xlane.xlu0 %1977 }
 0x273   : > { %4674 = vpow2.f32 %v2257_v21  ;;  %v2133_v53 = vsub.f32 %v5706_v48, %v1978_v51  ;;  %v2134_v43 = vsub.f32 %v5710_v52, %v1978_v51  ;;  %v2135_v9 = vsub.f32 %v5718_v59, %v1978_v51 }
 0x274   : > { %4676 = vpow2.f32 %v2259_v34  ;;  %v2136_v40 = vsub.f32 %v5725_v1, %v1978_v51 }
 0x275   : > { %4678 = vpow2.f32 %v2261_v60  ;;  %v2265_v45 = vmul.f32 1.442695, %v2133_v53  ;;  %v2267_v44 = vmul.f32 1.442695, %v2134_v43  ;;  %v2269_v18 = vmul.f32 1.442695, %v2135_v9 }
 0x276   : > { %4680 = vpow2.f32 %v2263_v38  ;;  %v2271_v58 = vmul.f32 1.442695, %v2136_v40  ;;  %v1983_v3 = vpop.xlane.xlu1 %1982 }
 0x277   : > { %4682 = vpow2.f32 %v2265_v45  ;;  %v2137_v29 = vsub.f32 %v5727_v2, %v1983_v3  ;;  %v2138_v21 = vsub.f32 %v5731_v6, %v1983_v3  ;;  %v2139_v48 = vsub.f32 %v5729_v5, %v1983_v3 }
 0x278   : > { %4684 = vpow2.f32 %v2267_v44  ;;  %v2140_v52 = vsub.f32 %v5740_v16, %v1983_v3 }
 0x279   : > { %4686 = vpow2.f32 %v2269_v18  ;;  %v2273_v59 = vmul.f32 1.442695, %v2137_v29  ;;  %v2275_v1 = vmul.f32 1.442695, %v2138_v21  ;;  %v2277_v34 = vmul.f32 1.442695, %v2139_v48 }
 0x27a   : > { %4688 = vpow2.f32 %v2271_v58  ;;  %v2279_v51 = vmul.f32 1.442695, %v2140_v52  ;;  %v1988_v11 = vpop.xlane.xlu1 %1987 }
 0x27b   : > { %4690 = vpow2.f32 %v2273_v59  ;;  %v2141_v57 = vsub.f32 %v5733_v10, %v1988_v11  ;;  %v2142_v47 = vsub.f32 %v5737_v13, %v1988_v11  ;;  %v2143_v2 = vsub.f32 %v5742_v17, %v1988_v11 }
 0x27c   : > { %4692 = vpow2.f32 %v2275_v1  ;;  %v2144_v5 = vsub.f32 %v5749_v23, %v1988_v11 }
 0x27d   : > { %v4675_v6 = vpop.eup %4674  ;;  %4694 = vpow2.f32 %v2277_v34  ;;  %v2281_v16 = vmul.f32 1.442695, %v2141_v57  ;;  %v2283_v60 = vmul.f32 1.442695, %v2142_v47  ;;  %v2285_v38 = vmul.f32 1.442695, %v2143_v2 }
 0x27e   : > { %v4677_v53 = vpop.eup %4676  ;;  %4696 = vpow2.f32 %v2279_v51  ;;  %v2287_v43 = vmul.f32 1.442695, %v2144_v5  ;;  %v1993_v9 = vpop.xlane.xlu0 %1992 }
 0x27f   : > { %v4679_v40 = vpop.eup %4678  ;;  %4698 = vpow2.f32 %v2281_v16  ;;  %v2145_v10 = vsub.f32 %v5751_v24, %v1993_v9  ;;  %v2146_v13 = vsub.f32 %v5753_v27, %v1993_v9  ;;  %v2147_v17 = vsub.f32 %v5755_v28, %v1993_v9 }
 0x280   : > { %v4681_v45 = vpop.eup %4680  ;;  %4700 = vpow2.f32 %v2283_v60  ;;  %v2148_v23 = vsub.f32 %v5759_v33, %v1993_v9  ;;  %v1998_v44 = vpop.xlane.xlu1 %1997  ;;  %v2513_v18 = vadd.f32 %v4677_v53, %v4675_v6 }
 0x281   : > { %v4683_v58 = vpop.eup %4682  ;;  %4702 = vpow2.f32 %v2285_v38  ;;  %v2289_v3 = vmul.f32 1.442695, %v2145_v10  ;;  %v2291_v29 = vmul.f32 1.442695, %v2146_v13  ;;  %v2293_v21 = vmul.f32 1.442695, %v2147_v17 }
 0x282   : > { %v4685_v48 = vpop.eup %4684  ;;  %4704 = vpow2.f32 %v2287_v43  ;;  %v2295_v52 = vmul.f32 1.442695, %v2148_v23  ;;  %v2149_v24 = vsub.f32 %v5757_v31, %v1998_v44  ;;  %v2150_v27 = vsub.f32 %v5763_v36, %v1998_v44 }
 0x283   : > { %v4687_v59 = vpop.eup %4686  ;;  %4706 = vpow2.f32 %v2289_v3  ;;  %v2151_v28 = vsub.f32 %v5765_v37, %v1998_v44  ;;  %v2152_v33 = vsub.f32 %v5772_v46, %v1998_v44  ;;  %v2674_v1 = vpack.c.bf16 %v4685_v48, %v4677_v53 }
 0x284   : > { %v4689_v34 = vpop.eup %4688  ;;  %4708 = vpow2.f32 %v2291_v29  ;;  %v2297_v51 = vmul.f32 1.442695, %v2149_v24  ;;  %v2299_v11 = vmul.f32 1.442695, %v2150_v27  ;;  %v2514_v57 = vadd.f32 %v4679_v40, %v2513_v18 }
 0x285   : > { %v6116_v47 = vpop.eup %4690  ;;  %4710 = vpow2.f32 %v2293_v21  ;;  %v2301_v2 = vmul.f32 1.442695, %v2151_v28  ;;  %v2303_v5 = vmul.f32 1.442695, %v2152_v33  ;;  %2961 = vmatprep.mubr.bf16.mxu0 %v2674_v1  ;;  %v2676_v31 = vpack.c.bf16 %v4689_v34, %v4681_v45 }
 0x286   : > { %v4693_v36 = vpop.eup %4692  ;;  %4712 = vpow2.f32 %v2295_v52  ;;  %v2515_v16 = vadd.f32 %v4681_v45, %v2514_v57  ;;  %v2673_v60 = vpack.c.bf16 %v4683_v58, %v4675_v6  ;;  %v2675_v37 = vpack.c.bf16 %v4687_v59, %v4679_v40  ;;  %v2003_v38 = vpop.xlane.xlu0 %2002 }
 0x287   : > { %v6118_v46 = vpop.eup %4694  ;;  %4714 = vpow2.f32 %v2297_v51  ;;  %3122 = vmatprep.mubr.bf16.mxu1 %v2676_v31  ;;  %v2153_v53 = vsub.f32 %v5775_v50, %v2003_v38  ;;  %v2154_v43 = vsub.f32 %v5777_v54, %v2003_v38  ;;  %v2155_v9 = vsub.f32 %v5779_v55, %v2003_v38 }
 0x288   : > { %v4697_v10 = vpop.eup %4696  ;;  %4716 = vpow2.f32 %v2299_v11  ;;  %2516 = vadd.xlane.f32.xlu0 %v2515_v16  ;;  %2962 = vmatmul.mubr.bf16.vlgmr.msra.gmra.mrb[64].mxu0 %v2673_v60  ;;  %v2156_v13 = vsub.f32 %v5784_v63, %v2003_v38  ;;  %v2008_v17 = vpop.xlane.xlu1 %2007  ;;  %v2518_v6 = vadd.f32 %v4685_v48, %v4683_v58  ;;  %v2523_v40 = vadd.f32 %v4693_v36, %v6116_v47 }
 0x289   : > { %v6125_v45 = vpop.eup %4698  ;;  %4718 = vpow2.f32 %v2301_v2  ;;  %3123 = vmatmul.mubr.bf16.vlgmr.msra.gmra.mrb[64].mxu1 %v2675_v37  ;;  %v2305_v23 = vmul.f32 1.442695, %v2153_v53  ;;  %v2307_v50 = vmul.f32 1.442695, %v2154_v43  ;;  %v2309_v44 = vmul.f32 1.442695, %v2155_v9 }
 0x28a   : > { %v4701_v54 = vpop.eup %4700  ;;  %4720 = vpow2.f32 %v2303_v5  ;;  %v2311_v55 = vmul.f32 1.442695, %v2156_v13  ;;  %v2157_v18 = vsub.f32 %v5782_v61, %v2008_v17  ;;  %v2158_v3 = vsub.f32 %v5788_v4, %v2008_v17 }
 0x28b   : > { %v6129_v29 = vpop.eup %4702  ;;  %4722 = vpow2.f32 %v2305_v23  ;;  %v2159_v63 = vsub.f32 %v5790_v7, %v2008_v17  ;;  %v2160_v58 = vsub.f32 %v5796_v14, %v2008_v17  ;;  %v2519_v21 = vadd.f32 %v4687_v59, %v2518_v6 }
 0x28c   : > { %v6133_v48 = vpop.eup %4704  ;;  %4724 = vpow2.f32 %v2307_v50  ;;  %v2313_v52 = vmul.f32 1.442695, %v2157_v18  ;;  %v2315_v24 = vmul.f32 1.442695, %v2158_v3  ;;  %v2678_v27 = vpack.c.bf16 %v4701_v54, %v4693_v36 }
 0x28d   : > { %v6135_v28 = vpop.eup %4706  ;;  %4726 = vpow2.f32 %v2309_v44  ;;  %v2317_v61 = vmul.f32 1.442695, %v2159_v63  ;;  %v2319_v33 = vmul.f32 1.442695, %v2160_v58  ;;  %v2520_v4 = vadd.f32 %v4689_v34, %v2519_v21 }
 0x28e   : > { %v4709_v1 = vpop.eup %4708  ;;  %4728 = vpow2.f32 %v2311_v55  ;;  %2969 = vmatprep.mubr.bf16.mxu0 %v2678_v27  ;;  %v2680_v7 = vpack.c.bf16 %v6133_v48, %v4697_v10  ;;  %v2524_v14 = vadd.f32 %v6118_v46, %v2523_v40  ;;  %v2677_v59 = vpack.c.bf16 %v6125_v45, %v6116_v47  ;;  %v2013_v51 = vpop.xlane.xlu0 %2012 }
 0x28f   : > { %v6141_v11 = vpop.eup %4710  ;;  %4730 = vpow2.f32 %v2313_v52  ;;  %2521 = vadd.xlane.f32.xlu1 %v2520_v4  ;;  %v2679_v57 = vpack.c.bf16 %v6129_v29, %v6118_v46  ;;  %v2161_v34 = vsub.f32 %v5799_v19, %v2013_v51  ;;  %v2162_v2 = vsub.f32 %v5801_v22, %v2013_v51 }
 0x290   : > { %v6147_v5 = vpop.eup %4712  ;;  %4732 = vpow2.f32 %v2315_v24  ;;  %3130 = vmatprep.mubr.bf16.mxu1 %v2680_v7  ;;  %v2525_v31 = vadd.f32 %v4697_v10, %v2524_v14  ;;  %2970 = vmatmul.mubr.bf16.gmra.mrb[68].mxu0 %v2677_v59  ;;  %v2163_v47 = vsub.f32 %v5803_v25, %v2013_v51  ;;  %v2164_v36 = vsub.f32 %v5808_v35, %v2013_v51  ;;  %v2018_v16 = vpop.xlane.xlu1 %2017  ;;  %v6739_v14 = vld [vmem:[#allocation13_spill] sm:$0xff] }
 0x291   : > { %v4715_v60 = vpop.eup %4714  ;;  %4734 = vpow2.f32 %v2317_v61  ;;  %3131 = vmatmul.mubr.bf16.gmra.mrb[68].mxu1 %v2679_v57  ;;  %v2321_v37 = vmul.f32 1.442695, %v2161_v34  ;;  %v2323_v38 = vmul.f32 1.442695, %v2162_v2  ;;  %v2165_v19 = vsub.f32 %v5806_v32, %v2018_v16  ;;  %v6741_v34 = vld [vmem:[#allocation15_spill] sm:$0xff] }
 0x292   : > { %v4717_v46 = vpop.eup %4716  ;;  %4736 = vpow2.f32 %v2319_v33  ;;  %2526 = vadd.xlane.f32.xlu0 %v2525_v31  ;;  %v2325_v22 = vmul.f32 1.442695, %v2163_v47  ;;  %v2327_v53 = vmul.f32 1.442695, %v2164_v36  ;;  %v2166_v43 = vsub.f32 %v5812_v41, %v2018_v16 }
 0x293   : > { %v4719_v9 = vpop.eup %4718  ;;  %4738 = vpow2.f32 %v2321_v37  ;;  %v2167_v25 = vsub.f32 %v5814_v42, %v2018_v16  ;;  %v2168_v35 = vsub.f32 %v5824_v62, %v2018_v16  ;;  %v2329_v10 = vmul.f32 1.442695, %v2165_v19 }
 0x294   : > { %v4721_v13 = vpop.eup %4720  ;;  %4740 = vpow2.f32 %v2323_v38  ;;  %v2331_v17 = vmul.f32 1.442695, %v2166_v43  ;;  %v2528_v6 = vadd.f32 %v4701_v54, %v6125_v45  ;;  %v2682_v32 = vpack.c.bf16 %v4717_v46, %v4709_v1 }
 0x295   : > { %v6156_v40 = vpop.eup %4722  ;;  %4742 = vpow2.f32 %v2325_v22  ;;  %v2333_v23 = vmul.f32 1.442695, %v2167_v25  ;;  %v2335_v50 = vmul.f32 1.442695, %v2168_v35  ;;  %v2684_v41 = vpack.c.bf16 %v4721_v13, %v6147_v5  ;;  %v6742_v25 = vld [vmem:[#allocation16_spill] sm:$0xff] }
 0x296   : > { %v4725_v44 = vpop.eup %4724  ;;  %4744 = vpow2.f32 %v2327_v53  ;;  %v2529_v42 = vadd.f32 %v6129_v29, %v2528_v6  ;;  %2977 = vmatprep.mubr.bf16.mxu0 %v2682_v32  ;;  %v2533_v62 = vadd.f32 %v4709_v1, %v6135_v28  ;;  %v2681_v55 = vpack.c.bf16 %v4715_v60, %v6135_v28  ;;  %v2023_v18 = vpop.xlane.xlu0 %2022 }
 0x297   : > { %v6162_v3 = vpop.eup %4726  ;;  %4746 = vpow2.f32 %v2329_v10  ;;  %3138 = vmatprep.mubr.bf16.mxu1 %v2684_v41  ;;  %v2683_v45 = vpack.c.bf16 %v4719_v9, %v6141_v11  ;;  %v2169_v54 = vsub.f32 %v5827_v8, %v2023_v18  ;;  %v2170_v63 = vsub.f32 %v5829_v12, %v2023_v18  ;;  %v6743_v10 = vld [vmem:[#allocation17_spill] sm:$0xff] }
 0x298   : > { %v6167_v58 = vpop.eup %4728  ;;  %4748 = vpow2.f32 %v2331_v17  ;;  %v2530_v29 = vadd.f32 %v6133_v48, %v2529_v42  ;;  %v2534_v21 = vadd.f32 %v6141_v11, %v2533_v62  ;;  %2978 = vmatmul.mubr.bf16.gmra.mrb[72].mxu0 %v2681_v55  ;;  %v2171_v52 = vsub.f32 %v5831_v15, %v2023_v18  ;;  %v2028_v24 = vpop.xlane.xlu1 %2027  ;;  %v6740_v11 = vld [vmem:[#allocation14_spill] sm:$0xff] }
 0x299   : > { %v4731_v27 = vpop.eup %4730  ;;  %4750 = vpow2.f32 %v2333_v23  ;;  %3139 = vmatmul.mubr.bf16.gmra.mrb[72].mxu1 %v2683_v45  ;;  %v2172_v28 = vsub.f32 %v5836_v30, %v2023_v18  ;;  %v2337_v61 = vmul.f32 1.442695, %v2169_v54  ;;  %v2339_v8 = vmul.f32 1.442695, %v2170_v63  ;;  %v6744_v23 = vld [vmem:[#allocation18_spill] sm:$0xff] }
 0x29a   : > { %v4733_v33 = vpop.eup %4732  ;;  %4752 = vpow2.f32 %v2335_v50  ;;  %2531 = vadd.xlane.f32.xlu1 %v2530_v29  ;;  %v2535_v12 = vadd.f32 %v6147_v5, %v2534_v21  ;;  %v2341_v4 = vmul.f32 1.442695, %v2171_v52  ;;  %v2538_v48 = vadd.f32 %v4717_v46, %v4715_v60  ;;  %v6746_v29 = vld [vmem:[#allocation19_spill] sm:$0xff] }
 0x29b   : > { %v4735_v1 = vpop.eup %4734  ;;  %4754 = vpow2.f32 %v2337_v61  ;;  %v2343_v7 = vmul.f32 1.442695, %v2172_v28  ;;  %v2173_v15 = vsub.f32 %v5834_v26, %v2028_v24  ;;  %v2174_v59 = vsub.f32 %v6739_v14, %v2028_v24  ;;  %v6748_v61 = vld [vmem:[#allocation22_spill] sm:$0xff] }
 0x29c   : > { %v4737_v51 = vpop.eup %4736  ;;  %2536 = vadd.xlane.f32.xlu0 %v2535_v12  ;;  %4756 = vpow2.f32 %v2339_v8  ;;  %v2539_v30 = vadd.f32 %v4719_v9, %v2538_v48  ;;  %v2175_v57 = vsub.f32 %v6740_v11, %v2028_v24  ;;  %v2176_v2 = vsub.f32 %v6741_v34, %v2028_v24  ;;  %v6747_v24 = vld [vmem:[#allocation21_spill] sm:$0xff] }
 0x29d   : > { %v6178_v31 = vpop.eup %4738  ;;  %4758 = vpow2.f32 %v2341_v4  ;;  %v2345_v5 = vmul.f32 1.442695, %v2173_v15  ;;  %v2347_v47 = vmul.f32 1.442695, %v2174_v59  ;;  %v2686_v36 = vpack.c.bf16 %v4733_v33, %v4725_v44  ;;  %v6749_v4 = vld [vmem:[#allocation23_spill] sm:$0xff] }
 0x29e   : > { %v4741_v16 = vpop.eup %4740  ;;  %4760 = vpow2.f32 %v2343_v7  ;;  %v2540_v60 = vadd.f32 %v4721_v13, %v2539_v30  ;;  %v2349_v26 = vmul.f32 1.442695, %v2175_v57  ;;  %v2351_v37 = vmul.f32 1.442695, %v2176_v2  ;;  %v2033_v38 = vpop.xlane.xlu0 %2032 }
 0x29f   : > { %v6180_v19 = vpop.eup %4742  ;;  %4762 = vpow2.f32 %v2345_v5  ;;  %2985 = vmatprep.mubr.bf16.mxu0 %v2686_v36  ;;  %v2688_v46 = vpack.c.bf16 %v4737_v51, %v6167_v58  ;;  %v2543_v22 = vadd.f32 %v4725_v44, %v6156_v40  ;;  %v2685_v53 = vpack.c.bf16 %v4731_v27, %v6156_v40  ;;  %v6745_v40 = vld [vmem:[#allocation20_spill] sm:$0xff] }
 0x2a0   : > { %v6185_v43 = vpop.eup %4744  ;;  %2541 = vadd.xlane.f32.xlu1 %v2540_v60  ;;  %4764 = vpow2.f32 %v2347_v47  ;;  %v2687_v9 = vpack.c.bf16 %v4735_v1, %v6162_v3  ;;  %v2177_v35 = vsub.f32 %v6742_v25, %v2033_v38  ;;  %v2178_v13 = vsub.f32 %v6743_v10, %v2033_v38  ;;  %v2038_v17 = vpop.xlane.xlu1 %2037  ;;  %v6750_v5 = vld [vmem:[#allocation24_spill] sm:$0xff] }
 0x2a1   : > { %v4747_v6 = vpop.eup %4746  ;;  %4766 = vpow2.f32 %v2349_v26  ;;  %3146 = vmatprep.mubr.bf16.mxu1 %v2688_v46  ;;  %v2544_v32 = vadd.f32 %v6162_v3, %v2543_v22  ;;  %2986 = vmatmul.mubr.bf16.gmra.mrb[76].mxu0 %v2685_v53  ;;  %v2179_v50 = vsub.f32 %v6744_v23, %v2033_v38  ;;  %v2180_v41 = vsub.f32 %v6745_v40, %v2033_v38  ;;  %v6751_v26 = vld [vmem:[#allocation25_spill] sm:$0xff]  ;;  %v6752_v38 = vld [vmem:[#allocation26_spill] sm:$0xff] }
 0x2a2   : > { %v4749_v44 = vpop.eup %4748  ;;  %4768 = vpow2.f32 %v2351_v37  ;;  %3147 = vmatmul.mubr.bf16.gmra.mrb[76].mxu1 %v2687_v9  ;;  %v2353_v42 = vmul.f32 1.442695, %v2177_v35  ;;  %v2355_v62 = vmul.f32 1.442695, %v2178_v13  ;;  %v2548_v55 = vadd.f32 %v4733_v33, %v4731_v27 }
 0x2a3   : > { %v4751_v18 = vpop.eup %4750  ;;  %v2545_v45 = vadd.f32 %v6167_v58, %v2544_v32  ;;  %v2357_v54 = vmul.f32 1.442695, %v2179_v50  ;;  %v2359_v63 = vmul.f32 1.442695, %v2180_v41  ;;  %v2181_v21 = vsub.f32 %v6746_v29, %v2038_v17  ;;  %v6754_v50 = vld [vmem:[#allocation27_spill] sm:$0xff]  ;;  %v6755_v41 = vld [vmem:[#allocation29_spill] sm:$0xff] }
 0x2a4   : > { %v4753_v52 = vpop.eup %4752  ;;  %4770 = vpow2.f32 %v2353_v42  ;;  %v2549_v3 = vadd.f32 %v4735_v1, %v2548_v55  ;;  %v2182_v28 = vsub.f32 %v6747_v24, %v2038_v17  ;;  %v2183_v8 = vsub.f32 %v6748_v61, %v2038_v17 }
 0x2a5   : > { %v6197_v12 = vpop.eup %4754  ;;  %2546 = vadd.xlane.f32.xlu0 %v2545_v45  ;;  %4772 = vpow2.f32 %v2355_v62  ;;  %v2184_v27 = vsub.f32 %v6749_v4, %v2038_v17  ;;  %v2361_v33 = vmul.f32 1.442695, %v2181_v21  ;;  %v2690_v48 = vpack.c.bf16 %v4749_v44, %v4741_v16  ;;  %v6756_v62 = vld [vmem:[#allocation30_spill] sm:$0xff] }
 0x2a6   : > { %v6200_v58 = vpop.eup %4756  ;;  %4774 = vpow2.f32 %v2357_v54  ;;  %v2550_v7 = vadd.f32 %v4737_v51, %v2549_v3  ;;  %v2363_v15 = vmul.f32 1.442695, %v2182_v28  ;;  %v2365_v14 = vmul.f32 1.442695, %v2183_v8  ;;  %v2043_v59 = vpop.xlane.xlu0 %2042 }
 0x2a7   : > { %v6202_v1 = vpop.eup %4758  ;;  %4776 = vpow2.f32 %v2359_v63  ;;  %v2367_v30 = vmul.f32 1.442695, %v2184_v27  ;;  %2993 = vmatprep.mubr.bf16.mxu0 %v2690_v48  ;;  %v2692_v11 = vpack.c.bf16 %v4753_v52, %v6185_v43  ;;  %v2553_v57 = vadd.f32 %v4741_v16, %v6178_v31 }
 0x2a8   : > { %v6206_v34 = vpop.eup %4760  ;;  %2551 = vadd.xlane.f32.xlu1 %v2550_v7  ;;  %4778 = vpow2.f32 %v2361_v33  ;;  %v2689_v2 = vpack.c.bf16 %v4747_v6, %v6178_v31  ;;  %v2691_v51 = vpack.c.bf16 %v4751_v18, %v6180_v19  ;;  %v2185_v47 = vsub.f32 %v6750_v5, %v2043_v59  ;;  %v2048_v46 = vpop.xlane.xlu1 %2047  ;;  %v6753_v31 = vld [vmem:[#allocation28_spill] sm:$0xff]  ;;  %v6759_v7 = vld [vmem:[#allocation33_spill] sm:$0xff] }
 0x2a9   : > { %v6211_v36 = vpop.eup %4762  ;;  %4780 = vpow2.f32 %v2363_v15  ;;  %3154 = vmatprep.mubr.bf16.mxu1 %v2692_v11  ;;  %v2554_v60 = vadd.f32 %v6180_v19, %v2553_v57  ;;  %v2186_v37 = vsub.f32 %v6751_v26, %v2043_v59  ;;  %v2187_v16 = vsub.f32 %v6752_v38, %v2043_v59  ;;  %v6758_v33 = vld [vmem:[#allocation32_spill] sm:$0xff] }
 0x2aa   : > { %v4765_v22 = vpop.eup %4764  ;;  %4782 = vpow2.f32 %v2365_v14  ;;  %2994 = vmatmul.mubr.bf16.gmra.mrb[80].mxu0 %v2689_v2  ;;  %3155 = vmatmul.mubr.bf16.gmra.mrb[80].mxu1 %v2691_v51  ;;  %v2188_v53 = vsub.f32 %v6753_v31, %v2043_v59  ;;  %v2369_v9 = vmul.f32 1.442695, %v2185_v47  ;;  %v2558_v25 = vadd.f32 %v4749_v44, %v4747_v6  ;;  %v6757_v6 = vld [vmem:[#allocation31_spill] sm:$0xff]  ;;  %v6761_v57 = vld [vmem:[#allocation36_spill] sm:$0xff] }
 0x2ab   : > { %v4767_v35 = vpop.eup %4766  ;;  %4784 = vpow2.f32 %v2367_v30  ;;  %v2555_v10 = vadd.f32 %v6185_v43, %v2554_v60  ;;  %v2371_v13 = vmul.f32 1.442695, %v2186_v37  ;;  %v2373_v17 = vmul.f32 1.442695, %v2187_v16  ;;  %v6762_v16 = vld [vmem:[#allocation35_spill] sm:$0xff] }
 0x2ac   : > { %v6218_v19 = vpop.eup %4768  ;;  %4786 = vpow2.f32 %v2369_v9  ;;  %v2375_v32 = vmul.f32 1.442695, %v2188_v53  ;;  %v2559_v23 = vadd.f32 %v4751_v18, %v2558_v25  ;;  %v2189_v40 = vsub.f32 %v6754_v50, %v2048_v46  ;;  %v6763_v53 = vld [vmem:[#allocation37_spill] sm:$0xff]  ;;  %v6764_v25 = vld [vmem:[#allocation38_spill] sm:$0xff] }
 0x2ad   : > { %2556 = vadd.xlane.f32.xlu0 %v2555_v10  ;;  %4788 = vpow2.f32 %v2371_v13  ;;  %v2190_v42 = vsub.f32 %v6755_v41, %v2048_v46  ;;  %v2191_v55 = vsub.f32 %v6756_v62, %v2048_v46  ;;  %v2192_v44 = vsub.f32 %v6757_v6, %v2048_v46 }
 0x2ae   : > { %v6224_v45 = vpop.eup %4770  ;;  %4790 = vpow2.f32 %v2373_v17  ;;  %v2560_v43 = vadd.f32 %v4753_v52, %v2559_v23  ;;  %v2377_v54 = vmul.f32 1.442695, %v2189_v40  ;;  %v2694_v63 = vpack.c.bf16 %v4765_v22, %v6200_v58  ;;  %v2053_v29 = vpop.xlane.xlu0 %2052  ;;  %v6765_v17 = vld [vmem:[#allocation39_spill] sm:$0xff] }
 0x2af   : > { %v4773_v21 = vpop.eup %4772  ;;  %4792 = vpow2.f32 %v2375_v32  ;;  %v2379_v18 = vmul.f32 1.442695, %v2190_v42  ;;  %v2381_v3 = vmul.f32 1.442695, %v2191_v55  ;;  %v2383_v24 = vmul.f32 1.442695, %v2192_v44 }
 0x2b0   : > { %v6227_v28 = vpop.eup %4774  ;;  %2561 = vadd.xlane.f32.xlu1 %v2560_v43  ;;  %4794 = vpow2.f32 %v2377_v54  ;;  %3001 = vmatprep.mubr.bf16.mxu0 %v2694_v63  ;;  %v2696_v61 = vpack.c.bf16 %v6218_v19, %v6206_v34  ;;  %v2563_v52 = vadd.f32 %v6200_v58, %v6197_v12  ;;  %v2693_v8 = vpack.c.bf16 %v6211_v36, %v6197_v12  ;;  %v2058_v14 = vpop.xlane.xlu1 %2057  ;;  %v6760_v58 = vld [vmem:[#allocation34_spill] sm:$0xff] }
 0x2b1   : > { %v6235_v4 = vpop.eup %4776  ;;  %4796 = vpow2.f32 %v2379_v18  ;;  %v2695_v27 = vpack.c.bf16 %v4767_v35, %v6202_v1  ;;  %v2193_v48 = vsub.f32 %v6758_v33, %v2053_v29  ;;  %v2194_v15 = vsub.f32 %v6759_v7, %v2053_v29  ;;  %v6767_v18 = vld [vmem:[#allocation41_spill] sm:$0xff] }
 0x2b2   : > { %v4779_v59 = vpop.eup %4778  ;;  %4798 = vpow2.f32 %v2381_v3  ;;  %3162 = vmatprep.mubr.bf16.mxu1 %v2696_v61  ;;  %v2564_v30 = vadd.f32 %v6202_v1, %v2563_v52  ;;  %3002 = vmatmul.mubr.bf16.gmra.mrb[84].mxu0 %v2693_v8  ;;  %v2195_v11 = vsub.f32 %v6760_v58, %v2053_v29  ;;  %v2196_v12 = vsub.f32 %v6761_v57, %v2053_v29 }
 0x2b3   : > { %v4781_v2 = vpop.eup %4780  ;;  %4800 = vpow2.f32 %v2383_v24  ;;  %3163 = vmatmul.mubr.bf16.gmra.mrb[84].mxu1 %v2695_v27  ;;  %v2385_v51 = vmul.f32 1.442695, %v2193_v48  ;;  %v2387_v5 = vmul.f32 1.442695, %v2194_v15  ;;  %v2568_v47 = vadd.f32 %v4765_v22, %v6211_v36  ;;  %v6768_v24 = vld [vmem:[#allocation42_spill] sm:$0xff] }
 0x2b4   : > { %v4783_v60 = vpop.eup %4782  ;;  %v2565_v26 = vadd.f32 %v6206_v34, %v2564_v30  ;;  %v2389_v37 = vmul.f32 1.442695, %v2195_v11  ;;  %v2391_v38 = vmul.f32 1.442695, %v2196_v12  ;;  %v2197_v46 = vsub.f32 %v6762_v16, %v2058_v14  ;;  %v6770_v11 = vld [vmem:[#allocation43_spill] sm:$0xff]  ;;  %v6771_v12 = vld [vmem:[#allocation45_spill] sm:$0xff] }
 0x2b5   : > { %v4785_v1 = vpop.eup %4784  ;;  %4802 = vpow2.f32 %v2385_v51  ;;  %v2569_v31 = vadd.f32 %v4767_v35, %v2568_v47  ;;  %v2198_v9 = vsub.f32 %v6763_v53, %v2058_v14  ;;  %v2199_v10 = vsub.f32 %v6764_v25, %v2058_v14 }
 0x2b6   : > { %v6248_v13 = vpop.eup %4786  ;;  %2566 = vadd.xlane.f32.xlu0 %v2565_v26  ;;  %4804 = vpow2.f32 %v2387_v5  ;;  %v2200_v36 = vsub.f32 %v6765_v17, %v2058_v14  ;;  %v2393_v22 = vmul.f32 1.442695, %v2197_v46  ;;  %v2698_v32 = vpack.c.bf16 %v4781_v2, %v4773_v21  ;;  %v2063_v34 = vpop.xlane.xlu0 %2062  ;;  %v6772_v5 = vld [vmem:[#allocation46_spill] sm:$0xff] }
 0x2b7   : > { %v4789_v23 = vpop.eup %4788  ;;  %4806 = vpow2.f32 %v2389_v37  ;;  %v2570_v50 = vadd.f32 %v6218_v19, %v2569_v31  ;;  %v2395_v40 = vmul.f32 1.442695, %v2198_v9  ;;  %v2397_v41 = vmul.f32 1.442695, %v2199_v10  ;;  %v6766_v19 = vld [vmem:[#allocation40_spill] sm:$0xff] }
 0x2b8   : > { %v6252_v35 = vpop.eup %4790  ;;  %4808 = vpow2.f32 %v2391_v38  ;;  %v2399_v42 = vmul.f32 1.442695, %v2200_v36  ;;  %3009 = vmatprep.mubr.bf16.mxu0 %v2698_v32  ;;  %v2700_v62 = vpack.c.bf16 %v4785_v1, %v6235_v4  ;;  %v2573_v55 = vadd.f32 %v4773_v21, %v6224_v45  ;;  %v2068_v61 = vpop.xlane.xlu1 %2067 }
 0x2b9   : > { %v6256_v6 = vpop.eup %4792  ;;  %2571 = vadd.xlane.f32.xlu1 %v2570_v50  ;;  %4810 = vpow2.f32 %v2393_v22  ;;  %v2697_v44 = vpack.c.bf16 %v4779_v59, %v6224_v45  ;;  %v2699_v43 = vpack.c.bf16 %v4783_v60, %v6227_v28  ;;  %v2201_v54 = vsub.f32 %v6766_v19, %v2063_v34  ;;  %v6769_v45 = vld [vmem:[#allocation44_spill] sm:$0xff] }
 0x2ba   : > { %v6261_v63 = vpop.eup %4794  ;;  %4812 = vpow2.f32 %v2395_v40  ;;  %3170 = vmatprep.mubr.bf16.mxu1 %v2700_v62  ;;  %v2574_v29 = vadd.f32 %v6227_v28, %v2573_v55  ;;  %v2202_v3 = vsub.f32 %v6767_v18, %v2063_v34  ;;  %v2203_v21 = vsub.f32 %v6768_v24, %v2063_v34  ;;  %v6774_v22 = vld [vmem:[#allocation48_spill] sm:$0xff] }
 0x2bb   : > { %v4797_v52 = vpop.eup %4796  ;;  %4814 = vpow2.f32 %v2397_v41  ;;  %3010 = vmatmul.mubr.bf16.gmra.mrb[88].mxu0 %v2697_v44  ;;  %3171 = vmatmul.mubr.bf16.gmra.mrb[88].mxu1 %v2699_v43  ;;  %v2204_v8 = vsub.f32 %v6769_v45, %v2063_v34  ;;  %v2401_v27 = vmul.f32 1.442695, %v2201_v54  ;;  %v2578_v33 = vadd.f32 %v4781_v2, %v4779_v59  ;;  %v6773_v59 = vld [vmem:[#allocation47_spill] sm:$0xff]  ;;  %v6775_v34 = vld [vmem:[#allocation49_spill] sm:$0xff]  ;;  %v6777_v55 = vld [vmem:[#allocation52_spill] sm:$0xff] }
 0x2bc   : > { %v4799_v48 = vpop.eup %4798  ;;  %4816 = vpow2.f32 %v2399_v42  ;;  %v2575_v7 = vadd.f32 %v6235_v4, %v2574_v29  ;;  %v2403_v15 = vmul.f32 1.442695, %v2202_v3  ;;  %v2405_v14 = vmul.f32 1.442695, %v2203_v21  ;;  %v6778_v21 = vld [vmem:[#allocation51_spill] sm:$0xff] }
 0x2bd   : > { %v6268_v28 = vpop.eup %4800  ;;  %4818 = vpow2.f32 %v2401_v27  ;;  %v2407_v30 = vmul.f32 1.442695, %v2204_v8  ;;  %v2579_v58 = vadd.f32 %v4783_v60, %v2578_v33  ;;  %v2205_v57 = vsub.f32 %v6770_v11, %v2068_v61  ;;  %v6779_v8 = vld [vmem:[#allocation53_spill] sm:$0xff]  ;;  %v6780_v33 = vld [vmem:[#allocation54_spill] sm:$0xff] }
 0x2be   : > { %2576 = vadd.xlane.f32.xlu0 %v2575_v7  ;;  %4820 = vpow2.f32 %v2403_v15  ;;  %v2206_v51 = vsub.f32 %v6771_v12, %v2068_v61  ;;  %v2207_v47 = vsub.f32 %v6772_v5, %v2068_v61  ;;  %v2208_v2 = vsub.f32 %v6773_v59, %v2068_v61  ;;  %v2073_v16 = vpop.xlane.xlu0 %2072 }
 0x2bf   : > { %v6274_v26 = vpop.eup %4802  ;;  %4822 = vpow2.f32 %v2405_v14  ;;  %v2580_v4 = vadd.f32 %v4785_v1, %v2579_v58  ;;  %v2409_v37 = vmul.f32 1.442695, %v2205_v57  ;;  %v2702_v38 = vpack.c.bf16 %v4797_v52, %v4789_v23  ;;  %v6781_v14 = vld [vmem:[#allocation55_spill] sm:$0xff] }
 0x2c0   : > { %v4805_v46 = vpop.eup %4804  ;;  %4824 = vpow2.f32 %v2407_v30  ;;  %v2411_v60 = vmul.f32 1.442695, %v2206_v51  ;;  %v2413_v31 = vmul.f32 1.442695, %v2207_v47  ;;  %v2415_v53 = vmul.f32 1.442695, %v2208_v2  ;;  %v2078_v40 = vpop.xlane.xlu1 %2077 }
 0x2c1   : > { %v6276_v9 = vpop.eup %4806  ;;  %2581 = vadd.xlane.f32.xlu1 %v2580_v4  ;;  %4826 = vpow2.f32 %v2409_v37  ;;  %3017 = vmatprep.mubr.bf16.mxu0 %v2702_v38  ;;  %v2704_v25 = vpack.c.bf16 %v6268_v28, %v6256_v6  ;;  %v2583_v10 = vadd.f32 %v4789_v23, %v6248_v13  ;;  %v2701_v1 = vpack.c.bf16 %v6261_v63, %v6248_v13  ;;  %v6776_v23 = vld [vmem:[#allocation50_spill] sm:$0xff] }
 0x2c2   : > { %v6283_v17 = vpop.eup %4808  ;;  %4828 = vpow2.f32 %v2411_v60  ;;  %v2703_v36 = vpack.c.bf16 %v4799_v48, %v6252_v35  ;;  %v2209_v32 = vsub.f32 %v6774_v22, %v2073_v16  ;;  %v2210_v50 = vsub.f32 %v6775_v34, %v2073_v16  ;;  %v6783_v60 = vld [vmem:[#allocation57_spill] sm:$0xff] }
 0x2c3   : > { %v4811_v41 = vpop.eup %4810  ;;  %4830 = vpow2.f32 %v2413_v31  ;;  %3178 = vmatprep.mubr.bf16.mxu1 %v2704_v25  ;;  %v2584_v42 = vadd.f32 %v6252_v35, %v2583_v10  ;;  %3018 = vmatmul.mubr.bf16.gmra.mrb[92].mxu0 %v2701_v1  ;;  %v2211_v62 = vsub.f32 %v6776_v23, %v2073_v16  ;;  %v2212_v13 = vsub.f32 %v6777_v55, %v2073_v16 }
 0x2c4   : > { %v4813_v44 = vpop.eup %4812  ;;  %4832 = vpow2.f32 %v2415_v53  ;;  %3179 = vmatmul.mubr.bf16.gmra.mrb[92].mxu1 %v2703_v36  ;;  %v2417_v43 = vmul.f32 1.442695, %v2209_v32  ;;  %v2419_v19 = vmul.f32 1.442695, %v2210_v50  ;;  %v2588_v54 = vadd.f32 %v4797_v52, %v6261_v63  ;;  %v6784_v53 = vld [vmem:[#allocation58_spill] sm:$0xff] }
 0x2c5   : > { %v4815_v29 = vpop.eup %4814  ;;  %v2585_v18 = vadd.f32 %v6256_v6, %v2584_v42  ;;  %v2421_v3 = vmul.f32 1.442695, %v2211_v62  ;;  %v2423_v24 = vmul.f32 1.442695, %v2212_v13  ;;  %v2213_v61 = vsub.f32 %v6778_v21, %v2078_v40  ;;  %v6786_v62 = vld [vmem:[#allocation59_spill] sm:$0xff]  ;;  %v6787_v13 = vld [vmem:[#allocation61_spill] sm:$0xff] }
 0x2c6   : > { %v4817_v35 = vpop.eup %4816  ;;  %4834 = vpow2.f32 %v2417_v43  ;;  %v2589_v45 = vadd.f32 %v4799_v48, %v2588_v54  ;;  %v2214_v27 = vsub.f32 %v6779_v8, %v2078_v40  ;;  %v2215_v7 = vsub.f32 %v6780_v33, %v2078_v40  ;;  %v2083_v6 = vpop.xlane.xlu0 %2082 }
 0x2c7   : > { %v6296_v15 = vpop.eup %4818  ;;  %2586 = vadd.xlane.f32.xlu0 %v2585_v18  ;;  %4836 = vpow2.f32 %v2419_v19  ;;  %v2216_v63 = vsub.f32 %v6781_v14, %v2078_v40  ;;  %v2425_v52 = vmul.f32 1.442695, %v2213_v61  ;;  %v2706_v30 = vpack.c.bf16 %v4813_v44, %v4805_v46  ;;  %v6788_v19 = vld [vmem:[#allocation62_spill] sm:$0xff] }
 0x2c8   : > { %v4821_v58 = vpop.eup %4820  ;;  %4838 = vpow2.f32 %v2421_v3  ;;  %v2590_v11 = vadd.f32 %v6268_v28, %v2589_v45  ;;  %v2427_v57 = vmul.f32 1.442695, %v2214_v27  ;;  %v2429_v12 = vmul.f32 1.442695, %v2215_v7  ;;  %v6782_v28 = vld [vmem:[#allocation56_spill] sm:$0xff]  ;;  %v2088_v25 = vpop.xlane.xlu1 %2087 }
 0x2c9   : > { %v6300_v48 = vpop.eup %4822  ;;  %4840 = vpow2.f32 %v2423_v24  ;;  %v2431_v51 = vmul.f32 1.442695, %v2216_v63  ;;  %3025 = vmatprep.mubr.bf16.mxu0 %v2706_v30  ;;  %v2708_v5 = vpack.c.bf16 %v4817_v35, %v6283_v17  ;;  %v2593_v47 = vadd.f32 %v4805_v46, %v6274_v26 }
 0x2ca   : > { %v6304_v59 = vpop.eup %4824  ;;  %2591 = vadd.xlane.f32.xlu1 %v2590_v11  ;;  %4842 = vpow2.f32 %v2425_v52  ;;  %v2705_v2 = vpack.c.bf16 %v4811_v41, %v6274_v26  ;;  %v2707_v4 = vpack.c.bf16 %v4815_v29, %v6276_v9  ;;  %v2217_v37 = vsub.f32 %v6782_v28, %v2083_v6  ;;  %v6785_v26 = vld [vmem:[#allocation60_spill] sm:$0xff] }
 0x2cb   : > { %v6309_v38 = vpop.eup %4826  ;;  %4844 = vpow2.f32 %v2427_v57  ;;  %3186 = vmatprep.mubr.bf16.mxu1 %v2708_v5  ;;  %v2594_v16 = vadd.f32 %v6276_v9, %v2593_v47  ;;  %v2218_v31 = vsub.f32 %v6783_v60, %v2083_v6  ;;  %v2219_v46 = vsub.f32 %v6784_v53, %v2083_v6  ;;  %v6790_v52 = vld [vmem:[#allocation64_spill] sm:$0xff] }
 0x2cc   : > { %v4829_v10 = vpop.eup %4828  ;;  %4846 = vpow2.f32 %v2429_v12  ;;  %3026 = vmatmul.mubr.bf16.gmra.mrb[96].mxu0 %v2705_v2  ;;  %3187 = vmatmul.mubr.bf16.gmra.mrb[96].mxu1 %v2707_v4  ;;  %v2220_v1 = vsub.f32 %v6785_v26, %v2083_v6  ;;  %v2433_v36 = vmul.f32 1.442695, %v2217_v37  ;;  %v2598_v22 = vadd.f32 %v4813_v44, %v4811_v41  ;;  %v6789_v41 = vld [vmem:[#allocation63_spill] sm:$0xff]  ;;  %v6791_v6 = vld [vmem:[#allocation65_spill] sm:$0xff]  ;;  %v6793_v47 = vld [vmem:[#allocation68_spill] sm:$0xff] }
 0x2cd   : > { %v4831_v32 = vpop.eup %4830  ;;  %4848 = vpow2.f32 %v2431_v51  ;;  %v2595_v34 = vadd.f32 %v6283_v17, %v2594_v16  ;;  %v2435_v50 = vmul.f32 1.442695, %v2218_v31  ;;  %v2437_v40 = vmul.f32 1.442695, %v2219_v46  ;;  %v6794_v46 = vld [vmem:[#allocation67_spill] sm:$0xff] }
 0x2ce   : > { %v6316_v9 = vpop.eup %4832  ;;  %4850 = vpow2.f32 %v2433_v36  ;;  %v2439_v42 = vmul.f32 1.442695, %v2220_v1  ;;  %v2599_v23 = vadd.f32 %v4815_v29, %v2598_v22  ;;  %v2221_v55 = vsub.f32 %v6786_v62, %v2088_v25  ;;  %v2093_v21 = vpop.xlane.xlu0 %2092  ;;  %v6795_v1 = vld [vmem:[#allocation69_spill] sm:$0xff]  ;;  %v6796_v22 = vld [vmem:[#allocation70_spill] sm:$0xff] }
 0x2cf   : > { %2596 = vadd.xlane.f32.xlu0 %v2595_v34  ;;  %4852 = vpow2.f32 %v2435_v50  ;;  %v2222_v43 = vsub.f32 %v6787_v13, %v2088_v25  ;;  %v2223_v54 = vsub.f32 %v6788_v19, %v2088_v25  ;;  %v2224_v44 = vsub.f32 %v6789_v41, %v2088_v25 }
 0x2d0   : > { %v6322_v18 = vpop.eup %4834  ;;  %4854 = vpow2.f32 %v2437_v40  ;;  %v2600_v17 = vadd.f32 %v4817_v35, %v2599_v23  ;;  %v2441_v3 = vmul.f32 1.442695, %v2221_v55  ;;  %v2710_v24 = vpack.c.bf16 %v4829_v10, %v4821_v58  ;;  %v2098_v57 = vpop.xlane.xlu1 %2097  ;;  %v6797_v40 = vld [vmem:[#allocation71_spill] sm:$0xff] }
 0x2d1   : > { %v4837_v61 = vpop.eup %4836  ;;  %4856 = vpow2.f32 %v2439_v42  ;;  %v2443_v29 = vmul.f32 1.442695, %v2222_v43  ;;  %v2445_v45 = vmul.f32 1.442695, %v2223_v54  ;;  %v2447_v8 = vmul.f32 1.442695, %v2224_v44 }
 0x2d2   : > { %v6324_v27 = vpop.eup %4838  ;;  %2601 = vadd.xlane.f32.xlu1 %v2600_v17  ;;  %4858 = vpow2.f32 %v2441_v3  ;;  %3033 = vmatprep.mubr.bf16.mxu0 %v2710_v24  ;;  %v2712_v33 = vpack.c.bf16 %v6316_v9, %v6304_v59  ;;  %v2603_v7 = vadd.f32 %v4821_v58, %v6296_v15  ;;  %v2709_v35 = vpack.c.bf16 %v6309_v38, %v6296_v15  ;;  %v6792_v58 = vld [vmem:[#allocation66_spill] sm:$0xff] }
 0x2d3   : > { %v6331_v14 = vpop.eup %4840  ;;  %4860 = vpow2.f32 %v2443_v29  ;;  %v2711_v63 = vpack.c.bf16 %v4831_v32, %v6300_v48  ;;  %v2225_v30 = vsub.f32 %v6790_v52, %v2093_v21  ;;  %v2226_v11 = vsub.f32 %v6791_v6, %v2093_v21  ;;  %v6799_v29 = vld [vmem:[#allocation73_spill] sm:$0xff] }
 0x2d4   : > { %v4843_v12 = vpop.eup %4842  ;;  %4862 = vpow2.f32 %v2445_v45  ;;  %3194 = vmatprep.mubr.bf16.mxu1 %v2712_v33  ;;  %v2604_v51 = vadd.f32 %v6300_v48, %v2603_v7  ;;  %3034 = vmatmul.mubr.bf16.gmra.mrb[100].mxu0 %v2709_v35  ;;  %v2227_v5 = vsub.f32 %v6792_v58, %v2093_v21  ;;  %v2228_v15 = vsub.f32 %v6793_v47, %v2093_v21 }
 0x2d5   : > { %v4845_v2 = vpop.eup %4844  ;;  %4864 = vpow2.f32 %v2447_v8  ;;  %3195 = vmatmul.mubr.bf16.gmra.mrb[100].mxu1 %v2711_v63  ;;  %v2449_v4 = vmul.f32 1.442695, %v2225_v30  ;;  %v2451_v28 = vmul.f32 1.442695, %v2226_v11  ;;  %v2608_v37 = vadd.f32 %v4829_v10, %v6309_v38  ;;  %v6800_v8 = vld [vmem:[#allocation74_spill] sm:$0xff] }
 0x2d6   : > { %v4847_v16 = vpop.eup %4846  ;;  %v2605_v60 = vadd.f32 %v6304_v59, %v2604_v51  ;;  %v2453_v31 = vmul.f32 1.442695, %v2227_v5  ;;  %v2455_v53 = vmul.f32 1.442695, %v2228_v15  ;;  %v2229_v25 = vsub.f32 %v6794_v46, %v2098_v57  ;;  %v2103_v59 = vpop.xlane.xlu0 %2102  ;;  %v6802_v5 = vld [vmem:[#allocation75_spill] sm:$0xff]  ;;  %v6803_v15 = vld [vmem:[#allocation77_spill] sm:$0xff] }
 0x2d7   : > { %v4849_v48 = vpop.eup %4848  ;;  %4866 = vpow2.f32 %v2449_v4  ;;  %v2609_v26 = vadd.f32 %v4831_v32, %v2608_v37  ;;  %v2230_v36 = vsub.f32 %v6795_v1, %v2098_v57  ;;  %v2231_v34 = vsub.f32 %v6796_v22, %v2098_v57 }
 0x2d8   : > { %v6344_v50 = vpop.eup %4850  ;;  %2606 = vadd.xlane.f32.xlu0 %v2605_v60  ;;  %4868 = vpow2.f32 %v2451_v28  ;;  %v2232_v38 = vsub.f32 %v6797_v40, %v2098_v57  ;;  %v2457_v10 = vmul.f32 1.442695, %v2229_v25  ;;  %v2714_v42 = vpack.c.bf16 %v4845_v2, %v4837_v61  ;;  %v2108_v33 = vpop.xlane.xlu1 %2107  ;;  %v6804_v28 = vld [vmem:[#allocation78_spill] sm:$0xff] }
 0x2d9   : > { %v4853_v23 = vpop.eup %4852  ;;  %4870 = vpow2.f32 %v2453_v31  ;;  %v2610_v62 = vadd.f32 %v6316_v9, %v2609_v26  ;;  %v2459_v55 = vmul.f32 1.442695, %v2230_v36  ;;  %v2461_v13 = vmul.f32 1.442695, %v2231_v34  ;;  %v6798_v9 = vld [vmem:[#allocation72_spill] sm:$0xff] }
 0x2da   : > { %v6348_v32 = vpop.eup %4854  ;;  %4872 = vpow2.f32 %v2455_v53  ;;  %v2463_v43 = vmul.f32 1.442695, %v2232_v38  ;;  %3041 = vmatprep.mubr.bf16.mxu0 %v2714_v42  ;;  %v2716_v19 = vpack.c.bf16 %v4849_v48, %v6331_v14  ;;  %v2613_v54 = vadd.f32 %v4837_v61, %v6322_v18  ;;  %v6806_v42 = vld [vmem:[#allocation80_spill] sm:$0xff] }
 0x2db   : > { %v6352_v41 = vpop.eup %4856  ;;  %2611 = vadd.xlane.f32.xlu1 %v2610_v62  ;;  %4874 = vpow2.f32 %v2457_v10  ;;  %v2713_v44 = vpack.c.bf16 %v4843_v12, %v6322_v18  ;;  %v2715_v17 = vpack.c.bf16 %v4847_v16, %v6324_v27  ;;  %v2233_v3 = vsub.f32 %v6798_v9, %v2103_v59  ;;  %v6801_v18 = vld [vmem:[#allocation76_spill] sm:$0xff] }
 0x2dc   : > { %v6357_v24 = vpop.eup %4858  ;;  %4876 = vpow2.f32 %v2459_v55  ;;  %3202 = vmatprep.mubr.bf16.mxu1 %v2716_v19  ;;  %v2614_v21 = vadd.f32 %v6324_v27, %v2613_v54  ;;  %v2234_v45 = vsub.f32 %v6799_v29, %v2103_v59  ;;  %v2235_v61 = vsub.f32 %v6800_v8, %v2103_v59  ;;  %v6808_v29 = vld [vmem:[#allocation82_spill] sm:$0xff] }
 0x2dd   : > { %v4861_v7 = vpop.eup %4860  ;;  %4878 = vpow2.f32 %v2461_v13  ;;  %3042 = vmatmul.mubr.bf16.gmra.mrb[104].mxu0 %v2713_v44  ;;  %3203 = vmatmul.mubr.bf16.gmra.mrb[104].mxu1 %v2715_v17  ;;  %v2236_v35 = vsub.f32 %v6801_v18, %v2103_v59  ;;  %v2465_v63 = vmul.f32 1.442695, %v2233_v3  ;;  %v2618_v52 = vadd.f32 %v4845_v2, %v4843_v12  ;;  %v6805_v12 = vld [vmem:[#allocation79_spill] sm:$0xff] }
 0x2de   : > { %v4863_v30 = vpop.eup %4862  ;;  %4880 = vpow2.f32 %v2463_v43  ;;  %v2615_v6 = vadd.f32 %v6331_v14, %v2614_v21  ;;  %v2467_v11 = vmul.f32 1.442695, %v2234_v45  ;;  %v2469_v57 = vmul.f32 1.442695, %v2235_v61  ;;  %v2113_v46 = vpop.xlane.xlu0 %2112  ;;  %v6809_v61 = vld [vmem:[#allocation83_spill] sm:$0xff] }
 0x2df   : > { %v6364_v27 = vpop.eup %4864  ;;  %4882 = vpow2.f32 %v2465_v63  ;;  %v2471_v51 = vmul.f32 1.442695, %v2236_v35  ;;  %v2619_v58 = vadd.f32 %v4847_v16, %v2618_v52  ;;  %v2237_v47 = vsub.f32 %v6802_v5, %v2108_v33  ;;  %v6811_v63 = vld [vmem:[#allocation85_spill] sm:$0xff] }
 0x2e0   : > { %2616 = vadd.xlane.f32.xlu0 %v2615_v6  ;;  %4884 = vpow2.f32 %v2467_v11  ;;  %v2238_v4 = vsub.f32 %v6803_v15, %v2108_v33  ;;  %v2239_v37 = vsub.f32 %v6804_v28, %v2108_v33  ;;  %v2240_v2 = vsub.f32 %v6805_v12, %v2108_v33  ;;  %v2118_v62 = vpop.xlane.xlu1 %2117 }
 0x2e1   : > { %v6370_v60 = vpop.eup %4866  ;;  %4886 = vpow2.f32 %v2469_v57  ;;  %v2620_v14 = vadd.f32 %v4849_v48, %v2619_v58  ;;  %v2473_v31 = vmul.f32 1.442695, %v2237_v47  ;;  %v2718_v53 = vpack.c.bf16 %v4861_v7, %v4853_v23 }
 0x2e2   : > { %v4869_v25 = vpop.eup %4868  ;;  %4888 = vpow2.f32 %v2471_v51  ;;  %v2475_v16 = vmul.f32 1.442695, %v2238_v4  ;;  %v2477_v26 = vmul.f32 1.442695, %v2239_v37  ;;  %v2479_v1 = vmul.f32 1.442695, %v2240_v2 }
 0x2e3   : > { %v6372_v36 = vpop.eup %4870  ;;  %2621 = vadd.xlane.f32.xlu1 %v2620_v14  ;;  %4890 = vpow2.f32 %v2473_v31  ;;  %3049 = vmatprep.mubr.bf16.mxu0 %v2718_v53  ;;  %v2720_v22 = vpack.c.bf16 %v6364_v27, %v6352_v41  ;;  %v2623_v34 = vadd.f32 %v4853_v23, %v6344_v50  ;;  %v2717_v48 = vpack.c.bf16 %v6357_v24, %v6344_v50  ;;  %v6807_v23 = vld [vmem:[#allocation81_spill] sm:$0xff]  ;;  %v6812_v2 = vld [vmem:[#allocation86_spill] sm:$0xff]  ;;  %v6813_v31 = vld [vmem:[#allocation87_spill] sm:$0xff] }
 0x2e4   : > { %v6379_v40 = vpop.eup %4872  ;;  %4892 = vpow2.f32 %v2475_v16  ;;  %v2719_v38 = vpack.c.bf16 %v4863_v30, %v6348_v32  ;;  %v2241_v10 = vsub.f32 %v6043_v0, %v2113_v46  ;;  %v2242_v59 = vsub.f32 %v6806_v42, %v2113_v46 }
 0x2e5   : > { %v4875_v55 = vpop.eup %4874  ;;  %4894 = vpow2.f32 %v2477_v26  ;;  %3210 = vmatprep.mubr.bf16.mxu1 %v2720_v22  ;;  %v2624_v13 = vadd.f32 %v6348_v32, %v2623_v34  ;;  %3050 = vmatmul.mubr.bf16.gmra.mrb[108].mxu0 %v2717_v48  ;;  %v2243_v43 = vsub.f32 %v6807_v23, %v2113_v46  ;;  %v2244_v50 = vsub.f32 %v6052_v20, %v2113_v46  ;;  %v6810_v20 = vld [vmem:[#allocation84_spill] sm:$0xff] }
 0x2e6   : > { %v4877_v19 = vpop.eup %4876  ;;  %4896 = vpow2.f32 %v2479_v1  ;;  %3211 = vmatmul.mubr.bf16.gmra.mrb[108].mxu1 %v2719_v38  ;;  %v2481_v54 = vmul.f32 1.442695, %v2241_v10  ;;  %v2483_v44 = vmul.f32 1.442695, %v2242_v59  ;;  %v2628_v0 = vadd.f32 %v4861_v7, %v6357_v24  ;;  %v6814_v10 = vld [vmem:[#allocation88_spill] sm:$0xff]  ;;  %v6815_v59 = vld [vmem:[#allocation89_spill] sm:$0xff] }
 0x2e7   : > { %v4879_v17 = vpop.eup %4878  ;;  %v2625_v9 = vadd.f32 %v6352_v41, %v2624_v13  ;;  %v2485_v3 = vmul.f32 1.442695, %v2243_v43  ;;  %v2487_v21 = vmul.f32 1.442695, %v2244_v50  ;;  %v2245_v45 = vsub.f32 %v6808_v29, %v2118_v62  ;;  %v2123_v41 = vpop.xlane.xlu0 %2122  ;;  %v6816_v13 = vld [vmem:[#allocation90_spill] sm:$0xff] }
 0x2e8   : > { %v4881_v32 = vpop.eup %4880  ;;  %4898 = vpow2.f32 %v2481_v54  ;;  %v2629_v8 = vadd.f32 %v4863_v30, %v2628_v0  ;;  %v2246_v33 = vsub.f32 %v6809_v61, %v2118_v62  ;;  %v2247_v18 = vsub.f32 %v6810_v20, %v2118_v62  ;;  %v2128_v46 = vpop.xlane.xlu1 %2127 }
 0x2e9   : > { %v6392_v35 = vpop.eup %4882  ;;  %2626 = vadd.xlane.f32.xlu0 %v2625_v9  ;;  %4900 = vpow2.f32 %v2483_v44  ;;  %v2248_v24 = vsub.f32 %v6811_v63, %v2118_v62  ;;  %v2489_v7 = vmul.f32 1.442695, %v2245_v45  ;;  %v2722_v52 = vpack.c.bf16 %v4877_v19, %v4869_v25 }
 0x2ea   : > { %v4885_v6 = vpop.eup %4884  ;;  %4902 = vpow2.f32 %v2485_v3  ;;  %v2630_v11 = vadd.f32 %v6364_v27, %v2629_v8  ;;  %v2491_v57 = vmul.f32 1.442695, %v2246_v33  ;;  %v2493_v51 = vmul.f32 1.442695, %v2247_v18 }
 0x2eb   : > { %v6396_v30 = vpop.eup %4886  ;;  %4904 = vpow2.f32 %v2487_v21  ;;  %v2495_v58 = vmul.f32 1.442695, %v2248_v24  ;;  %3057 = vmatprep.mubr.bf16.mxu0 %v2722_v52  ;;  %v2724_v5 = vpack.c.bf16 %v4881_v32, %v6379_v40  ;;  %v2633_v47 = vadd.f32 %v4869_v25, %v6370_v60 }
 0x2ec   : > { %v6400_v15 = vpop.eup %4888  ;;  %2631 = vadd.xlane.f32.xlu1 %v2630_v11  ;;  %4906 = vpow2.f32 %v2489_v7  ;;  %v2721_v4 = vpack.c.bf16 %v4875_v55, %v6370_v60  ;;  %v2723_v28 = vpack.c.bf16 %v4879_v17, %v6372_v36  ;;  %v2249_v27 = vsub.f32 %v6067_v39, %v2123_v41 }
 0x2ed   : > { %v4891_v37 = vpop.eup %4890  ;;  %4908 = vpow2.f32 %v2491_v57  ;;  %3218 = vmatprep.mubr.bf16.mxu1 %v2724_v5  ;;  %v2634_v12 = vadd.f32 %v6372_v36, %v2633_v47  ;;  %v2250_v14 = vsub.f32 %v6812_v2, %v2123_v41  ;;  %v2251_v53 = vsub.f32 %v6813_v31, %v2123_v41 }
 0x2ee   : > { %v4893_v25 = vpop.eup %4892  ;;  %4910 = vpow2.f32 %v2493_v51  ;;  %3058 = vmatmul.mubr.bf16.gmra.mrb[112].mxu0 %v2721_v4  ;;  %3219 = vmatmul.mubr.bf16.gmra.mrb[112].mxu1 %v2723_v28  ;;  %v2252_v60 = vsub.f32 %v6076_v49, %v2123_v41  ;;  %v2497_v16 = vmul.f32 1.442695, %v2249_v27  ;;  %v2638_v26 = vadd.f32 %v4877_v19, %v4875_v55 }
 0x2ef   : > { %v4895_v1 = vpop.eup %4894  ;;  %4912 = vpow2.f32 %v2495_v58  ;;  %v2635_v39 = vadd.f32 %v6379_v40, %v2634_v12  ;;  %v2499_v22 = vmul.f32 1.442695, %v2250_v14  ;;  %v2501_v34 = vmul.f32 1.442695, %v2251_v53 }
 0x2f0   : > { %v4897_v36 = vpop.eup %4896  ;;  %4914 = vpow2.f32 %v2497_v16  ;;  %v2503_v48 = vmul.f32 1.442695, %v2252_v60  ;;  %v2639_v38 = vadd.f32 %v4879_v17, %v2638_v26  ;;  %v2253_v42 = vsub.f32 %v6814_v10, %v2128_v46 }
 0x2f1   : > { %2636 = vadd.xlane.f32.xlu0 %v2635_v39  ;;  %4916 = vpow2.f32 %v2499_v22  ;;  %v2254_v62 = vsub.f32 %v6815_v59, %v2128_v46  ;;  %v2255_v49 = vsub.f32 %v6816_v13, %v2128_v46  ;;  %v2256_v55 = vsub.f32 %v6088_v56, %v2128_v46 }
 0x2f2   : > { %v4899_v23 = vpop.eup %4898  ;;  %4918 = vpow2.f32 %v2501_v34  ;;  %v2640_v43 = vadd.f32 %v4881_v32, %v2639_v38  ;;  %v2505_v40 = vmul.f32 1.442695, %v2253_v42  ;;  %v2726_v50 = vpack.c.bf16 %v4893_v25, %v4885_v6 }
 0x2f3   : > { %v4901_v19 = vpop.eup %4900  ;;  %4920 = vpow2.f32 %v2503_v48  ;;  %v2507_v54 = vmul.f32 1.442695, %v2254_v62  ;;  %v2509_v44 = vmul.f32 1.442695, %v2255_v49  ;;  %v2511_v0 = vmul.f32 1.442695, %v2256_v55 }
 0x2f4   : > { %v4903_v17 = vpop.eup %4902  ;;  %2641 = vadd.xlane.f32.xlu1 %v2640_v43  ;;  %4922 = vpow2.f32 %v2505_v40  ;;  %3065 = vmatprep.mubr.bf16.mxu0 %v2726_v50  ;;  %v2728_v9 = vpack.c.bf16 %v4897_v36, %v6400_v15  ;;  %v2643_v3 = vadd.f32 %v4885_v6, %v6392_v35  ;;  %v2725_v56 = vpack.c.bf16 %v4891_v37, %v6392_v35 }
 0x2f5   : > { %v4905_v21 = vpop.eup %4904  ;;  %4924 = vpow2.f32 %v2507_v54  ;;  %v2727_v29 = vpack.c.bf16 %v4895_v1, %v6396_v30  ;;  %v2648_v45 = vadd.f32 %v4893_v25, %v4891_v37  ;;  %v2653_v32 = vadd.f32 %v4901_v19, %v4899_v23 }
 0x2f6   : > { %v4907_v8 = vpop.eup %4906  ;;  %4926 = vpow2.f32 %v2509_v44  ;;  %3226 = vmatprep.mubr.bf16.mxu1 %v2728_v9  ;;  %v2644_v61 = vadd.f32 %v6396_v30, %v2643_v3  ;;  %3066 = vmatmul.mubr.bf16.gmra.mrb[116].mxu0 %v2725_v56 }
 0x2f7   : > { %v4909_v33 = vpop.eup %4908  ;;  %4928 = vpow2.f32 %v2511_v0  ;;  %3227 = vmatmul.mubr.bf16.gmra.mrb[116].mxu1 %v2727_v29  ;;  %v2649_v20 = vadd.f32 %v4895_v1, %v2648_v45  ;;  %v2654_v18 = vadd.f32 %v4903_v17, %v2653_v32  ;;  %v2729_v5 = vpack.c.bf16 %v4907_v8, %v4899_v23 }
 0x2f8   : > { %v4911_v63 = vpop.eup %4910  ;;  %v2645_v35 = vadd.f32 %v6400_v15, %v2644_v61  ;;  %v2730_v24 = vpack.c.bf16 %v4909_v33, %v4901_v19  ;;  %v2658_v7 = vadd.f32 %v4909_v33, %v4907_v8 }
 0x2f9   : > { %v4913_v52 = vpop.eup %4912  ;;  %v2650_v41 = vadd.f32 %v4897_v36, %v2649_v20  ;;  %v2655_v57 = vadd.f32 %v4905_v21, %v2654_v18  ;;  %v2731_v27 = vpack.c.bf16 %v4911_v63, %v4903_v17 }
 0x2fa   : > { %v4915_v6 = vpop.eup %4914  ;;  %2646 = vadd.xlane.f32.xlu0 %v2645_v35  ;;  %3073 = vmatprep.mubr.bf16.mxu0 %v2730_v24  ;;  %v2732_v11 = vpack.c.bf16 %v4913_v52, %v4905_v21  ;;  %v2659_v51 = vadd.f32 %v4911_v63, %v2658_v7 }
 0x2fb   : > { %v4917_v30 = vpop.eup %4916  ;;  %2651 = vadd.xlane.f32.xlu1 %v2650_v41 }
 0x2fc   : > { %v4919_v58 = vpop.eup %4918  ;;  %3234 = vmatprep.mubr.bf16.mxu1 %v2732_v11  ;;  %v2660_v47 = vadd.f32 %v4913_v52, %v2659_v51  ;;  %v2663_v4 = vadd.f32 %v4917_v30, %v4915_v6 }
 0x2fd   : > { %v4921_v28 = vpop.eup %4920 }
 0x2fe   : > { %v4923_v15 = vpop.eup %4922  ;;  %2656 = vadd.xlane.f32.xlu0 %v2655_v57  ;;  %3074 = vmatmul.mubr.bf16.gmra.mrb[120].mxu0 %v2729_v5  ;;  %v2664_v37 = vadd.f32 %v4919_v58, %v2663_v4 }
 0x2ff   : > { %v4925_v12 = vpop.eup %4924  ;;  %3235 = vmatmul.mubr.bf16.gmra.mrb[120].mxu1 %v2731_v27  ;;  %2661 = vadd.xlane.f32.xlu1 %v2660_v47  ;;  %v2733_v16 = vpack.c.bf16 %v4923_v15, %v4915_v6 }
 0x300   : > { %v4927_v2 = vpop.eup %4926  ;;  %v2734_v14 = vpack.c.bf16 %v4925_v12, %v4917_v30  ;;  %v2665_v31 = vadd.f32 %v4921_v28, %v2664_v37  ;;  %v2668_v53 = vadd.f32 %v4925_v12, %v4923_v15 }
 0x301   : > { %v4929_v46 = vpop.eup %4928  ;;  %v2735_v1 = vpack.c.bf16 %v4927_v2, %v4919_v58 }
 0x302   : > { %3081 = vmatprep.mubr.bf16.mxu0 %v2734_v14  ;;  %v2736_v25 = vpack.c.bf16 %v4929_v46, %v4921_v28  ;;  %2666 = vadd.xlane.f32.xlu0 %v2665_v31  ;;  %v2669_v60 = vadd.f32 %v4927_v2, %v2668_v53 }
 0x304   : > { %3242 = vmatprep.mubr.bf16.mxu1 %v2736_v25  ;;  %v2670_v26 = vadd.f32 %v4929_v46, %v2669_v60 }
 0x306   : > { %3082 = vmatmul.mubr.bf16.gmra.mrb[124].mxu0 %v2733_v16  ;;  %2671 = vadd.xlane.f32.xlu1 %v2670_v26 }
 0x307   : > { %3243 = vmatmul.mubr.bf16.gmra.mrb[124].mxu1 %v2735_v1 }
 0x315   : > { %v2517_v39 = vpop.xlane.xlu0 %2516 }
 0x316   : > { %4930 = vrcp.f32 %v2517_v39 }
 0x31c   : > { %v2522_v22 = vpop.xlane.xlu1 %2521 }
 0x31d   : > { %4932 = vrcp.f32 %v2522_v22 }
 0x31f   : > { %v2527_v34 = vpop.xlane.xlu0 %2526 }
 0x320   : > { %4934 = vrcp.f32 %v2527_v34  ;;  %v4931_v19 = vpop.eup %4930 }
 0x327   : > { %v2532_v48 = vpop.xlane.xlu1 %2531  ;;  %v4933_v17 = vpop.eup %4932 }
 0x328   : > { %4936 = vrcp.f32 %v2532_v48 }
 0x329   : > { %v2537_v54 = vpop.xlane.xlu0 %2536 }
 0x32a   : > { %4938 = vrcp.f32 %v2537_v54  ;;  %v4935_v52 = vpop.eup %4934 }
 0x32d   : > { %v2542_v56 = vpop.xlane.xlu1 %2541 }
 0x32e   : > { %4940 = vrcp.f32 %v2542_v56 }
 0x332   : > { %v4937_v6 = vpop.eup %4936  ;;  %v2547_v11 = vpop.xlane.xlu0 %2546 }
 0x333   : > { %4942 = vrcp.f32 %v2547_v11 }
 0x334   : > { %v4939_v25 = vpop.eup %4938 }
 0x335   : > { %v2552_v47 = vpop.xlane.xlu1 %2551 }
 0x336   : > { %4944 = vrcp.f32 %v2552_v47 }
 0x338   : > { %v4941_v16 = vpop.eup %4940 }
 0x33a   : > { %v2557_v26 = vpop.xlane.xlu0 %2556 }
 0x33b   : > { %4946 = vrcp.f32 %v2557_v26 }
 0x33d   : > { %v2562_v48 = vpop.xlane.xlu1 %2561 }
 0x33e   : > { %4948 = vrcp.f32 %v2562_v48 }
 0x35b   : > { %v4280_v36 = vpop.f32.mrb[64].mxu0 }
 0x35c   : > { %v4392_v38 = vpop.f32.mrb[64].mxu1  ;;  %v4281_v42 = vpop.f32.mrb[65].mxu0 }
 0x35d   : > { %v4393_v10 = vpop.f32.mrb[65].mxu1  ;;  %v4282_v62 = vadd.f32 %v4281_v42, %v4280_v36  ;;  %v4283_v13 = vpop.f32.mrb[66].mxu0 }
 0x35e   : > { %v4394_v59 = vadd.f32 %v4393_v10, %v4392_v38  ;;  %v4395_v49 = vpop.f32.mrb[66].mxu1  ;;  %v4284_v55 = vpop.f32.mrb[67].mxu0 }
 0x35f   : > { %v4285_v43 = vadd.f32 %v4284_v55, %v4283_v13  ;;  %v4396_v40 = vpop.f32.mrb[67].mxu1 }
 0x360   : > { %v3125_v23 = vadd.f32 %v4394_v59, %v4282_v62  ;;  %v4397_v50 = vadd.f32 %v4396_v40, %v4395_v49 }
 0x362   : > { %v3128_v44 = vadd.f32 %v4397_v50, %v4285_v43  ;;  %v3283_v21 = vmul.f32 %v4931_v19, %v3125_v23  ;;  %v4943_v50 = vpop.eup %4942 }
 0x363   : > { %v4286_v0 = vpop.f32.mrb[68].mxu0  ;;  %v4945_v54 = vpop.eup %4944 }
 0x364   : > { %v4398_v9 = vpop.f32.mrb[68].mxu1  ;;  %v4287_v3 = vpop.f32.mrb[69].mxu0  ;;  %v3284_v29 = vmul.f32 %v4933_v17, %v3128_v44 }
 0x365   : > { %v4399_v45 = vpop.f32.mrb[69].mxu1  ;;  %v4288_v32 = vadd.f32 %v4287_v3, %v4286_v0  ;;  %v4289_v61 = vpop.f32.mrb[70].mxu0 }
 0x366   : > { %v4400_v8 = vadd.f32 %v4399_v45, %v4398_v9  ;;  %v4401_v33 = vpop.f32.mrb[70].mxu1  ;;  %v4076_v20 = vpack.c.bf16 %v3284_v29, %v3283_v21  ;;  %v4290_v18 = vpop.f32.mrb[71].mxu0 }
 0x367   : > { %v4402_v63 = vpop.f32.mrb[71].mxu1  ;;  %v4291_v24 = vadd.f32 %v4290_v18, %v4289_v61  ;;  %v2567_v3 = vpop.xlane.xlu0 %2566 }
 0x368   : > { %v3133_v35 = vadd.f32 %v4400_v8, %v4288_v32  ;;  %v4403_v7 = vadd.f32 %v4402_v63, %v4401_v33  ;;  %4077 = vst [vmem:[%s6421_s12] sm:$0xff] %v4076_v20   ;;  %v2572_v20 = vpop.xlane.xlu1 %2571  ;;  %4950 = vrcp.f32 %v2567_v3 }
 0x369   : > { %4952 = vrcp.f32 %v2572_v20 }
 0x36a   : > { %v3136_v41 = vadd.f32 %v4403_v7, %v4291_v24  ;;  %v3285_v51 = vmul.f32 %v4935_v52, %v3133_v35  ;;  %v4947_v7 = vpop.eup %4946 }
 0x36b   : > { %v4292_v57 = vpop.f32.mrb[72].mxu0 }
 0x36c   : > { %v3286_v30 = vmul.f32 %v4937_v6, %v3136_v41  ;;  %v4404_v58 = vpop.f32.mrb[72].mxu1  ;;  %v4293_v5 = vpop.f32.mrb[73].mxu0 }
 0x36d   : > { %v4405_v4 = vpop.f32.mrb[73].mxu1  ;;  %v4294_v28 = vadd.f32 %v4293_v5, %v4292_v57  ;;  %v4295_v37 = vpop.f32.mrb[74].mxu0 }
 0x36e   : > { %v4081_v27 = vpack.c.bf16 %v3286_v30, %v3285_v51  ;;  %v4406_v15 = vadd.f32 %v4405_v4, %v4404_v58  ;;  %v4407_v12 = vpop.f32.mrb[74].mxu1  ;;  %v4296_v2 = vpop.f32.mrb[75].mxu0 }
 0x36f   : > { %v4408_v14 = vpop.f32.mrb[75].mxu1  ;;  %v4297_v53 = vadd.f32 %v4296_v2, %v4295_v37  ;;  %v4949_v41 = vpop.eup %4948 }
 0x370   : > { %4153 = vst [vmem:[%s6421_s12 + $0x8] sm:$0xff] %v4081_v27   ;;  %v3141_v31 = vadd.f32 %v4406_v15, %v4294_v28  ;;  %v4409_v46 = vadd.f32 %v4408_v14, %v4407_v12  ;;  %v2577_v58 = vpop.xlane.xlu0 %2576  ;;  %v2582_v4 = vpop.xlane.xlu1 %2581 }
 0x371   : > { %4954 = vrcp.f32 %v2577_v58 }
 0x372   : > { %v3144_v60 = vadd.f32 %v4409_v46, %v4297_v53  ;;  %v3287_v1 = vmul.f32 %v4939_v25, %v3141_v31  ;;  %4956 = vrcp.f32 %v2582_v4  ;;  %v4951_v46 = vpop.eup %4950 }
 0x374   : > { %v3288_v39 = vmul.f32 %v4941_v16, %v3144_v60  ;;  %v4298_v22 = vpop.f32.mrb[76].mxu0  ;;  %v2587_v25 = vpop.xlane.xlu0 %2586 }
 0x375   : > { %v4410_v34 = vpop.f32.mrb[76].mxu1  ;;  %v4299_v36 = vpop.f32.mrb[77].mxu0  ;;  %4958 = vrcp.f32 %v2587_v25 }
 0x376   : > { %v4086_v38 = vpack.c.bf16 %v3288_v39, %v3287_v1  ;;  %v4411_v10 = vpop.f32.mrb[77].mxu1  ;;  %v4300_v42 = vadd.f32 %v4299_v36, %v4298_v22  ;;  %v4301_v62 = vpop.f32.mrb[78].mxu0 }
 0x377   : > { %v4412_v59 = vadd.f32 %v4411_v10, %v4410_v34  ;;  %v4413_v13 = vpop.f32.mrb[78].mxu1  ;;  %v4302_v49 = vpop.f32.mrb[79].mxu0 }
 0x378   : > { %4154 = vst [vmem:[%s6421_s12 + $0x10] sm:$0xff] %v4086_v38   ;;  %v4414_v55 = vpop.f32.mrb[79].mxu1  ;;  %v4303_v43 = vadd.f32 %v4302_v49, %v4301_v62  ;;  %v4953_v16 = vpop.eup %4952 }
 0x379   : > { %v3149_v23 = vadd.f32 %v4412_v59, %v4300_v42  ;;  %v4415_v40 = vadd.f32 %v4414_v55, %v4413_v13  ;;  %v2592_v39 = vpop.xlane.xlu1 %2591 }
 0x37a   : > { %4960 = vrcp.f32 %v2592_v39 }
 0x37b   : > { %v3152_v19 = vadd.f32 %v4415_v40, %v4303_v43  ;;  %v3289_v44 = vmul.f32 %v4943_v50, %v3149_v23  ;;  %v4955_v40 = vpop.eup %4954  ;;  %v2597_v50 = vpop.xlane.xlu0 %2596 }
 0x37c   : > { %4962 = vrcp.f32 %v2597_v50 }
 0x37d   : > { %v3290_v0 = vmul.f32 %v4945_v54, %v3152_v19  ;;  %v4304_v17 = vpop.f32.mrb[80].mxu0  ;;  %v4416_v9 = vpop.f32.mrb[80].mxu1 }
 0x37e   : > { %v4417_v56 = vpop.f32.mrb[81].mxu1  ;;  %v4305_v45 = vpop.f32.mrb[81].mxu0 }
 0x37f   : > { %v4091_v21 = vpack.c.bf16 %v3290_v0, %v3289_v44  ;;  %v4418_v29 = vadd.f32 %v4417_v56, %v4416_v9  ;;  %v4419_v32 = vpop.f32.mrb[82].mxu1  ;;  %v4306_v8 = vadd.f32 %v4305_v45, %v4304_v17  ;;  %v4307_v61 = vpop.f32.mrb[82].mxu0 }
 0x380   : > { %v4420_v33 = vpop.f32.mrb[83].mxu1  ;;  %v4308_v18 = vpop.f32.mrb[83].mxu0 }
 0x381   : > { %4155 = vst [vmem:[%s6421_s12 + $0x18] sm:$0xff] %v4091_v21   ;;  %v4421_v63 = vadd.f32 %v4420_v33, %v4419_v32  ;;  %v3157_v35 = vadd.f32 %v4418_v29, %v4306_v8  ;;  %v4309_v24 = vadd.f32 %v4308_v18, %v4307_v61  ;;  %v4957_v54 = vpop.eup %4956  ;;  %v2602_v44 = vpop.xlane.xlu1 %2601 }
 0x382   : > { %4964 = vrcp.f32 %v2602_v44 }
 0x383   : > { %v3160_v52 = vadd.f32 %v4421_v63, %v4309_v24  ;;  %v3291_v11 = vmul.f32 %v4947_v7, %v3157_v35  ;;  %v4959_v24 = vpop.eup %4958 }
 0x385   : > { %v4310_v6 = vpop.f32.mrb[84].mxu0  ;;  %v3292_v57 = vmul.f32 %v4949_v41, %v3160_v52  ;;  %v4961_v52 = vpop.eup %4960 }
 0x386   : > { %v4422_v51 = vpop.f32.mrb[84].mxu1  ;;  %v4311_v30 = vpop.f32.mrb[85].mxu0 }
 0x387   : > { %v4423_v5 = vpop.f32.mrb[85].mxu1  ;;  %v4312_v47 = vadd.f32 %v4311_v30, %v4310_v6  ;;  %v4096_v28 = vpack.c.bf16 %v3292_v57, %v3291_v11  ;;  %v4313_v15 = vpop.f32.mrb[86].mxu0 }
 0x388   : > { %v4424_v27 = vadd.f32 %v4423_v5, %v4422_v51  ;;  %v4425_v37 = vpop.f32.mrb[86].mxu1  ;;  %v4314_v12 = vpop.f32.mrb[87].mxu0 }
 0x389   : > { %4156 = vst [vmem:[%s6421_s12 + $0x20] sm:$0xff] %v4096_v28   ;;  %v4315_v14 = vadd.f32 %v4314_v12, %v4313_v15  ;;  %v4426_v31 = vpop.f32.mrb[87].mxu1  ;;  %v2607_v41 = vpop.xlane.xlu0 %2606 }
 0x38a   : > { %v3165_v2 = vadd.f32 %v4424_v27, %v4312_v47  ;;  %v4427_v53 = vadd.f32 %v4426_v31, %v4425_v37  ;;  %v2612_v6 = vpop.xlane.xlu1 %2611  ;;  %4966 = vrcp.f32 %v2607_v41 }
 0x38b   : > { %4968 = vrcp.f32 %v2612_v6 }
 0x38c   : > { %v3168_v60 = vadd.f32 %v4427_v53, %v4315_v14  ;;  %v3293_v22 = vmul.f32 %v4951_v46, %v3165_v2  ;;  %v4963_v53 = vpop.eup %4962 }
 0x38d   : > { %v4965_v25 = vpop.eup %4964 }
 0x38e   : > { %v4316_v26 = vpop.f32.mrb[88].mxu0  ;;  %v4428_v1 = vpop.f32.mrb[88].mxu1  ;;  %v3294_v34 = vmul.f32 %v4953_v16, %v3168_v60 }
 0x38f   : > { %v4429_v36 = vpop.f32.mrb[89].mxu1  ;;  %v4317_v38 = vpop.f32.mrb[89].mxu0 }
 0x390   : > { %v4430_v48 = vadd.f32 %v4429_v36, %v4428_v1  ;;  %v4431_v10 = vpop.f32.mrb[90].mxu1  ;;  %v4101_v42 = vpack.c.bf16 %v3294_v34, %v3293_v22  ;;  %v4318_v59 = vadd.f32 %v4317_v38, %v4316_v26  ;;  %v4319_v62 = vpop.f32.mrb[90].mxu0 }
 0x391   : > { %v4432_v13 = vpop.f32.mrb[91].mxu1  ;;  %v4320_v49 = vpop.f32.mrb[91].mxu0 }
 0x392   : > { %v4433_v55 = vadd.f32 %v4432_v13, %v4431_v10  ;;  %4157 = vst [vmem:[%s6421_s12 + $0x28] sm:$0xff] %v4101_v42   ;;  %v3173_v23 = vadd.f32 %v4430_v48, %v4318_v59  ;;  %v4321_v43 = vadd.f32 %v4320_v49, %v4319_v62  ;;  %v2617_v60 = vpop.xlane.xlu0 %2616  ;;  %v2622_v16 = vpop.xlane.xlu1 %2621 }
 0x393   : > { %4970 = vrcp.f32 %v2617_v60 }
 0x394   : > { %v3176_v19 = vadd.f32 %v4433_v55, %v4321_v43  ;;  %v3295_v17 = vmul.f32 %v4955_v40, %v3173_v23  ;;  %4972 = vrcp.f32 %v2622_v16  ;;  %v4967_v43 = vpop.eup %4966 }
 0x395   : > { %v4969_v50 = vpop.eup %4968 }
 0x396   : > { %v4322_v0 = vpop.f32.mrb[92].mxu0  ;;  %v3296_v9 = vmul.f32 %v4957_v54, %v3176_v19  ;;  %v2627_v19 = vpop.xlane.xlu0 %2626 }
 0x397   : > { %v4434_v3 = vpop.f32.mrb[92].mxu1  ;;  %v4323_v56 = vpop.f32.mrb[93].mxu0  ;;  %4974 = vrcp.f32 %v2627_v19 }
 0x398   : > { %v4324_v21 = vadd.f32 %v4323_v56, %v4322_v0  ;;  %v4435_v29 = vpop.f32.mrb[93].mxu1  ;;  %v4325_v45 = vpop.f32.mrb[94].mxu0  ;;  %v4106_v32 = vpack.c.bf16 %v3296_v9, %v3295_v17 }
 0x399   : > { %v4436_v8 = vadd.f32 %v4435_v29, %v4434_v3  ;;  %v4437_v61 = vpop.f32.mrb[94].mxu1  ;;  %v4326_v33 = vpop.f32.mrb[95].mxu0 }
 0x39a   : > { %v4327_v20 = vadd.f32 %v4326_v33, %v4325_v45  ;;  %v4438_v18 = vpop.f32.mrb[95].mxu1  ;;  %4158 = vst [vmem:[%s6421_s12 + $0x30] sm:$0xff] %v4106_v32   ;;  %v2632_v54 = vpop.xlane.xlu1 %2631 }
 0x39b   : > { %v3181_v63 = vadd.f32 %v4436_v8, %v4324_v21  ;;  %v4439_v35 = vadd.f32 %v4438_v18, %v4437_v61  ;;  %4976 = vrcp.f32 %v2632_v54 }
 0x39d   : > { %v3184_v7 = vadd.f32 %v4439_v35, %v4327_v20  ;;  %v3297_v11 = vmul.f32 %v4959_v24, %v3181_v63  ;;  %v4971_v35 = vpop.eup %4970 }
 0x39e   : > { %v2642_v41 = vpop.xlane.xlu1 %2641 }
 0x39f   : > { %v3298_v57 = vmul.f32 %v4961_v52, %v3184_v7  ;;  %v4328_v51 = vpop.f32.mrb[96].mxu0  ;;  %v4440_v30 = vpop.f32.mrb[96].mxu1 }
 0x3a0   : > { %v4329_v58 = vpop.f32.mrb[97].mxu0  ;;  %v4441_v5 = vpop.f32.mrb[97].mxu1 }
 0x3a1   : > { %v4111_v47 = vpack.c.bf16 %v3298_v57, %v3297_v11  ;;  %v4330_v4 = vadd.f32 %v4329_v58, %v4328_v51  ;;  %v4442_v28 = vadd.f32 %v4441_v5, %v4440_v30  ;;  %v4331_v27 = vpop.f32.mrb[98].mxu0  ;;  %v4443_v15 = vpop.f32.mrb[98].mxu1 }
 0x3a2   : > { %v4332_v37 = vpop.f32.mrb[99].mxu0  ;;  %v4444_v12 = vpop.f32.mrb[99].mxu1 }
 0x3a3   : > { %4159 = vst [vmem:[%s6421_s12 + $0x38] sm:$0xff] %v4111_v47   ;;  %v3189_v2 = vadd.f32 %v4442_v28, %v4330_v4  ;;  %v4333_v14 = vadd.f32 %v4332_v37, %v4331_v27  ;;  %v4445_v31 = vadd.f32 %v4444_v12, %v4443_v15  ;;  %v4973_v7 = vpop.eup %4972  ;;  %v2637_v52 = vpop.xlane.xlu0 %2636 }
 0x3a4   : > { %4978 = vrcp.f32 %v2637_v52  ;;  %v2652_v60 = vpop.xlane.xlu1 %2651 }
 0x3a5   : > { %v3192_v46 = vadd.f32 %v4445_v31, %v4333_v14  ;;  %v3299_v26 = vmul.f32 %v4963_v53, %v3189_v2  ;;  %4980 = vrcp.f32 %v2642_v41  ;;  %v4975_v31 = vpop.eup %4974 }
 0x3a7   : > { %v3300_v1 = vmul.f32 %v4965_v25, %v3192_v46  ;;  %v4334_v39 = vpop.f32.mrb[100].mxu0  ;;  %v4977_v46 = vpop.eup %4976 }
 0x3a8   : > { %v4446_v22 = vpop.f32.mrb[100].mxu1  ;;  %v4335_v34 = vpop.f32.mrb[101].mxu0 }
 0x3a9   : > { %v4116_v36 = vpack.c.bf16 %v3300_v1, %v3299_v26  ;;  %v4336_v48 = vadd.f32 %v4335_v34, %v4334_v39  ;;  %v4447_v38 = vpop.f32.mrb[101].mxu1  ;;  %v4337_v10 = vpop.f32.mrb[102].mxu0 }
 0x3aa   : > { %v4448_v42 = vadd.f32 %v4447_v38, %v4446_v22  ;;  %v4449_v59 = vpop.f32.mrb[102].mxu1  ;;  %v4338_v62 = vpop.f32.mrb[103].mxu0 }
 0x3ab   : > { %4160 = vst [vmem:[%s6421_s12 + $0x40] sm:$0xff] %v4116_v36   ;;  %v4339_v13 = vadd.f32 %v4338_v62, %v4337_v10  ;;  %v4450_v49 = vpop.f32.mrb[103].mxu1  ;;  %v2647_v25 = vpop.xlane.xlu0 %2646 }
 0x3ac   : > { %v3197_v55 = vadd.f32 %v4448_v42, %v4336_v48  ;;  %v4451_v23 = vadd.f32 %v4450_v49, %v4449_v59  ;;  %4982 = vrcp.f32 %v2647_v25  ;;  %v2662_v19 = vpop.xlane.xlu1 %2661 }
 0x3ad   : > { %4984 = vrcp.f32 %v2652_v60 }
 0x3ae   : > { %v3200_v40 = vadd.f32 %v4451_v23, %v4339_v13  ;;  %v3301_v44 = vmul.f32 %v4967_v43, %v3197_v55  ;;  %v4979_v23 = vpop.eup %4978 }
 0x3b0   : > { %v3302_v0 = vmul.f32 %v4969_v50, %v3200_v40  ;;  %v4340_v17 = vpop.f32.mrb[104].mxu0  ;;  %v4452_v9 = vpop.f32.mrb[104].mxu1 }
 0x3b1   : > { %v4341_v3 = vpop.f32.mrb[105].mxu0  ;;  %v4453_v56 = vpop.f32.mrb[105].mxu1 }
 0x3b2   : > { %v4121_v21 = vpack.c.bf16 %v3302_v0, %v3301_v44  ;;  %v4342_v29 = vadd.f32 %v4341_v3, %v4340_v17  ;;  %v4454_v45 = vadd.f32 %v4453_v56, %v4452_v9  ;;  %v4343_v32 = vpop.f32.mrb[106].mxu0  ;;  %v4455_v8 = vpop.f32.mrb[106].mxu1 }
 0x3b3   : > { %v4344_v61 = vpop.f32.mrb[107].mxu0  ;;  %v4456_v33 = vpop.f32.mrb[107].mxu1 }
 0x3b4   : > { %4161 = vst [vmem:[%s6421_s12 + $0x48] sm:$0xff] %v4121_v21   ;;  %v3205_v20 = vadd.f32 %v4454_v45, %v4342_v29  ;;  %v4345_v18 = vadd.f32 %v4344_v61, %v4343_v32  ;;  %v4457_v63 = vadd.f32 %v4456_v33, %v4455_v8  ;;  %v4981_v40 = vpop.eup %4980  ;;  %v2657_v50 = vpop.xlane.xlu0 %2656 }
 0x3b5   : > { %4986 = vrcp.f32 %v2657_v50  ;;  %v2672_v52 = vpop.xlane.xlu1 %2671  ;;  %v3504_v50 = vld [vmem:[%s6421_s12] sm:$0xf] (%p5252_p0) }
 0x3b6   : > { %v3208_v24 = vadd.f32 %v4457_v63, %v4345_v18  ;;  %v3303_v6 = vmul.f32 %v4971_v35, %v3205_v20  ;;  %4988 = vrcp.f32 %v2662_v19  ;;  %v4983_v63 = vpop.eup %4982  ;;  %v3506_v19 = vld [vmem:[%s6421_s12 + $0x4] sm:$0xf] (%p5252_p0)  ;;  %3505 = vst [vmem:[%s6457_s20] sm:$0xf] (%p5252_p0), %v3504_v50 }
 0x3b7   : > { %3507 = vst [vmem:[%s6457_s20 + $0x8] sm:$0xf] (%p5252_p0), %v3506_v19 }
 0x3b8   : > { %v3304_v11 = vmul.f32 %v4973_v7, %v3208_v24  ;;  %v4346_v57 = vpop.f32.mrb[108].mxu0  ;;  %v2667_v35 = vpop.xlane.xlu0 %2666 }
 0x3b9   : > { %v4458_v51 = vpop.f32.mrb[108].mxu1  ;;  %v4347_v30 = vpop.f32.mrb[109].mxu0  ;;  %4990 = vrcp.f32 %v2667_v35 }
 0x3ba   : > { %v4126_v58 = vpack.c.bf16 %v3304_v11, %v3303_v6  ;;  %v4348_v5 = vadd.f32 %v4347_v30, %v4346_v57  ;;  %v4459_v47 = vpop.f32.mrb[109].mxu1  ;;  %v4349_v4 = vpop.f32.mrb[110].mxu0  ;;  %4992 = vrcp.f32 %v2672_v52 }
 0x3bb   : > { %v4460_v28 = vadd.f32 %v4459_v47, %v4458_v51  ;;  %v4461_v27 = vpop.f32.mrb[110].mxu1  ;;  %v4350_v15 = vpop.f32.mrb[111].mxu0  ;;  %v3542_v35 = vld [vmem:[%s6421_s12 + $0x4c] sm:$0xf] (%p5252_p0) }
 0x3bc   : > { %4162 = vst [vmem:[%s6421_s12 + $0x50] sm:$0xff] %v4126_v58   ;;  %v4351_v37 = vadd.f32 %v4350_v15, %v4349_v4  ;;  %v4462_v12 = vpop.f32.mrb[111].mxu1  ;;  %v4985_v7 = vpop.eup %4984  ;;  %3543 = vst [vmem:[%s6457_s20 + $0x98] sm:$0xf] (%p5252_p0), %v3542_v35 }
 0x3bd   : > { %v3213_v2 = vadd.f32 %v4460_v28, %v4348_v5  ;;  %v4463_v14 = vadd.f32 %v4462_v12, %v4461_v27 }
 0x3bf   : > { %v3216_v53 = vadd.f32 %v4463_v14, %v4351_v37  ;;  %v3305_v16 = vmul.f32 %v4975_v31, %v3213_v2  ;;  %v4987_v14 = vpop.eup %4986 }
 0x3c1   : > { %v3306_v26 = vmul.f32 %v4977_v46, %v3216_v53  ;;  %v4352_v1 = vpop.f32.mrb[112].mxu0  ;;  %v4464_v39 = vpop.f32.mrb[112].mxu1 }
 0x3c2   : > { %v4353_v22 = vpop.f32.mrb[113].mxu0  ;;  %v4465_v34 = vpop.f32.mrb[113].mxu1 }
 0x3c3   : > { %v4131_v36 = vpack.c.bf16 %v3306_v26, %v3305_v16  ;;  %v4354_v48 = vadd.f32 %v4353_v22, %v4352_v1  ;;  %v4466_v38 = vadd.f32 %v4465_v34, %v4464_v39  ;;  %v4355_v10 = vpop.f32.mrb[114].mxu0  ;;  %v4467_v42 = vpop.f32.mrb[114].mxu1 }
 0x3c4   : > { %v4356_v59 = vpop.f32.mrb[115].mxu0  ;;  %v4468_v62 = vpop.f32.mrb[115].mxu1 }
 0x3c5   : > { %4163 = vst [vmem:[%s6421_s12 + $0x58] sm:$0xff] %v4131_v36   ;;  %v3221_v13 = vadd.f32 %v4466_v38, %v4354_v48  ;;  %v4357_v49 = vadd.f32 %v4356_v59, %v4355_v10  ;;  %v4469_v55 = vadd.f32 %v4468_v62, %v4467_v42  ;;  %v4989_v53 = vpop.eup %4988 }
 0x3c7   : > { %v3224_v43 = vadd.f32 %v4469_v55, %v4357_v49  ;;  %v3307_v54 = vmul.f32 %v4979_v23, %v3221_v13  ;;  %v4991_v13 = vpop.eup %4990 }
 0x3c8   : > { %v4993_v55 = vpop.eup %4992 }
 0x3c9   : > { %v3308_v44 = vmul.f32 %v4981_v40, %v3224_v43  ;;  %v4358_v0 = vpop.f32.mrb[116].mxu0 }
 0x3ca   : > { %v4470_v17 = vpop.f32.mrb[116].mxu1  ;;  %v4359_v9 = vpop.f32.mrb[117].mxu0 }
 0x3cb   : > { %v4136_v3 = vpack.c.bf16 %v3308_v44, %v3307_v54  ;;  %v4360_v56 = vadd.f32 %v4359_v9, %v4358_v0  ;;  %v4471_v21 = vpop.f32.mrb[117].mxu1  ;;  %v4361_v29 = vpop.f32.mrb[118].mxu0  ;;  %v3508_v54 = vld [vmem:[%s6421_s12 + $0x8] sm:$0xf] (%p5252_p0)  ;;  %v3510_v44 = vld [vmem:[%s6421_s12 + $0xc] sm:$0xf] (%p5252_p0) }
 0x3cc   : > { %v4472_v45 = vadd.f32 %v4471_v21, %v4470_v17  ;;  %v4473_v32 = vpop.f32.mrb[118].mxu1  ;;  %v4362_v8 = vpop.f32.mrb[119].mxu0  ;;  %v3512_v0 = vld [vmem:[%s6421_s12 + $0x10] sm:$0xf] (%p5252_p0)  ;;  %v3514_v17 = vld [vmem:[%s6421_s12 + $0x14] sm:$0xf] (%p5252_p0) }
 0x3cd   : > { %4164 = vst [vmem:[%s6421_s12 + $0x60] sm:$0xff] %v4136_v3   ;;  %v4363_v61 = vadd.f32 %v4362_v8, %v4361_v29  ;;  %v4474_v33 = vpop.f32.mrb[119].mxu1  ;;  %v3516_v9 = vld [vmem:[%s6421_s12 + $0x18] sm:$0xf] (%p5252_p0)  ;;  %v3518_v3 = vld [vmem:[%s6421_s12 + $0x1c] sm:$0xf] (%p5252_p0) }
 0x3ce   : > { %v3229_v20 = vadd.f32 %v4472_v45, %v4360_v56  ;;  %v4475_v18 = vadd.f32 %v4474_v33, %v4473_v32  ;;  %v3520_v56 = vld [vmem:[%s6421_s12 + $0x20] sm:$0xf] (%p5252_p0)  ;;  %v3522_v21 = vld [vmem:[%s6421_s12 + $0x24] sm:$0xf] (%p5252_p0)  ;;  %v3524_v29 = vld [vmem:[%s6421_s12 + $0x28] sm:$0xf] (%p5252_p0) }
 0x3cf   : > { %v3526_v45 = vld [vmem:[%s6421_s12 + $0x2c] sm:$0xf] (%p5252_p0)  ;;  %v3528_v32 = vld [vmem:[%s6421_s12 + $0x30] sm:$0xf] (%p5252_p0)  ;;  %3509 = vst [vmem:[%s6457_s20 + $0x10] sm:$0xf] (%p5252_p0), %v3508_v54 }
 0x3d0   : > { %v3232_v24 = vadd.f32 %v4475_v18, %v4363_v61  ;;  %v3309_v6 = vmul.f32 %v4983_v63, %v3229_v20  ;;  %3511 = vst [vmem:[%s6457_s20 + $0x18] sm:$0xf] (%p5252_p0), %v3510_v44  ;;  %3513 = vst [vmem:[%s6457_s20 + $0x20] sm:$0xf] (%p5252_p0), %v3512_v0  ;;  %v3530_v8 = vld [vmem:[%s6421_s12 + $0x34] sm:$0xf] (%p5252_p0) }
 0x3d1   : > { %v4364_v41 = vpop.f32.mrb[120].mxu0  ;;  %3515 = vst [vmem:[%s6457_s20 + $0x28] sm:$0xf] (%p5252_p0), %v3514_v17  ;;  %3517 = vst [vmem:[%s6457_s20 + $0x30] sm:$0xf] (%p5252_p0), %v3516_v9 }
 0x3d2   : > { %v3310_v11 = vmul.f32 %v4985_v7, %v3232_v24  ;;  %v4476_v57 = vpop.f32.mrb[120].mxu1  ;;  %v4365_v51 = vpop.f32.mrb[121].mxu0  ;;  %3519 = vst [vmem:[%s6457_s20 + $0x38] sm:$0xf] (%p5252_p0), %v3518_v3  ;;  %3521 = vst [vmem:[%s6457_s20 + $0x40] sm:$0xf] (%p5252_p0), %v3520_v56 }
 0x3d3   : > { %v4366_v30 = vadd.f32 %v4365_v51, %v4364_v41  ;;  %v4477_v58 = vpop.f32.mrb[121].mxu1  ;;  %v4367_v5 = vpop.f32.mrb[122].mxu0  ;;  %3523 = vst [vmem:[%s6457_s20 + $0x48] sm:$0xf] (%p5252_p0), %v3522_v21  ;;  %3525 = vst [vmem:[%s6457_s20 + $0x50] sm:$0xf] (%p5252_p0), %v3524_v29 }
 0x3d4   : > { %v4141_v47 = vpack.c.bf16 %v3310_v11, %v3309_v6  ;;  %v4478_v4 = vadd.f32 %v4477_v58, %v4476_v57  ;;  %v4479_v28 = vpop.f32.mrb[122].mxu1  ;;  %v4368_v27 = vpop.f32.mrb[123].mxu0  ;;  %3527 = vst [vmem:[%s6457_s20 + $0x58] sm:$0xf] (%p5252_p0), %v3526_v45  ;;  %3529 = vst [vmem:[%s6457_s20 + $0x60] sm:$0xf] (%p5252_p0), %v3528_v32 }
 0x3d5   : > { %v4369_v15 = vadd.f32 %v4368_v27, %v4367_v5  ;;  %v4480_v37 = vpop.f32.mrb[123].mxu1  ;;  %v3532_v61 = vld [vmem:[%s6421_s12 + $0x38] sm:$0xf] (%p5252_p0)  ;;  %v3534_v33 = vld [vmem:[%s6421_s12 + $0x3c] sm:$0xf] (%p5252_p0) }
 0x3d6   : > { %4165 = vst [vmem:[%s6421_s12 + $0x68] sm:$0xff] %v4141_v47   ;;  %v3237_v12 = vadd.f32 %v4478_v4, %v4366_v30  ;;  %v4481_v2 = vadd.f32 %v4480_v37, %v4479_v28  ;;  %3531 = vst [vmem:[%s6457_s20 + $0x68] sm:$0xf] (%p5252_p0), %v3530_v8  ;;  %v3536_v20 = vld [vmem:[%s6421_s12 + $0x40] sm:$0xf] (%p5252_p0) }
 0x3d7   : > { %3533 = vst [vmem:[%s6457_s20 + $0x70] sm:$0xf] (%p5252_p0), %v3532_v61  ;;  %3535 = vst [vmem:[%s6457_s20 + $0x78] sm:$0xf] (%p5252_p0), %v3534_v33  ;;  %v3538_v18 = vld [vmem:[%s6421_s12 + $0x44] sm:$0xf] (%p5252_p0) }
 0x3d8   : > { %v3240_v31 = vadd.f32 %v4481_v2, %v4369_v15  ;;  %v3311_v25 = vmul.f32 %v4987_v14, %v3237_v12  ;;  %v3540_v63 = vld [vmem:[%s6421_s12 + $0x48] sm:$0xf] (%p5252_p0)  ;;  %3537 = vst [vmem:[%s6457_s20 + $0x80] sm:$0xf] (%p5252_p0), %v3536_v20  ;;  %3539 = vst [vmem:[%s6457_s20 + $0x88] sm:$0xf] (%p5252_p0), %v3538_v18 }
 0x3d9   : > { %v4370_v46 = vpop.f32.mrb[124].mxu0  ;;  %3541 = vst [vmem:[%s6457_s20 + $0x90] sm:$0xf] (%p5252_p0), %v3540_v63  ;;  %v3544_v24 = vld [vmem:[%s6421_s12 + $0x50] sm:$0xf] (%p5252_p0) }
 0x3da   : > { %v3312_v60 = vmul.f32 %v4989_v53, %v3240_v31  ;;  %v4482_v16 = vpop.f32.mrb[124].mxu1  ;;  %v4371_v26 = vpop.f32.mrb[125].mxu0  ;;  %v3546_v7 = vld [vmem:[%s6421_s12 + $0x54] sm:$0xf] (%p5252_p0)  ;;  %3545 = vst [vmem:[%s6457_s20 + $0xa0] sm:$0xf] (%p5252_p0), %v3544_v24 }
 0x3db   : > { %v4372_v1 = vadd.f32 %v4371_v26, %v4370_v46  ;;  %v4483_v39 = vpop.f32.mrb[125].mxu1  ;;  %v4373_v22 = vpop.f32.mrb[126].mxu0  ;;  %3547 = vst [vmem:[%s6457_s20 + $0xa8] sm:$0xf] (%p5252_p0), %v3546_v7  ;;  %v3548_v52 = vld [vmem:[%s6421_s12 + $0x58] sm:$0xf] (%p5252_p0) }
 0x3dc   : > { %v4146_v34 = vpack.c.bf16 %v3312_v60, %v3311_v25  ;;  %v4484_v36 = vadd.f32 %v4483_v39, %v4482_v16  ;;  %v4485_v48 = vpop.f32.mrb[126].mxu1  ;;  %v4374_v38 = vpop.f32.mrb[127].mxu0  ;;  %v3550_v41 = vld [vmem:[%s6421_s12 + $0x5c] sm:$0xf] (%p5252_p0)  ;;  %v3552_v6 = vld [vmem:[%s6421_s12 + $0x60] sm:$0xf] (%p5252_p0) }
 0x3dd   : > { %v4375_v10 = vadd.f32 %v4374_v38, %v4373_v22  ;;  %v4486_v42 = vpop.f32.mrb[127].mxu1  ;;  %3549 = vst [vmem:[%s6457_s20 + $0xb0] sm:$0xf] (%p5252_p0), %v3548_v52  ;;  %3551 = vst [vmem:[%s6457_s20 + $0xb8] sm:$0xf] (%p5252_p0), %v3550_v41 }
 0x3de   : > { %4166 = vst [vmem:[%s6421_s12 + $0x70] sm:$0xff] %v4146_v34   ;;  %v3245_v59 = vadd.f32 %v4484_v36, %v4372_v1  ;;  %v4487_v62 = vadd.f32 %v4486_v42, %v4485_v48  ;;  %3553 = vst [vmem:[%s6457_s20 + $0xc0] sm:$0xf] (%p5252_p0), %v3552_v6  ;;  %v3554_v11 = vld [vmem:[%s6421_s12 + $0x64] sm:$0xf] (%p5252_p0) }
 0x3df   : > { %v3556_v57 = vld [vmem:[%s6421_s12 + $0x68] sm:$0xf] (%p5252_p0)  ;;  %v3558_v51 = vld [vmem:[%s6421_s12 + $0x6c] sm:$0xf] (%p5252_p0)  ;;  %3555 = vst [vmem:[%s6457_s20 + $0xc8] sm:$0xf] (%p5252_p0), %v3554_v11 }
 0x3e0   : > { %v3248_v49 = vadd.f32 %v4487_v62, %v4375_v10  ;;  %v3313_v23 = vmul.f32 %v4991_v13, %v3245_v59  ;;  %3481 = sbr.rel (!%p5252_p0) target bundleno = 1007 (0x3ef), region = 159  ;;  %3557 = vst [vmem:[%s6457_s20 + $0xd0] sm:$0xf] (%p5252_p0), %v3556_v57  ;;  %3559 = vst [vmem:[%s6457_s20 + $0xd8] sm:$0xf] (%p5252_p0), %v3558_v51 }
 0x3e2   : > { %v3314_v43 = vmul.f32 %v4993_v55, %v3248_v49 }
 0x3e4   : > { %v4151_v40 = vpack.c.bf16 %v3314_v43, %v3313_v23 }
 0x3e5   : > { %v3560_v30 = vld [vmem:[%s6421_s12 + $0x70] sm:$0xf] (%p5252_p0)  ;;  %v3562_v58 = vld [vmem:[%s6421_s12 + $0x74] sm:$0xf] (%p5252_p0) }
 0x3e6   : > { %4167 = vst [vmem:[%s6421_s12 + $0x78] sm:$0xff] %v4151_v40   ;;  %3561 = vst [vmem:[%s6457_s20 + $0xe0] sm:$0xf] (%p5252_p0), %v3560_v30 }
 0x3e7   : > { %3563 = vst [vmem:[%s6457_s20 + $0xe8] sm:$0xf] %v3562_v58 }
 0x3ed   : > { %v3564_v5 = vld [vmem:[%s6421_s12 + $0x78] sm:$0xf]  ;;  %v3566_v47 = vld [vmem:[%s6421_s12 + $0x7c] sm:$0xf] }
 0x3ee   : > { %3565 = vst [vmem:[%s6457_s20 + $0xf0] sm:$0xf] %v3564_v5  ;;  %3567 = vst [vmem:[%s6457_s20 + $0xf8] sm:$0xf] %v3566_v47 }
 0x3ef PF: > { %s13_s24 = sadd.s32 1, %s5096_s24   ;;  %s6822_s10 = sld [smem:[#allocation10_spill]] }
 0x3f0   : > { %p6514_p5 = scmp.ge.s32.totalorder %s13_s24, 10   ;;  %s6823_s28 = sld [smem:[#allocation11_spill]] }
 0x3f1   : > { %s6824_s29 = sld [smem:[#allocation12_spill]]  ;;  %s6825_s12 = smov %s5052_s13 }
 0x3f2   : > { %s6826_s13 = smov %s5241_s27  ;;  %s6827_s14 = smov %s5060_s15 }
 0x3f3   : > { %s6828_s15 = smov %s5228_s19  ;;  %s6829_s16 = smov %s5068_s17 }
 0x3f4   : > { %s6830_s17 = smov %s5233_s18  ;;  %s6831_s18 = smov %s5084_s21 }
 0x3f5   : > { %s6832_s19 = smov %s5088_s22  ;;  %s6833_s20 = smov %s5092_s23 }
 0x3f6   : > { %s6834_s21 = smov %s6822_s10  ;;  %s6835_s22 = smov %s6823_s28 }
 0x3f7   : > { %s6836_s23 = smov %s6824_s29  ;;  %12 = sbr.rel (!%p6514_p5) target bundleno = 10 (0xa), region = 247 }

// kernel: _lambda_.14
= control target key start
LH: loop header
LB: loop body
LE: loop exit
PB: predicated region body
PF: predicated region fallthrough
CT: control target
= control target key end

     0   :  { %s1513_s12 = smov 0   ;;  %s1515_s13 = smov 0   ;;  %s1834_s0 = inlined_call_operand.vmem [shape: bf16[1024,256], index: 0, kind: input, shape index: {}]   ;;  %s1835_s1 = inlined_call_operand.vmem [shape: bf16[256,128], index: 1, kind: input, shape index: {}]   ;;  %s1836_s2 = inlined_call_operand.vmem [shape: f32[1,128], index: 2, kind: input, shape index: {}]   ;;  %s1837_s3 = inlined_call_operand.vmem [shape: f32[1024,128], index: 3, kind: output, shape index: {}]  }
   0x1   :  { %s1517_s14 = smov 0  }
   0x2 LB: > { %s25_s15 = sadd.s32 1, %s1486_s13  ;;  %p1209_p0 = scmp.ge.s32.totalorder %s1490_s14, 1  ;;  %s1490_s14 = sphi %s1517_s14, %s13_s14   ;;  %s1486_s13 = sphi %s1515_s13, %s1839_s13   ;;  %s1482_s12 = sphi %s1513_s12, %s1838_s12  }
   0x3   : > { %p27_p1 = scmp.ge.s32.totalorder %s25_s15, 2  ;;  %p170_p2 = scmp.lt.s32.totalorder %s1490_s14, 3 }
   0x5   : > { %s1841_s15 = smov (%p27_p1, %s25_s15), 0  ;;  %p171_p3 = pnand %p1209_p0, %p170_p2 }
   0x6   : > { %v1356_v0 = vld [vmem:[%s1835_s1] sm:$0xff] (!%p171_p3)   ;;  %v1492_v1 = vmov (!%p171_p3), 0   ;;  %s1210_s18 = sshll.u32 (!%p171_p3), %s1482_s12, 6  ;;  %v1357_v2 = vld [vmem:[%s1835_s1 + $0x8] sm:$0xff] (!%p171_p3)   ;;  %v1358_v3 = vld [vmem:[%s1835_s1 + $0x10] sm:$0xff] (!%p171_p3)  }
   0x7   : > { %174 = sbr.rel (%p171_p3) target bundleno = 408 (0x198), region = 32  ;;  %748 = vmatprep.subr.bf16.mxu0 (!%p171_p3), %v1492_v1  ;;  %1299 = vmatprep.subr.bf16.mxu1 (!%p171_p3), %v1492_v1  ;;  %p206_p4 = scmp.lt.s32.totalorder (!%p171_p3), %s1210_s18, 127  ;;  %v1359_v4 = vld [vmem:[%s1835_s1 + $0x18] sm:$0xff] (!%p171_p3)   ;;  %v1360_v5 = vld [vmem:[%s1835_s1 + $0x20] sm:$0xff] (!%p171_p3)   ;;  %v1361_v7 = vld [vmem:[%s1835_s1 + $0x28] sm:$0xff] (!%p171_p3)  }
   0x8   : > { %749 = vmatpush1.bf16.msra.mxu0 (!%p171_p3), %v1356_v0  ;;  %1315 = vmatpush1.bf16.msra.mxu1 (!%p171_p3), %v1356_v0  ;;  %v1362_v9 = vld [vmem:[%s1835_s1 + $0x30] sm:$0xff] (!%p171_p3)   ;;  %v1363_v10 = vld [vmem:[%s1835_s1 + $0x38] sm:$0xff] (!%p171_p3)   ;;  %v1364_v11 = vld [vmem:[%s1835_s1 + $0x40] sm:$0xff] (!%p171_p3)  }
   0x9   : > { %750 = vmatprep.subr.bf16.mxu0 (!%p171_p3), %v1492_v1  ;;  %1300 = vmatprep.subr.bf16.mxu1 (!%p171_p3), %v1492_v1  ;;  %v1365_v12 = vld [vmem:[%s1835_s1 + $0x48] sm:$0xff] (!%p171_p3)   ;;  %v1366_v13 = vld [vmem:[%s1835_s1 + $0x50] sm:$0xff] (!%p171_p3)   ;;  %v1367_v14 = vld [vmem:[%s1835_s1 + $0x58] sm:$0xff] (!%p171_p3)  }
   0xa   : > { %v1368_v15 = vld [vmem:[%s1835_s1 + $0x60] sm:$0xff] (!%p171_p3)   ;;  %v1369_v16 = vld [vmem:[%s1835_s1 + $0x68] sm:$0xff] (!%p171_p3)   ;;  %v1370_v17 = vld [vmem:[%s1835_s1 + $0x70] sm:$0xff] (!%p171_p3)  }
   0xb   : > { %v1371_v18 = vld [vmem:[%s1835_s1 + $0x78] sm:$0xff] (!%p171_p3)  }
   0xc   : > { %751 = vmatpush1.bf16.msra.mxu0 (!%p171_p3), %v1357_v2  ;;  %1316 = vmatpush1.bf16.msra.mxu1 (!%p171_p3), %v1357_v2 }
   0xd   : > { %752 = vmatprep.subr.bf16.mxu0 (!%p171_p3), %v1492_v1  ;;  %1301 = vmatprep.subr.bf16.mxu1 (!%p171_p3), %v1492_v1 }
   0xe   : > { %s1843_s18 = smov (!%p206_p4, %s1210_s18), 127 }
   0xf   : > { %s1298_s25 = sshll.u32 %s1843_s18, 3 }
  0x10   : > { %753 = vmatpush1.bf16.msra.mxu0 %v1358_v3  ;;  %1317 = vmatpush1.bf16.msra.mxu1 %v1358_v3  ;;  %s1562_s30 = scalar_lea.vmem %s1834_s0, %s1298_s25  ;;  %s1695_s9 = scalar_lea.vmem %s1837_s3, %s1298_s25 }
  0x11   : > { %754 = vmatprep.subr.bf16.mxu0 %v1492_v1  ;;  %1302 = vmatprep.subr.bf16.mxu1 %v1492_v1  ;;  %v1374_v6 = vld [vmem:[%s1562_s30 + $0x4] ss:$8 sps:$4 sm:$0xff]   ;;  %v1372_v19 = vld [vmem:[%s1562_s30] ss:$8 sps:$4 sm:$0xff]   ;;  %v1378_v21 = vld [vmem:[%s1562_s30 + $0x14] ss:$8 sps:$4 sm:$0xff]  }
  0x12   : > { %v1377_v8 = vld [vmem:[%s1562_s30 + $0x104] ss:$8 sps:$4 sm:$0xff]   ;;  %780 = vmatprep.mubr.bf16.mxu0 %v1374_v6  ;;  %v1375_v20 = vld [vmem:[%s1562_s30 + $0x100] ss:$8 sps:$4 sm:$0xff]   ;;  %v1380_v22 = vld [vmem:[%s1562_s30 + $0x114] ss:$8 sps:$4 sm:$0xff]  }
  0x13   : > { %908 = vmatprep.mubr.bf16.mxu1 %v1377_v8  ;;  %v1382_v23 = vld [vmem:[%s1562_s30 + $0x10] ss:$8 sps:$4 sm:$0xff]   ;;  %v1384_v25 = vld [vmem:[%s1562_s30 + $0x24] ss:$8 sps:$4 sm:$0xff]   ;;  %v1388_v27 = vld [vmem:[%s1562_s30 + $0x20] ss:$8 sps:$4 sm:$0xff]  }
  0x14   : > { %755 = vmatpush1.bf16.msra.mxu0 %v1359_v4  ;;  %1318 = vmatpush1.bf16.msra.mxu1 %v1359_v4  ;;  %v1383_v24 = vld [vmem:[%s1562_s30 + $0x110] ss:$8 sps:$4 sm:$0xff]   ;;  %v1386_v26 = vld [vmem:[%s1562_s30 + $0x124] ss:$8 sps:$4 sm:$0xff]   ;;  %v1389_v28 = vld [vmem:[%s1562_s30 + $0x120] ss:$8 sps:$4 sm:$0xff]  }
  0x15   : > { %756 = vmatprep.subr.bf16.mxu0 %v1492_v1  ;;  %1303 = vmatprep.subr.bf16.mxu1 %v1492_v1  ;;  %v1390_v29 = vld [vmem:[%s1562_s30 + $0x34] ss:$8 sps:$4 sm:$0xff]   ;;  %v1394_v31 = vld [vmem:[%s1562_s30 + $0x30] ss:$8 sps:$4 sm:$0xff]   ;;  %v1396_v33 = vld [vmem:[%s1562_s30 + $0x44] ss:$8 sps:$4 sm:$0xff]  }
  0x16   : > { %v1392_v30 = vld [vmem:[%s1562_s30 + $0x134] ss:$8 sps:$4 sm:$0xff]   ;;  %v1395_v32 = vld [vmem:[%s1562_s30 + $0x130] ss:$8 sps:$4 sm:$0xff]   ;;  %v1398_v34 = vld [vmem:[%s1562_s30 + $0x144] ss:$8 sps:$4 sm:$0xff]  }
  0x17   : > { %v1400_v35 = vld [vmem:[%s1562_s30 + $0x40] ss:$8 sps:$4 sm:$0xff]   ;;  %v1402_v37 = vld [vmem:[%s1562_s30 + $0x54] ss:$8 sps:$4 sm:$0xff]   ;;  %v1406_v39 = vld [vmem:[%s1562_s30 + $0x50] ss:$8 sps:$4 sm:$0xff]  }
  0x18   : > { %757 = vmatpush1.bf16.msra.mxu0 %v1360_v5  ;;  %1319 = vmatpush1.bf16.msra.mxu1 %v1360_v5  ;;  %v1401_v36 = vld [vmem:[%s1562_s30 + $0x140] ss:$8 sps:$4 sm:$0xff]   ;;  %v1404_v38 = vld [vmem:[%s1562_s30 + $0x154] ss:$8 sps:$4 sm:$0xff]   ;;  %v1407_v40 = vld [vmem:[%s1562_s30 + $0x150] ss:$8 sps:$4 sm:$0xff]  }
  0x19   : > { %758 = vmatprep.subr.bf16.mxu0 %v1492_v1  ;;  %1304 = vmatprep.subr.bf16.mxu1 %v1492_v1  ;;  %v1408_v41 = vld [vmem:[%s1562_s30 + $0x64] ss:$8 sps:$4 sm:$0xff]   ;;  %v1412_v43 = vld [vmem:[%s1562_s30 + $0x60] ss:$8 sps:$4 sm:$0xff]   ;;  %v1414_v45 = vld [vmem:[%s1562_s30 + $0x74] ss:$8 sps:$4 sm:$0xff]  }
  0x1a   : > { %v1410_v42 = vld [vmem:[%s1562_s30 + $0x164] ss:$8 sps:$4 sm:$0xff]   ;;  %v1413_v44 = vld [vmem:[%s1562_s30 + $0x160] ss:$8 sps:$4 sm:$0xff]   ;;  %v1416_v46 = vld [vmem:[%s1562_s30 + $0x174] ss:$8 sps:$4 sm:$0xff]  }
  0x1b   : > { %v1418_v47 = vld [vmem:[%s1562_s30 + $0x70] ss:$8 sps:$4 sm:$0xff]   ;;  %v1420_v49 = vld [vmem:[%s1562_s30 + $0x84] ss:$8 sps:$4 sm:$0xff]   ;;  %v1424_v51 = vld [vmem:[%s1562_s30 + $0x80] ss:$8 sps:$4 sm:$0xff]  }
  0x1c   : > { %759 = vmatpush1.bf16.msra.mxu0 %v1361_v7  ;;  %1320 = vmatpush1.bf16.msra.mxu1 %v1361_v7  ;;  %v1419_v48 = vld [vmem:[%s1562_s30 + $0x170] ss:$8 sps:$4 sm:$0xff]   ;;  %v1422_v50 = vld [vmem:[%s1562_s30 + $0x184] ss:$8 sps:$4 sm:$0xff]   ;;  %v1425_v52 = vld [vmem:[%s1562_s30 + $0x180] ss:$8 sps:$4 sm:$0xff]  }
  0x1d   : > { %760 = vmatprep.subr.bf16.mxu0 %v1492_v1  ;;  %1305 = vmatprep.subr.bf16.mxu1 %v1492_v1  ;;  %v1426_v53 = vld [vmem:[%s1562_s30 + $0x94] ss:$8 sps:$4 sm:$0xff]   ;;  %v1430_v55 = vld [vmem:[%s1562_s30 + $0x90] ss:$8 sps:$4 sm:$0xff]   ;;  %v1432_v57 = vld [vmem:[%s1562_s30 + $0xa4] ss:$8 sps:$4 sm:$0xff]  }
  0x1e   : > { %v1428_v54 = vld [vmem:[%s1562_s30 + $0x194] ss:$8 sps:$4 sm:$0xff]   ;;  %v1431_v56 = vld [vmem:[%s1562_s30 + $0x190] ss:$8 sps:$4 sm:$0xff]   ;;  %v1434_v58 = vld [vmem:[%s1562_s30 + $0x1a4] ss:$8 sps:$4 sm:$0xff]  }
  0x1f   : > { %v1436_v59 = vld [vmem:[%s1562_s30 + $0xa0] ss:$8 sps:$4 sm:$0xff]   ;;  %v1438_v61 = vld [vmem:[%s1562_s30 + $0xb4] ss:$8 sps:$4 sm:$0xff]   ;;  %v1442_v63 = vld [vmem:[%s1562_s30 + $0xb0] ss:$8 sps:$4 sm:$0xff]  }
  0x20   : > { %761 = vmatpush1.bf16.msra.mxu0 %v1362_v9  ;;  %1321 = vmatpush1.bf16.msra.mxu1 %v1362_v9  ;;  %v1437_v60 = vld [vmem:[%s1562_s30 + $0x1a0] ss:$8 sps:$4 sm:$0xff]   ;;  %v1440_v62 = vld [vmem:[%s1562_s30 + $0x1b4] ss:$8 sps:$4 sm:$0xff]   ;;  %v1443_v0 = vld [vmem:[%s1562_s30 + $0x1b0] ss:$8 sps:$4 sm:$0xff]  }
  0x21   : > { %762 = vmatprep.subr.bf16.mxu0 %v1492_v1  ;;  %1306 = vmatprep.subr.bf16.mxu1 %v1492_v1  ;;  %v1446_v2 = vld [vmem:[%s1562_s30 + $0x1c4] ss:$8 sps:$4 sm:$0xff]   ;;  %v1448_v3 = vld [vmem:[%s1562_s30 + $0xc0] ss:$8 sps:$4 sm:$0xff]   ;;  %v1450_v5 = vld [vmem:[%s1562_s30 + $0xd4] ss:$8 sps:$4 sm:$0xff]  }
  0x22   : > { %v1449_v4 = vld [vmem:[%s1562_s30 + $0x1c0] ss:$8 sps:$4 sm:$0xff]   ;;  %v1452_v6 = vld [vmem:[%s1562_s30 + $0x1d4] ss:$8 sps:$4 sm:$0xff]   ;;  %v1454_v7 = vld [vmem:[%s1562_s30 + $0xd0] ss:$8 sps:$4 sm:$0xff]  }
  0x23   : > { %v1455_v8 = vld [vmem:[%s1562_s30 + $0x1d0] ss:$8 sps:$4 sm:$0xff]   ;;  %v1456_v9 = vld [vmem:[%s1562_s30 + $0xe4] ss:$8 sps:$4 sm:$0xff]  }
  0x24   : > { %763 = vmatpush1.bf16.msra.mxu0 %v1363_v10  ;;  %1322 = vmatpush1.bf16.msra.mxu1 %v1363_v10  ;;  %v1458_v10 = vld [vmem:[%s1562_s30 + $0x1e4] ss:$8 sps:$4 sm:$0xff]  }
  0x25   : > { %764 = vmatprep.subr.bf16.mxu0 %v1492_v1  ;;  %1307 = vmatprep.subr.bf16.mxu1 %v1492_v1 }
  0x28   : > { %765 = vmatpush1.bf16.msra.mxu0 %v1364_v11  ;;  %1323 = vmatpush1.bf16.msra.mxu1 %v1364_v11  ;;  %v1460_v11 = vld [vmem:[%s1562_s30 + $0xe0] ss:$8 sps:$4 sm:$0xff]  }
  0x29   : > { %766 = vmatprep.subr.bf16.mxu0 %v1492_v1  ;;  %1308 = vmatprep.subr.bf16.mxu1 %v1492_v1 }
  0x2c   : > { %767 = vmatpush1.bf16.msra.mxu0 %v1365_v12  ;;  %1324 = vmatpush1.bf16.msra.mxu1 %v1365_v12  ;;  %v1461_v12 = vld [vmem:[%s1562_s30 + $0x1e0] ss:$8 sps:$4 sm:$0xff]  }
  0x2d   : > { %768 = vmatprep.subr.bf16.mxu0 %v1492_v1  ;;  %1309 = vmatprep.subr.bf16.mxu1 %v1492_v1 }
  0x30   : > { %769 = vmatpush1.bf16.msra.mxu0 %v1366_v13  ;;  %1325 = vmatpush1.bf16.msra.mxu1 %v1366_v13  ;;  %v1462_v13 = vld [vmem:[%s1562_s30 + $0xf4] ss:$8 sps:$4 sm:$0xff]  }
  0x31   : > { %770 = vmatprep.subr.bf16.mxu0 %v1492_v1  ;;  %1310 = vmatprep.subr.bf16.mxu1 %v1492_v1 }
  0x34   : > { %771 = vmatpush1.bf16.msra.mxu0 %v1367_v14  ;;  %1326 = vmatpush1.bf16.msra.mxu1 %v1367_v14  ;;  %v1464_v14 = vld [vmem:[%s1562_s30 + $0x1f4] ss:$8 sps:$4 sm:$0xff]  }
  0x35   : > { %772 = vmatprep.subr.bf16.mxu0 %v1492_v1  ;;  %1311 = vmatprep.subr.bf16.mxu1 %v1492_v1 }
  0x38   : > { %773 = vmatpush1.bf16.msra.mxu0 %v1368_v15  ;;  %1327 = vmatpush1.bf16.msra.mxu1 %v1368_v15  ;;  %v1466_v15 = vld [vmem:[%s1562_s30 + $0xf0] ss:$8 sps:$4 sm:$0xff]  }
  0x39   : > { %774 = vmatprep.subr.bf16.mxu0 %v1492_v1  ;;  %1312 = vmatprep.subr.bf16.mxu1 %v1492_v1 }
  0x3c   : > { %775 = vmatpush1.bf16.msra.mxu0 %v1369_v16  ;;  %1328 = vmatpush1.bf16.msra.mxu1 %v1369_v16  ;;  %v1467_v16 = vld [vmem:[%s1562_s30 + $0x1f0] ss:$8 sps:$4 sm:$0xff]  }
  0x3d   : > { %776 = vmatprep.subr.bf16.mxu0 %v1492_v1  ;;  %1313 = vmatprep.subr.bf16.mxu1 %v1492_v1 }
  0x40   : > { %777 = vmatpush1.bf16.msra.mxu0 %v1370_v17  ;;  %1329 = vmatpush1.bf16.msra.mxu1 %v1370_v17  ;;  %v1688_v17 = vld [vmem:[%s1836_s2] ss:$0 sm:$0xff] }
  0x41   : > { %778 = vmatprep.subr.bf16.mxu0 %v1492_v1  ;;  %1314 = vmatprep.subr.bf16.mxu1 %v1492_v1  ;;  %v1444_v1 = vld [vmem:[%s1562_s30 + $0xc4] ss:$8 sps:$4 sm:$0xff]  }
  0x44   : > { %779 = vmatpush1.bf16.msra.mxu0 %v1371_v18  ;;  %1330 = vmatpush1.bf16.msra.mxu1 %v1371_v18 }
  0x47   : > { %781 = vmatmul.mubr.bf16.vlgmr.msra.gmra.mrb[0].mxu0 %v1372_v19  ;;  %909 = vmatmul.mubr.bf16.vlgmr.msra.gmra.mrb[0].mxu1 %v1375_v20 }
  0x48   : > { %788 = vmatprep.mubr.bf16.mxu0 %v1378_v21  ;;  %916 = vmatprep.mubr.bf16.mxu1 %v1380_v22 }
  0x4f   : > { %789 = vmatmul.mubr.bf16.gmra.mrb[4].mxu0 %v1382_v23  ;;  %917 = vmatmul.mubr.bf16.gmra.mrb[4].mxu1 %v1383_v24 }
  0x50   : > { %796 = vmatprep.mubr.bf16.mxu0 %v1384_v25  ;;  %924 = vmatprep.mubr.bf16.mxu1 %v1386_v26 }
  0x57   : > { %797 = vmatmul.mubr.bf16.gmra.mrb[8].mxu0 %v1388_v27  ;;  %925 = vmatmul.mubr.bf16.gmra.mrb[8].mxu1 %v1389_v28 }
  0x58   : > { %804 = vmatprep.mubr.bf16.mxu0 %v1390_v29  ;;  %932 = vmatprep.mubr.bf16.mxu1 %v1392_v30 }
  0x5f   : > { %805 = vmatmul.mubr.bf16.gmra.mrb[12].mxu0 %v1394_v31  ;;  %933 = vmatmul.mubr.bf16.gmra.mrb[12].mxu1 %v1395_v32 }
  0x60   : > { %812 = vmatprep.mubr.bf16.mxu0 %v1396_v33  ;;  %940 = vmatprep.mubr.bf16.mxu1 %v1398_v34 }
  0x67   : > { %813 = vmatmul.mubr.bf16.gmra.mrb[16].mxu0 %v1400_v35  ;;  %941 = vmatmul.mubr.bf16.gmra.mrb[16].mxu1 %v1401_v36 }
  0x68   : > { %820 = vmatprep.mubr.bf16.mxu0 %v1402_v37  ;;  %948 = vmatprep.mubr.bf16.mxu1 %v1404_v38 }
  0x6f   : > { %821 = vmatmul.mubr.bf16.gmra.mrb[20].mxu0 %v1406_v39  ;;  %949 = vmatmul.mubr.bf16.gmra.mrb[20].mxu1 %v1407_v40 }
  0x70   : > { %828 = vmatprep.mubr.bf16.mxu0 %v1408_v41  ;;  %956 = vmatprep.mubr.bf16.mxu1 %v1410_v42 }
  0x77   : > { %829 = vmatmul.mubr.bf16.gmra.mrb[24].mxu0 %v1412_v43  ;;  %957 = vmatmul.mubr.bf16.gmra.mrb[24].mxu1 %v1413_v44 }
  0x78   : > { %836 = vmatprep.mubr.bf16.mxu0 %v1414_v45  ;;  %964 = vmatprep.mubr.bf16.mxu1 %v1416_v46 }
  0x7f   : > { %837 = vmatmul.mubr.bf16.gmra.mrb[28].mxu0 %v1418_v47  ;;  %965 = vmatmul.mubr.bf16.gmra.mrb[28].mxu1 %v1419_v48 }
  0x80   : > { %844 = vmatprep.mubr.bf16.mxu0 %v1420_v49  ;;  %972 = vmatprep.mubr.bf16.mxu1 %v1422_v50 }
  0x87   : > { %845 = vmatmul.mubr.bf16.gmra.mrb[32].mxu0 %v1424_v51  ;;  %973 = vmatmul.mubr.bf16.gmra.mrb[32].mxu1 %v1425_v52 }
  0x88   : > { %852 = vmatprep.mubr.bf16.mxu0 %v1426_v53  ;;  %980 = vmatprep.mubr.bf16.mxu1 %v1428_v54 }
  0x8f   : > { %853 = vmatmul.mubr.bf16.gmra.mrb[36].mxu0 %v1430_v55  ;;  %981 = vmatmul.mubr.bf16.gmra.mrb[36].mxu1 %v1431_v56 }
  0x90   : > { %860 = vmatprep.mubr.bf16.mxu0 %v1432_v57  ;;  %988 = vmatprep.mubr.bf16.mxu1 %v1434_v58 }
  0x97   : > { %861 = vmatmul.mubr.bf16.gmra.mrb[40].mxu0 %v1436_v59  ;;  %989 = vmatmul.mubr.bf16.gmra.mrb[40].mxu1 %v1437_v60 }
  0x98   : > { %868 = vmatprep.mubr.bf16.mxu0 %v1438_v61  ;;  %996 = vmatprep.mubr.bf16.mxu1 %v1440_v62 }
  0x9f   : > { %869 = vmatmul.mubr.bf16.gmra.mrb[44].mxu0 %v1442_v63  ;;  %997 = vmatmul.mubr.bf16.gmra.mrb[44].mxu1 %v1443_v0 }
  0xa0   : > { %876 = vmatprep.mubr.bf16.mxu0 %v1444_v1  ;;  %1004 = vmatprep.mubr.bf16.mxu1 %v1446_v2 }
  0xa7   : > { %877 = vmatmul.mubr.bf16.gmra.mrb[48].mxu0 %v1448_v3  ;;  %1005 = vmatmul.mubr.bf16.gmra.mrb[48].mxu1 %v1449_v4 }
  0xa8   : > { %884 = vmatprep.mubr.bf16.mxu0 %v1450_v5  ;;  %1012 = vmatprep.mubr.bf16.mxu1 %v1452_v6 }
  0xaf   : > { %885 = vmatmul.mubr.bf16.gmra.mrb[52].mxu0 %v1454_v7  ;;  %1013 = vmatmul.mubr.bf16.gmra.mrb[52].mxu1 %v1455_v8 }
  0xb0   : > { %892 = vmatprep.mubr.bf16.mxu0 %v1456_v9  ;;  %1020 = vmatprep.mubr.bf16.mxu1 %v1458_v10 }
  0xb7   : > { %893 = vmatmul.mubr.bf16.gmra.mrb[56].mxu0 %v1460_v11  ;;  %1021 = vmatmul.mubr.bf16.gmra.mrb[56].mxu1 %v1461_v12 }
  0xb8   : > { %900 = vmatprep.mubr.bf16.mxu0 %v1462_v13  ;;  %1028 = vmatprep.mubr.bf16.mxu1 %v1464_v14 }
  0xbf   : > { %901 = vmatmul.mubr.bf16.gmra.mrb[60].mxu0 %v1466_v15  ;;  %1029 = vmatmul.mubr.bf16.gmra.mrb[60].mxu1 %v1467_v16 }
 0x11a   : > { %v782_v18 = vpop.f32.mrb[0].mxu0  ;;  %v910_v19 = vpop.f32.mrb[0].mxu1 }
 0x11b   : > { %v783_v20 = vadd.f32 %v1688_v17, %v782_v18  ;;  %v911_v21 = vadd.f32 %v1688_v17, %v910_v19  ;;  %v784_v22 = vpop.f32.mrb[1].mxu0  ;;  %v912_v23 = vpop.f32.mrb[1].mxu1 }
 0x11c   : > { %v785_v24 = vpop.f32.mrb[2].mxu0  ;;  %v913_v25 = vpop.f32.mrb[2].mxu1 }
 0x11d   : > { %1037 = vst [vmem:[%s1695_s9] sm:$0xff] %v783_v20  ;;  %1069 = vst [vmem:[%s1695_s9 + $0x100] sm:$0xff] %v911_v21  ;;  %v786_v26 = vadd.f32 %v1688_v17, %v785_v24  ;;  %v914_v27 = vadd.f32 %v1688_v17, %v913_v25  ;;  %v787_v28 = vpop.f32.mrb[3].mxu0  ;;  %v915_v29 = vpop.f32.mrb[3].mxu1 }
 0x11f   : > { %1038 = vst [vmem:[%s1695_s9 + $0x8] sm:$0xff] %v786_v26  ;;  %1070 = vst [vmem:[%s1695_s9 + $0x108] sm:$0xff] %v914_v27 }
 0x122   : > { %v790_v30 = vpop.f32.mrb[4].mxu0  ;;  %v918_v31 = vpop.f32.mrb[4].mxu1 }
 0x123   : > { %v791_v32 = vadd.f32 %v1688_v17, %v790_v30  ;;  %v919_v33 = vadd.f32 %v1688_v17, %v918_v31  ;;  %v792_v34 = vpop.f32.mrb[5].mxu0  ;;  %v920_v35 = vpop.f32.mrb[5].mxu1 }
 0x124   : > { %v793_v36 = vpop.f32.mrb[6].mxu0  ;;  %v921_v37 = vpop.f32.mrb[6].mxu1 }
 0x125   : > { %1039 = vst [vmem:[%s1695_s9 + $0x10] sm:$0xff] %v791_v32  ;;  %1071 = vst [vmem:[%s1695_s9 + $0x110] sm:$0xff] %v919_v33  ;;  %v794_v38 = vadd.f32 %v1688_v17, %v793_v36  ;;  %v922_v39 = vadd.f32 %v1688_v17, %v921_v37  ;;  %v795_v40 = vpop.f32.mrb[7].mxu0  ;;  %v923_v41 = vpop.f32.mrb[7].mxu1 }
 0x127   : > { %1040 = vst [vmem:[%s1695_s9 + $0x18] sm:$0xff] %v794_v38  ;;  %1072 = vst [vmem:[%s1695_s9 + $0x118] sm:$0xff] %v922_v39 }
 0x12a   : > { %v798_v42 = vpop.f32.mrb[8].mxu0  ;;  %v926_v43 = vpop.f32.mrb[8].mxu1 }
 0x12b   : > { %v799_v44 = vadd.f32 %v1688_v17, %v798_v42  ;;  %v927_v45 = vadd.f32 %v1688_v17, %v926_v43  ;;  %v800_v46 = vpop.f32.mrb[9].mxu0  ;;  %v928_v47 = vpop.f32.mrb[9].mxu1 }
 0x12c   : > { %v801_v48 = vpop.f32.mrb[10].mxu0  ;;  %v929_v49 = vpop.f32.mrb[10].mxu1 }
 0x12d   : > { %1041 = vst [vmem:[%s1695_s9 + $0x20] sm:$0xff] %v799_v44  ;;  %1073 = vst [vmem:[%s1695_s9 + $0x120] sm:$0xff] %v927_v45  ;;  %v802_v50 = vadd.f32 %v1688_v17, %v801_v48  ;;  %v930_v51 = vadd.f32 %v1688_v17, %v929_v49  ;;  %v803_v52 = vpop.f32.mrb[11].mxu0  ;;  %v931_v53 = vpop.f32.mrb[11].mxu1 }
 0x12f   : > { %1042 = vst [vmem:[%s1695_s9 + $0x28] sm:$0xff] %v802_v50  ;;  %1074 = vst [vmem:[%s1695_s9 + $0x128] sm:$0xff] %v930_v51 }
 0x132   : > { %v806_v54 = vpop.f32.mrb[12].mxu0  ;;  %v934_v55 = vpop.f32.mrb[12].mxu1 }
 0x133   : > { %v807_v56 = vadd.f32 %v1688_v17, %v806_v54  ;;  %v935_v57 = vadd.f32 %v1688_v17, %v934_v55  ;;  %v808_v58 = vpop.f32.mrb[13].mxu0  ;;  %v936_v59 = vpop.f32.mrb[13].mxu1 }
 0x134   : > { %v809_v60 = vpop.f32.mrb[14].mxu0  ;;  %v937_v61 = vpop.f32.mrb[14].mxu1 }
 0x135   : > { %1043 = vst [vmem:[%s1695_s9 + $0x30] sm:$0xff] %v807_v56  ;;  %1075 = vst [vmem:[%s1695_s9 + $0x130] sm:$0xff] %v935_v57  ;;  %v810_v62 = vadd.f32 %v1688_v17, %v809_v60  ;;  %v938_v63 = vadd.f32 %v1688_v17, %v937_v61  ;;  %v811_v0 = vpop.f32.mrb[15].mxu0  ;;  %v939_v1 = vpop.f32.mrb[15].mxu1 }
 0x137   : > { %1044 = vst [vmem:[%s1695_s9 + $0x38] sm:$0xff] %v810_v62  ;;  %1076 = vst [vmem:[%s1695_s9 + $0x138] sm:$0xff] %v938_v63 }
 0x13a   : > { %v814_v2 = vpop.f32.mrb[16].mxu0  ;;  %v942_v3 = vpop.f32.mrb[16].mxu1 }
 0x13b   : > { %v815_v4 = vadd.f32 %v1688_v17, %v814_v2  ;;  %v943_v5 = vadd.f32 %v1688_v17, %v942_v3  ;;  %v816_v6 = vpop.f32.mrb[17].mxu0  ;;  %v944_v7 = vpop.f32.mrb[17].mxu1 }
 0x13c   : > { %v817_v8 = vpop.f32.mrb[18].mxu0  ;;  %v945_v9 = vpop.f32.mrb[18].mxu1 }
 0x13d   : > { %1045 = vst [vmem:[%s1695_s9 + $0x40] sm:$0xff] %v815_v4  ;;  %1077 = vst [vmem:[%s1695_s9 + $0x140] sm:$0xff] %v943_v5  ;;  %v818_v10 = vadd.f32 %v1688_v17, %v817_v8  ;;  %v946_v11 = vadd.f32 %v1688_v17, %v945_v9  ;;  %v819_v12 = vpop.f32.mrb[19].mxu0  ;;  %v947_v13 = vpop.f32.mrb[19].mxu1 }
 0x13f   : > { %1046 = vst [vmem:[%s1695_s9 + $0x48] sm:$0xff] %v818_v10  ;;  %1078 = vst [vmem:[%s1695_s9 + $0x148] sm:$0xff] %v946_v11 }
 0x142   : > { %v822_v14 = vpop.f32.mrb[20].mxu0  ;;  %v950_v15 = vpop.f32.mrb[20].mxu1 }
 0x143   : > { %v823_v16 = vadd.f32 %v1688_v17, %v822_v14  ;;  %v951_v18 = vadd.f32 %v1688_v17, %v950_v15  ;;  %v824_v19 = vpop.f32.mrb[21].mxu0  ;;  %v952_v20 = vpop.f32.mrb[21].mxu1 }
 0x144   : > { %v825_v21 = vpop.f32.mrb[22].mxu0  ;;  %v953_v22 = vpop.f32.mrb[22].mxu1 }
 0x145   : > { %1047 = vst [vmem:[%s1695_s9 + $0x50] sm:$0xff] %v823_v16  ;;  %1079 = vst [vmem:[%s1695_s9 + $0x150] sm:$0xff] %v951_v18  ;;  %v826_v23 = vadd.f32 %v1688_v17, %v825_v21  ;;  %v954_v24 = vadd.f32 %v1688_v17, %v953_v22  ;;  %v827_v25 = vpop.f32.mrb[23].mxu0  ;;  %v955_v26 = vpop.f32.mrb[23].mxu1 }
 0x147   : > { %1048 = vst [vmem:[%s1695_s9 + $0x58] sm:$0xff] %v826_v23  ;;  %1080 = vst [vmem:[%s1695_s9 + $0x158] sm:$0xff] %v954_v24 }
 0x14a   : > { %v830_v27 = vpop.f32.mrb[24].mxu0  ;;  %v958_v28 = vpop.f32.mrb[24].mxu1 }
 0x14b   : > { %v831_v29 = vadd.f32 %v1688_v17, %v830_v27  ;;  %v959_v30 = vadd.f32 %v1688_v17, %v958_v28  ;;  %v832_v31 = vpop.f32.mrb[25].mxu0  ;;  %v960_v32 = vpop.f32.mrb[25].mxu1 }
 0x14c   : > { %v833_v33 = vpop.f32.mrb[26].mxu0  ;;  %v961_v34 = vpop.f32.mrb[26].mxu1 }
 0x14d   : > { %1049 = vst [vmem:[%s1695_s9 + $0x60] sm:$0xff] %v831_v29  ;;  %1081 = vst [vmem:[%s1695_s9 + $0x160] sm:$0xff] %v959_v30  ;;  %v834_v35 = vadd.f32 %v1688_v17, %v833_v33  ;;  %v962_v36 = vadd.f32 %v1688_v17, %v961_v34  ;;  %v835_v37 = vpop.f32.mrb[27].mxu0  ;;  %v963_v38 = vpop.f32.mrb[27].mxu1 }
 0x14f   : > { %1050 = vst [vmem:[%s1695_s9 + $0x68] sm:$0xff] %v834_v35  ;;  %1082 = vst [vmem:[%s1695_s9 + $0x168] sm:$0xff] %v962_v36 }
 0x152   : > { %v838_v39 = vpop.f32.mrb[28].mxu0  ;;  %v966_v40 = vpop.f32.mrb[28].mxu1 }
 0x153   : > { %v839_v41 = vadd.f32 %v1688_v17, %v838_v39  ;;  %v967_v42 = vadd.f32 %v1688_v17, %v966_v40  ;;  %v840_v43 = vpop.f32.mrb[29].mxu0  ;;  %v968_v44 = vpop.f32.mrb[29].mxu1 }
 0x154   : > { %v841_v45 = vpop.f32.mrb[30].mxu0  ;;  %v969_v46 = vpop.f32.mrb[30].mxu1 }
 0x155   : > { %1051 = vst [vmem:[%s1695_s9 + $0x70] sm:$0xff] %v839_v41  ;;  %1083 = vst [vmem:[%s1695_s9 + $0x170] sm:$0xff] %v967_v42  ;;  %v842_v47 = vadd.f32 %v1688_v17, %v841_v45  ;;  %v970_v48 = vadd.f32 %v1688_v17, %v969_v46  ;;  %v843_v49 = vpop.f32.mrb[31].mxu0  ;;  %v971_v50 = vpop.f32.mrb[31].mxu1 }
 0x157   : > { %1052 = vst [vmem:[%s1695_s9 + $0x78] sm:$0xff] %v842_v47  ;;  %1084 = vst [vmem:[%s1695_s9 + $0x178] sm:$0xff] %v970_v48 }
 0x15a   : > { %v846_v51 = vpop.f32.mrb[32].mxu0  ;;  %v974_v52 = vpop.f32.mrb[32].mxu1 }
 0x15b   : > { %v847_v53 = vadd.f32 %v1688_v17, %v846_v51  ;;  %v975_v54 = vadd.f32 %v1688_v17, %v974_v52  ;;  %v848_v55 = vpop.f32.mrb[33].mxu0  ;;  %v976_v56 = vpop.f32.mrb[33].mxu1 }
 0x15c   : > { %v849_v57 = vpop.f32.mrb[34].mxu0  ;;  %v977_v58 = vpop.f32.mrb[34].mxu1 }
 0x15d   : > { %1053 = vst [vmem:[%s1695_s9 + $0x80] sm:$0xff] %v847_v53  ;;  %1085 = vst [vmem:[%s1695_s9 + $0x180] sm:$0xff] %v975_v54  ;;  %v850_v59 = vadd.f32 %v1688_v17, %v849_v57  ;;  %v978_v60 = vadd.f32 %v1688_v17, %v977_v58  ;;  %v851_v61 = vpop.f32.mrb[35].mxu0  ;;  %v979_v62 = vpop.f32.mrb[35].mxu1 }
 0x15f   : > { %1054 = vst [vmem:[%s1695_s9 + $0x88] sm:$0xff] %v850_v59  ;;  %1086 = vst [vmem:[%s1695_s9 + $0x188] sm:$0xff] %v978_v60 }
 0x162   : > { %v854_v63 = vpop.f32.mrb[36].mxu0  ;;  %v982_v0 = vpop.f32.mrb[36].mxu1 }
 0x163   : > { %v855_v1 = vadd.f32 %v1688_v17, %v854_v63  ;;  %v983_v2 = vadd.f32 %v1688_v17, %v982_v0  ;;  %v856_v3 = vpop.f32.mrb[37].mxu0  ;;  %v984_v4 = vpop.f32.mrb[37].mxu1 }
 0x164   : > { %v857_v5 = vpop.f32.mrb[38].mxu0  ;;  %v985_v6 = vpop.f32.mrb[38].mxu1 }
 0x165   : > { %1055 = vst [vmem:[%s1695_s9 + $0x90] sm:$0xff] %v855_v1  ;;  %1087 = vst [vmem:[%s1695_s9 + $0x190] sm:$0xff] %v983_v2  ;;  %v858_v7 = vadd.f32 %v1688_v17, %v857_v5  ;;  %v986_v8 = vadd.f32 %v1688_v17, %v985_v6  ;;  %v859_v9 = vpop.f32.mrb[39].mxu0  ;;  %v987_v10 = vpop.f32.mrb[39].mxu1 }
 0x167   : > { %1056 = vst [vmem:[%s1695_s9 + $0x98] sm:$0xff] %v858_v7  ;;  %1088 = vst [vmem:[%s1695_s9 + $0x198] sm:$0xff] %v986_v8 }
 0x16a   : > { %v862_v11 = vpop.f32.mrb[40].mxu0  ;;  %v990_v12 = vpop.f32.mrb[40].mxu1 }
 0x16b   : > { %v863_v13 = vadd.f32 %v1688_v17, %v862_v11  ;;  %v991_v14 = vadd.f32 %v1688_v17, %v990_v12  ;;  %v864_v15 = vpop.f32.mrb[41].mxu0  ;;  %v992_v16 = vpop.f32.mrb[41].mxu1 }
 0x16c   : > { %v865_v18 = vpop.f32.mrb[42].mxu0  ;;  %v993_v19 = vpop.f32.mrb[42].mxu1 }
 0x16d   : > { %1057 = vst [vmem:[%s1695_s9 + $0xa0] sm:$0xff] %v863_v13  ;;  %1089 = vst [vmem:[%s1695_s9 + $0x1a0] sm:$0xff] %v991_v14  ;;  %v866_v20 = vadd.f32 %v1688_v17, %v865_v18  ;;  %v994_v21 = vadd.f32 %v1688_v17, %v993_v19  ;;  %v867_v22 = vpop.f32.mrb[43].mxu0  ;;  %v995_v23 = vpop.f32.mrb[43].mxu1 }
 0x16f   : > { %1058 = vst [vmem:[%s1695_s9 + $0xa8] sm:$0xff] %v866_v20  ;;  %1090 = vst [vmem:[%s1695_s9 + $0x1a8] sm:$0xff] %v994_v21 }
 0x172   : > { %v870_v24 = vpop.f32.mrb[44].mxu0  ;;  %v998_v25 = vpop.f32.mrb[44].mxu1 }
 0x173   : > { %v871_v26 = vadd.f32 %v1688_v17, %v870_v24  ;;  %v999_v27 = vadd.f32 %v1688_v17, %v998_v25  ;;  %v872_v28 = vpop.f32.mrb[45].mxu0  ;;  %v1000_v29 = vpop.f32.mrb[45].mxu1 }
 0x174   : > { %v873_v30 = vpop.f32.mrb[46].mxu0  ;;  %v1001_v31 = vpop.f32.mrb[46].mxu1 }
 0x175   : > { %1059 = vst [vmem:[%s1695_s9 + $0xb0] sm:$0xff] %v871_v26  ;;  %1091 = vst [vmem:[%s1695_s9 + $0x1b0] sm:$0xff] %v999_v27  ;;  %v874_v32 = vadd.f32 %v1688_v17, %v873_v30  ;;  %v1002_v33 = vadd.f32 %v1688_v17, %v1001_v31  ;;  %v875_v34 = vpop.f32.mrb[47].mxu0  ;;  %v1003_v35 = vpop.f32.mrb[47].mxu1 }
 0x177   : > { %1060 = vst [vmem:[%s1695_s9 + $0xb8] sm:$0xff] %v874_v32  ;;  %1092 = vst [vmem:[%s1695_s9 + $0x1b8] sm:$0xff] %v1002_v33 }
 0x17a   : > { %v878_v36 = vpop.f32.mrb[48].mxu0  ;;  %v1006_v37 = vpop.f32.mrb[48].mxu1 }
 0x17b   : > { %v879_v38 = vadd.f32 %v1688_v17, %v878_v36  ;;  %v1007_v39 = vadd.f32 %v1688_v17, %v1006_v37  ;;  %v880_v40 = vpop.f32.mrb[49].mxu0  ;;  %v1008_v41 = vpop.f32.mrb[49].mxu1 }
 0x17c   : > { %v881_v42 = vpop.f32.mrb[50].mxu0  ;;  %v1009_v43 = vpop.f32.mrb[50].mxu1 }
 0x17d   : > { %1061 = vst [vmem:[%s1695_s9 + $0xc0] sm:$0xff] %v879_v38  ;;  %1093 = vst [vmem:[%s1695_s9 + $0x1c0] sm:$0xff] %v1007_v39  ;;  %v882_v44 = vadd.f32 %v1688_v17, %v881_v42  ;;  %v1010_v45 = vadd.f32 %v1688_v17, %v1009_v43  ;;  %v883_v46 = vpop.f32.mrb[51].mxu0  ;;  %v1011_v47 = vpop.f32.mrb[51].mxu1 }
 0x17f   : > { %1062 = vst [vmem:[%s1695_s9 + $0xc8] sm:$0xff] %v882_v44  ;;  %1094 = vst [vmem:[%s1695_s9 + $0x1c8] sm:$0xff] %v1010_v45 }
 0x182   : > { %v886_v48 = vpop.f32.mrb[52].mxu0  ;;  %v1014_v49 = vpop.f32.mrb[52].mxu1 }
 0x183   : > { %v887_v50 = vadd.f32 %v1688_v17, %v886_v48  ;;  %v1015_v51 = vadd.f32 %v1688_v17, %v1014_v49  ;;  %v888_v52 = vpop.f32.mrb[53].mxu0  ;;  %v1016_v53 = vpop.f32.mrb[53].mxu1 }
 0x184   : > { %v889_v54 = vpop.f32.mrb[54].mxu0  ;;  %v1017_v55 = vpop.f32.mrb[54].mxu1 }
 0x185   : > { %1063 = vst [vmem:[%s1695_s9 + $0xd0] sm:$0xff] %v887_v50  ;;  %1095 = vst [vmem:[%s1695_s9 + $0x1d0] sm:$0xff] %v1015_v51  ;;  %v890_v56 = vadd.f32 %v1688_v17, %v889_v54  ;;  %v1018_v57 = vadd.f32 %v1688_v17, %v1017_v55  ;;  %v891_v58 = vpop.f32.mrb[55].mxu0  ;;  %v1019_v59 = vpop.f32.mrb[55].mxu1 }
 0x187   : > { %1064 = vst [vmem:[%s1695_s9 + $0xd8] sm:$0xff] %v890_v56  ;;  %1096 = vst [vmem:[%s1695_s9 + $0x1d8] sm:$0xff] %v1018_v57 }
 0x18a   : > { %v894_v60 = vpop.f32.mrb[56].mxu0  ;;  %v1022_v61 = vpop.f32.mrb[56].mxu1 }
 0x18b   : > { %v895_v62 = vadd.f32 %v1688_v17, %v894_v60  ;;  %v1023_v63 = vadd.f32 %v1688_v17, %v1022_v61  ;;  %v896_v0 = vpop.f32.mrb[57].mxu0  ;;  %v1024_v1 = vpop.f32.mrb[57].mxu1 }
 0x18c   : > { %v897_v2 = vpop.f32.mrb[58].mxu0  ;;  %v1025_v3 = vpop.f32.mrb[58].mxu1 }
 0x18d   : > { %1065 = vst [vmem:[%s1695_s9 + $0xe0] sm:$0xff] %v895_v62  ;;  %1097 = vst [vmem:[%s1695_s9 + $0x1e0] sm:$0xff] %v1023_v63  ;;  %v898_v4 = vadd.f32 %v1688_v17, %v897_v2  ;;  %v1026_v5 = vadd.f32 %v1688_v17, %v1025_v3  ;;  %v899_v6 = vpop.f32.mrb[59].mxu0  ;;  %v1027_v7 = vpop.f32.mrb[59].mxu1 }
 0x18f   : > { %1066 = vst [vmem:[%s1695_s9 + $0xe8] sm:$0xff] %v898_v4  ;;  %1098 = vst [vmem:[%s1695_s9 + $0x1e8] sm:$0xff] %v1026_v5 }
 0x192   : > { %v902_v8 = vpop.f32.mrb[60].mxu0  ;;  %v1030_v9 = vpop.f32.mrb[60].mxu1 }
 0x193   : > { %v903_v10 = vadd.f32 %v1688_v17, %v902_v8  ;;  %v1031_v11 = vadd.f32 %v1688_v17, %v1030_v9  ;;  %v904_v12 = vpop.f32.mrb[61].mxu0  ;;  %v1032_v13 = vpop.f32.mrb[61].mxu1 }
 0x194   : > { %v905_v14 = vpop.f32.mrb[62].mxu0  ;;  %v1033_v15 = vpop.f32.mrb[62].mxu1 }
 0x195   : > { %1067 = vst [vmem:[%s1695_s9 + $0xf0] sm:$0xff] %v903_v10  ;;  %1099 = vst [vmem:[%s1695_s9 + $0x1f0] sm:$0xff] %v1031_v11  ;;  %v906_v16 = vadd.f32 %v1688_v17, %v905_v14  ;;  %v1034_v18 = vadd.f32 %v1688_v17, %v1033_v15  ;;  %v907_v19 = vpop.f32.mrb[63].mxu0  ;;  %v1035_v20 = vpop.f32.mrb[63].mxu1 }
 0x197   : > { %1068 = vst [vmem:[%s1695_s9 + $0xf8] sm:$0xff] %v906_v16  ;;  %1100 = vst [vmem:[%s1695_s9 + $0x1f8] sm:$0xff] %v1034_v18 }
 0x198 PF: > { %s13_s14 = sadd.s32 1, %s1490_s14   ;;  %s1838_s12 = smov %s1486_s13 }
 0x199   : > { %p10_p5 = scmp.ge.s32.totalorder %s13_s14, 4   ;;  %s1839_s13 = smov %s1841_s15 }
 0x19b   :  { %12 = sbr.rel (!%p10_p5) target bundleno = 2 (0x2), region = 68 }

// kernel: _lambda_.15
= control target key start
LH: loop header
LB: loop body
LE: loop exit
PB: predicated region body
PF: predicated region fallthrough
CT: control target
= control target key end

     0   :  { %s3258_s12 = smov 0   ;;  %s3260_s13 = smov 0   ;;  %s4863_s0 = inlined_call_operand.vmem [shape: bf16[1024,128], index: 0, kind: input, shape index: {}]   ;;  %s4864_s1 = inlined_call_operand.vmem [shape: bf16[128,256], index: 1, kind: input, shape index: {}]   ;;  %s4865_s2 = inlined_call_operand.vmem [shape: f32[1,256], index: 2, kind: input, shape index: {}]   ;;  %s4866_s3 = inlined_call_operand.vmem [shape: bf16[1024,256], index: 3, kind: output, shape index: {}]  }
   0x1   :  { %s3262_s14 = smov 0  }
   0x2 LB: > { %s25_s15 = sadd.s32 1, %s3231_s13  ;;  %p2675_p0 = scmp.ge.s32.totalorder %s3235_s14, 1  ;;  %s3235_s14 = sphi %s3262_s14, %s13_s14   ;;  %s3231_s13 = sphi %s3260_s13, %s4954_s13   ;;  %s3227_s12 = sphi %s3258_s12, %s4953_s12  }
   0x3   : > { %p27_p1 = scmp.ge.s32.totalorder %s25_s15, 2  ;;  %p173_p2 = scmp.lt.s32.totalorder %s3235_s14, 3 }
   0x5   : > { %s4956_s15 = smov (%p27_p1, %s25_s15), 0  ;;  %p174_p3 = pnand %p2675_p0, %p173_p2 }
   0x7   : > { %177 = sbr.rel (%p174_p3) target bundleno = 614 (0x266), region = 32 }
   0xe   : > { %v2901_v0 = vld [vmem:[%s4864_s1 + $0x4] ss:$8 sps:$4 sm:$0xff]   ;;  %s2676_s18 = sshll.u32 %s3227_s12, 6  ;;  %v2903_v1 = vld [vmem:[%s4864_s1] ss:$8 sps:$4 sm:$0xff]   ;;  %v3237_v2 = vmov 0   ;;  %v323_v49 = vlaneseq }
   0xf   : > { %637 = vmatprep.mubr.bf16.mxu0 %v3237_v2  ;;  %797 = vmatprep.mubr.bf16.mxu1 %v3237_v2  ;;  %p212_p4 = scmp.lt.s32.totalorder %s2676_s18, 127  ;;  %v2904_v3 = vld [vmem:[%s4864_s1 + $0x14] ss:$8 sps:$4 sm:$0xff]   ;;  %v2906_v4 = vld [vmem:[%s4864_s1 + $0x10] ss:$8 sps:$4 sm:$0xff]  }
  0x10   : > { %605 = vmatprep.subr.bf16.mxu0 %v2901_v0  ;;  %2860 = vmatprep.subr.bf16.mxu1 %v2901_v0  ;;  %v2907_v5 = vld [vmem:[%s4864_s1 + $0x24] ss:$8 sps:$4 sm:$0xff]   ;;  %v2909_v6 = vld [vmem:[%s4864_s1 + $0x20] ss:$8 sps:$4 sm:$0xff]   ;;  %v2910_v7 = vld [vmem:[%s4864_s1 + $0x34] ss:$8 sps:$4 sm:$0xff]  }
  0x11   : > { %606 = vmatpush1.bf16.msra.mxu0 %v2903_v1  ;;  %2868 = vmatpush1.bf16.msra.mxu1 %v2903_v1  ;;  %s4958_s18 = smov (!%p212_p4, %s2676_s18), 127  ;;  %v2912_v8 = vld [vmem:[%s4864_s1 + $0x30] ss:$8 sps:$4 sm:$0xff]   ;;  %v2913_v9 = vld [vmem:[%s4864_s1 + $0x44] ss:$8 sps:$4 sm:$0xff]   ;;  %v324_v50 = vshrl.u32 %v323_v49, 7 }
  0x12   : > { %607 = vmatprep.subr.bf16.mxu0 %v2904_v3  ;;  %2861 = vmatprep.subr.bf16.mxu1 %v2904_v3  ;;  %s2677_s27 = sshll.u32 %s4958_s18, 2  ;;  %v2915_v10 = vld [vmem:[%s4864_s1 + $0x40] ss:$8 sps:$4 sm:$0xff]   ;;  %v2916_v11 = vld [vmem:[%s4864_s1 + $0x54] ss:$8 sps:$4 sm:$0xff]   ;;  %s2795_s5 = sshll.u32 %s4958_s18, 3 }
  0x13   : > { %s3305_s7 = scalar_lea.vmem %s4863_s0, %s2677_s27  ;;  %v2918_v12 = vld [vmem:[%s4864_s1 + $0x50] ss:$8 sps:$4 sm:$0xff]   ;;  %v2919_v13 = vld [vmem:[%s4864_s1 + $0x64] ss:$8 sps:$4 sm:$0xff]   ;;  %v2921_v14 = vld [vmem:[%s4864_s1 + $0x60] ss:$8 sps:$4 sm:$0xff]   ;;  %s3548_s18 = scalar_lea.vmem %s4866_s3, %s2795_s5 }
  0x14   : > { %v2922_v15 = vld [vmem:[%s4864_s1 + $0x74] ss:$8 sps:$4 sm:$0xff]   ;;  %v2924_v16 = vld [vmem:[%s4864_s1 + $0x70] ss:$8 sps:$4 sm:$0xff]   ;;  %v2925_v17 = vld [vmem:[%s3305_s7] sm:$0xff]   ;;  %v325_v51 = vsub.s32 0, %v324_v50 }
  0x15   : > { %608 = vmatpush1.bf16.msra.mxu0 %v2906_v4  ;;  %2869 = vmatpush1.bf16.msra.mxu1 %v2906_v4  ;;  %v2926_v18 = vld [vmem:[%s3305_s7 + $0x80] sm:$0xff]   ;;  %v2927_v19 = vld [vmem:[%s3305_s7 + $0x8] sm:$0xff]   ;;  %v2929_v21 = vld [vmem:[%s3305_s7 + $0x10] sm:$0xff]   ;;  %v329_v53 = vsub.s32 1, %v324_v50 }
  0x16   : > { %609 = vmatprep.subr.bf16.mxu0 %v2907_v5  ;;  %2862 = vmatprep.subr.bf16.mxu1 %v2907_v5  ;;  %v2928_v20 = vld [vmem:[%s3305_s7 + $0x88] sm:$0xff]   ;;  %v2930_v22 = vld [vmem:[%s3305_s7 + $0x90] sm:$0xff]   ;;  %v2931_v23 = vld [vmem:[%s3305_s7 + $0x18] sm:$0xff]  }
  0x17   : > { %v2932_v24 = vld [vmem:[%s3305_s7 + $0x98] sm:$0xff]   ;;  %v2933_v25 = vld [vmem:[%s3305_s7 + $0x20] sm:$0xff]   ;;  %v2935_v27 = vld [vmem:[%s3305_s7 + $0x28] sm:$0xff]  }
  0x18   : > { %v2934_v26 = vld [vmem:[%s3305_s7 + $0xa0] sm:$0xff]   ;;  %v2936_v28 = vld [vmem:[%s3305_s7 + $0xa8] sm:$0xff]   ;;  %v2937_v29 = vld [vmem:[%s3305_s7 + $0x30] sm:$0xff]  }
  0x19   : > { %610 = vmatpush1.bf16.msra.mxu0 %v2909_v6  ;;  %2870 = vmatpush1.bf16.msra.mxu1 %v2909_v6  ;;  %v2938_v30 = vld [vmem:[%s3305_s7 + $0xb0] sm:$0xff]   ;;  %v2939_v31 = vld [vmem:[%s3305_s7 + $0x38] sm:$0xff]   ;;  %v2941_v33 = vld [vmem:[%s3305_s7 + $0x40] sm:$0xff]  }
  0x1a   : > { %611 = vmatprep.subr.bf16.mxu0 %v2910_v7  ;;  %2863 = vmatprep.subr.bf16.mxu1 %v2910_v7  ;;  %v2940_v32 = vld [vmem:[%s3305_s7 + $0xb8] sm:$0xff]   ;;  %v2942_v34 = vld [vmem:[%s3305_s7 + $0xc0] sm:$0xff]   ;;  %v2943_v35 = vld [vmem:[%s3305_s7 + $0x48] sm:$0xff]  }
  0x1b   : > { %v2944_v36 = vld [vmem:[%s3305_s7 + $0xc8] sm:$0xff]   ;;  %v2945_v37 = vld [vmem:[%s3305_s7 + $0x50] sm:$0xff]   ;;  %v2947_v39 = vld [vmem:[%s3305_s7 + $0x58] sm:$0xff]  }
  0x1c   : > { %v2946_v38 = vld [vmem:[%s3305_s7 + $0xd0] sm:$0xff]   ;;  %v2948_v40 = vld [vmem:[%s3305_s7 + $0xd8] sm:$0xff]   ;;  %v2949_v41 = vld [vmem:[%s3305_s7 + $0x60] sm:$0xff]  }
  0x1d   : > { %612 = vmatpush1.bf16.msra.mxu0 %v2912_v8  ;;  %2871 = vmatpush1.bf16.msra.mxu1 %v2912_v8  ;;  %v2950_v42 = vld [vmem:[%s3305_s7 + $0xe0] sm:$0xff]   ;;  %v2951_v43 = vld [vmem:[%s3305_s7 + $0x68] sm:$0xff]   ;;  %v2953_v45 = vld [vmem:[%s3305_s7 + $0x70] sm:$0xff]  }
  0x1e   : > { %613 = vmatprep.subr.bf16.mxu0 %v2913_v9  ;;  %2864 = vmatprep.subr.bf16.mxu1 %v2913_v9  ;;  %v2952_v44 = vld [vmem:[%s3305_s7 + $0xe8] sm:$0xff]   ;;  %v2954_v46 = vld [vmem:[%s3305_s7 + $0xf0] sm:$0xff]   ;;  %v2955_v47 = vld [vmem:[%s3305_s7 + $0x78] sm:$0xff]  }
  0x1f   : > { %v2956_v48 = vld [vmem:[%s3305_s7 + $0xf8] sm:$0xff]   ;;  %v321_v52 = vld [vmem:[%s4865_s2] sm:$0x3] }
  0x20   : > { %v3399_v54 = vrot.slane %v321_v52, %v325_v51  ;;  %v3401_v55 = vrot.slane %v321_v52, %v329_v53 }
  0x21   : > { %614 = vmatpush1.bf16.msra.mxu0 %v2915_v10  ;;  %2872 = vmatpush1.bf16.msra.mxu1 %v2915_v10 }
  0x22   : > { %615 = vmatprep.subr.bf16.mxu0 %v2916_v11  ;;  %2865 = vmatprep.subr.bf16.mxu1 %v2916_v11 }
  0x25   : > { %616 = vmatpush1.bf16.msra.mxu0 %v2918_v12  ;;  %2873 = vmatpush1.bf16.msra.mxu1 %v2918_v12 }
  0x26   : > { %617 = vmatprep.subr.bf16.mxu0 %v2919_v13  ;;  %2866 = vmatprep.subr.bf16.mxu1 %v2919_v13 }
  0x29   : > { %618 = vmatpush1.bf16.msra.mxu0 %v2921_v14  ;;  %2874 = vmatpush1.bf16.msra.mxu1 %v2921_v14 }
  0x2a   : > { %619 = vmatprep.subr.bf16.mxu0 %v2922_v15  ;;  %2867 = vmatprep.subr.bf16.mxu1 %v2922_v15 }
  0x2d   : > { %620 = vmatpush1.bf16.msra.mxu0 %v2924_v16  ;;  %2875 = vmatpush1.bf16.msra.mxu1 %v2924_v16 }
  0x30   : > { %638 = vmatmul.mubr.bf16.vlgmr.msra.gmra.mrb[0].mxu0 %v2925_v17  ;;  %798 = vmatmul.mubr.bf16.vlgmr.msra.gmra.mrb[0].mxu1 %v2926_v18 }
  0x31   : > { %647 = vmatprep.mubr.bf16.mxu0 %v3237_v2  ;;  %807 = vmatprep.mubr.bf16.mxu1 %v3237_v2 }
  0x38   : > { %648 = vmatmul.mubr.bf16.gmra.mrb[4].mxu0 %v2927_v19  ;;  %808 = vmatmul.mubr.bf16.gmra.mrb[4].mxu1 %v2928_v20 }
  0x39   : > { %657 = vmatprep.mubr.bf16.mxu0 %v3237_v2  ;;  %817 = vmatprep.mubr.bf16.mxu1 %v3237_v2 }
  0x40   : > { %658 = vmatmul.mubr.bf16.gmra.mrb[8].mxu0 %v2929_v21  ;;  %818 = vmatmul.mubr.bf16.gmra.mrb[8].mxu1 %v2930_v22 }
  0x41   : > { %667 = vmatprep.mubr.bf16.mxu0 %v3237_v2  ;;  %827 = vmatprep.mubr.bf16.mxu1 %v3237_v2 }
  0x48   : > { %668 = vmatmul.mubr.bf16.gmra.mrb[12].mxu0 %v2931_v23  ;;  %828 = vmatmul.mubr.bf16.gmra.mrb[12].mxu1 %v2932_v24 }
  0x49   : > { %677 = vmatprep.mubr.bf16.mxu0 %v3237_v2  ;;  %837 = vmatprep.mubr.bf16.mxu1 %v3237_v2 }
  0x50   : > { %678 = vmatmul.mubr.bf16.gmra.mrb[16].mxu0 %v2933_v25  ;;  %838 = vmatmul.mubr.bf16.gmra.mrb[16].mxu1 %v2934_v26 }
  0x51   : > { %687 = vmatprep.mubr.bf16.mxu0 %v3237_v2  ;;  %847 = vmatprep.mubr.bf16.mxu1 %v3237_v2 }
  0x58   : > { %688 = vmatmul.mubr.bf16.gmra.mrb[20].mxu0 %v2935_v27  ;;  %848 = vmatmul.mubr.bf16.gmra.mrb[20].mxu1 %v2936_v28 }
  0x59   : > { %697 = vmatprep.mubr.bf16.mxu0 %v3237_v2  ;;  %857 = vmatprep.mubr.bf16.mxu1 %v3237_v2 }
  0x60   : > { %698 = vmatmul.mubr.bf16.gmra.mrb[24].mxu0 %v2937_v29  ;;  %858 = vmatmul.mubr.bf16.gmra.mrb[24].mxu1 %v2938_v30 }
  0x61   : > { %707 = vmatprep.mubr.bf16.mxu0 %v3237_v2  ;;  %867 = vmatprep.mubr.bf16.mxu1 %v3237_v2 }
  0x68   : > { %708 = vmatmul.mubr.bf16.gmra.mrb[28].mxu0 %v2939_v31  ;;  %868 = vmatmul.mubr.bf16.gmra.mrb[28].mxu1 %v2940_v32 }
  0x69   : > { %717 = vmatprep.mubr.bf16.mxu0 %v3237_v2  ;;  %877 = vmatprep.mubr.bf16.mxu1 %v3237_v2 }
  0x70   : > { %718 = vmatmul.mubr.bf16.gmra.mrb[32].mxu0 %v2941_v33  ;;  %878 = vmatmul.mubr.bf16.gmra.mrb[32].mxu1 %v2942_v34 }
  0x71   : > { %727 = vmatprep.mubr.bf16.mxu0 %v3237_v2  ;;  %887 = vmatprep.mubr.bf16.mxu1 %v3237_v2 }
  0x78   : > { %728 = vmatmul.mubr.bf16.gmra.mrb[36].mxu0 %v2943_v35  ;;  %888 = vmatmul.mubr.bf16.gmra.mrb[36].mxu1 %v2944_v36 }
  0x79   : > { %737 = vmatprep.mubr.bf16.mxu0 %v3237_v2  ;;  %897 = vmatprep.mubr.bf16.mxu1 %v3237_v2 }
  0x80   : > { %738 = vmatmul.mubr.bf16.gmra.mrb[40].mxu0 %v2945_v37  ;;  %898 = vmatmul.mubr.bf16.gmra.mrb[40].mxu1 %v2946_v38 }
  0x81   : > { %747 = vmatprep.mubr.bf16.mxu0 %v3237_v2  ;;  %907 = vmatprep.mubr.bf16.mxu1 %v3237_v2 }
  0x88   : > { %748 = vmatmul.mubr.bf16.gmra.mrb[44].mxu0 %v2947_v39  ;;  %908 = vmatmul.mubr.bf16.gmra.mrb[44].mxu1 %v2948_v40 }
  0x89   : > { %757 = vmatprep.mubr.bf16.mxu0 %v3237_v2  ;;  %917 = vmatprep.mubr.bf16.mxu1 %v3237_v2 }
  0x90   : > { %758 = vmatmul.mubr.bf16.gmra.mrb[48].mxu0 %v2949_v41  ;;  %918 = vmatmul.mubr.bf16.gmra.mrb[48].mxu1 %v2950_v42 }
  0x91   : > { %767 = vmatprep.mubr.bf16.mxu0 %v3237_v2  ;;  %927 = vmatprep.mubr.bf16.mxu1 %v3237_v2 }
  0x98   : > { %768 = vmatmul.mubr.bf16.gmra.mrb[52].mxu0 %v2951_v43  ;;  %928 = vmatmul.mubr.bf16.gmra.mrb[52].mxu1 %v2952_v44 }
  0x99   : > { %777 = vmatprep.mubr.bf16.mxu0 %v3237_v2  ;;  %937 = vmatprep.mubr.bf16.mxu1 %v3237_v2 }
  0xa0   : > { %778 = vmatmul.mubr.bf16.gmra.mrb[56].mxu0 %v2953_v45  ;;  %938 = vmatmul.mubr.bf16.gmra.mrb[56].mxu1 %v2954_v46 }
  0xa1   : > { %787 = vmatprep.mubr.bf16.mxu0 %v3237_v2  ;;  %947 = vmatprep.mubr.bf16.mxu1 %v3237_v2 }
  0xa8   : > { %788 = vmatmul.mubr.bf16.gmra.mrb[60].mxu0 %v2955_v47  ;;  %948 = vmatmul.mubr.bf16.gmra.mrb[60].mxu1 %v2956_v48 }
 0x103   : > { %v639_v56 = vpop.f32.mrb[0].mxu0  ;;  %v799_v57 = vpop.f32.mrb[0].mxu1 }
 0x104   : > { %v3404_v58 = vadd.f32 %v639_v56, %v3399_v54  ;;  %v3407_v59 = vadd.f32 %v799_v57, %v3399_v54  ;;  %v641_v60 = vpop.f32.mrb[1].mxu0  ;;  %v801_v61 = vpop.f32.mrb[1].mxu1 }
 0x105   : > { %v3410_v62 = vadd.f32 %v641_v60, %v3401_v55  ;;  %v3413_v63 = vadd.f32 %v801_v61, %v3401_v55  ;;  %v643_v0 = vpop.f32.mrb[2].mxu0  ;;  %v803_v1 = vpop.f32.mrb[2].mxu1 }
 0x106   : > { %v958_v2 = vmul.f32 %v3404_v58, %v3404_v58  ;;  %v1022_v3 = vmul.f32 %v3407_v59, %v3407_v59  ;;  %v3420_v4 = vadd.f32 %v643_v0, %v3399_v54  ;;  %v3423_v5 = vadd.f32 %v803_v1, %v3399_v54  ;;  %v645_v6 = vpop.f32.mrb[3].mxu0  ;;  %v805_v7 = vpop.f32.mrb[3].mxu1 }
 0x107   : > { %v959_v8 = vmul.f32 %v3410_v62, %v3410_v62  ;;  %v1023_v9 = vmul.f32 %v3413_v63, %v3413_v63  ;;  %v3430_v10 = vadd.f32 %v645_v6, %v3401_v55  ;;  %v3433_v11 = vadd.f32 %v805_v7, %v3401_v55 }
 0x108   : > { %v1086_v12 = vmul.f32 %v958_v2, %v3404_v58  ;;  %v1150_v13 = vmul.f32 %v1022_v3, %v3407_v59  ;;  %v960_v14 = vmul.f32 %v3420_v4, %v3420_v4  ;;  %v1024_v15 = vmul.f32 %v3423_v5, %v3423_v5 }
 0x109   : > { %v1087_v16 = vmul.f32 %v959_v8, %v3410_v62  ;;  %v1151_v17 = vmul.f32 %v1023_v9, %v3413_v63  ;;  %v961_v18 = vmul.f32 %v3430_v10, %v3430_v10  ;;  %v1025_v19 = vmul.f32 %v3433_v11, %v3433_v11 }
 0x10a   : > { %v1214_v20 = vmul.f32 0.044715, %v1086_v12  ;;  %v1278_v21 = vmul.f32 0.044715, %v1150_v13  ;;  %v1088_v22 = vmul.f32 %v960_v14, %v3420_v4  ;;  %v1152_v23 = vmul.f32 %v1024_v15, %v3423_v5 }
 0x10b   : > { %v1215_v24 = vmul.f32 0.044715, %v1087_v16  ;;  %v1279_v25 = vmul.f32 0.044715, %v1151_v17  ;;  %v1089_v26 = vmul.f32 %v961_v18, %v3430_v10  ;;  %v1153_v27 = vmul.f32 %v1025_v19, %v3433_v11  ;;  %v649_v28 = vpop.f32.mrb[4].mxu0  ;;  %v809_v29 = vpop.f32.mrb[4].mxu1 }
 0x10c   : > { %v1342_v30 = vadd.f32 %v1214_v20, %v3404_v58  ;;  %v1406_v31 = vadd.f32 %v1278_v21, %v3407_v59  ;;  %v1216_v32 = vmul.f32 0.044715, %v1088_v22  ;;  %v1280_v33 = vmul.f32 0.044715, %v1152_v23  ;;  %v651_v34 = vpop.f32.mrb[5].mxu0  ;;  %v811_v35 = vpop.f32.mrb[5].mxu1 }
 0x10d   : > { %v1343_v36 = vadd.f32 %v1215_v24, %v3410_v62  ;;  %v1407_v37 = vadd.f32 %v1279_v25, %v3413_v63  ;;  %v1217_v38 = vmul.f32 0.044715, %v1089_v26  ;;  %v1281_v39 = vmul.f32 0.044715, %v1153_v27  ;;  %v653_v40 = vpop.f32.mrb[6].mxu0  ;;  %v813_v41 = vpop.f32.mrb[6].mxu1 }
 0x10e   : > { %v1470_v42 = vmul.f32 0.7978846, %v1342_v30  ;;  %v1534_v43 = vmul.f32 0.7978846, %v1406_v31  ;;  %v1344_v44 = vadd.f32 %v1216_v32, %v3420_v4  ;;  %v1408_v45 = vadd.f32 %v1280_v33, %v3423_v5  ;;  %v655_v46 = vpop.f32.mrb[7].mxu0  ;;  %v815_v47 = vpop.f32.mrb[7].mxu1 }
 0x10f   : > { %v1471_v48 = vmul.f32 0.7978846, %v1343_v36  ;;  %v1535_v49 = vmul.f32 0.7978846, %v1407_v37  ;;  %v1345_v50 = vadd.f32 %v1217_v38, %v3430_v10  ;;  %v1409_v51 = vadd.f32 %v1281_v39, %v3433_v11 }
 0x110   : > { %2957 = vtanh.f32 %v1470_v42  ;;  %v1472_v52 = vmul.f32 0.7978846, %v1344_v44  ;;  %v1536_v53 = vmul.f32 0.7978846, %v1408_v45  ;;  %v3460_v56 = vadd.f32 %v649_v28, %v3399_v54 }
 0x111   : > { %2959 = vtanh.f32 %v1534_v43  ;;  %v1473_v57 = vmul.f32 0.7978846, %v1345_v50  ;;  %v1537_v60 = vmul.f32 0.7978846, %v1409_v51  ;;  %v3463_v61 = vadd.f32 %v809_v29, %v3399_v54 }
 0x112   : > { %2961 = vtanh.f32 %v1471_v48  ;;  %v962_v0 = vmul.f32 %v3460_v56, %v3460_v56  ;;  %v3468_v1 = vadd.f32 %v651_v34, %v3401_v55  ;;  %v3471_v2 = vadd.f32 %v811_v35, %v3401_v55 }
 0x113   : > { %2963 = vtanh.f32 %v1535_v49  ;;  %v1026_v3 = vmul.f32 %v3463_v61, %v3463_v61  ;;  %v3476_v6 = vadd.f32 %v653_v40, %v3399_v54  ;;  %v3479_v7 = vadd.f32 %v813_v41, %v3399_v54  ;;  %v3481_v8 = vpop.f32.mrb[8].mxu0  ;;  %v3483_v9 = vpop.f32.mrb[8].mxu1 }
 0x114   : > { %2965 = vtanh.f32 %v1472_v52  ;;  %v1090_v12 = vmul.f32 %v962_v0, %v3460_v56  ;;  %v963_v13 = vmul.f32 %v3468_v1, %v3468_v1  ;;  %v1027_v14 = vmul.f32 %v3471_v2, %v3471_v2  ;;  %v3490_v15 = vpop.f32.mrb[9].mxu0  ;;  %v3492_v16 = vpop.f32.mrb[9].mxu1 }
 0x115   : > { %2967 = vtanh.f32 %v1536_v53  ;;  %v1154_v17 = vmul.f32 %v1026_v3, %v3463_v61  ;;  %v964_v18 = vmul.f32 %v3476_v6, %v3476_v6  ;;  %v1028_v19 = vmul.f32 %v3479_v7, %v3479_v7  ;;  %v3499_v20 = vpop.f32.mrb[10].mxu0  ;;  %v3501_v21 = vpop.f32.mrb[10].mxu1 }
 0x116   : > { %2969 = vtanh.f32 %v1473_v57  ;;  %v1218_v22 = vmul.f32 0.044715, %v1090_v12  ;;  %v1091_v23 = vmul.f32 %v963_v13, %v3468_v1  ;;  %v1155_v24 = vmul.f32 %v1027_v14, %v3471_v2  ;;  %v3505_v25 = vpop.f32.mrb[11].mxu0  ;;  %v3507_v26 = vpop.f32.mrb[11].mxu1 }
 0x117   : > { %2971 = vtanh.f32 %v1537_v60  ;;  %v1282_v27 = vmul.f32 0.044715, %v1154_v17  ;;  %v1092_v28 = vmul.f32 %v964_v18, %v3476_v6  ;;  %v1156_v29 = vmul.f32 %v1028_v19, %v3479_v7 }
 0x118   : > { %v1346_v30 = vadd.f32 %v1218_v22, %v3460_v56  ;;  %v1219_v31 = vmul.f32 0.044715, %v1091_v23  ;;  %v1283_v32 = vmul.f32 0.044715, %v1155_v24  ;;  %v3513_v33 = vadd.f32 %v655_v46, %v3401_v55 }
 0x119   : > { %v1410_v34 = vadd.f32 %v1282_v27, %v3463_v61  ;;  %v1220_v35 = vmul.f32 0.044715, %v1092_v28  ;;  %v1284_v36 = vmul.f32 0.044715, %v1156_v29  ;;  %v3517_v37 = vadd.f32 %v815_v47, %v3401_v55 }
 0x11a   : > { %v2958_v38 = vpop.eup %2957  ;;  %v1474_v39 = vmul.f32 0.7978846, %v1346_v30  ;;  %v1347_v40 = vadd.f32 %v1219_v31, %v3468_v1  ;;  %v1411_v41 = vadd.f32 %v1283_v32, %v3471_v2  ;;  %v965_v42 = vmul.f32 %v3513_v33, %v3513_v33 }
 0x11b   : > { %v2960_v43 = vpop.eup %2959  ;;  %v1726_v44 = vadd.f32 1.0, %v2958_v38  ;;  %v1538_v45 = vmul.f32 0.7978846, %v1410_v34  ;;  %v1348_v46 = vadd.f32 %v1220_v35, %v3476_v6  ;;  %v1412_v48 = vadd.f32 %v1284_v36, %v3479_v7  ;;  %v3525_v49 = vpop.f32.mrb[12].mxu0 }
 0x11c   : > { %v3527_v47 = vpop.f32.mrb[12].mxu1  ;;  %v2962_v50 = vpop.eup %2961  ;;  %v1790_v51 = vadd.f32 1.0, %v2960_v43  ;;  %2973 = vtanh.f32 %v1474_v39  ;;  %v1475_v52 = vmul.f32 0.7978846, %v1347_v40  ;;  %v1539_v53 = vmul.f32 0.7978846, %v1411_v41 }
 0x11d   : > { %v3529_v57 = vpop.f32.mrb[13].mxu0  ;;  %v2964_v60 = vpop.eup %2963  ;;  %v1854_v0 = vmul.f32 0.5, %v1726_v44  ;;  %v1727_v3 = vadd.f32 1.0, %v2962_v50  ;;  %2975 = vtanh.f32 %v1538_v45  ;;  %v1476_v12 = vmul.f32 0.7978846, %v1348_v46 }
 0x11e   : > { %v3531_v13 = vpop.f32.mrb[13].mxu1  ;;  %v3533_v14 = vpop.f32.mrb[14].mxu0  ;;  %v1918_v18 = vmul.f32 0.5, %v1790_v51  ;;  %v1791_v19 = vadd.f32 1.0, %v2964_v60  ;;  %2977 = vtanh.f32 %v1475_v52  ;;  %v1540_v22 = vmul.f32 0.7978846, %v1412_v48 }
 0x11f   : > { %v2966_v17 = vpop.eup %2965  ;;  %v3535_v23 = vpop.f32.mrb[14].mxu1  ;;  %v1982_v28 = vmul.f32 %v1854_v0, %v3404_v58  ;;  %v1855_v29 = vmul.f32 0.5, %v1727_v3  ;;  %2979 = vtanh.f32 %v1539_v53 }
 0x120   : > { %v3537_v24 = vpop.f32.mrb[15].mxu0  ;;  %v2968_v27 = vpop.eup %2967  ;;  %v1728_v30 = vadd.f32 1.0, %v2966_v17  ;;  %v2046_v34 = vmul.f32 %v1918_v18, %v3407_v59  ;;  %v1919_v35 = vmul.f32 0.5, %v1791_v19  ;;  %2981 = vtanh.f32 %v1476_v12 }
 0x121   : > { %v3541_v31 = vpop.f32.mrb[15].mxu1  ;;  %v2970_v32 = vpop.eup %2969  ;;  %v1792_v36 = vadd.f32 1.0, %v2968_v27  ;;  %v1983_v39 = vmul.f32 %v1855_v29, %v3410_v62  ;;  %2983 = vtanh.f32 %v1540_v22  ;;  %v1093_v59 = vmul.f32 %v965_v42, %v3513_v33 }
 0x122   : > { %v2972_v38 = vpop.eup %2971  ;;  %v1856_v40 = vmul.f32 0.5, %v1728_v30  ;;  %v1729_v41 = vadd.f32 1.0, %v2970_v32  ;;  %v2047_v58 = vmul.f32 %v1919_v35, %v3413_v63  ;;  %v1029_v62 = vmul.f32 %v3517_v37, %v3517_v37 }
 0x123   : > { %v1920_v43 = vmul.f32 0.5, %v1792_v36  ;;  %v1793_v44 = vadd.f32 1.0, %v2972_v38  ;;  %v2796_v45 = vpack.c.bf16 %v1983_v39, %v1982_v28  ;;  %v3555_v50 = vpop.f32.mrb[16].mxu0  ;;  %v3557_v51 = vpop.f32.mrb[16].mxu1  ;;  %v1221_v60 = vmul.f32 0.044715, %v1093_v59 }
 0x124   : > { %v1984_v46 = vmul.f32 %v1856_v40, %v3420_v4  ;;  %v1857_v48 = vmul.f32 0.5, %v1729_v41  ;;  %v2828_v52 = vpack.c.bf16 %v2047_v58, %v2046_v34  ;;  %v3560_v0 = vpop.f32.mrb[17].mxu0  ;;  %v3562_v42 = vpop.f32.mrb[17].mxu1  ;;  %v1157_v3 = vmul.f32 %v1029_v62, %v3517_v37 }
 0x125   : > { %v2048_v63 = vmul.f32 %v1920_v43, %v3423_v5  ;;  %v1921_v53 = vmul.f32 0.5, %v1793_v44  ;;  %2494 = vst [vmem:[%s3548_s18] sm:$0xff] %v2796_v45  ;;  %v3569_v12 = vadd.f32 %v3481_v8, %v3399_v54  ;;  %v3573_v17 = vadd.f32 %v3483_v9, %v3399_v54  ;;  %v3575_v5 = vpop.f32.mrb[18].mxu0  ;;  %v3577_v18 = vpop.f32.mrb[18].mxu1 }
 0x126   : > { %v1985_v4 = vmul.f32 %v1857_v48, %v3430_v10  ;;  %v2974_v19 = vpop.eup %2973  ;;  %2526 = vst [vmem:[%s3548_s18 + $0x100] sm:$0xff] %v2828_v52  ;;  %v1349_v10 = vadd.f32 %v1221_v60, %v3513_v33  ;;  %v3584_v27 = vadd.f32 %v3490_v15, %v3401_v55  ;;  %v3588_v8 = vadd.f32 %v3492_v16, %v3401_v55  ;;  %v3590_v9 = vpop.f32.mrb[19].mxu0 }
 0x127   : > { %v2049_v22 = vmul.f32 %v1921_v53, %v3433_v11  ;;  %v3592_v28 = vpop.f32.mrb[19].mxu1  ;;  %v2976_v29 = vpop.eup %2975  ;;  %v1730_v32 = vadd.f32 1.0, %v2974_v19  ;;  %v1285_v11 = vmul.f32 0.044715, %v1157_v3  ;;  %v966_v34 = vmul.f32 %v3569_v12, %v3569_v12 }
 0x128   : > { %v2797_v30 = vpack.c.bf16 %v1985_v4, %v1984_v46  ;;  %v2978_v35 = vpop.eup %2977  ;;  %v1794_v15 = vadd.f32 1.0, %v2976_v29  ;;  %v1477_v38 = vmul.f32 0.7978846, %v1349_v10  ;;  %v1030_v16 = vmul.f32 %v3573_v17, %v3573_v17 }
 0x129   : > { %v2829_v36 = vpack.c.bf16 %v2049_v22, %v2048_v63  ;;  %v2980_v39 = vpop.eup %2979  ;;  %v1858_v40 = vmul.f32 0.5, %v1730_v32  ;;  %v1731_v41 = vadd.f32 1.0, %v2978_v35  ;;  %v1413_v58 = vadd.f32 %v1285_v11, %v3517_v37 }
 0x12a   : > { %2495 = vst [vmem:[%s3548_s18 + $0x8] sm:$0xff] %v2797_v30  ;;  %v1094_v43 = vmul.f32 %v966_v34, %v3569_v12  ;;  %v2982_v44 = vpop.eup %2981  ;;  %v1922_v59 = vmul.f32 0.5, %v1794_v15  ;;  %v1795_v45 = vadd.f32 1.0, %v2980_v39  ;;  %2985 = vtanh.f32 %v1477_v38 }
 0x12b   : > { %2527 = vst [vmem:[%s3548_s18 + $0x108] sm:$0xff] %v2829_v36  ;;  %v1158_v46 = vmul.f32 %v1030_v16, %v3573_v17  ;;  %v2984_v48 = vpop.eup %2983  ;;  %v1986_v62 = vmul.f32 %v1858_v40, %v3460_v56  ;;  %v1859_v52 = vmul.f32 0.5, %v1731_v41  ;;  %v1732_v63 = vadd.f32 1.0, %v2982_v44  ;;  %v3604_v60 = vpop.f32.mrb[20].mxu0 }
 0x12c   : > { %v1541_v53 = vmul.f32 0.7978846, %v1413_v58  ;;  %v3606_v4 = vpop.f32.mrb[20].mxu1  ;;  %v2050_v3 = vmul.f32 %v1922_v59, %v3463_v61  ;;  %v1923_v19 = vmul.f32 0.5, %v1795_v45  ;;  %v1796_v22 = vadd.f32 1.0, %v2984_v48  ;;  %v3609_v29 = vpop.f32.mrb[21].mxu0 }
 0x12d   : > { %v1222_v10 = vmul.f32 0.044715, %v1094_v43  ;;  %v3611_v30 = vpop.f32.mrb[21].mxu1  ;;  %v1987_v32 = vmul.f32 %v1859_v52, %v3468_v1  ;;  %v1860_v11 = vmul.f32 0.5, %v1732_v63  ;;  %v1286_v56 = vmul.f32 0.044715, %v1158_v46 }
 0x12e   : > { %2987 = vtanh.f32 %v1541_v53  ;;  %v3614_v34 = vpop.f32.mrb[22].mxu0  ;;  %v3616_v35 = vpop.f32.mrb[22].mxu1  ;;  %v2051_v36 = vmul.f32 %v1923_v19, %v3471_v2  ;;  %v1924_v61 = vmul.f32 0.5, %v1796_v22  ;;  %v967_v38 = vmul.f32 %v3584_v27, %v3584_v27 }
 0x12f   : > { %v1350_v15 = vadd.f32 %v1222_v10, %v3569_v12  ;;  %v3622_v16 = vpop.f32.mrb[23].mxu0  ;;  %v3624_v1 = vpop.f32.mrb[23].mxu1  ;;  %v2798_v39 = vpack.c.bf16 %v1987_v32, %v1986_v62  ;;  %v3627_v40 = vmul.f32 %v1860_v11, %v3476_v6  ;;  %v1414_v41 = vadd.f32 %v1286_v56, %v3573_v17 }
 0x130   : > { %v1031_v2 = vmul.f32 %v3588_v8, %v3588_v8  ;;  %v2830_v58 = vpack.c.bf16 %v2051_v36, %v2050_v3  ;;  %v3633_v43 = vmul.f32 %v1924_v61, %v3479_v7  ;;  %v1095_v59 = vmul.f32 %v967_v38, %v3584_v27 }
 0x131   : > { %v1478_v44 = vmul.f32 0.7978846, %v1350_v15  ;;  %2496 = vst [vmem:[%s3548_s18 + $0x10] sm:$0xff] %v2798_v39  ;;  %v1542_v45 = vmul.f32 0.7978846, %v1414_v41  ;;  %v3640_v6 = vadd.f32 %v3499_v20, %v3399_v54  ;;  %v3644_v48 = vadd.f32 %v3501_v21, %v3399_v54 }
 0x132   : > { %v1159_v46 = vmul.f32 %v1031_v2, %v3588_v8  ;;  %2528 = vst [vmem:[%s3548_s18 + $0x110] sm:$0xff] %v2830_v58  ;;  %v1223_v62 = vmul.f32 0.044715, %v1095_v59  ;;  %v3649_v7 = vadd.f32 %v3505_v25, %v3401_v55  ;;  %v3653_v52 = vadd.f32 %v3507_v26, %v3401_v55 }
 0x133   : > { %2989 = vtanh.f32 %v1478_v44  ;;  %v968_v20 = vmul.f32 %v3640_v6, %v3640_v6  ;;  %v1032_v21 = vmul.f32 %v3644_v48, %v3644_v48  ;;  %v3659_v53 = vpop.f32.mrb[24].mxu0  ;;  %v3661_v3 = vpop.f32.mrb[24].mxu1  ;;  %v3670_v10 = vadd.f32 %v3525_v49, %v3399_v54 }
 0x134   : > { %2991 = vtanh.f32 %v1542_v45  ;;  %v1287_v63 = vmul.f32 0.044715, %v1159_v46  ;;  %v2986_v19 = vpop.eup %2985  ;;  %v1351_v25 = vadd.f32 %v1223_v62, %v3584_v27  ;;  %v969_v22 = vmul.f32 %v3649_v7, %v3649_v7  ;;  %v3672_v32 = vpop.f32.mrb[25].mxu0 }
 0x135   : > { %v1033_v26 = vmul.f32 %v3653_v52, %v3653_v52  ;;  %v3674_v11 = vpop.f32.mrb[25].mxu1  ;;  %v1733_v56 = vadd.f32 1.0, %v2986_v19  ;;  %v1096_v61 = vmul.f32 %v968_v20, %v3640_v6  ;;  %v1160_v15 = vmul.f32 %v1032_v21, %v3644_v48  ;;  %v3679_v38 = vpop.f32.mrb[26].mxu0 }
 0x136   : > { %v1415_v36 = vadd.f32 %v1287_v63, %v3588_v8  ;;  %v3681_v39 = vpop.f32.mrb[26].mxu1  ;;  %v1479_v41 = vmul.f32 0.7978846, %v1351_v25  ;;  %v1097_v2 = vmul.f32 %v969_v22, %v3649_v7  ;;  %v970_v58 = vmul.f32 %v3670_v10, %v3670_v10  ;;  %v3687_v44 = vpop.f32.mrb[27].mxu0 }
 0x137   : > { %4867 = vst [vmem:[#allocation2_spill] sm:$0xff] %v3681_v39  ;;  %v1161_v49 = vmul.f32 %v1033_v26, %v3653_v52  ;;  %4868 = vst [vmem:[#allocation3_spill] sm:$0xff] %v3687_v44  ;;  %v3689_v59 = vpop.f32.mrb[27].mxu1  ;;  %v1861_v46 = vmul.f32 0.5, %v1733_v56  ;;  %v1224_v63 = vmul.f32 0.044715, %v1096_v61  ;;  %v3693_v20 = vadd.f32 %v3527_v47, %v3399_v54 }
 0x138   : > { %v2988_v45 = vpop.eup %2987  ;;  %v1543_v62 = vmul.f32 0.7978846, %v1415_v36  ;;  %2993 = vtanh.f32 %v1479_v41  ;;  %v1288_v19 = vmul.f32 0.044715, %v1160_v15  ;;  %v1225_v25 = vmul.f32 0.044715, %v1097_v2 }
 0x139   : > { %v1797_v21 = vadd.f32 1.0, %v2988_v45  ;;  %v1989_v22 = vmul.f32 %v1861_v46, %v3513_v33  ;;  %v1352_v26 = vadd.f32 %v1224_v63, %v3640_v6  ;;  %v1289_v44 = vmul.f32 0.044715, %v1161_v49 }
 0x13a   : > { %2995 = vtanh.f32 %v1543_v62  ;;  %v1416_v56 = vadd.f32 %v1288_v19, %v3644_v48  ;;  %v1353_v36 = vadd.f32 %v1225_v25, %v3649_v7  ;;  %v1098_v61 = vmul.f32 %v970_v58, %v3670_v10 }
 0x13b   : > { %v1925_v39 = vmul.f32 0.5, %v1797_v21  ;;  %v2799_v47 = vpack.c.bf16 %v1989_v22, %v3627_v40  ;;  %v1480_v45 = vmul.f32 0.7978846, %v1352_v26  ;;  %v1417_v15 = vadd.f32 %v1289_v44, %v3653_v52  ;;  %v3704_v41 = vpop.f32.mrb[28].mxu0  ;;  %v3706_v2 = vpop.f32.mrb[28].mxu1 }
 0x13c   : > { %v1034_v33 = vmul.f32 %v3693_v20, %v3693_v20  ;;  %4869 = vst [vmem:[#allocation4_spill] sm:$0xff] %v3704_v41  ;;  %4870 = vst [vmem:[#allocation5_spill] sm:$0xff] %v3706_v2  ;;  %v1544_v62 = vmul.f32 0.7978846, %v1416_v56  ;;  %v1481_v63 = vmul.f32 0.7978846, %v1353_v36 }
 0x13d   : > { %v2990_v49 = vpop.eup %2989  ;;  %v2053_v46 = vmul.f32 %v1925_v39, %v3517_v37  ;;  %v1226_v21 = vmul.f32 0.044715, %v1098_v61  ;;  %2497 = vst [vmem:[%s3548_s18 + $0x18] sm:$0xff] %v2799_v47  ;;  %2997 = vtanh.f32 %v1480_v45  ;;  %v1545_v40 = vmul.f32 0.7978846, %v1417_v15  ;;  %v3711_v25 = vpop.f32.mrb[29].mxu0 }
 0x13e   : > { %v2992_v19 = vpop.eup %2991  ;;  %v1734_v58 = vadd.f32 1.0, %v2990_v49  ;;  %v1162_v44 = vmul.f32 %v1034_v33, %v3693_v20  ;;  %4871 = vst [vmem:[#allocation6_spill] sm:$0xff] %v3711_v25  ;;  %v3713_v22 = vpop.f32.mrb[29].mxu1  ;;  %2999 = vtanh.f32 %v1544_v62  ;;  %v3723_v47 = vadd.f32 %v3529_v57, %v3401_v55 }
 0x13f   : > { %4872 = vst [vmem:[#allocation7_spill] sm:$0xff] %v3713_v22  ;;  %v2831_v26 = vpack.c.bf16 %v2053_v46, %v3633_v43  ;;  %v1798_v2 = vadd.f32 1.0, %v2992_v19  ;;  %v1354_v37 = vadd.f32 %v1226_v21, %v3670_v10  ;;  %v3717_v39 = vpop.f32.mrb[30].mxu0  ;;  %v3719_v56 = vpop.f32.mrb[30].mxu1  ;;  %3001 = vtanh.f32 %v1481_v63 }
 0x140   : > { %4873 = vst [vmem:[#allocation8_spill] sm:$0xff] %v3717_v39  ;;  %4874 = vst [vmem:[#allocation9_spill] sm:$0xff] %v3719_v56  ;;  %v1862_v36 = vmul.f32 0.5, %v1734_v58  ;;  %v1290_v61 = vmul.f32 0.044715, %v1162_v44  ;;  %v3725_v45 = vpop.f32.mrb[31].mxu0  ;;  %3003 = vtanh.f32 %v1545_v40  ;;  %v3732_v49 = vadd.f32 %v3531_v13, %v3401_v55 }
 0x141   : > { %4875 = vst [vmem:[#allocation10_spill] sm:$0xff] %v3725_v45  ;;  %v3727_v15 = vpop.f32.mrb[31].mxu1  ;;  %2529 = vst [vmem:[%s3548_s18 + $0x118] sm:$0xff] %v2831_v26  ;;  %v1926_v43 = vmul.f32 0.5, %v1798_v2  ;;  %v1482_v33 = vmul.f32 0.7978846, %v1354_v37  ;;  %v971_v57 = vmul.f32 %v3723_v47, %v3723_v47  ;;  %v3740_v63 = vadd.f32 %v3533_v14, %v3399_v54 }
 0x142   : > { %4876 = vst [vmem:[#allocation11_spill] sm:$0xff] %v3727_v15  ;;  %v1990_v46 = vmul.f32 %v1862_v36, %v3569_v12  ;;  %v1418_v62 = vadd.f32 %v1290_v61, %v3693_v20  ;;  %v2994_v21 = vpop.eup %2993  ;;  %v1035_v19 = vmul.f32 %v3732_v49, %v3732_v49  ;;  %v3747_v13 = vadd.f32 %v3535_v23, %v3399_v54 }
 0x143   : > { %v2054_v2 = vmul.f32 %v1926_v43, %v3573_v17  ;;  %3005 = vtanh.f32 %v1482_v33  ;;  %v1735_v58 = vadd.f32 1.0, %v2994_v21  ;;  %v1099_v44 = vmul.f32 %v971_v57, %v3723_v47  ;;  %v3752_v26 = vpop.f32.mrb[32].mxu0  ;;  %v3754_v37 = vpop.f32.mrb[32].mxu1 }
 0x144   : > { %v2996_v12 = vpop.eup %2995  ;;  %v1546_v40 = vmul.f32 0.7978846, %v1418_v62  ;;  %v972_v14 = vmul.f32 %v3740_v63, %v3740_v63  ;;  %4877 = vst [vmem:[#allocation12_spill] sm:$0xff] %v3752_v26  ;;  %4878 = vst [vmem:[#allocation13_spill] sm:$0xff] %v3754_v37  ;;  %v1163_v36 = vmul.f32 %v1035_v19, %v3732_v49  ;;  %v1036_v61 = vmul.f32 %v3747_v13, %v3747_v13  ;;  %v3763_v43 = vpop.f32.mrb[33].mxu0 }
 0x145   : > { %v1799_v17 = vadd.f32 1.0, %v2996_v12  ;;  %v3761_v23 = vadd.f32 %v3537_v24, %v3401_v55  ;;  %4879 = vst [vmem:[#allocation14_spill] sm:$0xff] %v3763_v43  ;;  %v3765_v33 = vpop.f32.mrb[33].mxu1  ;;  %v1863_v62 = vmul.f32 0.5, %v1735_v58  ;;  %v1227_v57 = vmul.f32 0.044715, %v1099_v44 }
 0x146   : > { %4880 = vst [vmem:[#allocation15_spill] sm:$0xff] %v3765_v33  ;;  %3007 = vtanh.f32 %v1546_v40  ;;  %v1100_v21 = vmul.f32 %v972_v14, %v3740_v63  ;;  %v3768_v37 = vpop.f32.mrb[34].mxu0  ;;  %v3770_v12 = vpop.f32.mrb[34].mxu1  ;;  %v1291_v26 = vmul.f32 0.044715, %v1163_v36  ;;  %v1164_v15 = vmul.f32 %v1036_v61, %v3747_v13 }
 0x147   : > { %4881 = vst [vmem:[#allocation16_spill] sm:$0xff] %v3768_v37  ;;  %4882 = vst [vmem:[#allocation17_spill] sm:$0xff] %v3770_v12  ;;  %v1927_v19 = vmul.f32 0.5, %v1799_v17  ;;  %v973_v24 = vmul.f32 %v3761_v23, %v3761_v23  ;;  %v3775_v45 = vpop.f32.mrb[35].mxu0  ;;  %v3777_v43 = vpop.f32.mrb[35].mxu1  ;;  %v1991_v40 = vmul.f32 %v1863_v62, %v3584_v27  ;;  %v1355_v44 = vadd.f32 %v1227_v57, %v3723_v47 }
 0x148   : > { %4883 = vst [vmem:[#allocation18_spill] sm:$0xff] %v3775_v45  ;;  %4884 = vst [vmem:[#allocation19_spill] sm:$0xff] %v3777_v43  ;;  %v2998_v58 = vpop.eup %2997  ;;  %v1228_v14 = vmul.f32 0.044715, %v1100_v21  ;;  %v3783_v12 = vadd.f32 %v3541_v31, %v3401_v55  ;;  %v1419_v37 = vadd.f32 %v1291_v26, %v3732_v49  ;;  %v1292_v45 = vmul.f32 0.044715, %v1164_v15 }
 0x149   : > { %v3000_v17 = vpop.eup %2999  ;;  %v2055_v36 = vmul.f32 %v1927_v19, %v3588_v8  ;;  %v1736_v61 = vadd.f32 1.0, %v2998_v58  ;;  %v2800_v43 = vpack.c.bf16 %v1991_v40, %v1990_v46  ;;  %v1483_v27 = vmul.f32 0.7978846, %v1355_v44 }
 0x14a   : > { %v3002_v33 = vpop.eup %3001  ;;  %v1800_v56 = vadd.f32 1.0, %v3000_v17  ;;  %v1356_v62 = vadd.f32 %v1228_v14, %v3740_v63  ;;  %v1547_v22 = vmul.f32 0.7978846, %v1419_v37 }
 0x14b   : > { %v3004_v57 = vpop.eup %3003  ;;  %v2832_v21 = vpack.c.bf16 %v2055_v36, %v2054_v2  ;;  %v1864_v39 = vmul.f32 0.5, %v1736_v61  ;;  %v1737_v31 = vadd.f32 1.0, %v3002_v33  ;;  %2498 = vst [vmem:[%s3548_s18 + $0x20] sm:$0xff] %v2800_v43  ;;  %3009 = vtanh.f32 %v1483_v27  ;;  %v3789_v19 = vpop.f32.mrb[36].mxu0 }
 0x14c   : > { %v1928_v25 = vmul.f32 0.5, %v1800_v56  ;;  %v1801_v41 = vadd.f32 1.0, %v3004_v57  ;;  %v1484_v8 = vmul.f32 0.7978846, %v1356_v62  ;;  %v3791_v15 = vpop.f32.mrb[36].mxu1  ;;  %3011 = vtanh.f32 %v1547_v22  ;;  %v3796_v40 = vpop.f32.mrb[37].mxu0 }
 0x14d   : > { %v3006_v46 = vpop.eup %3005  ;;  %2530 = vst [vmem:[%s3548_s18 + $0x120] sm:$0xff] %v2832_v21  ;;  %v1992_v26 = vmul.f32 %v1864_v39, %v3640_v6  ;;  %v1865_v58 = vmul.f32 0.5, %v1737_v31  ;;  %v1420_v2 = vadd.f32 %v1292_v45, %v3747_v13  ;;  %v3798_v37 = vpop.f32.mrb[37].mxu1  ;;  %v1101_v22 = vmul.f32 %v973_v24, %v3761_v23 }
 0x14e   : > { %v2056_v56 = vmul.f32 %v1928_v25, %v3644_v48  ;;  %v1929_v43 = vmul.f32 0.5, %v1801_v41  ;;  %v1738_v33 = vadd.f32 1.0, %v3006_v46  ;;  %3013 = vtanh.f32 %v1484_v8  ;;  %v3801_v44 = vpop.f32.mrb[38].mxu0  ;;  %v3803_v14 = vpop.f32.mrb[38].mxu1 }
 0x14f   : > { %v1993_v17 = vmul.f32 %v1865_v58, %v3649_v7  ;;  %v1548_v6 = vmul.f32 0.7978846, %v1420_v2  ;;  %v1037_v39 = vmul.f32 %v3783_v12, %v3783_v12  ;;  %v3809_v45 = vpop.f32.mrb[39].mxu0  ;;  %v3811_v36 = vpop.f32.mrb[39].mxu1  ;;  %v3816_v61 = vadd.f32 %v3555_v50, %v3399_v54 }
 0x150   : > { %v3008_v48 = vpop.eup %3007  ;;  %v2057_v41 = vmul.f32 %v1929_v43, %v3653_v52  ;;  %v1866_v25 = vmul.f32 0.5, %v1738_v33  ;;  %v3820_v7 = vadd.f32 %v3557_v51, %v3399_v54  ;;  %v1229_v62 = vmul.f32 0.044715, %v1101_v22 }
 0x151   : > { %v2801_v24 = vpack.c.bf16 %v1993_v17, %v1992_v26  ;;  %v1802_v27 = vadd.f32 1.0, %v3008_v48  ;;  %3015 = vtanh.f32 %v1548_v6  ;;  %v1165_v52 = vmul.f32 %v1037_v39, %v3783_v12 }
 0x152   : > { %v2833_v57 = vpack.c.bf16 %v2057_v41, %v2056_v56  ;;  %v3823_v21 = vmul.f32 %v1866_v25, %v3670_v10  ;;  %v974_v31 = vmul.f32 %v3816_v61, %v3816_v61  ;;  %v1357_v8 = vadd.f32 %v1229_v62, %v3761_v23 }
 0x153   : > { %2499 = vst [vmem:[%s3548_s18 + $0x28] sm:$0xff] %v2801_v24  ;;  %v1930_v50 = vmul.f32 0.5, %v1802_v27  ;;  %v1038_v51 = vmul.f32 %v3820_v7, %v3820_v7  ;;  %v3834_v46 = vadd.f32 %v3560_v0, %v3401_v55  ;;  %v1293_v26 = vmul.f32 0.044715, %v1165_v52  ;;  %v3846_v56 = vpop.f32.mrb[40].mxu0  ;;  %v3848_v43 = vpop.f32.mrb[40].mxu1 }
 0x154   : > { %2531 = vst [vmem:[%s3548_s18 + $0x128] sm:$0xff] %v2833_v57  ;;  %v1102_v10 = vmul.f32 %v974_v31, %v3816_v61  ;;  %v3840_v58 = vadd.f32 %v3562_v42, %v3401_v55  ;;  %v3844_v2 = vadd.f32 %v3575_v5, %v3399_v54  ;;  %4885 = vst [vmem:[#allocation20_spill] sm:$0xff] %v3848_v43  ;;  %v1485_v0 = vmul.f32 0.7978846, %v1357_v8  ;;  %v3854_v22 = vpop.f32.mrb[41].mxu0  ;;  %v3856_v42 = vpop.f32.mrb[41].mxu1 }
 0x155   : > { %v2058_v33 = vmul.f32 %v1930_v50, %v3693_v20  ;;  %v1166_v17 = vmul.f32 %v1038_v51, %v3820_v7  ;;  %v975_v6 = vmul.f32 %v3834_v46, %v3834_v46  ;;  %4886 = vst [vmem:[#allocation21_spill] sm:$0xff] %v3854_v22  ;;  %4887 = vst [vmem:[#allocation22_spill] sm:$0xff] %v3856_v42  ;;  %v3010_v39 = vpop.eup %3009  ;;  %v3863_v25 = vpop.f32.mrb[42].mxu0 }
 0x156   : > { %v1421_v5 = vadd.f32 %v1293_v26, %v3783_v12  ;;  %v1230_v48 = vmul.f32 0.044715, %v1102_v10  ;;  %v1039_v41 = vmul.f32 %v3840_v58, %v3840_v58  ;;  %v976_v20 = vmul.f32 %v3844_v2, %v3844_v2  ;;  %4888 = vst [vmem:[#allocation23_spill] sm:$0xff] %v3863_v25  ;;  %v3865_v24 = vpop.f32.mrb[42].mxu1  ;;  %v3012_v27 = vpop.eup %3011 }
 0x157   : > { %4889 = vst [vmem:[#allocation24_spill] sm:$0xff] %v3865_v24  ;;  %v1739_v62 = vadd.f32 1.0, %v3010_v39  ;;  %3017 = vtanh.f32 %v1485_v0  ;;  %v1294_v57 = vmul.f32 0.044715, %v1166_v17  ;;  %v1103_v52 = vmul.f32 %v975_v6, %v3834_v46  ;;  %v3871_v0 = vpop.f32.mrb[43].mxu0 }
 0x158   : > { %v3014_v31 = vpop.eup %3013  ;;  %v1803_v50 = vadd.f32 1.0, %v3012_v27  ;;  %v1549_v8 = vmul.f32 0.7978846, %v1421_v5  ;;  %v1358_v51 = vadd.f32 %v1230_v48, %v3816_v61  ;;  %v1167_v26 = vmul.f32 %v1039_v41, %v3840_v58  ;;  %v3875_v41 = vpop.f32.mrb[43].mxu1 }
 0x159   : > { %v1867_v10 = vmul.f32 0.5, %v1739_v62  ;;  %v1740_v42 = vadd.f32 1.0, %v3014_v31  ;;  %v1422_v22 = vadd.f32 %v1294_v57, %v3820_v7  ;;  %v1231_v25 = vmul.f32 0.044715, %v1103_v52 }
 0x15a   : > { %v1931_v43 = vmul.f32 0.5, %v1803_v50  ;;  %3019 = vtanh.f32 %v1549_v8  ;;  %v1486_v24 = vmul.f32 0.7978846, %v1358_v51  ;;  %v1295_v39 = vmul.f32 0.044715, %v1167_v26 }
 0x15b   : > { %v3016_v17 = vpop.eup %3015  ;;  %v1995_v6 = vmul.f32 %v1867_v10, %v3723_v47  ;;  %v1868_v27 = vmul.f32 0.5, %v1740_v42  ;;  %v1550_v5 = vmul.f32 0.7978846, %v1422_v22  ;;  %v1359_v48 = vadd.f32 %v1231_v25, %v3834_v46  ;;  %v3915_v51 = vpop.f32.mrb[44].mxu0 }
 0x15c   : > { %v2059_v62 = vmul.f32 %v1931_v43, %v3732_v49  ;;  %v1804_v57 = vadd.f32 1.0, %v3016_v17  ;;  %3021 = vtanh.f32 %v1486_v24  ;;  %v1423_v52 = vadd.f32 %v1295_v39, %v3840_v58  ;;  %v3917_v26 = vpop.f32.mrb[44].mxu1 }
 0x15d   : > { %v2802_v31 = vpack.c.bf16 %v1995_v6, %v3823_v21  ;;  %v3881_v50 = vmul.f32 %v1868_v27, %v3740_v63  ;;  %3023 = vtanh.f32 %v1550_v5  ;;  %v1487_v47 = vmul.f32 0.7978846, %v1359_v48 }
 0x15e   : > { %v2834_v42 = vpack.c.bf16 %v2059_v62, %v2058_v33  ;;  %v1932_v22 = vmul.f32 0.5, %v1804_v57  ;;  %v1551_v8 = vmul.f32 0.7978846, %v1423_v52  ;;  %v1104_v25 = vmul.f32 %v976_v20, %v3844_v2 }
 0x15f   : > { %2500 = vst [vmem:[%s3548_s18 + $0x30] sm:$0xff] %v2802_v31  ;;  %3025 = vtanh.f32 %v1487_v47  ;;  %v3887_v49 = vadd.f32 %v3577_v18, %v3399_v54  ;;  %v3891_v43 = vadd.f32 %v3590_v9, %v3401_v55  ;;  %v3895_v63 = vadd.f32 %v3592_v28, %v3401_v55 }
 0x160   : > { %2532 = vst [vmem:[%s3548_s18 + $0x130] sm:$0xff] %v2834_v42  ;;  %v3899_v21 = vmul.f32 %v1932_v22, %v3747_v13  ;;  %3027 = vtanh.f32 %v1551_v8  ;;  %v1232_v33 = vmul.f32 0.044715, %v1104_v25  ;;  %v3903_v20 = vadd.f32 %v3604_v60, %v3399_v54 }
 0x161   : > { %v3018_v18 = vpop.eup %3017  ;;  %v1040_v24 = vmul.f32 %v3887_v49, %v3887_v49  ;;  %v977_v9 = vmul.f32 %v3891_v43, %v3891_v43  ;;  %v1041_v28 = vmul.f32 %v3895_v63, %v3895_v63  ;;  %v3913_v13 = vadd.f32 %v3606_v4, %v3399_v54 }
 0x162   : > { %v1741_v60 = vadd.f32 1.0, %v3018_v18  ;;  %v1360_v10 = vadd.f32 %v1232_v33, %v3844_v2  ;;  %v978_v39 = vmul.f32 %v3903_v20, %v3903_v20  ;;  %v3924_v17 = vadd.f32 %v3609_v29, %v3401_v55 }
 0x163   : > { %v1168_v6 = vmul.f32 %v1040_v24, %v3887_v49  ;;  %v1105_v27 = vmul.f32 %v977_v9, %v3891_v43  ;;  %v1169_v4 = vmul.f32 %v1041_v28, %v3895_v63  ;;  %v1042_v5 = vmul.f32 %v3913_v13, %v3913_v13 }
 0x164   : > { %v3020_v48 = vpop.eup %3019  ;;  %v1869_v62 = vmul.f32 0.5, %v1741_v60  ;;  %v1488_v57 = vmul.f32 0.7978846, %v1360_v10  ;;  %v1106_v52 = vmul.f32 %v978_v39, %v3903_v20  ;;  %v979_v31 = vmul.f32 %v3924_v17, %v3924_v17  ;;  %v3938_v39 = vpop.f32.mrb[45].mxu0 }
 0x165   : > { %v1805_v47 = vadd.f32 1.0, %v3020_v48  ;;  %v1296_v29 = vmul.f32 0.044715, %v1168_v6  ;;  %v1233_v42 = vmul.f32 0.044715, %v1105_v27  ;;  %v1170_v22 = vmul.f32 %v1042_v5, %v3913_v13  ;;  %4890 = vst [vmem:[#allocation25_spill] sm:$0xff] %v3938_v39 }
 0x166   : > { %v3022_v8 = vpop.eup %3021  ;;  %v1997_v25 = vmul.f32 %v1869_v62, %v3761_v23  ;;  %3029 = vtanh.f32 %v1488_v57  ;;  %v1297_v33 = vmul.f32 0.044715, %v1169_v4  ;;  %v1234_v18 = vmul.f32 0.044715, %v1106_v52  ;;  %v3940_v6 = vpop.f32.mrb[45].mxu1 }
 0x167   : > { %v3024_v24 = vpop.eup %3023  ;;  %v1933_v9 = vmul.f32 0.5, %v1805_v47  ;;  %v1742_v28 = vadd.f32 1.0, %v3022_v8  ;;  %v1424_v60 = vadd.f32 %v1296_v29, %v3887_v49  ;;  %v1361_v10 = vadd.f32 %v1233_v42, %v3891_v43  ;;  %4891 = vst [vmem:[#allocation26_spill] sm:$0xff] %v3940_v6 }
 0x168   : > { %v2803_v27 = vpack.c.bf16 %v1997_v25, %v3881_v50  ;;  %v1806_v5 = vadd.f32 1.0, %v3024_v24  ;;  %v1425_v23 = vadd.f32 %v1297_v33, %v3895_v63  ;;  %v1362_v4 = vadd.f32 %v1234_v18, %v3903_v20  ;;  %v3949_v18 = vpop.f32.mrb[46].mxu0  ;;  %v3951_v24 = vpop.f32.mrb[46].mxu1 }
 0x169   : > { %v3026_v48 = vpop.eup %3025  ;;  %v2061_v62 = vmul.f32 %v1933_v9, %v3783_v12  ;;  %v1870_v57 = vmul.f32 0.5, %v1742_v28  ;;  %v1552_v52 = vmul.f32 0.7978846, %v1424_v60  ;;  %v1489_v47 = vmul.f32 0.7978846, %v1361_v10 }
 0x16a   : > { %v3028_v29 = vpop.eup %3027  ;;  %2501 = vst [vmem:[%s3548_s18 + $0x38] sm:$0xff] %v2803_v27  ;;  %v1934_v42 = vmul.f32 0.5, %v1806_v5  ;;  %v1743_v8 = vadd.f32 1.0, %v3026_v48  ;;  %v1553_v39 = vmul.f32 0.7978846, %v1425_v23  ;;  %v1107_v10 = vmul.f32 %v979_v31, %v3924_v17  ;;  %v3968_v5 = vpop.f32.mrb[47].mxu1 }
 0x16b   : > { %v1490_v6 = vmul.f32 0.7978846, %v1362_v4  ;;  %v2835_v50 = vpack.c.bf16 %v2061_v62, %v3899_v21  ;;  %v1998_v25 = vmul.f32 %v1870_v57, %v3816_v61  ;;  %v1807_v33 = vadd.f32 1.0, %v3028_v29 }
 0x16c   : > { %3031 = vtanh.f32 %v1552_v52  ;;  %v2062_v12 = vmul.f32 %v1934_v42, %v3820_v7  ;;  %v1871_v9 = vmul.f32 0.5, %v1743_v8  ;;  %v1298_v28 = vmul.f32 0.044715, %v1170_v22  ;;  %v3966_v22 = vpop.f32.mrb[47].mxu0 }
 0x16d   : > { %3033 = vtanh.f32 %v1489_v47  ;;  %2533 = vst [vmem:[%s3548_s18 + $0x138] sm:$0xff] %v2835_v50  ;;  %v1935_v60 = vmul.f32 0.5, %v1807_v33  ;;  %v3958_v21 = vadd.f32 %v3611_v30, %v3401_v55  ;;  %v3964_v7 = vadd.f32 %v3614_v34, %v3399_v54 }
 0x16e   : > { %3035 = vtanh.f32 %v1553_v39  ;;  %v1999_v61 = vmul.f32 %v1871_v9, %v3834_v46  ;;  %v1426_v27 = vadd.f32 %v1298_v28, %v3913_v13  ;;  %v1235_v39 = vmul.f32 0.044715, %v1107_v10 }
 0x16f   : > { %3037 = vtanh.f32 %v1490_v6  ;;  %v2063_v31 = vmul.f32 %v1935_v60, %v3840_v58  ;;  %v1043_v30 = vmul.f32 %v3958_v21, %v3958_v21  ;;  %v3975_v46 = vadd.f32 %v3616_v35, %v3399_v54 }
 0x170   : > { %v3030_v6 = vpop.eup %3029  ;;  %v2804_v23 = vpack.c.bf16 %v1999_v61, %v1998_v25  ;;  %v1554_v34 = vmul.f32 0.7978846, %v1426_v27  ;;  %v980_v4 = vmul.f32 %v3964_v7, %v3964_v7  ;;  %v3981_v48 = vadd.f32 %v3622_v16, %v3401_v55 }
 0x171   : > { %v2836_v58 = vpack.c.bf16 %v2063_v31, %v2062_v12  ;;  %v1744_v62 = vadd.f32 1.0, %v3030_v6  ;;  %v1363_v57 = vadd.f32 %v1235_v39, %v3924_v17  ;;  %v1171_v52 = vmul.f32 %v1043_v30, %v3958_v21 }
 0x172   : > { %2502 = vst [vmem:[%s3548_s18 + $0x40] sm:$0xff] %v2804_v23  ;;  %3039 = vtanh.f32 %v1554_v34  ;;  %v1108_v35 = vmul.f32 %v980_v4, %v3964_v7  ;;  %v1044_v47 = vmul.f32 %v3975_v46, %v3975_v46  ;;  %v981_v29 = vmul.f32 %v3981_v48, %v3981_v48 }
 0x173   : > { %2534 = vst [vmem:[%s3548_s18 + $0x140] sm:$0xff] %v2836_v58  ;;  %v1872_v42 = vmul.f32 0.5, %v1744_v62  ;;  %v1491_v16 = vmul.f32 0.7978846, %v1363_v57  ;;  %v1299_v8 = vmul.f32 0.044715, %v1171_v52  ;;  %v3994_v50 = vadd.f32 %v3624_v1, %v3401_v55 }
 0x174   : > { %v1236_v25 = vmul.f32 0.044715, %v1108_v35  ;;  %v1172_v33 = vmul.f32 %v1044_v47, %v3975_v46  ;;  %v1109_v12 = vmul.f32 %v981_v29, %v3981_v48  ;;  %v4000_v9 = vadd.f32 %v3659_v53, %v3399_v54 }
 0x175   : > { %v2000_v60 = vmul.f32 %v1872_v42, %v3844_v2  ;;  %3041 = vtanh.f32 %v1491_v16  ;;  %v1427_v10 = vadd.f32 %v1299_v8, %v3958_v21  ;;  %v1045_v61 = vmul.f32 %v3994_v50, %v3994_v50 }
 0x176   : > { %v3032_v28 = vpop.eup %3031  ;;  %v1364_v31 = vadd.f32 %v1236_v25, %v3964_v7  ;;  %v1300_v39 = vmul.f32 0.044715, %v1172_v33  ;;  %v1237_v30 = vmul.f32 0.044715, %v1109_v12  ;;  %v982_v2 = vmul.f32 %v4000_v9, %v4000_v9 }
 0x177   : > { %v3034_v1 = vpop.eup %3033  ;;  %v1808_v27 = vadd.f32 1.0, %v3032_v28  ;;  %v1555_v34 = vmul.f32 0.7978846, %v1427_v10  ;;  %v1173_v53 = vmul.f32 %v1045_v61, %v3994_v50  ;;  %v4014_v10 = vpop.f32.mrb[48].mxu0 }
 0x178   : > { %v3036_v6 = vpop.eup %3035  ;;  %v1745_v23 = vadd.f32 1.0, %v3034_v1  ;;  %v1492_v57 = vmul.f32 0.7978846, %v1364_v31  ;;  %v1428_v52 = vadd.f32 %v1300_v39, %v3975_v46  ;;  %v1365_v29 = vadd.f32 %v1237_v30, %v3981_v48  ;;  %v4022_v31 = vpop.f32.mrb[48].mxu1 }
 0x179   : > { %v3038_v4 = vpop.eup %3037  ;;  %v1936_v58 = vmul.f32 0.5, %v1808_v27  ;;  %v1809_v62 = vadd.f32 1.0, %v3036_v6  ;;  %3043 = vtanh.f32 %v1555_v34  ;;  %v1301_v28 = vmul.f32 0.044715, %v1173_v53  ;;  %v4024_v39 = vpop.f32.mrb[49].mxu0 }
 0x17a   : > { %v1873_v35 = vmul.f32 0.5, %v1745_v23  ;;  %v1746_v47 = vadd.f32 1.0, %v3038_v4  ;;  %3045 = vtanh.f32 %v1492_v57  ;;  %v1556_v8 = vmul.f32 0.7978846, %v1428_v52  ;;  %v4027_v23 = vpop.f32.mrb[49].mxu1 }
 0x17b   : > { %v2064_v42 = vmul.f32 %v1936_v58, %v3887_v49  ;;  %v1937_v16 = vmul.f32 0.5, %v1809_v62  ;;  %v1493_v12 = vmul.f32 0.7978846, %v1365_v29  ;;  %v1110_v27 = vmul.f32 %v982_v2, %v4000_v9  ;;  %v4032_v2 = vpop.f32.mrb[50].mxu0  ;;  %v4050_v29 = vpop.f32.mrb[50].mxu1 }
 0x17c   : > { %v2001_v25 = vmul.f32 %v1873_v35, %v3891_v43  ;;  %v1874_v33 = vmul.f32 0.5, %v1746_v47  ;;  %v3040_v61 = vpop.eup %3039  ;;  %3047 = vtanh.f32 %v1556_v8  ;;  %v4020_v49 = vadd.f32 %v3661_v3, %v3399_v54 }
 0x17d   : > { %v2065_v1 = vmul.f32 %v1937_v16, %v3895_v63  ;;  %v1810_v6 = vadd.f32 1.0, %v3040_v61  ;;  %3049 = vtanh.f32 %v1493_v12  ;;  %v1429_v34 = vadd.f32 %v1301_v28, %v3994_v50  ;;  %v4892_v61 = vld [vmem:[#allocation2_spill] sm:$0xff] }
 0x17e   : > { %v2805_v43 = vpack.c.bf16 %v2001_v25, %v2000_v60  ;;  %v2002_v30 = vmul.f32 %v1874_v33, %v3903_v20  ;;  %v1238_v53 = vmul.f32 0.044715, %v1110_v27  ;;  %v1046_v3 = vmul.f32 %v4020_v49, %v4020_v49 }
 0x17f   : > { %v2837_v63 = vpack.c.bf16 %v2065_v1, %v2064_v42  ;;  %v3042_v4 = vpop.eup %3041  ;;  %v1938_v58 = vmul.f32 0.5, %v1810_v6  ;;  %v4037_v60 = vadd.f32 %v3672_v32, %v3401_v55  ;;  %v4041_v20 = vadd.f32 %v3674_v11, %v3401_v55 }
 0x180   : > { %2503 = vst [vmem:[%s3548_s18 + $0x48] sm:$0xff] %v2805_v43  ;;  %v4045_v62 = vadd.f32 %v3679_v38, %v3399_v54  ;;  %v1747_v57 = vadd.f32 1.0, %v3042_v4  ;;  %v1557_v52 = vmul.f32 0.7978846, %v1429_v34  ;;  %v1366_v35 = vadd.f32 %v1238_v53, %v4000_v9 }
 0x181   : > { %2535 = vst [vmem:[%s3548_s18 + $0x148] sm:$0xff] %v2837_v63  ;;  %v1174_v47 = vmul.f32 %v1046_v3, %v4020_v49  ;;  %v2066_v32 = vmul.f32 %v1938_v58, %v3913_v13  ;;  %v983_v42 = vmul.f32 %v4037_v60, %v4037_v60  ;;  %v1047_v11 = vmul.f32 %v4041_v20, %v4041_v20  ;;  %v4070_v58 = vpop.f32.mrb[51].mxu0 }
 0x182   : > { %v984_v38 = vmul.f32 %v4045_v62, %v4045_v62  ;;  %v1875_v16 = vmul.f32 0.5, %v1747_v57  ;;  %3051 = vtanh.f32 %v1557_v52  ;;  %v1494_v8 = vmul.f32 0.7978846, %v1366_v35 }
 0x183   : > { %v1302_v25 = vmul.f32 0.044715, %v1174_v47  ;;  %v3044_v33 = vpop.eup %3043  ;;  %v1111_v12 = vmul.f32 %v983_v42, %v4037_v60  ;;  %v1175_v28 = vmul.f32 %v1047_v11, %v4041_v20  ;;  %v4064_v1 = vadd.f32 %v4892_v61, %v3399_v54  ;;  %v4072_v11 = vpop.f32.mrb[51].mxu1 }
 0x184   : > { %v1112_v13 = vmul.f32 %v984_v38, %v4045_v62  ;;  %v3046_v27 = vpop.eup %3045  ;;  %v2003_v43 = vmul.f32 %v1875_v16, %v3924_v17  ;;  %v1811_v6 = vadd.f32 1.0, %v3044_v33  ;;  %3053 = vtanh.f32 %v1494_v8 }
 0x185   : > { %v1430_v63 = vadd.f32 %v1302_v25, %v4020_v49  ;;  %v1748_v34 = vadd.f32 1.0, %v3046_v27  ;;  %v1239_v53 = vmul.f32 0.044715, %v1111_v12  ;;  %v1303_v3 = vmul.f32 0.044715, %v1175_v28 }
 0x186   : > { %v1048_v4 = vmul.f32 %v4064_v1, %v4064_v1  ;;  %v3048_v57 = vpop.eup %3047  ;;  %v2806_v52 = vpack.c.bf16 %v2003_v43, %v2002_v30  ;;  %v1939_v35 = vmul.f32 0.5, %v1811_v6  ;;  %v1240_v42 = vmul.f32 0.044715, %v1112_v13 }
 0x187   : > { %v1558_v47 = vmul.f32 0.7978846, %v1430_v63  ;;  %v3050_v17 = vpop.eup %3049  ;;  %v1876_v38 = vmul.f32 0.5, %v1748_v34  ;;  %v1812_v16 = vadd.f32 1.0, %v3048_v57  ;;  %v1367_v8 = vadd.f32 %v1239_v53, %v4037_v60 }
 0x188   : > { %v1431_v25 = vadd.f32 %v1303_v3, %v4041_v20  ;;  %2504 = vst [vmem:[%s3548_s18 + $0x50] sm:$0xff] %v2806_v52  ;;  %v2067_v33 = vmul.f32 %v1939_v35, %v3958_v21  ;;  %v1749_v12 = vadd.f32 1.0, %v3050_v17  ;;  %v1368_v30 = vadd.f32 %v1240_v42, %v4045_v62  ;;  %v4893_v21 = vld [vmem:[#allocation3_spill] sm:$0xff]  ;;  %v4894_v35 = vld [vmem:[#allocation4_spill] sm:$0xff]  ;;  %v4100_v42 = vpop.f32.mrb[52].mxu0  ;;  %v4102_v17 = vpop.f32.mrb[52].mxu1 }
 0x189   : > { %3055 = vtanh.f32 %v1558_v47  ;;  %v2004_v28 = vmul.f32 %v1876_v38, %v3964_v7  ;;  %v1940_v13 = vmul.f32 0.5, %v1812_v16  ;;  %v1495_v61 = vmul.f32 0.7978846, %v1367_v8  ;;  %4895 = vst [vmem:[#allocation2_spill] sm:$0xff] %v4100_v42  ;;  %4896 = vst [vmem:[#allocation3_spill] sm:$0xff] %v4102_v17 }
 0x18a   : > { %v1559_v27 = vmul.f32 0.7978846, %v1431_v25  ;;  %v2838_v43 = vpack.c.bf16 %v2067_v33, %v2066_v32  ;;  %v1877_v6 = vmul.f32 0.5, %v1749_v12  ;;  %v1496_v63 = vmul.f32 0.7978846, %v1368_v30  ;;  %v4897_v25 = vld [vmem:[#allocation5_spill] sm:$0xff] }
 0x18b   : > { %v1176_v34 = vmul.f32 %v1048_v4, %v4064_v1  ;;  %v2068_v53 = vmul.f32 %v1940_v13, %v3975_v46  ;;  %3057 = vtanh.f32 %v1495_v61  ;;  %v4084_v3 = vadd.f32 %v4893_v21, %v3401_v55  ;;  %v4111_v12 = vpop.f32.mrb[53].mxu0 }
 0x18c   : > { %v4088_v57 = vadd.f32 %v3689_v59, %v3401_v55  ;;  %v3052_v7 = vpop.eup %3051  ;;  %2536 = vst [vmem:[%s3548_s18 + $0x150] sm:$0xff] %v2838_v43  ;;  %v2005_v52 = vmul.f32 %v1877_v6, %v3981_v48  ;;  %3059 = vtanh.f32 %v1559_v27  ;;  %v4094_v4 = vadd.f32 %v4894_v35, %v3399_v54  ;;  %4898 = vst [vmem:[#allocation4_spill] sm:$0xff] %v4111_v12  ;;  %v4115_v43 = vpop.f32.mrb[53].mxu1 }
 0x18d   : > { %v1304_v32 = vmul.f32 0.044715, %v1176_v34  ;;  %v1813_v46 = vadd.f32 1.0, %v3052_v7  ;;  %3061 = vtanh.f32 %v1496_v63  ;;  %v985_v47 = vmul.f32 %v4084_v3, %v4084_v3  ;;  %4899 = vst [vmem:[#allocation5_spill] sm:$0xff] %v4115_v43  ;;  %v4900_v34 = vld [vmem:[#allocation6_spill] sm:$0xff] }
 0x18e   : > { %v1049_v59 = vmul.f32 %v4088_v57, %v4088_v57  ;;  %v3054_v48 = vpop.eup %3053  ;;  %v2807_v38 = vpack.c.bf16 %v2005_v52, %v2004_v28  ;;  %v986_v8 = vmul.f32 %v4094_v4, %v4094_v4  ;;  %v4109_v33 = vadd.f32 %v4897_v25, %v3399_v54 }
 0x18f   : > { %v1432_v16 = vadd.f32 %v1304_v32, %v4064_v1  ;;  %v1941_v30 = vmul.f32 0.5, %v1813_v46  ;;  %v1750_v13 = vadd.f32 1.0, %v3054_v48  ;;  %v1113_v61 = vmul.f32 %v985_v47, %v4084_v3 }
 0x190   : > { %v1177_v27 = vmul.f32 %v1049_v59, %v4088_v57  ;;  %2505 = vst [vmem:[%s3548_s18 + $0x58] sm:$0xff] %v2807_v38  ;;  %v1114_v6 = vmul.f32 %v986_v8, %v4094_v4  ;;  %v1050_v63 = vmul.f32 %v4109_v33, %v4109_v33  ;;  %v4123_v21 = vadd.f32 %v4900_v34, %v3401_v55 }
 0x191   : > { %v1560_v28 = vmul.f32 0.7978846, %v1432_v16  ;;  %v2069_v7 = vmul.f32 %v1941_v30, %v3994_v50  ;;  %v1878_v52 = vmul.f32 0.5, %v1750_v13  ;;  %v1241_v32 = vmul.f32 0.044715, %v1113_v61 }
 0x192   : > { %v1305_v35 = vmul.f32 0.044715, %v1177_v27  ;;  %v1242_v47 = vmul.f32 0.044715, %v1114_v6  ;;  %v1178_v59 = vmul.f32 %v1050_v63, %v4109_v33  ;;  %v987_v48 = vmul.f32 %v4123_v21, %v4123_v21  ;;  %v4901_v63 = vld [vmem:[#allocation7_spill] sm:$0xff] }
 0x193   : > { %v3056_v46 = vpop.eup %3055  ;;  %3063 = vtanh.f32 %v1560_v28  ;;  %v2839_v38 = vpack.c.bf16 %v2069_v7, %v2068_v53  ;;  %v2006_v16 = vmul.f32 %v1878_v52, %v4000_v9  ;;  %v1369_v25 = vadd.f32 %v1241_v32, %v4084_v3  ;;  %v4902_v9 = vld [vmem:[#allocation8_spill] sm:$0xff] }
 0x194   : > { %v1814_v8 = vadd.f32 1.0, %v3056_v46  ;;  %v1433_v50 = vadd.f32 %v1305_v35, %v4088_v57  ;;  %v1370_v30 = vadd.f32 %v1242_v47, %v4094_v4  ;;  %v1306_v13 = vmul.f32 0.044715, %v1178_v59  ;;  %v4144_v47 = vpop.f32.mrb[54].mxu0 }
 0x195   : > { %v1115_v61 = vmul.f32 %v987_v48, %v4123_v21  ;;  %v3058_v27 = vpop.eup %3057  ;;  %2537 = vst [vmem:[%s3548_s18 + $0x158] sm:$0xff] %v2839_v38  ;;  %v1497_v6 = vmul.f32 0.7978846, %v1369_v25  ;;  %v4137_v34 = vadd.f32 %v4901_v63, %v3401_v55  ;;  %v4141_v53 = vadd.f32 %v4902_v9, %v3399_v54  ;;  %4903 = vst [vmem:[#allocation6_spill] sm:$0xff] %v4144_v47  ;;  %v4147_v25 = vpop.f32.mrb[54].mxu1 }
 0x196   : > { %v1942_v28 = vmul.f32 0.5, %v1814_v8  ;;  %v3060_v7 = vpop.eup %3059  ;;  %v1751_v52 = vadd.f32 1.0, %v3058_v27  ;;  %v1561_v32 = vmul.f32 0.7978846, %v1433_v50  ;;  %v1498_v35 = vmul.f32 0.7978846, %v1370_v30 }
 0x197   : > { %v1434_v46 = vadd.f32 %v1306_v13, %v4109_v33  ;;  %v3062_v59 = vpop.eup %3061  ;;  %v1815_v38 = vadd.f32 1.0, %v3060_v7  ;;  %3065 = vtanh.f32 %v1497_v6  ;;  %v1243_v8 = vmul.f32 0.044715, %v1115_v61  ;;  %4904 = vst [vmem:[#allocation7_spill] sm:$0xff] %v4147_v25  ;;  %v4149_v12 = vpop.f32.mrb[55].mxu0 }
 0x198   : > { %v2070_v48 = vmul.f32 %v1942_v28, %v4020_v49  ;;  %v1879_v63 = vmul.f32 0.5, %v1751_v52  ;;  %v1752_v43 = vadd.f32 1.0, %v3062_v59  ;;  %3067 = vtanh.f32 %v1561_v32  ;;  %4905 = vst [vmem:[#allocation8_spill] sm:$0xff] %v4149_v12  ;;  %v4154_v27 = vpop.f32.mrb[55].mxu1  ;;  %v4907_v32 = vld [vmem:[#allocation9_spill] sm:$0xff] }
 0x199   : > { %v1562_v9 = vmul.f32 0.7978846, %v1434_v46  ;;  %v1943_v50 = vmul.f32 0.5, %v1815_v38  ;;  %3069 = vtanh.f32 %v1498_v35  ;;  %v1371_v30 = vadd.f32 %v1243_v8, %v4123_v21  ;;  %4906 = vst [vmem:[#allocation27_spill] sm:$0xff] %v4154_v27  ;;  %v4908_v38 = vld [vmem:[#allocation10_spill] sm:$0xff]  ;;  %v4205_v27 = vpop.f32.mrb[56].mxu1 }
 0x19a   : > { %v1051_v13 = vmul.f32 %v4137_v34, %v4137_v34  ;;  %v2007_v49 = vmul.f32 %v1879_v63, %v4037_v60  ;;  %v1880_v61 = vmul.f32 0.5, %v1752_v43  ;;  %v988_v28 = vmul.f32 %v4141_v53, %v4141_v53  ;;  %4913 = vst [vmem:[#allocation10_spill] sm:$0xff] %v4205_v27  ;;  %v4212_v27 = vpop.f32.mrb[57].mxu1 }
 0x19b   : > { %3071 = vtanh.f32 %v1562_v9  ;;  %v2071_v6 = vmul.f32 %v1943_v50, %v4041_v20  ;;  %v1499_v7 = vmul.f32 0.7978846, %v1371_v30  ;;  %v4163_v35 = vadd.f32 %v4907_v32, %v3399_v54 }
 0x19c   : > { %v1179_v52 = vmul.f32 %v1051_v13, %v4137_v34  ;;  %v2808_v59 = vpack.c.bf16 %v2007_v49, %v2006_v16  ;;  %v4166_v60 = vmul.f32 %v1880_v61, %v4045_v62  ;;  %v1116_v43 = vmul.f32 %v988_v28, %v4141_v53  ;;  %v4909_v62 = vld [vmem:[#allocation11_spill] sm:$0xff] }
 0x19d   : > { %v3064_v46 = vpop.eup %3063  ;;  %v4171_v8 = vadd.f32 %v4908_v38, %v3401_v55  ;;  %v2840_v20 = vpack.c.bf16 %v2071_v6, %v2070_v48  ;;  %3073 = vtanh.f32 %v1499_v7  ;;  %v1052_v30 = vmul.f32 %v4163_v35, %v4163_v35  ;;  %v4910_v48 = vld [vmem:[#allocation12_spill] sm:$0xff]  ;;  %v4911_v6 = vld [vmem:[#allocation13_spill] sm:$0xff]  ;;  %4914 = vst [vmem:[#allocation11_spill] sm:$0xff] %v4212_v27 }
 0x19e   : > { %v1816_v63 = vadd.f32 1.0, %v3064_v46  ;;  %v1307_v9 = vmul.f32 0.044715, %v1179_v52  ;;  %2506 = vst [vmem:[%s3548_s18 + $0x60] sm:$0xff] %v2808_v59  ;;  %v1244_v50 = vmul.f32 0.044715, %v1116_v43  ;;  %v4180_v13 = vadd.f32 %v4909_v62, %v3401_v55 }
 0x19f   : > { %v989_v16 = vmul.f32 %v4171_v8, %v4171_v8  ;;  %2538 = vst [vmem:[%s3548_s18 + $0x160] sm:$0xff] %v2840_v20  ;;  %v4186_v28 = vadd.f32 %v4910_v48, %v3399_v54  ;;  %v4190_v7 = vadd.f32 %v4911_v6, %v3399_v54  ;;  %v1180_v32 = vmul.f32 %v1052_v30, %v4163_v35  ;;  %v4202_v62 = vpop.f32.mrb[56].mxu0 }
 0x1a0   : > { %v1944_v49 = vmul.f32 0.5, %v1816_v63  ;;  %v1435_v61 = vadd.f32 %v1307_v9, %v4137_v34  ;;  %v1372_v52 = vadd.f32 %v1244_v50, %v4141_v53  ;;  %v1053_v59 = vmul.f32 %v4180_v13, %v4180_v13  ;;  %4912 = vst [vmem:[#allocation9_spill] sm:$0xff] %v4202_v62 }
 0x1a1   : > { %v1117_v46 = vmul.f32 %v989_v16, %v4171_v8  ;;  %v3066_v43 = vpop.eup %3065  ;;  %v990_v63 = vmul.f32 %v4186_v28, %v4186_v28  ;;  %v1054_v9 = vmul.f32 %v4190_v7, %v4190_v7  ;;  %v1308_v6 = vmul.f32 0.044715, %v1180_v32 }
 0x1a2   : > { %v2072_v38 = vmul.f32 %v1944_v49, %v4064_v1  ;;  %v1563_v20 = vmul.f32 0.7978846, %v1435_v61  ;;  %v3068_v50 = vpop.eup %3067  ;;  %v1753_v48 = vadd.f32 1.0, %v3066_v43  ;;  %v1500_v30 = vmul.f32 0.7978846, %v1372_v52 }
 0x1a3   : > { %v1181_v16 = vmul.f32 %v1053_v59, %v4180_v13  ;;  %v3070_v12 = vpop.eup %3069  ;;  %v1817_v25 = vadd.f32 1.0, %v3068_v50  ;;  %v1245_v1 = vmul.f32 0.044715, %v1117_v46  ;;  %v1118_v49 = vmul.f32 %v990_v63, %v4186_v28  ;;  %v4210_v59 = vpop.f32.mrb[57].mxu0 }
 0x1a4   : > { %3075 = vtanh.f32 %v1563_v20  ;;  %v1881_v47 = vmul.f32 0.5, %v1753_v48  ;;  %v1754_v17 = vadd.f32 1.0, %v3070_v12  ;;  %v1436_v62 = vadd.f32 %v1308_v6, %v4163_v35  ;;  %v4219_v27 = vpop.f32.mrb[58].mxu0 }
 0x1a5   : > { %v3072_v61 = vpop.eup %3071  ;;  %3077 = vtanh.f32 %v1500_v30  ;;  %v1945_v42 = vmul.f32 0.5, %v1817_v25  ;;  %v1373_v52 = vadd.f32 %v1245_v1, %v4171_v8  ;;  %v1309_v32 = vmul.f32 0.044715, %v1181_v16  ;;  %4915 = vst [vmem:[#allocation12_spill] sm:$0xff] %v4219_v27 }
 0x1a6   : > { %v1818_v43 = vadd.f32 1.0, %v3072_v61  ;;  %v2009_v20 = vmul.f32 %v1881_v47, %v4084_v3  ;;  %v1882_v46 = vmul.f32 0.5, %v1754_v17  ;;  %v1564_v50 = vmul.f32 0.7978846, %v1436_v62  ;;  %v4221_v3 = vpop.f32.mrb[58].mxu1 }
 0x1a7   : > { %v1246_v63 = vmul.f32 0.044715, %v1118_v49  ;;  %v3074_v48 = vpop.eup %3073  ;;  %v2073_v12 = vmul.f32 %v1945_v42, %v4088_v57  ;;  %v1501_v6 = vmul.f32 0.7978846, %v1373_v52  ;;  %v1437_v25 = vadd.f32 %v1309_v32, %v4180_v13  ;;  %4916 = vst [vmem:[#allocation13_spill] sm:$0xff] %v4221_v3  ;;  %v4920_v32 = vld [vmem:[#allocation17_spill] sm:$0xff] }
 0x1a8   : > { %v1946_v30 = vmul.f32 0.5, %v1818_v43  ;;  %v2809_v16 = vpack.c.bf16 %v2009_v20, %v4166_v60  ;;  %v2010_v1 = vmul.f32 %v1882_v46, %v4094_v4  ;;  %v1755_v61 = vadd.f32 1.0, %v3074_v48  ;;  %v4917_v60 = vld [vmem:[#allocation14_spill] sm:$0xff]  ;;  %v4918_v43 = vld [vmem:[#allocation15_spill] sm:$0xff] }
 0x1a9   : > { %3079 = vtanh.f32 %v1564_v50  ;;  %v2841_v17 = vpack.c.bf16 %v2073_v12, %v2072_v38  ;;  %v1565_v57 = vmul.f32 0.7978846, %v1437_v25  ;;  %v1374_v62 = vadd.f32 %v1246_v63, %v4186_v28  ;;  %v4921_v25 = vld [vmem:[#allocation18_spill] sm:$0xff] }
 0x1aa   : > { %v2074_v47 = vmul.f32 %v1946_v30, %v4109_v33  ;;  %3081 = vtanh.f32 %v1501_v6  ;;  %2507 = vst [vmem:[%s3548_s18 + $0x68] sm:$0xff] %v2809_v16  ;;  %v1883_v42 = vmul.f32 0.5, %v1755_v61  ;;  %v1182_v49 = vmul.f32 %v1054_v9, %v4190_v7  ;;  %v4919_v33 = vld [vmem:[#allocation16_spill] sm:$0xff] }
 0x1ab   : > { %v4229_v4 = vadd.f32 %v4917_v60, %v3401_v55  ;;  %2539 = vst [vmem:[%s3548_s18 + $0x168] sm:$0xff] %v2841_v17  ;;  %3083 = vtanh.f32 %v1565_v57  ;;  %v4234_v52 = vadd.f32 %v4918_v43, %v3401_v55  ;;  %v4238_v38 = vadd.f32 %v4919_v33, %v3399_v54 }
 0x1ac   : > { %v4242_v20 = vadd.f32 %v4920_v32, %v3399_v54  ;;  %v2011_v9 = vmul.f32 %v1883_v42, %v4123_v21  ;;  %v1502_v46 = vmul.f32 0.7978846, %v1374_v62  ;;  %v1310_v50 = vmul.f32 0.044715, %v1182_v49  ;;  %v4257_v21 = vpop.f32.mrb[59].mxu0 }
 0x1ad   : > { %v991_v63 = vmul.f32 %v4229_v4, %v4229_v4  ;;  %v1055_v12 = vmul.f32 %v4234_v52, %v4234_v52  ;;  %v992_v30 = vmul.f32 %v4238_v38, %v4238_v38  ;;  %v4255_v16 = vadd.f32 %v4921_v25, %v3401_v55  ;;  %4922 = vst [vmem:[#allocation14_spill] sm:$0xff] %v4257_v21 }
 0x1ae   : > { %v3076_v48 = vpop.eup %3075  ;;  %v1056_v6 = vmul.f32 %v4242_v20, %v4242_v20  ;;  %v2810_v17 = vpack.c.bf16 %v2011_v9, %v2010_v1  ;;  %3085 = vtanh.f32 %v1502_v46  ;;  %v1438_v42 = vadd.f32 %v1310_v50, %v4190_v7  ;;  %v4923_v50 = vld [vmem:[#allocation19_spill] sm:$0xff] }
 0x1af   : > { %v3078_v61 = vpop.eup %3077  ;;  %v1819_v57 = vadd.f32 1.0, %v3076_v48  ;;  %v1119_v49 = vmul.f32 %v991_v63, %v4229_v4  ;;  %v1183_v60 = vmul.f32 %v1055_v12, %v4234_v52  ;;  %v1120_v43 = vmul.f32 %v992_v30, %v4238_v38  ;;  %v4271_v63 = vpop.f32.mrb[59].mxu1 }
 0x1b0   : > { %v1756_v62 = vadd.f32 1.0, %v3078_v61  ;;  %2508 = vst [vmem:[%s3548_s18 + $0x70] sm:$0xff] %v2810_v17  ;;  %v1566_v32 = vmul.f32 0.7978846, %v1438_v42  ;;  %v1184_v25 = vmul.f32 %v1056_v6, %v4242_v20  ;;  %v993_v21 = vmul.f32 %v4255_v16, %v4255_v16  ;;  %4924 = vst [vmem:[#allocation15_spill] sm:$0xff] %v4271_v63 }
 0x1b1   : > { %v1947_v33 = vmul.f32 0.5, %v1819_v57  ;;  %v1247_v9 = vmul.f32 0.044715, %v1119_v49  ;;  %v1311_v46 = vmul.f32 0.044715, %v1183_v60  ;;  %v4269_v48 = vadd.f32 %v4923_v50, %v3401_v55 }
 0x1b2   : > { %v1884_v1 = vmul.f32 0.5, %v1756_v62  ;;  %3087 = vtanh.f32 %v1566_v32  ;;  %v1248_v61 = vmul.f32 0.044715, %v1120_v43  ;;  %v1312_v17 = vmul.f32 0.044715, %v1184_v25 }
 0x1b3   : > { %v3080_v12 = vpop.eup %3079  ;;  %v2075_v30 = vmul.f32 %v1947_v33, %v4137_v34  ;;  %v1375_v62 = vadd.f32 %v1247_v9, %v4229_v4  ;;  %v1439_v49 = vadd.f32 %v1311_v46, %v4234_v52  ;;  %v1121_v32 = vmul.f32 %v993_v21, %v4255_v16 }
 0x1b4   : > { %v3082_v6 = vpop.eup %3081  ;;  %v2012_v57 = vmul.f32 %v1884_v1, %v4141_v53  ;;  %v1820_v42 = vadd.f32 1.0, %v3080_v12  ;;  %v1376_v3 = vadd.f32 %v1248_v61, %v4238_v38  ;;  %v1440_v63 = vadd.f32 %v1312_v17, %v4242_v20 }
 0x1b5   : > { %v2842_v60 = vpack.c.bf16 %v2075_v30, %v2074_v47  ;;  %v1757_v50 = vadd.f32 1.0, %v3082_v6  ;;  %v3084_v27 = vpop.eup %3083  ;;  %v1503_v33 = vmul.f32 0.7978846, %v1375_v62  ;;  %v1567_v43 = vmul.f32 0.7978846, %v1439_v49  ;;  %v4289_v6 = vpop.f32.mrb[60].mxu0 }
 0x1b6   : > { %v1948_v34 = vmul.f32 0.5, %v1820_v42  ;;  %v1821_v53 = vadd.f32 1.0, %v3084_v27  ;;  %v1504_v1 = vmul.f32 0.7978846, %v1376_v3  ;;  %v1568_v12 = vmul.f32 0.7978846, %v1440_v63 }
 0x1b7   : > { %2540 = vst [vmem:[%s3548_s18 + $0x170] sm:$0xff] %v2842_v60  ;;  %v1885_v25 = vmul.f32 0.5, %v1757_v50  ;;  %3089 = vtanh.f32 %v1503_v33  ;;  %v1249_v47 = vmul.f32 0.044715, %v1121_v32  ;;  %v1057_v46 = vmul.f32 %v4269_v48, %v4269_v48  ;;  %v4291_v27 = vpop.f32.mrb[60].mxu1  ;;  %v4295_v42 = vpop.f32.mrb[61].mxu0 }
 0x1b8   : > { %v2076_v9 = vmul.f32 %v1948_v34, %v4163_v35  ;;  %v3086_v30 = vpop.eup %3085  ;;  %v1949_v17 = vmul.f32 0.5, %v1821_v53  ;;  %3091 = vtanh.f32 %v1567_v43  ;;  %v4287_v21 = vadd.f32 %v3789_v19, %v3399_v54 }
 0x1b9   : > { %v2013_v61 = vmul.f32 %v1885_v25, %v4171_v8  ;;  %v1758_v35 = vadd.f32 1.0, %v3086_v30  ;;  %3093 = vtanh.f32 %v1504_v1  ;;  %v1377_v3 = vadd.f32 %v1249_v47, %v4255_v16  ;;  %v4297_v8 = vpop.f32.mrb[61].mxu1 }
 0x1ba   : > { %v1185_v63 = vmul.f32 %v1057_v46, %v4269_v48  ;;  %v2077_v49 = vmul.f32 %v1949_v17, %v4180_v13  ;;  %3095 = vtanh.f32 %v1568_v12  ;;  %v994_v19 = vmul.f32 %v4287_v21, %v4287_v21  ;;  %v4325_v46 = vpop.f32.mrb[62].mxu0 }
 0x1bb   : > { %v2811_v62 = vpack.c.bf16 %v2013_v61, %v2012_v57  ;;  %v1886_v60 = vmul.f32 0.5, %v1758_v35  ;;  %v1505_v50 = vmul.f32 0.7978846, %v1377_v3  ;;  %v4304_v33 = vadd.f32 %v3791_v15, %v3399_v54 }
 0x1bc   : > { %v1313_v34 = vmul.f32 0.044715, %v1185_v63  ;;  %v3088_v43 = vpop.eup %3087  ;;  %v2843_v32 = vpack.c.bf16 %v2077_v49, %v2076_v9  ;;  %v1122_v25 = vmul.f32 %v994_v19, %v4287_v21  ;;  %v4310_v13 = vadd.f32 %v3796_v40, %v3401_v55 }
 0x1bd   : > { %2509 = vst [vmem:[%s3548_s18 + $0x78] sm:$0xff] %v2811_v62  ;;  %v4314_v57 = vadd.f32 %v3798_v37, %v3401_v55  ;;  %v2014_v53 = vmul.f32 %v1886_v60, %v4186_v28  ;;  %v1822_v1 = vadd.f32 1.0, %v3088_v43  ;;  %3097 = vtanh.f32 %v1505_v50 }
 0x1be   : > { %v1441_v15 = vadd.f32 %v1313_v34, %v4269_v48  ;;  %2541 = vst [vmem:[%s3548_s18 + $0x178] sm:$0xff] %v2843_v32  ;;  %v1250_v12 = vmul.f32 0.044715, %v1122_v25  ;;  %v1058_v9 = vmul.f32 %v4304_v33, %v4304_v33  ;;  %v995_v47 = vmul.f32 %v4310_v13, %v4310_v13  ;;  %v4348_v32 = vpop.f32.mrb[62].mxu1 }
 0x1bf   : > { %v1059_v40 = vmul.f32 %v4314_v57, %v4314_v57  ;;  %v1950_v37 = vmul.f32 0.5, %v1822_v1  ;;  %v4329_v28 = vadd.f32 %v3801_v44, %v3399_v54  ;;  %v4333_v61 = vadd.f32 %v3803_v14, %v3399_v54  ;;  %4925 = vst [vmem:[#allocation16_spill] sm:$0xff] %v4348_v32  ;;  %v4356_v32 = vpop.f32.mrb[63].mxu1 }
 0x1c0   : > { %v1569_v30 = vmul.f32 0.7978846, %v1441_v15  ;;  %v1378_v17 = vadd.f32 %v1250_v12, %v4287_v21  ;;  %v1186_v35 = vmul.f32 %v1058_v9, %v4304_v33  ;;  %v1123_v3 = vmul.f32 %v995_v47, %v4310_v13  ;;  %4927 = vst [vmem:[#allocation18_spill] sm:$0xff] %v4356_v32 }
 0x1c1   : > { %v1187_v63 = vmul.f32 %v1059_v40, %v4314_v57  ;;  %v3090_v62 = vpop.eup %3089  ;;  %v2078_v49 = vmul.f32 %v1950_v37, %v4190_v7  ;;  %v996_v44 = vmul.f32 %v4329_v28, %v4329_v28  ;;  %v1060_v19 = vmul.f32 %v4333_v61, %v4333_v61 }
 0x1c2   : > { %3099 = vtanh.f32 %v1569_v30  ;;  %v3092_v14 = vpop.eup %3091  ;;  %v1759_v60 = vadd.f32 1.0, %v3090_v62  ;;  %v1506_v50 = vmul.f32 0.7978846, %v1378_v17  ;;  %v1314_v34 = vmul.f32 0.044715, %v1186_v35  ;;  %v4352_v30 = vpop.f32.mrb[63].mxu0 }
 0x1c3   : > { %v4346_v43 = vadd.f32 %v3809_v45, %v3401_v55  ;;  %v3094_v25 = vpop.eup %3093  ;;  %v1823_v1 = vadd.f32 1.0, %v3092_v14  ;;  %v1251_v7 = vmul.f32 0.044715, %v1123_v3  ;;  %v1315_v15 = vmul.f32 0.044715, %v1187_v63  ;;  %4926 = vst [vmem:[#allocation17_spill] sm:$0xff] %v4352_v30 }
 0x1c4   : > { %v1124_v12 = vmul.f32 %v996_v44, %v4329_v28  ;;  %v3096_v9 = vpop.eup %3095  ;;  %v1887_v47 = vmul.f32 0.5, %v1759_v60  ;;  %v1760_v40 = vadd.f32 1.0, %v3094_v25  ;;  %3101 = vtanh.f32 %v1506_v50 }
 0x1c5   : > { %v1442_v37 = vadd.f32 %v1314_v34, %v4304_v33  ;;  %v1951_v17 = vmul.f32 0.5, %v1823_v1  ;;  %v1824_v35 = vadd.f32 1.0, %v3096_v9  ;;  %v1379_v45 = vadd.f32 %v1251_v7, %v4310_v13 }
 0x1c6   : > { %v1443_v62 = vadd.f32 %v1315_v15, %v4314_v57  ;;  %v2015_v3 = vmul.f32 %v1887_v47, %v4229_v4  ;;  %v1888_v63 = vmul.f32 0.5, %v1760_v40  ;;  %v1252_v14 = vmul.f32 0.044715, %v1124_v12 }
 0x1c7   : > { %v1570_v44 = vmul.f32 0.7978846, %v1442_v37  ;;  %v3098_v60 = vpop.eup %3097  ;;  %v2079_v50 = vmul.f32 %v1951_v17, %v4234_v52  ;;  %v1952_v34 = vmul.f32 0.5, %v1824_v35  ;;  %v1507_v25 = vmul.f32 0.7978846, %v1379_v45 }
 0x1c8   : > { %v1571_v1 = vmul.f32 0.7978846, %v1443_v62  ;;  %v2812_v9 = vpack.c.bf16 %v2015_v3, %v2014_v53  ;;  %v2016_v7 = vmul.f32 %v1888_v63, %v4238_v38  ;;  %v1761_v30 = vadd.f32 1.0, %v3098_v60 }
 0x1c9   : > { %3103 = vtanh.f32 %v1570_v44  ;;  %v2844_v15 = vpack.c.bf16 %v2079_v50, %v2078_v49  ;;  %v2080_v32 = vmul.f32 %v1952_v34, %v4242_v20  ;;  %v1380_v4 = vadd.f32 %v1252_v14, %v4329_v28  ;;  %v4928_v49 = vld [vmem:[#allocation20_spill] sm:$0xff] }
 0x1ca   : > { %3105 = vtanh.f32 %v1507_v25  ;;  %2510 = vst [vmem:[%s3548_s18 + $0x80] sm:$0xff] %v2812_v9  ;;  %v1889_v12 = vmul.f32 0.5, %v1761_v30  ;;  %v1188_v52 = vmul.f32 %v1060_v19, %v4333_v61  ;;  %v997_v47 = vmul.f32 %v4346_v43, %v4346_v43 }
 0x1cb   : > { %3107 = vtanh.f32 %v1571_v1  ;;  %2542 = vst [vmem:[%s3548_s18 + $0x180] sm:$0xff] %v2844_v15  ;;  %v1508_v53 = vmul.f32 0.7978846, %v1380_v4  ;;  %v4370_v38 = vadd.f32 %v3811_v36, %v3401_v55  ;;  %v4374_v20 = vadd.f32 %v3846_v56, %v3399_v54  ;;  %v4929_v15 = vld [vmem:[#allocation21_spill] sm:$0xff] }
 0x1cc   : > { %v3100_v40 = vpop.eup %3099  ;;  %v4378_v37 = vadd.f32 %v4928_v49, %v3399_v54  ;;  %v2017_v19 = vmul.f32 %v1889_v12, %v4255_v16  ;;  %v1316_v17 = vmul.f32 0.044715, %v1188_v52  ;;  %v1125_v35 = vmul.f32 %v997_v47, %v4346_v43  ;;  %v4930_v47 = vld [vmem:[#allocation22_spill] sm:$0xff] }
 0x1cd   : > { %v1825_v30 = vadd.f32 1.0, %v3100_v40  ;;  %3109 = vtanh.f32 %v1508_v53  ;;  %v1061_v36 = vmul.f32 %v4370_v38, %v4370_v38  ;;  %v998_v45 = vmul.f32 %v4374_v20, %v4374_v20 }
 0x1ce   : > { %v1062_v56 = vmul.f32 %v4378_v37, %v4378_v37  ;;  %v3102_v62 = vpop.eup %3101  ;;  %v2813_v3 = vpack.c.bf16 %v2017_v19, %v2016_v7  ;;  %v1444_v16 = vadd.f32 %v1316_v17, %v4333_v61  ;;  %v1253_v44 = vmul.f32 0.044715, %v1125_v35 }
 0x1cf   : > { %v1953_v63 = vmul.f32 0.5, %v1825_v30  ;;  %v1762_v14 = vadd.f32 1.0, %v3102_v62  ;;  %v1189_v60 = vmul.f32 %v1061_v36, %v4370_v38  ;;  %v1126_v50 = vmul.f32 %v998_v45, %v4374_v20 }
 0x1d0   : > { %v1190_v34 = vmul.f32 %v1062_v56, %v4378_v37  ;;  %2511 = vst [vmem:[%s3548_s18 + $0x88] sm:$0xff] %v2813_v3  ;;  %v1572_v1 = vmul.f32 0.7978846, %v1444_v16  ;;  %v1381_v9 = vadd.f32 %v1253_v44, %v4346_v43  ;;  %v4397_v7 = vadd.f32 %v4929_v15, %v3401_v55  ;;  %v4931_v15 = vld [vmem:[#allocation23_spill] sm:$0xff] }
 0x1d1   : > { %v2081_v25 = vmul.f32 %v1953_v63, %v4269_v48  ;;  %v1890_v4 = vmul.f32 0.5, %v1762_v14  ;;  %v1317_v12 = vmul.f32 0.044715, %v1189_v60  ;;  %v1254_v52 = vmul.f32 0.044715, %v1126_v50 }
 0x1d2   : > { %v4401_v40 = vadd.f32 %v4930_v47, %v3401_v55  ;;  %3111 = vtanh.f32 %v1572_v1  ;;  %v1509_v19 = vmul.f32 0.7978846, %v1381_v9  ;;  %v1318_v48 = vmul.f32 0.044715, %v1190_v34 }
 0x1d3   : > { %v3104_v53 = vpop.eup %3103  ;;  %v2845_v49 = vpack.c.bf16 %v2081_v25, %v2080_v32  ;;  %v2018_v17 = vmul.f32 %v1890_v4, %v4287_v21  ;;  %v1445_v36 = vadd.f32 %v1317_v12, %v4370_v38  ;;  %v1382_v45 = vadd.f32 %v1254_v52, %v4374_v20 }
 0x1d4   : > { %v3106_v30 = vpop.eup %3105  ;;  %v1826_v35 = vadd.f32 1.0, %v3104_v53  ;;  %3113 = vtanh.f32 %v1509_v19  ;;  %v1446_v3 = vadd.f32 %v1318_v48, %v4378_v37  ;;  %v999_v32 = vmul.f32 %v4397_v7, %v4397_v7 }
 0x1d5   : > { %v3108_v56 = vpop.eup %3107  ;;  %2543 = vst [vmem:[%s3548_s18 + $0x188] sm:$0xff] %v2845_v49  ;;  %v1763_v62 = vadd.f32 1.0, %v3106_v30  ;;  %v1573_v44 = vmul.f32 0.7978846, %v1445_v36  ;;  %v1510_v14 = vmul.f32 0.7978846, %v1382_v45  ;;  %v1063_v34 = vmul.f32 %v4401_v40, %v4401_v40 }
 0x1d6   : > { %v1954_v63 = vmul.f32 0.5, %v1826_v35  ;;  %v1827_v16 = vadd.f32 1.0, %v3108_v56  ;;  %v1574_v21 = vmul.f32 0.7978846, %v1446_v3  ;;  %v1127_v50 = vmul.f32 %v999_v32, %v4397_v7  ;;  %v4932_v35 = vld [vmem:[#allocation24_spill] sm:$0xff] }
 0x1d7   : > { %v1891_v60 = vmul.f32 0.5, %v1763_v62  ;;  %v3110_v25 = vpop.eup %3109  ;;  %3115 = vtanh.f32 %v1573_v44  ;;  %v4416_v4 = vadd.f32 %v4931_v15, %v3399_v54  ;;  %v1191_v49 = vmul.f32 %v1063_v34, %v4401_v40 }
 0x1d8   : > { %v2082_v1 = vmul.f32 %v1954_v63, %v4304_v33  ;;  %v1955_v9 = vmul.f32 0.5, %v1827_v16  ;;  %v1764_v52 = vadd.f32 1.0, %v3110_v25  ;;  %3117 = vtanh.f32 %v1510_v14 }
 0x1d9   : > { %v2019_v12 = vmul.f32 %v1891_v60, %v4310_v13  ;;  %v1255_v47 = vmul.f32 0.044715, %v1127_v50  ;;  %3119 = vtanh.f32 %v1574_v21  ;;  %v1000_v33 = vmul.f32 %v4416_v4, %v4416_v4 }
 0x1da   : > { %v2083_v53 = vmul.f32 %v1955_v9, %v4314_v57  ;;  %v1892_v48 = vmul.f32 0.5, %v1764_v52  ;;  %v4426_v13 = vadd.f32 %v4932_v35, %v3399_v54  ;;  %v1319_v45 = vmul.f32 0.044715, %v1191_v49 }
 0x1db   : > { %v2814_v19 = vpack.c.bf16 %v2019_v12, %v2018_v17  ;;  %v1383_v30 = vadd.f32 %v1255_v47, %v4397_v7  ;;  %v1128_v56 = vmul.f32 %v1000_v33, %v4416_v4  ;;  %v4431_v57 = vadd.f32 %v3871_v0, %v3401_v55 }
 0x1dc   : > { %v2846_v36 = vpack.c.bf16 %v2083_v53, %v2082_v1  ;;  %v3112_v62 = vpop.eup %3111  ;;  %v2020_v3 = vmul.f32 %v1892_v48, %v4329_v28  ;;  %v1064_v32 = vmul.f32 %v4426_v13, %v4426_v13  ;;  %v4439_v63 = vadd.f32 %v3875_v41, %v3401_v55 }
 0x1dd   : > { %2512 = vst [vmem:[%s3548_s18 + $0x90] sm:$0xff] %v2814_v19  ;;  %v1511_v17 = vmul.f32 0.7978846, %v1383_v30  ;;  %v1828_v16 = vadd.f32 1.0, %v3112_v62  ;;  %v1447_v44 = vadd.f32 %v1319_v45, %v4401_v40  ;;  %v1256_v14 = vmul.f32 0.044715, %v1128_v56 }
 0x1de   : > { %2544 = vst [vmem:[%s3548_s18 + $0x190] sm:$0xff] %v2846_v36  ;;  %v1001_v0 = vmul.f32 %v4431_v57, %v4431_v57  ;;  %v3114_v60 = vpop.eup %3113  ;;  %v1192_v28 = vmul.f32 %v1064_v32, %v4426_v13  ;;  %v1065_v21 = vmul.f32 %v4439_v63, %v4439_v63  ;;  %v4450_v50 = vadd.f32 %v3915_v51, %v3399_v54 }
 0x1df   : > { %3121 = vtanh.f32 %v1511_v17  ;;  %v1956_v41 = vmul.f32 0.5, %v1828_v16  ;;  %v1765_v34 = vadd.f32 1.0, %v3114_v60  ;;  %v1575_v25 = vmul.f32 0.7978846, %v1447_v44 }
 0x1e0   : > { %v1384_v1 = vadd.f32 %v1256_v14, %v4416_v4  ;;  %v1320_v9 = vmul.f32 0.044715, %v1192_v28  ;;  %v1129_v15 = vmul.f32 %v1001_v0, %v4431_v57  ;;  %v1193_v12 = vmul.f32 %v1065_v21, %v4439_v63 }
 0x1e1   : > { %v1002_v52 = vmul.f32 %v4450_v50, %v4450_v50  ;;  %v3116_v47 = vpop.eup %3115  ;;  %v2084_v53 = vmul.f32 %v1956_v41, %v4333_v61  ;;  %v1893_v49 = vmul.f32 0.5, %v1765_v34  ;;  %3123 = vtanh.f32 %v1575_v25 }
 0x1e2   : > { %v1512_v51 = vmul.f32 0.7978846, %v1384_v1  ;;  %v3118_v33 = vpop.eup %3117  ;;  %v1829_v19 = vadd.f32 1.0, %v3116_v47  ;;  %v1448_v48 = vadd.f32 %v1320_v9, %v4426_v13  ;;  %v1257_v30 = vmul.f32 0.044715, %v1129_v15 }
 0x1e3   : > { %v1321_v35 = vmul.f32 0.044715, %v1193_v12  ;;  %v3120_v36 = vpop.eup %3119  ;;  %v2021_v45 = vmul.f32 %v1893_v49, %v4346_v43  ;;  %v1766_v56 = vadd.f32 1.0, %v3118_v33  ;;  %v1130_v62 = vmul.f32 %v1002_v52, %v4450_v50  ;;  %v4934_v49 = vld [vmem:[#allocation26_spill] sm:$0xff] }
 0x1e4   : > { %3125 = vtanh.f32 %v1512_v51  ;;  %v1957_v17 = vmul.f32 0.5, %v1829_v19  ;;  %v1830_v32 = vadd.f32 1.0, %v3120_v36  ;;  %v1576_v61 = vmul.f32 0.7978846, %v1448_v48 }
 0x1e5   : > { %v1385_v16 = vadd.f32 %v1257_v30, %v4431_v57  ;;  %v2815_v44 = vpack.c.bf16 %v2021_v45, %v2020_v3  ;;  %v1894_v14 = vmul.f32 0.5, %v1766_v56  ;;  %v1449_v0 = vadd.f32 %v1321_v35, %v4439_v63 }
 0x1e6   : > { %v1258_v60 = vmul.f32 0.044715, %v1130_v62  ;;  %v2085_v28 = vmul.f32 %v1957_v17, %v4370_v38  ;;  %v1958_v21 = vmul.f32 0.5, %v1830_v32  ;;  %3127 = vtanh.f32 %v1576_v61  ;;  %v4933_v38 = vld [vmem:[#allocation25_spill] sm:$0xff] }
 0x1e7   : > { %v1513_v43 = vmul.f32 0.7978846, %v1385_v16  ;;  %2513 = vst [vmem:[%s3548_s18 + $0x98] sm:$0xff] %v2815_v44  ;;  %v2022_v41 = vmul.f32 %v1894_v14, %v4374_v20  ;;  %v1577_v34 = vmul.f32 0.7978846, %v1449_v0  ;;  %v4469_v1 = vadd.f32 %v3917_v26, %v3399_v54 }
 0x1e8   : > { %v1386_v25 = vadd.f32 %v1258_v60, %v4450_v50  ;;  %v2847_v9 = vpack.c.bf16 %v2085_v28, %v2084_v53  ;;  %v2086_v15 = vmul.f32 %v1958_v21, %v4378_v37  ;;  %v4474_v12 = vadd.f32 %v4933_v38, %v3401_v55 }
 0x1e9   : > { %v3122_v3 = vpop.eup %3121  ;;  %3129 = vtanh.f32 %v1513_v43  ;;  %v1066_v20 = vmul.f32 %v4469_v1, %v4469_v1  ;;  %v4483_v53 = vadd.f32 %v4934_v49, %v3401_v55  ;;  %v4487_v37 = vadd.f32 %v3949_v18, %v3399_v54 }
 0x1ea   : > { %v1767_v52 = vadd.f32 1.0, %v3122_v3  ;;  %3131 = vtanh.f32 %v1577_v34  ;;  %v1514_v47 = vmul.f32 0.7978846, %v1386_v25  ;;  %2545 = vst [vmem:[%s3548_s18 + $0x198] sm:$0xff] %v2847_v9  ;;  %v1003_v26 = vmul.f32 %v4474_v12, %v4474_v12 }
 0x1eb   : > { %v4491_v51 = vadd.f32 %v3951_v24, %v3399_v54  ;;  %v3124_v33 = vpop.eup %3123  ;;  %v1194_v48 = vmul.f32 %v1066_v20, %v4469_v1  ;;  %v4496_v30 = vadd.f32 %v3966_v22, %v3401_v55  ;;  %v1067_v18 = vmul.f32 %v4483_v53, %v4483_v53 }
 0x1ec   : > { %v1895_v19 = vmul.f32 0.5, %v1767_v52  ;;  %3133 = vtanh.f32 %v1514_v47  ;;  %v1831_v35 = vadd.f32 1.0, %v3124_v33  ;;  %v1131_v36 = vmul.f32 %v1003_v26, %v4474_v12 }
 0x1ed   : > { %v1004_v45 = vmul.f32 %v4487_v37, %v4487_v37  ;;  %v1322_v62 = vmul.f32 0.044715, %v1194_v48  ;;  %v1068_v17 = vmul.f32 %v4491_v51, %v4491_v51  ;;  %v1005_v22 = vmul.f32 %v4496_v30, %v4496_v30 }
 0x1ee   : > { %v3126_v24 = vpop.eup %3125  ;;  %v2023_v56 = vmul.f32 %v1895_v19, %v4397_v7  ;;  %v1959_v32 = vmul.f32 0.5, %v1831_v35  ;;  %v1259_v16 = vmul.f32 0.044715, %v1131_v36  ;;  %v1195_v44 = vmul.f32 %v1067_v18, %v4483_v53 }
 0x1ef   : > { %v1768_v61 = vadd.f32 1.0, %v3126_v24  ;;  %v1450_v0 = vadd.f32 %v1322_v62, %v4469_v1  ;;  %v1132_v60 = vmul.f32 %v1004_v45, %v4487_v37  ;;  %v1196_v7 = vmul.f32 %v1068_v17, %v4491_v51 }
 0x1f0   : > { %v2816_v14 = vpack.c.bf16 %v2023_v56, %v2022_v41  ;;  %v3128_v28 = vpop.eup %3127  ;;  %v2087_v21 = vmul.f32 %v1959_v32, %v4401_v40  ;;  %v1387_v34 = vadd.f32 %v1259_v16, %v4474_v12  ;;  %v1323_v25 = vmul.f32 0.044715, %v1195_v44 }
 0x1f1   : > { %v1896_v43 = vmul.f32 0.5, %v1768_v61  ;;  %v1832_v3 = vadd.f32 1.0, %v3128_v28  ;;  %v1578_v9 = vmul.f32 0.7978846, %v1450_v0  ;;  %v1260_v38 = vmul.f32 0.044715, %v1132_v60 }
 0x1f2   : > { %2514 = vst [vmem:[%s3548_s18 + $0xa0] sm:$0xff] %v2816_v14  ;;  %v1133_v41 = vmul.f32 %v1005_v22, %v4496_v30  ;;  %v2848_v47 = vpack.c.bf16 %v2087_v21, %v2086_v15  ;;  %v1515_v26 = vmul.f32 0.7978846, %v1387_v34  ;;  %v1451_v49 = vadd.f32 %v1323_v25, %v4483_v53 }
 0x1f3   : > { %v3130_v52 = vpop.eup %3129  ;;  %v2024_v20 = vmul.f32 %v1896_v43, %v4416_v4  ;;  %v1960_v40 = vmul.f32 0.5, %v1832_v3  ;;  %3135 = vtanh.f32 %v1578_v9  ;;  %v1388_v48 = vadd.f32 %v1260_v38, %v4487_v37 }
 0x1f4   : > { %v3132_v33 = vpop.eup %3131  ;;  %v1769_v19 = vadd.f32 1.0, %v3130_v52  ;;  %2546 = vst [vmem:[%s3548_s18 + $0x1a0] sm:$0xff] %v2848_v47  ;;  %3137 = vtanh.f32 %v1515_v26  ;;  %v1579_v36 = vmul.f32 0.7978846, %v1451_v49  ;;  %v1324_v18 = vmul.f32 0.044715, %v1196_v7 }
 0x1f5   : > { %v1833_v35 = vadd.f32 1.0, %v3132_v33  ;;  %v2088_v24 = vmul.f32 %v1960_v40, %v4426_v13  ;;  %v1516_v56 = vmul.f32 0.7978846, %v1388_v48  ;;  %v1261_v4 = vmul.f32 0.044715, %v1133_v41 }
 0x1f6   : > { %v3134_v45 = vpop.eup %3133  ;;  %v1897_v15 = vmul.f32 0.5, %v1769_v19  ;;  %3139 = vtanh.f32 %v1579_v36  ;;  %v1452_v22 = vadd.f32 %v1324_v18, %v4491_v51  ;;  %v4526_v16 = vadd.f32 %v3968_v5, %v3401_v55 }
 0x1f7   : > { %v1961_v62 = vmul.f32 0.5, %v1833_v35  ;;  %v1770_v17 = vadd.f32 1.0, %v3134_v45  ;;  %3141 = vtanh.f32 %v1516_v56  ;;  %v1389_v61 = vadd.f32 %v1261_v4, %v4496_v30 }
 0x1f8   : > { %v2025_v32 = vmul.f32 %v1897_v15, %v4431_v57  ;;  %v1580_v14 = vmul.f32 0.7978846, %v1452_v22  ;;  %v4531_v0 = vadd.f32 %v4014_v10, %v3399_v54  ;;  %v1069_v57 = vmul.f32 %v4526_v16, %v4526_v16 }
 0x1f9   : > { %v2089_v13 = vmul.f32 %v1961_v62, %v4439_v63  ;;  %v1898_v44 = vmul.f32 0.5, %v1770_v17  ;;  %v1517_v7 = vmul.f32 0.7978846, %v1389_v61  ;;  %v4537_v28 = vadd.f32 %v4022_v31, %v3399_v54 }
 0x1fa   : > { %v2817_v60 = vpack.c.bf16 %v2025_v32, %v2024_v20  ;;  %3143 = vtanh.f32 %v1580_v14  ;;  %v1006_v63 = vmul.f32 %v4531_v0, %v4531_v0  ;;  %v1197_v10 = vmul.f32 %v1069_v57, %v4526_v16 }
 0x1fb   : > { %v2849_v5 = vpack.c.bf16 %v2089_v13, %v2088_v24  ;;  %v2026_v21 = vmul.f32 %v1898_v44, %v4450_v50  ;;  %3145 = vtanh.f32 %v1517_v7  ;;  %v1070_v43 = vmul.f32 %v4537_v28, %v4537_v28 }
 0x1fc   : > { %2515 = vst [vmem:[%s3548_s18 + $0xa8] sm:$0xff] %v2817_v60  ;;  %v4548_v34 = vadd.f32 %v4024_v39, %v3401_v55  ;;  %v1134_v31 = vmul.f32 %v1006_v63, %v4531_v0  ;;  %v4554_v50 = vadd.f32 %v4027_v23, %v3401_v55  ;;  %v4558_v25 = vadd.f32 %v4032_v2, %v3399_v54 }
 0x1fd   : > { %2547 = vst [vmem:[%s3548_s18 + $0x1a8] sm:$0xff] %v2849_v5  ;;  %v4562_v3 = vadd.f32 %v4050_v29, %v3399_v54  ;;  %v3136_v9 = vpop.eup %3135  ;;  %v1325_v38 = vmul.f32 0.044715, %v1197_v10  ;;  %v1198_v39 = vmul.f32 %v1070_v43, %v4537_v28  ;;  %v4569_v52 = vadd.f32 %v4070_v58, %v3401_v55 }
 0x1fe   : > { %v1007_v41 = vmul.f32 %v4548_v34, %v4548_v34  ;;  %v3138_v23 = vpop.eup %3137  ;;  %v1834_v47 = vadd.f32 1.0, %v3136_v9  ;;  %v1262_v20 = vmul.f32 0.044715, %v1134_v31  ;;  %v1071_v2 = vmul.f32 %v4554_v50, %v4554_v50 }
 0x1ff   : > { %v1008_v29 = vmul.f32 %v4558_v25, %v4558_v25  ;;  %v1771_v26 = vadd.f32 1.0, %v3138_v23  ;;  %v1453_v49 = vadd.f32 %v1325_v38, %v4526_v16  ;;  %v1326_v33 = vmul.f32 0.044715, %v1198_v39 }
 0x200   : > { %v1135_v40 = vmul.f32 %v1007_v41, %v4548_v34  ;;  %v3140_v19 = vpop.eup %3139  ;;  %v1962_v48 = vmul.f32 0.5, %v1834_v47  ;;  %v1390_v58 = vadd.f32 %v1262_v20, %v4531_v0  ;;  %v1199_v35 = vmul.f32 %v1071_v2, %v4554_v50 }
 0x201   : > { %v1136_v36 = vmul.f32 %v1008_v29, %v4558_v25  ;;  %v3142_v18 = vpop.eup %3141  ;;  %v1899_v45 = vmul.f32 0.5, %v1771_v26  ;;  %v1835_v24 = vadd.f32 1.0, %v3140_v19  ;;  %v1581_v15 = vmul.f32 0.7978846, %v1453_v49  ;;  %v4935_v49 = vld [vmem:[#allocation2_spill] sm:$0xff] }
 0x202   : > { %v1454_v56 = vadd.f32 %v1326_v33, %v4537_v28  ;;  %v2090_v4 = vmul.f32 %v1962_v48, %v4469_v1  ;;  %v1772_v62 = vadd.f32 1.0, %v3142_v18  ;;  %v1518_v17 = vmul.f32 0.7978846, %v1390_v58  ;;  %v4936_v48 = vld [vmem:[#allocation3_spill] sm:$0xff] }
 0x203   : > { %v1263_v22 = vmul.f32 0.044715, %v1135_v40  ;;  %v2027_v32 = vmul.f32 %v1899_v45, %v4474_v12  ;;  %v1963_v61 = vmul.f32 0.5, %v1835_v24  ;;  %3147 = vtanh.f32 %v1581_v15 }
 0x204   : > { %v1582_v13 = vmul.f32 0.7978846, %v1454_v56  ;;  %v3144_v44 = vpop.eup %3143  ;;  %v1900_v14 = vmul.f32 0.5, %v1772_v62  ;;  %3149 = vtanh.f32 %v1518_v17  ;;  %v1327_v7 = vmul.f32 0.044715, %v1199_v35 }
 0x205   : > { %v1391_v60 = vadd.f32 %v1263_v22, %v4548_v34  ;;  %v3146_v57 = vpop.eup %3145  ;;  %v2818_v5 = vpack.c.bf16 %v2027_v32, %v2026_v21  ;;  %v2091_v63 = vmul.f32 %v1963_v61, %v4483_v53  ;;  %v1836_v1 = vadd.f32 1.0, %v3144_v44 }
 0x206   : > { %3151 = vtanh.f32 %v1582_v13  ;;  %v2028_v10 = vmul.f32 %v1900_v14, %v4487_v37  ;;  %v1773_v12 = vadd.f32 1.0, %v3146_v57  ;;  %v1455_v31 = vadd.f32 %v1327_v7, %v4554_v50 }
 0x207   : > { %v1519_v43 = vmul.f32 0.7978846, %v1391_v60  ;;  %2516 = vst [vmem:[%s3548_s18 + $0xb0] sm:$0xff] %v2818_v5  ;;  %v2850_v9 = vpack.c.bf16 %v2091_v63, %v2090_v4  ;;  %v1964_v38 = vmul.f32 0.5, %v1836_v1  ;;  %v1264_v39 = vmul.f32 0.044715, %v1136_v36 }
 0x208   : > { %v1072_v41 = vmul.f32 %v4562_v3, %v4562_v3  ;;  %v1901_v23 = vmul.f32 0.5, %v1773_v12  ;;  %v1583_v21 = vmul.f32 0.7978846, %v1455_v31  ;;  %v1009_v53 = vmul.f32 %v4569_v52, %v4569_v52  ;;  %v4937_v36 = vld [vmem:[#allocation4_spill] sm:$0xff] }
 0x209   : > { %3153 = vtanh.f32 %v1519_v43  ;;  %2548 = vst [vmem:[%s3548_s18 + $0x1b0] sm:$0xff] %v2850_v9  ;;  %v2092_v37 = vmul.f32 %v1964_v38, %v4491_v51  ;;  %v1392_v47 = vadd.f32 %v1264_v39, %v4558_v25  ;;  %v4598_v2 = vadd.f32 %v4072_v11, %v3401_v55 }
 0x20a   : > { %v1200_v20 = vmul.f32 %v1072_v41, %v4562_v3  ;;  %v2029_v29 = vmul.f32 %v1901_v23, %v4496_v30  ;;  %3155 = vtanh.f32 %v1583_v21  ;;  %v1137_v26 = vmul.f32 %v1009_v53, %v4569_v52 }
 0x20b   : > { %v4604_v33 = vadd.f32 %v4935_v49, %v3399_v54  ;;  %v1520_v40 = vmul.f32 0.7978846, %v1392_v47  ;;  %v1073_v19 = vmul.f32 %v4598_v2, %v4598_v2  ;;  %v4610_v58 = vadd.f32 %v4936_v48, %v3399_v54  ;;  %v4939_v48 = vld [vmem:[#allocation6_spill] sm:$0xff] }
 0x20c   : > { %v1328_v51 = vmul.f32 0.044715, %v1200_v20  ;;  %v2819_v11 = vpack.c.bf16 %v2029_v29, %v2028_v10  ;;  %v1265_v35 = vmul.f32 0.044715, %v1137_v26  ;;  %v4616_v18 = vadd.f32 %v4937_v36, %v3401_v55 }
 0x20d   : > { %v1010_v30 = vmul.f32 %v4604_v33, %v4604_v33  ;;  %v3148_v45 = vpop.eup %3147  ;;  %3157 = vtanh.f32 %v1520_v40  ;;  %v1201_v15 = vmul.f32 %v1073_v19, %v4598_v2  ;;  %v1074_v56 = vmul.f32 %v4610_v58, %v4610_v58 }
 0x20e   : > { %v1456_v24 = vadd.f32 %v1328_v51, %v4562_v3  ;;  %v3150_v4 = vpop.eup %3149  ;;  %2517 = vst [vmem:[%s3548_s18 + $0xb8] sm:$0xff] %v2819_v11  ;;  %v1837_v62 = vadd.f32 1.0, %v3148_v45  ;;  %v1393_v17 = vadd.f32 %v1265_v35, %v4569_v52  ;;  %v1011_v32 = vmul.f32 %v4616_v18, %v4616_v18 }
 0x20f   : > { %v1138_v22 = vmul.f32 %v1010_v30, %v4604_v33  ;;  %v1774_v13 = vadd.f32 1.0, %v3150_v4  ;;  %v1329_v14 = vmul.f32 0.044715, %v1201_v15  ;;  %v1202_v60 = vmul.f32 %v1074_v56, %v4610_v58  ;;  %v4940_v30 = vld [vmem:[#allocation7_spill] sm:$0xff] }
 0x210   : > { %v3152_v61 = vpop.eup %3151  ;;  %v1584_v44 = vmul.f32 0.7978846, %v1456_v24  ;;  %v1965_v7 = vmul.f32 0.5, %v1837_v62  ;;  %v1521_v5 = vmul.f32 0.7978846, %v1393_v17  ;;  %v1139_v26 = vmul.f32 %v1011_v32, %v4616_v18  ;;  %v4941_v17 = vld [vmem:[#allocation8_spill] sm:$0xff] }
 0x211   : > { %v1838_v57 = vadd.f32 1.0, %v3152_v61  ;;  %v1266_v63 = vmul.f32 0.044715, %v1138_v22  ;;  %v1902_v1 = vmul.f32 0.5, %v1774_v13  ;;  %v1457_v10 = vadd.f32 %v1329_v14, %v4598_v2 }
 0x212   : > { %3159 = vtanh.f32 %v1584_v44  ;;  %v1330_v12 = vmul.f32 0.044715, %v1202_v60  ;;  %v2093_v31 = vmul.f32 %v1965_v7, %v4526_v16  ;;  %v1267_v51 = vmul.f32 0.044715, %v1139_v26 }
 0x213   : > { %v3154_v43 = vpop.eup %3153  ;;  %v1966_v9 = vmul.f32 0.5, %v1838_v57  ;;  %3161 = vtanh.f32 %v1521_v5  ;;  %v1394_v38 = vadd.f32 %v1266_v63, %v4604_v33  ;;  %v2030_v39 = vmul.f32 %v1902_v1, %v4531_v0  ;;  %v4938_v0 = vld [vmem:[#allocation5_spill] sm:$0xff]  ;;  %v4942_v57 = vld [vmem:[#allocation27_spill] sm:$0xff] }
 0x214   : > { %v1775_v41 = vadd.f32 1.0, %v3154_v43  ;;  %v1585_v23 = vmul.f32 0.7978846, %v1457_v10  ;;  %v1458_v21 = vadd.f32 %v1330_v12, %v4610_v58  ;;  %v3156_v53 = vpop.eup %3155  ;;  %v2851_v47 = vpack.c.bf16 %v2093_v31, %v2092_v37 }
 0x215   : > { %v2094_v20 = vmul.f32 %v1966_v9, %v4537_v28  ;;  %v1522_v29 = vmul.f32 0.7978846, %v1394_v38  ;;  %v1839_v16 = vadd.f32 1.0, %v3156_v53  ;;  %v4638_v19 = vadd.f32 %v4938_v0, %v3401_v55 }
 0x216   : > { %v1903_v49 = vmul.f32 0.5, %v1775_v41  ;;  %3163 = vtanh.f32 %v1585_v23  ;;  %v1586_v40 = vmul.f32 0.7978846, %v1458_v21  ;;  %2549 = vst [vmem:[%s3548_s18 + $0x1b8] sm:$0xff] %v2851_v47  ;;  %v4642_v11 = vadd.f32 %v4939_v48, %v3399_v54  ;;  %v4943_v21 = vld [vmem:[#allocation9_spill] sm:$0xff] }
 0x217   : > { %3165 = vtanh.f32 %v1522_v29  ;;  %v3158_v37 = vpop.eup %3157  ;;  %v1967_v35 = vmul.f32 0.5, %v1839_v16  ;;  %v4647_v36 = vadd.f32 %v4940_v30, %v3399_v54  ;;  %v1395_v24 = vadd.f32 %v1267_v51, %v4616_v18 }
 0x218   : > { %v2031_v28 = vmul.f32 %v1903_v49, %v4548_v34  ;;  %3167 = vtanh.f32 %v1586_v40  ;;  %v1776_v45 = vadd.f32 1.0, %v3158_v37  ;;  %v1075_v15 = vmul.f32 %v4638_v19, %v4638_v19 }
 0x219   : > { %v1012_v56 = vmul.f32 %v4642_v11, %v4642_v11  ;;  %v2095_v62 = vmul.f32 %v1967_v35, %v4554_v50  ;;  %v1076_v34 = vmul.f32 %v4647_v36, %v4647_v36  ;;  %v4659_v22 = vadd.f32 %v4941_v17, %v3401_v55 }
 0x21a   : > { %v2820_v4 = vpack.c.bf16 %v2031_v28, %v2030_v39  ;;  %v1904_v32 = vmul.f32 0.5, %v1776_v45  ;;  %v1523_v61 = vmul.f32 0.7978846, %v1395_v24  ;;  %v1203_v13 = vmul.f32 %v1075_v15, %v4638_v19 }
 0x21b   : > { %v1140_v44 = vmul.f32 %v1012_v56, %v4642_v11  ;;  %v2852_v60 = vpack.c.bf16 %v2095_v62, %v2094_v20  ;;  %v1204_v7 = vmul.f32 %v1076_v34, %v4647_v36  ;;  %v1013_v50 = vmul.f32 %v4659_v22, %v4659_v22 }
 0x21c   : > { %v3160_v14 = vpop.eup %3159  ;;  %2518 = vst [vmem:[%s3548_s18 + $0xc0] sm:$0xff] %v2820_v4  ;;  %v4669_v5 = vadd.f32 %v4942_v57, %v3401_v55  ;;  %v2032_v1 = vmul.f32 %v1904_v32, %v4558_v25  ;;  %3169 = vtanh.f32 %v1523_v61  ;;  %v1331_v12 = vmul.f32 0.044715, %v1203_v13  ;;  %v4944_v13 = vld [vmem:[#allocation10_spill] sm:$0xff] }
 0x21d   : > { %v3162_v63 = vpop.eup %3161  ;;  %v1840_v10 = vadd.f32 1.0, %v3160_v14  ;;  %2550 = vst [vmem:[%s3548_s18 + $0x1c0] sm:$0xff] %v2852_v60  ;;  %v1268_v31 = vmul.f32 0.044715, %v1140_v44  ;;  %v1332_v9 = vmul.f32 0.044715, %v1204_v7  ;;  %v1141_v38 = vmul.f32 %v1013_v50, %v4659_v22 }
 0x21e   : > { %v1777_v43 = vadd.f32 1.0, %v3162_v63  ;;  %v1459_v41 = vadd.f32 %v1331_v12, %v4638_v19  ;;  %v1077_v23 = vmul.f32 %v4669_v5, %v4669_v5  ;;  %v4679_v53 = vadd.f32 %v4943_v21, %v3399_v54  ;;  %v4946_v12 = vld [vmem:[#allocation12_spill] sm:$0xff] }
 0x21f   : > { %v1968_v39 = vmul.f32 0.5, %v1840_v10  ;;  %v1396_v20 = vadd.f32 %v1268_v31, %v4642_v11  ;;  %v1460_v29 = vadd.f32 %v1332_v9, %v4647_v36  ;;  %v1269_v26 = vmul.f32 0.044715, %v1141_v38  ;;  %v4945_v10 = vld [vmem:[#allocation11_spill] sm:$0xff] }
 0x220   : > { %v3164_v25 = vpop.eup %3163  ;;  %v1905_v47 = vmul.f32 0.5, %v1777_v43  ;;  %v1587_v51 = vmul.f32 0.7978846, %v1459_v41  ;;  %v1205_v0 = vmul.f32 %v1077_v23, %v4669_v5  ;;  %v1014_v61 = vmul.f32 %v4679_v53, %v4679_v53 }
 0x221   : > { %v3166_v49 = vpop.eup %3165  ;;  %v2096_v16 = vmul.f32 %v1968_v39, %v4562_v3  ;;  %v1841_v40 = vadd.f32 1.0, %v3164_v25  ;;  %v1524_v35 = vmul.f32 0.7978846, %v1396_v20  ;;  %v1588_v30 = vmul.f32 0.7978846, %v1460_v29 }
 0x222   : > { %v3168_v48 = vpop.eup %3167  ;;  %v2033_v37 = vmul.f32 %v1905_v47, %v4569_v52  ;;  %v1778_v28 = vadd.f32 1.0, %v3166_v49  ;;  %3171 = vtanh.f32 %v1587_v51  ;;  %v1397_v15 = vadd.f32 %v1269_v26, %v4659_v22  ;;  %v4948_v26 = vld [vmem:[#allocation14_spill] sm:$0xff] }
 0x223   : > { %v1969_v45 = vmul.f32 0.5, %v1841_v40  ;;  %v1842_v24 = vadd.f32 1.0, %v3168_v48  ;;  %3173 = vtanh.f32 %v1524_v35  ;;  %v1333_v3 = vmul.f32 0.044715, %v1205_v0 }
 0x224   : > { %v2821_v56 = vpack.c.bf16 %v2033_v37, %v2032_v1  ;;  %v1906_v4 = vmul.f32 0.5, %v1778_v28  ;;  %3175 = vtanh.f32 %v1588_v30  ;;  %v1525_v17 = vmul.f32 0.7978846, %v1397_v15 }
 0x225   : > { %v2097_v62 = vmul.f32 %v1969_v45, %v4598_v2  ;;  %v1970_v34 = vmul.f32 0.5, %v1842_v24  ;;  %v1461_v32 = vadd.f32 %v1333_v3, %v4669_v5  ;;  %v4695_v44 = vadd.f32 %v4944_v13, %v3399_v54 }
 0x226   : > { %2519 = vst [vmem:[%s3548_s18 + $0xc8] sm:$0xff] %v2821_v56  ;;  %v2034_v52 = vmul.f32 %v1906_v4, %v4604_v33  ;;  %v3170_v14 = vpop.eup %3169  ;;  %3177 = vtanh.f32 %v1525_v17  ;;  %v4702_v7 = vadd.f32 %v4210_v59, %v3401_v55  ;;  %v1142_v57 = vmul.f32 %v1014_v61, %v4679_v53  ;;  %v4947_v59 = vld [vmem:[#allocation13_spill] sm:$0xff] }
 0x227   : > { %v2853_v60 = vpack.c.bf16 %v2097_v62, %v2096_v16  ;;  %v4698_v2 = vmul.f32 %v1970_v34, %v4610_v58  ;;  %v1779_v33 = vadd.f32 1.0, %v3170_v14  ;;  %v1589_v50 = vmul.f32 0.7978846, %v1461_v32 }
 0x228   : > { %v1078_v63 = vmul.f32 %v4695_v44, %v4695_v44  ;;  %v1015_v1 = vmul.f32 %v4702_v7, %v4702_v7  ;;  %v4712_v58 = vadd.f32 %v4945_v10, %v3401_v55  ;;  %v4716_v43 = vadd.f32 %v4946_v12, %v3399_v54 }
 0x229   : > { %2551 = vst [vmem:[%s3548_s18 + $0x1c8] sm:$0xff] %v2853_v60  ;;  %v4720_v31 = vadd.f32 %v4947_v59, %v3399_v54  ;;  %v1907_v9 = vmul.f32 0.5, %v1779_v33  ;;  %3179 = vtanh.f32 %v1589_v50  ;;  %v1270_v38 = vmul.f32 0.044715, %v1142_v57 }
 0x22a   : > { %v1206_v39 = vmul.f32 %v1078_v63, %v4695_v44  ;;  %v1143_v41 = vmul.f32 %v1015_v1, %v4702_v7  ;;  %v1079_v23 = vmul.f32 %v4712_v58, %v4712_v58  ;;  %v1016_v21 = vmul.f32 %v4716_v43, %v4716_v43 }
 0x22b   : > { %v1080_v25 = vmul.f32 %v4720_v31, %v4720_v31  ;;  %v2035_v47 = vmul.f32 %v1907_v9, %v4616_v18  ;;  %v1398_v20 = vadd.f32 %v1270_v38, %v4679_v53  ;;  %v4734_v49 = vadd.f32 %v4948_v26, %v3401_v55 }
 0x22c   : > { %v1334_v29 = vmul.f32 0.044715, %v1206_v39  ;;  %v3172_v16 = vpop.eup %3171  ;;  %v1271_v40 = vmul.f32 0.044715, %v1143_v41  ;;  %v1207_v51 = vmul.f32 %v1079_v23, %v4712_v58  ;;  %v1144_v0 = vmul.f32 %v1016_v21, %v4716_v43  ;;  %v4949_v39 = vld [vmem:[#allocation15_spill] sm:$0xff] }
 0x22d   : > { %v1208_v48 = vmul.f32 %v1080_v25, %v4720_v31  ;;  %v3174_v37 = vpop.eup %3173  ;;  %v2822_v28 = vpack.c.bf16 %v2035_v47, %v2034_v52  ;;  %v1843_v35 = vadd.f32 1.0, %v3172_v16  ;;  %v1526_v18 = vmul.f32 0.7978846, %v1398_v20 }
 0x22e   : > { %v1462_v30 = vadd.f32 %v1334_v29, %v4695_v44  ;;  %v3176_v45 = vpop.eup %3175  ;;  %v1780_v24 = vadd.f32 1.0, %v3174_v37  ;;  %v1399_v15 = vadd.f32 %v1271_v40, %v4702_v7  ;;  %v1335_v56 = vmul.f32 0.044715, %v1207_v51 }
 0x22f   : > { %v1272_v4 = vmul.f32 0.044715, %v1144_v0  ;;  %2520 = vst [vmem:[%s3548_s18 + $0xd0] sm:$0xff] %v2822_v28  ;;  %v1971_v3 = vmul.f32 0.5, %v1843_v35  ;;  %v1844_v62 = vadd.f32 1.0, %v3176_v45  ;;  %3181 = vtanh.f32 %v1526_v18 }
 0x230   : > { %v1590_v34 = vmul.f32 0.7978846, %v1462_v30  ;;  %v3178_v17 = vpop.eup %3177  ;;  %v1908_v32 = vmul.f32 0.5, %v1780_v24  ;;  %v1527_v61 = vmul.f32 0.7978846, %v1399_v15  ;;  %v1463_v52 = vadd.f32 %v1335_v56, %v4712_v58 }
 0x231   : > { %v1400_v13 = vadd.f32 %v1272_v4, %v4716_v43  ;;  %v2099_v14 = vmul.f32 %v1971_v3, %v4638_v19  ;;  %v1972_v60 = vmul.f32 0.5, %v1844_v62  ;;  %v1781_v33 = vadd.f32 1.0, %v3178_v17 }
 0x232   : > { %3183 = vtanh.f32 %v1590_v34  ;;  %v2036_v50 = vmul.f32 %v1908_v32, %v4642_v11  ;;  %v1591_v57 = vmul.f32 0.7978846, %v1463_v52  ;;  %v1336_v9 = vmul.f32 0.044715, %v1208_v48 }
 0x233   : > { %3185 = vtanh.f32 %v1527_v61  ;;  %v1528_v63 = vmul.f32 0.7978846, %v1400_v13  ;;  %v3180_v1 = vpop.eup %3179  ;;  %v2854_v10 = vpack.c.bf16 %v2099_v14, %v4698_v2  ;;  %v2100_v12 = vmul.f32 %v1972_v60, %v4647_v36 }
 0x234   : > { %v1909_v59 = vmul.f32 0.5, %v1781_v33  ;;  %v1845_v38 = vadd.f32 1.0, %v3180_v1  ;;  %3187 = vtanh.f32 %v1591_v57  ;;  %v1017_v19 = vmul.f32 %v4734_v49, %v4734_v49 }
 0x235   : > { %v4752_v41 = vadd.f32 %v4949_v39, %v3401_v55  ;;  %2552 = vst [vmem:[%s3548_s18 + $0x1d0] sm:$0xff] %v2854_v10  ;;  %3189 = vtanh.f32 %v1528_v63  ;;  %v1464_v2 = vadd.f32 %v1336_v9, %v4720_v31  ;;  %v4759_v36 = vadd.f32 %v4289_v6, %v3399_v54 }
 0x236   : > { %v2037_v11 = vmul.f32 %v1909_v59, %v4659_v22  ;;  %v1973_v23 = vmul.f32 0.5, %v1845_v38  ;;  %v1145_v21 = vmul.f32 %v1017_v19, %v4734_v49  ;;  %v4766_v47 = vadd.f32 %v4291_v27, %v3399_v54 }
 0x237   : > { %v1081_v25 = vmul.f32 %v4752_v41, %v4752_v41  ;;  %v1592_v22 = vmul.f32 0.7978846, %v1464_v2  ;;  %v1018_v29 = vmul.f32 %v4759_v36, %v4759_v36  ;;  %v4772_v26 = vadd.f32 %v4295_v42, %v3401_v55 }
 0x238   : > { %v2823_v20 = vpack.c.bf16 %v2037_v11, %v2036_v50  ;;  %v2101_v6 = vmul.f32 %v1973_v23, %v4669_v5  ;;  %v1273_v16 = vmul.f32 0.044715, %v1145_v21  ;;  %v1082_v51 = vmul.f32 %v4766_v47, %v4766_v47 }
 0x239   : > { %v1209_v40 = vmul.f32 %v1081_v25, %v4752_v41  ;;  %v3182_v0 = vpop.eup %3181  ;;  %3191 = vtanh.f32 %v1592_v22  ;;  %v1146_v27 = vmul.f32 %v1018_v29, %v4759_v36  ;;  %v1019_v48 = vmul.f32 %v4772_v26, %v4772_v26 }
 0x23a   : > { %2521 = vst [vmem:[%s3548_s18 + $0xd8] sm:$0xff] %v2823_v20  ;;  %v4784_v42 = vadd.f32 %v4297_v8, %v3401_v55  ;;  %v2855_v5 = vpack.c.bf16 %v2101_v6, %v2100_v12  ;;  %v1782_v37 = vadd.f32 1.0, %v3182_v0  ;;  %v1401_v28 = vadd.f32 %v1273_v16, %v4734_v49  ;;  %v4951_v6 = vld [vmem:[#allocation17_spill] sm:$0xff] }
 0x23b   : > { %v1337_v35 = vmul.f32 0.044715, %v1209_v40  ;;  %v1274_v30 = vmul.f32 0.044715, %v1146_v27  ;;  %v1210_v45 = vmul.f32 %v1082_v51, %v4766_v47  ;;  %v1147_v24 = vmul.f32 %v1019_v48, %v4772_v26 }
 0x23c   : > { %v3184_v18 = vpop.eup %3183  ;;  %v1083_v15 = vmul.f32 %v4784_v42, %v4784_v42  ;;  %2553 = vst [vmem:[%s3548_s18 + $0x1d8] sm:$0xff] %v2855_v5  ;;  %v1910_v4 = vmul.f32 0.5, %v1782_v37  ;;  %v1529_v8 = vmul.f32 0.7978846, %v1401_v28  ;;  %v4802_v11 = vadd.f32 %v4325_v46, %v3399_v54 }
 0x23d   : > { %v3186_v56 = vpop.eup %3185  ;;  %v1846_v3 = vadd.f32 1.0, %v3184_v18  ;;  %v1465_v62 = vadd.f32 %v1337_v35, %v4752_v41  ;;  %v1402_v17 = vadd.f32 %v1274_v30, %v4759_v36  ;;  %v1338_v32 = vmul.f32 0.044715, %v1210_v45 }
 0x23e   : > { %v1783_v34 = vadd.f32 1.0, %v3186_v56  ;;  %v1275_v61 = vmul.f32 0.044715, %v1147_v24  ;;  %v3188_v52 = vpop.eup %3187  ;;  %v2038_v13 = vmul.f32 %v1910_v4, %v4679_v53  ;;  %3193 = vtanh.f32 %v1529_v8 }
 0x23f   : > { %v1974_v14 = vmul.f32 0.5, %v1846_v3  ;;  %v1593_v60 = vmul.f32 0.7978846, %v1465_v62  ;;  %v3190_v33 = vpop.eup %3189  ;;  %v1847_v57 = vadd.f32 1.0, %v3188_v52  ;;  %v1530_v63 = vmul.f32 0.7978846, %v1402_v17 }
 0x240   : > { %v1911_v50 = vmul.f32 0.5, %v1783_v34  ;;  %v1466_v1 = vadd.f32 %v1338_v32, %v4766_v47  ;;  %v1403_v12 = vadd.f32 %v1275_v61, %v4772_v26  ;;  %v1784_v38 = vadd.f32 1.0, %v3190_v33 }
 0x241   : > { %v2102_v10 = vmul.f32 %v1974_v14, %v4695_v44  ;;  %3195 = vtanh.f32 %v1593_v60  ;;  %v1975_v9 = vmul.f32 0.5, %v1847_v57  ;;  %v1211_v39 = vmul.f32 %v1083_v15, %v4784_v42 }
 0x242   : > { %v2039_v59 = vmul.f32 %v1911_v50, %v4702_v7  ;;  %3197 = vtanh.f32 %v1530_v63  ;;  %v1594_v53 = vmul.f32 0.7978846, %v1466_v1  ;;  %v1531_v19 = vmul.f32 0.7978846, %v1403_v12  ;;  %v4950_v7 = vld [vmem:[#allocation16_spill] sm:$0xff] }
 0x243   : > { %v3192_v2 = vpop.eup %3191  ;;  %v2103_v23 = vmul.f32 %v1975_v9, %v4712_v58  ;;  %v4807_v21 = vadd.f32 %v4950_v7, %v3399_v54  ;;  %v1339_v20 = vmul.f32 0.044715, %v1211_v39  ;;  %v1020_v29 = vmul.f32 %v4802_v11, %v4802_v11  ;;  %v4952_v54 = vld [vmem:[#allocation18_spill] sm:$0xff] }
 0x244   : > { %v2824_v44 = vpack.c.bf16 %v2039_v59, %v2038_v13  ;;  %3199 = vtanh.f32 %v1594_v53  ;;  %v1848_v25 = vadd.f32 1.0, %v3192_v2  ;;  %v4816_v16 = vadd.f32 %v4951_v6, %v3401_v55 }
 0x245   : > { %3201 = vtanh.f32 %v1531_v19  ;;  %v2856_v22 = vpack.c.bf16 %v2103_v23, %v2102_v10  ;;  %v1084_v46 = vmul.f32 %v4807_v21, %v4807_v21  ;;  %v1912_v58 = vmul.f32 0.5, %v1784_v38 }
 0x246   : > { %2522 = vst [vmem:[%s3548_s18 + $0xe0] sm:$0xff] %v2824_v44  ;;  %v1467_v40 = vadd.f32 %v1339_v20, %v4784_v42  ;;  %v4821_v51 = vadd.f32 %v4952_v54, %v3401_v55  ;;  %v1148_v0 = vmul.f32 %v1020_v29, %v4802_v11  ;;  %v1021_v48 = vmul.f32 %v4816_v16, %v4816_v16 }
 0x247   : > { %2554 = vst [vmem:[%s3548_s18 + $0x1e0] sm:$0xff] %v2856_v22  ;;  %v1212_v27 = vmul.f32 %v1084_v46, %v4807_v21  ;;  %v1976_v37 = vmul.f32 0.5, %v1848_v25  ;;  %v2040_v15 = vmul.f32 %v1912_v58, %v4716_v43 }
 0x248   : > { %v3194_v5 = vpop.eup %3193  ;;  %v1595_v28 = vmul.f32 0.7978846, %v1467_v40  ;;  %v1085_v35 = vmul.f32 %v4821_v51, %v4821_v51  ;;  %v1276_v30 = vmul.f32 0.044715, %v1148_v0  ;;  %v1149_v55 = vmul.f32 %v1021_v48, %v4816_v16 }
 0x249   : > { %v1785_v18 = vadd.f32 1.0, %v3194_v5  ;;  %v1340_v45 = vmul.f32 0.044715, %v1212_v27  ;;  %v2104_v17 = vmul.f32 %v1976_v37, %v4720_v31 }
 0x24a   : > { %3203 = vtanh.f32 %v1595_v28  ;;  %v1213_v56 = vmul.f32 %v1085_v35, %v4821_v51  ;;  %v1404_v62 = vadd.f32 %v1276_v30, %v4802_v11  ;;  %v1277_v61 = vmul.f32 0.044715, %v1149_v55 }
 0x24b   : > { %v3196_v24 = vpop.eup %3195  ;;  %v1913_v3 = vmul.f32 0.5, %v1785_v18  ;;  %v1468_v34 = vadd.f32 %v1340_v45, %v4807_v21 }
 0x24c   : > { %v3198_v4 = vpop.eup %3197  ;;  %v1849_v8 = vadd.f32 1.0, %v3196_v24  ;;  %v1341_v52 = vmul.f32 0.044715, %v1213_v56  ;;  %v1532_v60 = vmul.f32 0.7978846, %v1404_v62  ;;  %v1405_v1 = vadd.f32 %v1277_v61, %v4816_v16 }
 0x24d   : > { %v1786_v32 = vadd.f32 1.0, %v3198_v4  ;;  %v2041_v14 = vmul.f32 %v1913_v3, %v4734_v49  ;;  %v1596_v33 = vmul.f32 0.7978846, %v1468_v34 }
 0x24e   : > { %v3200_v13 = vpop.eup %3199  ;;  %v1977_v43 = vmul.f32 0.5, %v1849_v8  ;;  %v1469_v10 = vadd.f32 %v1341_v52, %v4821_v51  ;;  %3205 = vtanh.f32 %v1532_v60  ;;  %v1533_v9 = vmul.f32 0.7978846, %v1405_v1 }
 0x24f   : > { %v3202_v50 = vpop.eup %3201  ;;  %v1914_v57 = vmul.f32 0.5, %v1786_v32  ;;  %v1850_v63 = vadd.f32 1.0, %v3200_v13  ;;  %v2825_v12 = vpack.c.bf16 %v2041_v14, %v2040_v15  ;;  %3207 = vtanh.f32 %v1596_v33 }
 0x250   : > { %v2105_v31 = vmul.f32 %v1977_v43, %v4752_v41  ;;  %v1787_v59 = vadd.f32 1.0, %v3202_v50  ;;  %v1597_v19 = vmul.f32 0.7978846, %v1469_v10  ;;  %3209 = vtanh.f32 %v1533_v9 }
 0x251   : > { %2523 = vst [vmem:[%s3548_s18 + $0xe8] sm:$0xff] %v2825_v12  ;;  %v2042_v53 = vmul.f32 %v1914_v57, %v4759_v36  ;;  %v1978_v39 = vmul.f32 0.5, %v1850_v63 }
 0x252   : > { %v2857_v49 = vpack.c.bf16 %v2105_v31, %v2104_v17  ;;  %v1915_v38 = vmul.f32 0.5, %v1787_v59  ;;  %3211 = vtanh.f32 %v1597_v19 }
 0x253   : > { %v2106_v7 = vmul.f32 %v1978_v39, %v4766_v47 }
 0x254   : > { %2555 = vst [vmem:[%s3548_s18 + $0x1e8] sm:$0xff] %v2857_v49  ;;  %v2043_v2 = vmul.f32 %v1915_v38, %v4772_v26  ;;  %v3204_v44 = vpop.eup %3203 }
 0x255   : > { %v1851_v23 = vadd.f32 1.0, %v3204_v44 }
 0x256   : > { %v2826_v41 = vpack.c.bf16 %v2043_v2, %v2042_v53 }
 0x257   : > { %v1979_v25 = vmul.f32 0.5, %v1851_v23 }
 0x258   : > { %2524 = vst [vmem:[%s3548_s18 + $0xf0] sm:$0xff] %v2826_v41  ;;  %v3206_v20 = vpop.eup %3205 }
 0x259   : > { %v2107_v22 = vmul.f32 %v1979_v25, %v4784_v42  ;;  %v3208_v36 = vpop.eup %3207  ;;  %v1788_v29 = vadd.f32 1.0, %v3206_v20 }
 0x25a   : > { %v1852_v6 = vadd.f32 1.0, %v3208_v36  ;;  %v3210_v58 = vpop.eup %3209 }
 0x25b   : > { %v2858_v46 = vpack.c.bf16 %v2107_v22, %v2106_v7  ;;  %v1916_v26 = vmul.f32 0.5, %v1788_v29  ;;  %v1789_v0 = vadd.f32 1.0, %v3210_v58 }
 0x25c   : > { %v3212_v40 = vpop.eup %3211  ;;  %v1980_v54 = vmul.f32 0.5, %v1852_v6 }
 0x25d   : > { %2556 = vst [vmem:[%s3548_s18 + $0x1f0] sm:$0xff] %v2858_v46  ;;  %v1853_v27 = vadd.f32 1.0, %v3212_v40  ;;  %v2044_v47 = vmul.f32 %v1916_v26, %v4802_v11  ;;  %v1917_v48 = vmul.f32 0.5, %v1789_v0 }
 0x25e   : > { %v2108_v5 = vmul.f32 %v1980_v54, %v4807_v21 }
 0x25f   : > { %v1981_v37 = vmul.f32 0.5, %v1853_v27  ;;  %v2045_v42 = vmul.f32 %v1917_v48, %v4816_v16 }
 0x261   : > { %v2109_v28 = vmul.f32 %v1981_v37, %v4821_v51  ;;  %v2827_v35 = vpack.c.bf16 %v2045_v42, %v2044_v47 }
 0x263   : > { %v2859_v18 = vpack.c.bf16 %v2109_v28, %v2108_v5  ;;  %2525 = vst [vmem:[%s3548_s18 + $0xf8] sm:$0xff] %v2827_v35 }
 0x265   : > { %2557 = vst [vmem:[%s3548_s18 + $0x1f8] sm:$0xff] %v2859_v18 }
 0x266 PF: > { %s13_s14 = sadd.s32 1, %s3235_s14   ;;  %s4953_s12 = smov %s3231_s13 }
 0x267   : > { %p10_p5 = scmp.ge.s32.totalorder %s13_s14, 4   ;;  %s4954_s13 = smov %s4956_s15 }
 0x269   :  { %12 = sbr.rel (!%p10_p5) target bundleno = 2 (0x2), region = 68 }

</bundles_post_ra>
